<compile_context>
chip_gen: v7x
topology: tpu7x:2x2x1
jax: 0.10.0
libtpu: 0.0.40
codegen_flags: <defaults>
</compile_context>

<pallas_src>
import jax
import jax.numpy as jnp
from jax import lax
from jax.experimental import pallas as pl
from jax.experimental.pallas import tpu as pltpu

# union of (block_offset, parity) row/col taps needed by the 4 output parities of the 3x3 conv
_UT = ((-1, 1), (0, 0), (0, 1), (1, 0))


def _upsample_fused_kernel(x_ref, wt_ref, bt_ref, wcf_ref, bc_ref, o_ref, yp_ref):
    """One row-tile of: y = ConvTranspose2d(x) ; z = Conv2d(y).

    x_ref  : (1, H+4, W+4, Cin)  f32, zero-padded input (full image, NHWC)
    wt_ref : (9*Cin, 4*Cout)     bf16 fused polyphase transposed-conv weights
    bt_ref : (1, 4*Cout)         f32  transposed-conv bias (tiled over parities)
    wcf_ref: (16*Cout, 4*Cout)   bf16 fused parity-space 3x3 conv weights
    bc_ref : (1, 4*Cout)         f32  3x3 conv bias (tiled over parities)
    o_ref  : (1, TH, W, 4*Cout)  f32  output parity planes: lane index = (qy*2+qx)*C + c
    yp_ref : (TH+2, W+2, 4*Cout) f32  VMEM scratch: stage-1 parity planes (+/-1 block halo)
    """
    _, TH, W, _ = o_ref.shape
    C = bc_ref.shape[1] // 4
    H = x_ref.shape[1] - 4

    t = pl.program_id(1)
    r0 = pl.multiple_of(t * TH, TH)          # first input row of this tile (padded coords)

    # ---- stage 1: ConvTranspose2d(k=5,s=2,p=2,op=1) via polyphase, one fused matmul ----
    # y[2i+py, 2j+px, co] = sum_{dh,dw,ci} x[i-1+dh, j-1+dw, ci] * Wt[(dh,dw,ci),(py,px,co)]
    taps = []
    for dh in range(3):
        for dw in range(3):
            taps.append(x_ref[0, pl.ds(r0 + dh, TH + 2), pl.ds(dw, W + 2), :])
    patch1 = jnp.concatenate(taps, axis=-1).astype(jnp.bfloat16)      # (TH+2, W+2, 9*Cin)
    yp = lax.dot_general(patch1, wt_ref[...],
                         dimension_numbers=(((2,), (0,)), ((), ())),
                         preferred_element_type=jnp.float32)          # (TH+2, W+2, 4*C)
    yp = yp + bt_ref[...]
    # Halo blocks outside the true y support must be zero (the 3x3 conv sees zero padding there).
    bi = (r0 - 1) + lax.broadcasted_iota(jnp.int32, (TH + 2, W + 2, 1), 0)
    bj = -1 + lax.broadcasted_iota(jnp.int32, (TH + 2, W + 2, 1), 1)
    valid = (bi >= 0) & (bi < H) & (bj >= 0) & (bj < W)
    yp_ref[...] = jnp.where(valid, yp, 0.0)

    # ---- stage 2: Conv2d(k=3,s=1,p=1) in parity space, ONE fused matmul for all 4 parities ----
    # z_{qy,qx}[i,j,co] = sum_{r,s,ci} yp[i+di, j+dj, (ps*2+pxs)*C + ci] * Wc[co,ci,r,s]
    # with di,ps = divmod(qy+r-1, 2) ; dj,pxs = divmod(qx+s-1, 2).  The union over parities of the
    # needed (di,ps) x (dj,pxs) positions is _UT x _UT (16 positions); the fused weight matrix
    # carries zeros where a given parity does not use a position.
    taps2 = []
    for (di, ps) in _UT:
        for (dj, pxs) in _UT:
            plane = (ps * 2 + pxs) * C
            taps2.append(yp_ref[pl.ds(1 + di, TH), pl.ds(1 + dj, W), pl.ds(plane, C)])
    patch2 = jnp.concatenate(taps2, axis=-1).astype(jnp.bfloat16)     # (TH, W, 16*C)
    z = lax.dot_general(patch2, wcf_ref[...],
                        dimension_numbers=(((2,), (0,)), ((), ())),
                        preferred_element_type=jnp.float32)           # (TH, W, 4*C)
    o_ref[0] = z + bc_ref[...]


def _polyphase_weight_matrix(w_t):
    """ConvTranspose2d weight (Cin, Cout, 5, 5) -> fused polyphase matrix (9*Cin, 4*Cout).

    row = (dh*3 + dw)*Cin + ci ; col = (py*2 + px)*Cout + co ; tap kh = 4 - 2*dh + py (kw analog).
    """
    Cin, Cout, _, _ = w_t.shape
    rows = []
    for dh in range(3):
        for dw in range(3):
            for ci in range(Cin):
                cols = []
                for py in range(2):
                    for px in range(2):
                        kh = 4 - 2 * dh + py
                        kw = 4 - 2 * dw + px
                        if 0 <= kh < 5 and 0 <= kw < 5:
                            cols.append(w_t[ci, :, kh, kw])
                        else:
                            cols.append(jnp.zeros((Cout,), w_t.dtype))
                rows.append(jnp.concatenate(cols))
    return jnp.stack(rows)                                            # (9*Cin, 4*Cout)


def _fused_parity_conv_matrix(w_c):
    """Conv2d weight (Cout, Cin, 3, 3) -> fused parity-space matrix (16*Cin, 4*Cout).

    row = ((a*4 + b)*Cin + ci) with a,b indexing _UT ; col = (qy*2 + qx)*Cout + co.
    Nonzero iff r = 2*di + ps - qy + 1 and s = 2*dj + pxs - qx + 1 are both in [0, 3).
    """
    Cout, Cin, _, _ = w_c.shape
    rows = []
    for (di, ps) in _UT:
        for (dj, pxs) in _UT:
            for ci in range(Cin):
                cols = []
                for qy in range(2):
                    for qx in range(2):
                        r = 2 * di + ps - qy + 1
                        s = 2 * dj + pxs - qx + 1
                        if 0 <= r < 3 and 0 <= s < 3:
                            cols.append(w_c[:, ci, r, s])
                        else:
                            cols.append(jnp.zeros((Cout,), w_c.dtype))
                rows.append(jnp.concatenate(cols))
    return jnp.stack(rows)                                            # (16*Cin, 4*Cout)


def _pick_tile_h(H, W, C, vmem_budget_bytes=6 << 20):
    """Largest TH dividing H whose per-tile f32 working set fits the budget."""
    best = 1
    for th in range(1, H + 1):
        if H % th:
            continue
        per_tile = 4 * (2 * (H + 4) * (W + 4) * C          # input block (double-buffered)
                        + 2 * th * W * 4 * C                # output block (double-buffered)
                        + (th + 2) * (W + 2) * 4 * C)       # stage-1 scratch
        if per_tile <= vmem_budget_bytes:
            best = th
    return best


def upsample_forward(x_nchw, w_t, b_t, w_c, b_c, temb=None, cemb=None):
    """Forward pass of UpSample. temb / cemb are accepted but unused (as in PyTorch)."""
    N, C, H, W = x_nchw.shape
    TH = _pick_tile_h(H, W, C)

    # single boundary layout change: NCHW -> NHWC (channels minor), plus 2-px zero halo
    x = jnp.transpose(x_nchw, (0, 2, 3, 1))
    x_pad = jnp.pad(x, ((0, 0), (2, 2), (2, 2), (0, 0)))

    # fused, bf16 weight matrices prepared once outside the kernel
    wt_mat = _polyphase_weight_matrix(w_t).astype(jnp.bfloat16)        # (9*C, 4*C)
    bt_vec = jnp.tile(b_t, 4).reshape(1, 4 * C).astype(jnp.float32)
    wcf_mat = _fused_parity_conv_matrix(w_c).astype(jnp.bfloat16)      # (16*C, 4*C)
    bc_vec = jnp.tile(b_c, 4).reshape(1, 4 * C).astype(jnp.float32)

    out = pl.pallas_call(
        _upsample_fused_kernel,
        out_shape=jax.ShapeDtypeStruct((N, H, W, 4 * C), jnp.float32),
        grid=(N, H // TH),
        in_specs=[
            pl.BlockSpec((1, H + 4, W + 4, C), lambda n, t: (n, 0, 0, 0)),
            pl.BlockSpec((9 * C, 4 * C), lambda n, t: (0, 0)),
            pl.BlockSpec((1, 4 * C), lambda n, t: (0, 0)),
            pl.BlockSpec((16 * C, 4 * C), lambda n, t: (0, 0)),
            pl.BlockSpec((1, 4 * C), lambda n, t: (0, 0)),
        ],
        out_specs=pl.BlockSpec((1, TH, W, 4 * C), lambda n, t: (n, t, 0, 0)),
        scratch_shapes=[pltpu.VMEM((TH + 2, W + 2, 4 * C), jnp.float32)],
        compiler_params=pltpu.CompilerParams(
            dimension_semantics=("parallel", "parallel")),
    )(x_pad, wt_mat, bt_vec, wcf_mat, bc_vec)

    # sub-pixel interleave + NHWC->NCHW folded into one transpose
    out = out.reshape(N, H, W, 2, 2, C)
    out = jnp.transpose(out, (0, 5, 1, 3, 2, 4)).reshape(N, C, 2 * H, 2 * W)
    return out


def _reference_forward(x, w_t, b_t, w_c, b_c):
    """Pure-JAX (lax.conv_general_dilated, f32 HIGHEST) reference."""
    w_t_oihw = jnp.transpose(w_t[:, :, ::-1, ::-1], (1, 0, 2, 3))
    y = lax.conv_general_dilated(
        x, w_t_oihw, window_strides=(1, 1), padding=((2, 3), (2, 3)),
        lhs_dilation=(2, 2), dimension_numbers=('NCHW', 'OIHW', 'NCHW'),
        precision=lax.Precision.HIGHEST) + b_t[None, :, None, None]
    z = lax.conv_general_dilated(
        y, w_c, window_strides=(1, 1), padding=((1, 1), (1, 1)),
        dimension_numbers=('NCHW', 'OIHW', 'NCHW'),
        precision=lax.Precision.HIGHEST) + b_c[None, :, None, None]
    return z


if __name__ == "__main__":
    key = jax.random.PRNGKey(0)
    k1, k2, k3, k4, k5, k6, k7 = jax.random.split(key, 7)

    in_ch = 4
    N, H, W = 2, 16, 16

    # shapes follow nn.ConvTranspose2d (Cin, Cout, kH, kW) / nn.Conv2d (Cout, Cin, kH, kW)
    w_t = jax.random.normal(k1, (in_ch, in_ch, 5, 5), jnp.float32) * 0.1
    b_t = jax.random.normal(k2, (in_ch,), jnp.float32) * 0.1
    w_c = jax.random.normal(k3, (in_ch, in_ch, 3, 3), jnp.float32) * 0.1
    b_c = jax.random.normal(k4, (in_ch,), jnp.float32) * 0.1

    x = jax.random.normal(k5, (N, in_ch, H, W), jnp.float32)              # NCHW, like PyTorch
    temb = jax.random.normal(k6, (N, 32), jnp.float32)                    # unused by forward
    cemb = jax.random.normal(k7, (N, 32), jnp.float32)                    # unused by forward

    fwd = jax.jit(upsample_forward)
    out = jax.block_until_ready(fwd(x, w_t, b_t, w_c, b_c, temb, cemb))
    assert out.shape == (N, in_ch, 2 * H, 2 * W), out.shape

    ref = jax.block_until_ready(_reference_forward(x, w_t, b_t, w_c, b_c))
    max_err = float(jnp.max(jnp.abs(out - ref)))
    rel_err = float(jnp.linalg.norm(out - ref) / (jnp.linalg.norm(ref) + 1e-12))
    # bf16 MXU operands vs. an f32 HIGHEST reference -> loosened tolerance.
    assert max_err < 6e-2 and rel_err < 2e-2, (max_err, rel_err)

    print("KERNEL_OK")
</pallas_src>

<mosaic_0001>
module attributes {stable_mosaic.version = 11 : i64} {
  func.func @_upsample_fused_kernel(%arg0: i32, %arg1: i32, %arg2: memref<1x20x20x4xf32, #tpu.memory_space<vmem>>, %arg3: memref<36x16xbf16, #tpu.memory_space<vmem>>, %arg4: memref<1x16xf32, #tpu.memory_space<vmem>>, %arg5: memref<64x16xbf16, #tpu.memory_space<vmem>>, %arg6: memref<1x16xf32, #tpu.memory_space<vmem>>, %arg7: memref<1x16x16x16xf32, #tpu.memory_space<vmem>>, %arg8: memref<18x18x16xf32, #tpu.memory_space<vmem>>) attributes {dimension_semantics = [#tpu.dimension_semantics<parallel>, #tpu.dimension_semantics<parallel>], iteration_bounds = array<i64: 2, 1>, scalar_prefetch = 0 : i64, scratch_operands = 1 : i64, tpu.core_type = #tpu.core_type<tc>, window_params = [{transform_indices = @transform_0, window_bounds = array<i64: 1, 20, 20, 4>}, {pipeline_mode = #tpu.pipeline_mode<synchronous>, transform_indices = @transform_1, window_bounds = array<i64: 36, 16>}, {pipeline_mode = #tpu.pipeline_mode<synchronous>, transform_indices = @transform_2, window_bounds = array<i64: 1, 16>}, {pipeline_mode = #tpu.pipeline_mode<synchronous>, transform_indices = @transform_3, window_bounds = array<i64: 64, 16>}, {pipeline_mode = #tpu.pipeline_mode<synchronous>, transform_indices = @transform_4, window_bounds = array<i64: 1, 16>}, {transform_indices = @transform_5, window_bounds = array<i64: 1, 16, 16, 16>}]} {
    %c16_i32 = arith.constant 16 : i32
    %0 = arith.muli %arg1, %c16_i32 : i32
    %1 = tpu.assume_multiple %0, 16 : i32
    %c0_i32 = arith.constant 0 : i32
    %2 = arith.addi %1, %c0_i32 : i32
    %c0 = arith.constant 0 : index
    %3 = arith.index_cast %2 : i32 to index
    %c0_0 = arith.constant 0 : index
    %c0_1 = arith.constant 0 : index
    %4 = vector.load %arg2[%c0, %3, %c0_0, %c0_1] : memref<1x20x20x4xf32, #tpu.memory_space<vmem>>, vector<1x18x18x4xf32>
    %5 = vector.shape_cast %4 : vector<1x18x18x4xf32> to vector<18x18x4xf32>
    %c0_i32_2 = arith.constant 0 : i32
    %6 = arith.addi %1, %c0_i32_2 : i32
    %c0_3 = arith.constant 0 : index
    %7 = arith.index_cast %6 : i32 to index
    %c1 = arith.constant 1 : index
    %c0_4 = arith.constant 0 : index
    %8 = vector.load %arg2[%c0_3, %7, %c1, %c0_4] : memref<1x20x20x4xf32, #tpu.memory_space<vmem>>, vector<1x18x18x4xf32>
    %9 = vector.shape_cast %8 : vector<1x18x18x4xf32> to vector<18x18x4xf32>
    %c0_i32_5 = arith.constant 0 : i32
    %10 = arith.addi %1, %c0_i32_5 : i32
    %c0_6 = arith.constant 0 : index
    %11 = arith.index_cast %10 : i32 to index
    %c2 = arith.constant 2 : index
    %c0_7 = arith.constant 0 : index
    %12 = vector.load %arg2[%c0_6, %11, %c2, %c0_7] : memref<1x20x20x4xf32, #tpu.memory_space<vmem>>, vector<1x18x18x4xf32>
    %13 = vector.shape_cast %12 : vector<1x18x18x4xf32> to vector<18x18x4xf32>
    %c1_i32 = arith.constant 1 : i32
    %14 = arith.addi %1, %c1_i32 : i32
    %c0_8 = arith.constant 0 : index
    %15 = arith.index_cast %14 : i32 to index
    %c0_9 = arith.constant 0 : index
    %c0_10 = arith.constant 0 : index
    %16 = vector.load %arg2[%c0_8, %15, %c0_9, %c0_10] : memref<1x20x20x4xf32, #tpu.memory_space<vmem>>, vector<1x18x18x4xf32>
    %17 = vector.shape_cast %16 : vector<1x18x18x4xf32> to vector<18x18x4xf32>
    %c1_i32_11 = arith.constant 1 : i32
    %18 = arith.addi %1, %c1_i32_11 : i32
    %c0_12 = arith.constant 0 : index
    %19 = arith.index_cast %18 : i32 to index
    %c1_13 = arith.constant 1 : index
    %c0_14 = arith.constant 0 : index
    %20 = vector.load %arg2[%c0_12, %19, %c1_13, %c0_14] : memref<1x20x20x4xf32, #tpu.memory_space<vmem>>, vector<1x18x18x4xf32>
    %21 = vector.shape_cast %20 : vector<1x18x18x4xf32> to vector<18x18x4xf32>
    %c1_i32_15 = arith.constant 1 : i32
    %22 = arith.addi %1, %c1_i32_15 : i32
    %c0_16 = arith.constant 0 : index
    %23 = arith.index_cast %22 : i32 to index
    %c2_17 = arith.constant 2 : index
    %c0_18 = arith.constant 0 : index
    %24 = vector.load %arg2[%c0_16, %23, %c2_17, %c0_18] : memref<1x20x20x4xf32, #tpu.memory_space<vmem>>, vector<1x18x18x4xf32>
    %25 = vector.shape_cast %24 : vector<1x18x18x4xf32> to vector<18x18x4xf32>
    %c2_i32 = arith.constant 2 : i32
    %26 = arith.addi %1, %c2_i32 : i32
    %c0_19 = arith.constant 0 : index
    %27 = arith.index_cast %26 : i32 to index
    %c0_20 = arith.constant 0 : index
    %c0_21 = arith.constant 0 : index
    %28 = vector.load %arg2[%c0_19, %27, %c0_20, %c0_21] : memref<1x20x20x4xf32, #tpu.memory_space<vmem>>, vector<1x18x18x4xf32>
    %29 = vector.shape_cast %28 : vector<1x18x18x4xf32> to vector<18x18x4xf32>
    %c2_i32_22 = arith.constant 2 : i32
    %30 = arith.addi %1, %c2_i32_22 : i32
    %c0_23 = arith.constant 0 : index
    %31 = arith.index_cast %30 : i32 to index
    %c1_24 = arith.constant 1 : index
    %c0_25 = arith.constant 0 : index
    %32 = vector.load %arg2[%c0_23, %31, %c1_24, %c0_25] : memref<1x20x20x4xf32, #tpu.memory_space<vmem>>, vector<1x18x18x4xf32>
    %33 = vector.shape_cast %32 : vector<1x18x18x4xf32> to vector<18x18x4xf32>
    %c2_i32_26 = arith.constant 2 : i32
    %34 = arith.addi %1, %c2_i32_26 : i32
    %c0_27 = arith.constant 0 : index
    %35 = arith.index_cast %34 : i32 to index
    %c2_28 = arith.constant 2 : index
    %c0_29 = arith.constant 0 : index
    %36 = vector.load %arg2[%c0_27, %35, %c2_28, %c0_29] : memref<1x20x20x4xf32, #tpu.memory_space<vmem>>, vector<1x18x18x4xf32>
    %37 = vector.shape_cast %36 : vector<1x18x18x4xf32> to vector<18x18x4xf32>
    %38 = tpu.concatenate %5, %9, %13, %17, %21, %25, %29, %33, %37 in 2 : vector<18x18x4xf32>, vector<18x18x4xf32>, vector<18x18x4xf32>, vector<18x18x4xf32>, vector<18x18x4xf32>, vector<18x18x4xf32>, vector<18x18x4xf32>, vector<18x18x4xf32>, vector<18x18x4xf32> -> vector<18x18x36xf32>
    %39 = arith.truncf %38 : vector<18x18x36xf32> to vector<18x18x36xbf16>
    %c0_30 = arith.constant 0 : index
    %c0_31 = arith.constant 0 : index
    %40 = vector.load %arg3[%c0_30, %c0_31] : memref<36x16xbf16, #tpu.memory_space<vmem>>, vector<36x16xbf16>
    %cst = arith.constant dense<0.000000e+00> : vector<18x18x16xf32>
    %41 = tpu.matmul %39, %40, %cst {dimension_numbers = #tpu.dot_dimension_numbers<[2], [0], [0, 1], [1], [0, 0, 0, 1, 1, 1], [], []>} : vector<18x18x36xbf16>, vector<36x16xbf16>, vector<18x18x16xf32> -> vector<18x18x16xf32>
    %c0_32 = arith.constant 0 : index
    %c0_33 = arith.constant 0 : index
    %42 = vector.load %arg4[%c0_32, %c0_33] : memref<1x16xf32, #tpu.memory_space<vmem>>, vector<1x16xf32>
    %43 = vector.shape_cast %42 : vector<1x16xf32> to vector<1x1x16xf32>
    %44 = vector.broadcast %43 : vector<1x1x16xf32> to vector<18x18x16xf32>
    %45 = arith.addf %41, %44 : vector<18x18x16xf32>
    %c1_i32_34 = arith.constant 1 : i32
    %46 = arith.subi %1, %c1_i32_34 : i32
    %47 = tpu.iota {dimensions = array<i32: 0>} : vector<18x18x1xi32>
    %48 = vector.broadcast %46 : i32 to vector<18x18x1xi32>
    %49 = arith.addi %48, %47 : vector<18x18x1xi32>
    %50 = tpu.iota {dimensions = array<i32: 1>} : vector<18x18x1xi32>
    %c-1_i32 = arith.constant -1 : i32
    %51 = vector.broadcast %c-1_i32 : i32 to vector<18x18x1xi32>
    %52 = arith.addi %51, %50 : vector<18x18x1xi32>
    %c0_i32_35 = arith.constant 0 : i32
    %53 = vector.broadcast %c0_i32_35 : i32 to vector<18x18x1xi32>
    %54 = arith.cmpi sge, %49, %53 : vector<18x18x1xi32>
    %c16_i32_36 = arith.constant 16 : i32
    %55 = vector.broadcast %c16_i32_36 : i32 to vector<18x18x1xi32>
    %56 = arith.cmpi slt, %49, %55 : vector<18x18x1xi32>
    %57 = arith.andi %54, %56 : vector<18x18x1xi1>
    %c0_i32_37 = arith.constant 0 : i32
    %58 = vector.broadcast %c0_i32_37 : i32 to vector<18x18x1xi32>
    %59 = arith.cmpi sge, %52, %58 : vector<18x18x1xi32>
    %60 = arith.andi %57, %59 : vector<18x18x1xi1>
    %c16_i32_38 = arith.constant 16 : i32
    %61 = vector.broadcast %c16_i32_38 : i32 to vector<18x18x1xi32>
    %62 = arith.cmpi slt, %52, %61 : vector<18x18x1xi32>
    %63 = arith.andi %60, %62 : vector<18x18x1xi1>
    %cst_39 = arith.constant 0.000000e+00 : f32
    %64 = vector.shape_cast %63 : vector<18x18x1xi1> to vector<18x18x1xi1>
    %65 = vector.broadcast %64 : vector<18x18x1xi1> to vector<18x18x16xi1>
    %66 = vector.broadcast %cst_39 : f32 to vector<18x18x16xf32>
    %67 = arith.select %65, %45, %66 : vector<18x18x16xi1>, vector<18x18x16xf32>
    %c0_40 = arith.constant 0 : index
    %c0_41 = arith.constant 0 : index
    %c0_42 = arith.constant 0 : index
    %68 = vector.load %arg8[%c0_40, %c0_41, %c0_42] : memref<18x18x16xf32, #tpu.memory_space<vmem>>, vector<18x18x16xf32>
    tpu.vector_store %arg8[%c0_40, %c0_41, %c0_42], %67 {strides = array<i32>} : memref<18x18x16xf32, #tpu.memory_space<vmem>>, vector<18x18x16xf32>,
    %c0_43 = arith.constant 0 : index
    %c0_44 = arith.constant 0 : index
    %c12 = arith.constant 12 : index
    %69 = vector.load %arg8[%c0_43, %c0_44, %c12] : memref<18x18x16xf32, #tpu.memory_space<vmem>>, vector<16x16x4xf32>
    %c0_45 = arith.constant 0 : index
    %c1_46 = arith.constant 1 : index
    %c8 = arith.constant 8 : index
    %70 = vector.load %arg8[%c0_45, %c1_46, %c8] : memref<18x18x16xf32, #tpu.memory_space<vmem>>, vector<16x16x4xf32>
    %c0_47 = arith.constant 0 : index
    %c1_48 = arith.constant 1 : index
    %c12_49 = arith.constant 12 : index
    %71 = vector.load %arg8[%c0_47, %c1_48, %c12_49] : memref<18x18x16xf32, #tpu.memory_space<vmem>>, vector<16x16x4xf32>
    %c0_50 = arith.constant 0 : index
    %c2_51 = arith.constant 2 : index
    %c8_52 = arith.constant 8 : index
    %72 = vector.load %arg8[%c0_50, %c2_51, %c8_52] : memref<18x18x16xf32, #tpu.memory_space<vmem>>, vector<16x16x4xf32>
    %c1_53 = arith.constant 1 : index
    %c0_54 = arith.constant 0 : index
    %c4 = arith.constant 4 : index
    %73 = vector.load %arg8[%c1_53, %c0_54, %c4] : memref<18x18x16xf32, #tpu.memory_space<vmem>>, vector<16x16x4xf32>
    %c1_55 = arith.constant 1 : index
    %c1_56 = arith.constant 1 : index
    %c0_57 = arith.constant 0 : index
    %74 = vector.load %arg8[%c1_55, %c1_56, %c0_57] : memref<18x18x16xf32, #tpu.memory_space<vmem>>, vector<16x16x4xf32>
    %c1_58 = arith.constant 1 : index
    %c1_59 = arith.constant 1 : index
    %c4_60 = arith.constant 4 : index
    %75 = vector.load %arg8[%c1_58, %c1_59, %c4_60] : memref<18x18x16xf32, #tpu.memory_space<vmem>>, vector<16x16x4xf32>
    %c1_61 = arith.constant 1 : index
    %c2_62 = arith.constant 2 : index
    %c0_63 = arith.constant 0 : index
    %76 = vector.load %arg8[%c1_61, %c2_62, %c0_63] : memref<18x18x16xf32, #tpu.memory_space<vmem>>, vector<16x16x4xf32>
    %c1_64 = arith.constant 1 : index
    %c0_65 = arith.constant 0 : index
    %c12_66 = arith.constant 12 : index
    %77 = vector.load %arg8[%c1_64, %c0_65, %c12_66] : memref<18x18x16xf32, #tpu.memory_space<vmem>>, vector<16x16x4xf32>
    %c1_67 = arith.constant 1 : index
    %c1_68 = arith.constant 1 : index
    %c8_69 = arith.constant 8 : index
    %78 = vector.load %arg8[%c1_67, %c1_68, %c8_69] : memref<18x18x16xf32, #tpu.memory_space<vmem>>, vector<16x16x4xf32>
    %c1_70 = arith.constant 1 : index
    %c1_71 = arith.constant 1 : index
    %c12_72 = arith.constant 12 : index
    %79 = vector.load %arg8[%c1_70, %c1_71, %c12_72] : memref<18x18x16xf32, #tpu.memory_space<vmem>>, vector<16x16x4xf32>
    %c1_73 = arith.constant 1 : index
    %c2_74 = arith.constant 2 : index
    %c8_75 = arith.constant 8 : index
    %80 = vector.load %arg8[%c1_73, %c2_74, %c8_75] : memref<18x18x16xf32, #tpu.memory_space<vmem>>, vector<16x16x4xf32>
    %c2_76 = arith.constant 2 : index
    %c0_77 = arith.constant 0 : index
    %c4_78 = arith.constant 4 : index
    %81 = vector.load %arg8[%c2_76, %c0_77, %c4_78] : memref<18x18x16xf32, #tpu.memory_space<vmem>>, vector<16x16x4xf32>
    %c2_79 = arith.constant 2 : index
    %c1_80 = arith.constant 1 : index
    %c0_81 = arith.constant 0 : index
    %82 = vector.load %arg8[%c2_79, %c1_80, %c0_81] : memref<18x18x16xf32, #tpu.memory_space<vmem>>, vector<16x16x4xf32>
    %c2_82 = arith.constant 2 : index
    %c1_83 = arith.constant 1 : index
    %c4_84 = arith.constant 4 : index
    %83 = vector.load %arg8[%c2_82, %c1_83, %c4_84] : memref<18x18x16xf32, #tpu.memory_space<vmem>>, vector<16x16x4xf32>
    %c2_85 = arith.constant 2 : index
    %c2_86 = arith.constant 2 : index
    %c0_87 = arith.constant 0 : index
    %84 = vector.load %arg8[%c2_85, %c2_86, %c0_87] : memref<18x18x16xf32, #tpu.memory_space<vmem>>, vector<16x16x4xf32>
    %85 = tpu.concatenate %69, %70, %71, %72, %73, %74, %75, %76, %77, %78, %79, %80, %81, %82, %83, %84 in 2 : vector<16x16x4xf32>, vector<16x16x4xf32>, vector<16x16x4xf32>, vector<16x16x4xf32>, vector<16x16x4xf32>, vector<16x16x4xf32>, vector<16x16x4xf32>, vector<16x16x4xf32>, vector<16x16x4xf32>, vector<16x16x4xf32>, vector<16x16x4xf32>, vector<16x16x4xf32>, vector<16x16x4xf32>, vector<16x16x4xf32>, vector<16x16x4xf32>, vector<16x16x4xf32> -> vector<16x16x64xf32>
    %86 = arith.truncf %85 : vector<16x16x64xf32> to vector<16x16x64xbf16>
    %c0_88 = arith.constant 0 : index
    %c0_89 = arith.constant 0 : index
    %87 = vector.load %arg5[%c0_88, %c0_89] : memref<64x16xbf16, #tpu.memory_space<vmem>>, vector<64x16xbf16>
    %cst_90 = arith.constant dense<0.000000e+00> : vector<16x16x16xf32>
    %88 = tpu.matmul %86, %87, %cst_90 {dimension_numbers = #tpu.dot_dimension_numbers<[2], [0], [0, 1], [1], [0, 0, 0, 1, 1, 1], [], []>} : vector<16x16x64xbf16>, vector<64x16xbf16>, vector<16x16x16xf32> -> vector<16x16x16xf32>
    %c0_91 = arith.constant 0 : index
    %c0_92 = arith.constant 0 : index
    %89 = vector.load %arg6[%c0_91, %c0_92] : memref<1x16xf32, #tpu.memory_space<vmem>>, vector<1x16xf32>
    %90 = vector.shape_cast %89 : vector<1x16xf32> to vector<1x1x16xf32>
    %91 = vector.broadcast %90 : vector<1x1x16xf32> to vector<16x16x16xf32>
    %92 = arith.addf %88, %91 : vector<16x16x16xf32>
    %c0_93 = arith.constant 0 : index
    %c0_94 = arith.constant 0 : index
    %c0_95 = arith.constant 0 : index
    %c0_96 = arith.constant 0 : index
    %93 = vector.load %arg7[%c0_93, %c0_94, %c0_95, %c0_96] : memref<1x16x16x16xf32, #tpu.memory_space<vmem>>, vector<1x16x16x16xf32>
    %94 = vector.shape_cast %93 : vector<1x16x16x16xf32> to vector<16x16x16xf32>
    %95 = vector.shape_cast %92 : vector<16x16x16xf32> to vector<1x16x16x16xf32>
    tpu.vector_store %arg7[%c0_93, %c0_94, %c0_95, %c0_96], %95 {strides = array<i32>} : memref<1x16x16x16xf32, #tpu.memory_space<vmem>>, vector<1x16x16x16xf32>,
    return
  }
  func.func @transform_0(%arg0: i32, %arg1: i32) -> (i32, i32, i32, i32) {
    %c0_i32 = arith.constant 0 : i32
    %c0_i32_0 = arith.constant 0 : i32
    %c0_i32_1 = arith.constant 0 : i32
    %c0_i32_2 = arith.constant 0 : i32
    return %arg0, %c0_i32, %c0_i32_0, %c0_i32_1 : i32, i32, i32, i32
  }
  func.func @transform_1(%arg0: i32, %arg1: i32) -> (i32, i32) {
    %c0_i32 = arith.constant 0 : i32
    %c0_i32_0 = arith.constant 0 : i32
    %c0_i32_1 = arith.constant 0 : i32
    return %c0_i32, %c0_i32_0 : i32, i32
  }
  func.func @transform_2(%arg0: i32, %arg1: i32) -> (i32, i32) {
    %c0_i32 = arith.constant 0 : i32
    %c0_i32_0 = arith.constant 0 : i32
    %c0_i32_1 = arith.constant 0 : i32
    return %c0_i32, %c0_i32_0 : i32, i32
  }
  func.func @transform_3(%arg0: i32, %arg1: i32) -> (i32, i32) {
    %c0_i32 = arith.constant 0 : i32
    %c0_i32_0 = arith.constant 0 : i32
    %c0_i32_1 = arith.constant 0 : i32
    return %c0_i32, %c0_i32_0 : i32, i32
  }
  func.func @transform_4(%arg0: i32, %arg1: i32) -> (i32, i32) {
    %c0_i32 = arith.constant 0 : i32
    %c0_i32_0 = arith.constant 0 : i32
    %c0_i32_1 = arith.constant 0 : i32
    return %c0_i32, %c0_i32_0 : i32, i32
  }
  func.func @transform_5(%arg0: i32, %arg1: i32) -> (i32, i32, i32, i32) {
    %c0_i32 = arith.constant 0 : i32
    %c0_i32_0 = arith.constant 0 : i32
    %c0_i32_1 = arith.constant 0 : i32
    return %arg0, %arg1, %c0_i32, %c0_i32_0 : i32, i32, i32, i32
  }
}

</mosaic_0001>

<bundles_post_ra>
// kernel: tile.13
= control target key start
LH: loop header
LB: loop body
LE: loop exit
PB: predicated region body
PF: predicated region fallthrough
CT: control target
= control target key end

     0   :  { %s22_s0 = inlined_call_operand.vmem [shape: f32[4], index: 0, kind: input, shape index: {}]   ;;  %s23_s1 = inlined_call_operand.vmem [shape: f32[4,4], index: 1, kind: output, shape index: {}]  }
   0x1   :  { %v4_v0 = vld [vmem:[%s22_s0] ss:$0 sm:$0xff] }
   0x2   :  { %5 = vst [vmem:[%s23_s1] sm:$0xf] %v4_v0 }

// kernel: tile.14
= control target key start
LH: loop header
LB: loop body
LE: loop exit
PB: predicated region body
PF: predicated region fallthrough
CT: control target
= control target key end

     0   :  { %vm7_vm0 = vcmask 31744   ;;  %s37_s8 = smov 4   ;;  %s38_s9 = smov 8   ;;  %vm13_vm1 = vcmask 130144   ;;  %vm19_vm2 = vcmask 97344   ;;  %vm25_vm3 = vcmask 64544   ;;  %s55_s0 = inlined_call_operand.vmem [shape: f32[4,4], index: 0, kind: input, shape index: {}]   ;;  %s56_s1 = inlined_call_operand.vmem [shape: f32[1,16], index: 1, kind: output, shape index: {}]  }
   0x1   :  { %v4_v0 = vld [vmem:[%s55_s0] sm:$0xf]  ;;  %s36_s0 = smov 12  }
   0x2   :  { %5 = vst [vmem:[#allocation1] sm:$0xf] %v4_v0 }
   0x9   :  { %v10_v1 = vld [vmem:[#allocation1 + $0x3] sm:$0x1]   ;;  %v22_v2 = vld [vmem:[#allocation1 + $0x1] sm:$0x1]   ;;  %v6_v3 = vld [vmem:[#allocation1] sm:$0x1]  }
   0xa   :  { %11 = vrot.lane.b32.xlu0 %v10_v1, %s36_s0  ;;  %23 = vrot.lane.b32.xlu1 %v22_v2, %s37_s8  ;;  %v16_v4 = vld [vmem:[#allocation1 + $0x2] sm:$0x1]   ;;  %8 = vst.msk [vmem:[#allocation0] sm:$0x1] %vm7_vm0, %v6_v3  }
   0xe   :  { %17 = vrot.lane.b32.xlu0 %v16_v4, %s38_s9 }
  0x7c   :  { %v12_v5 = vpop.permute.xlu0 %11   ;;  %v24_v6 = vpop.permute.xlu1 %23  }
  0x7d   :  { %14 = vst.msk [vmem:[#allocation0] sm:$0x1] %vm13_vm1, %v12_v5  }
  0x80   :  { %v18_v7 = vpop.permute.xlu0 %17  }
  0x81   :  { %20 = vst.msk [vmem:[#allocation0] sm:$0x1] %vm19_vm2, %v18_v7  }
  0x82   :  { %26 = vst.msk [vmem:[#allocation0] sm:$0x1] %vm25_vm3, %v24_v6  }
  0x89   :  { %v30_v8 = vld [vmem:[#allocation0] sm:$0x1] }
  0x8a   :  { %32 = vst [vmem:[%s56_s1] sm:$0x1] %v30_v8 }

// kernel: upsample_forward.1
= control target key start
LH: loop header
LB: loop body
LE: loop exit
PB: predicated region body
PF: predicated region fallthrough
CT: control target
= control target key end

     0   :  { %s12822_s18 = smov 0   ;;  %s12824_s19 = smov 0   ;;  %s19219_s0 = inlined_call_operand.vmem [shape: f32[2,20,20,4], index: 0, kind: input, shape index: {}]   ;;  %s19220_s1 = inlined_call_operand.vmem [shape: bf16[36,16], index: 1, kind: input, shape index: {}]   ;;  %s19221_s2 = inlined_call_operand.vmem [shape: f32[1,16], index: 2, kind: input, shape index: {}]   ;;  %s19222_s3 = inlined_call_operand.vmem [shape: bf16[64,16], index: 3, kind: input, shape index: {}]   ;;  %s19223_s4 = inlined_call_operand.vmem [shape: f32[1,16], index: 4, kind: input, shape index: {}]   ;;  %s19224_s5 = inlined_call_operand.vmem [shape: f32[2,16,16,16], index: 5, kind: output, shape index: {}]  }
   0x1   :  { %s12826_s20 = smov 0  }
   0x2 LB: > { %s27_s21 = sadd.s32 1, %s12768_s19  ;;  %p10027_p0 = scmp.ge.s32.totalorder %s12772_s20, 1  ;;  %s12772_s20 = sphi %s12826_s20, %s15_s20   ;;  %s12768_s19 = sphi %s12824_s19, %s20446_s19   ;;  %s12764_s18 = sphi %s12822_s18, %s20445_s18  }
   0x3   : > { %p29_p1 = scmp.ge.s32.totalorder %s27_s21, 2  ;;  %p201_p2 = scmp.lt.s32.totalorder %s12772_s20, 3 }
   0x5   : > { %s20448_s21 = smov (%p29_p1, %s27_s21), 0  ;;  %p202_p3 = pnand %p10027_p0, %p201_p2 }
   0x7   : > { %205 = sbr.rel (%p202_p3) target bundleno = 1638 (0x666), region = 40 }
   0xe   : > { %p234_p4 = scmp.lt.s32.totalorder %s12764_s18, 1  ;;  %s12774_s26 = smov 4   ;;  %vm2474_vm0 = vcmask 31744   ;;  %vm2529_vm1 = vcmask 64512   ;;  %vm2584_vm2 = vcmask 97280   ;;  %vm2639_vm3 = vcmask 130048  }
   0xf   : > { %s12775_s27 = smov 8   ;;  %s12776_s28 = smov 12   ;;  %vm5277_vm4 = vcmask 1041408   ;;  %vm12783_vm5 = vmmov 0   ;;  %vm2694_vm6 = vcmask 162816   ;;  %vm2749_vm7 = vcmask 195584  }
  0x10   : > { %s20450_s18 = smov (!%p234_p4, %s12764_s18), 1  ;;  %s12777_s29 = smov 16   ;;  %vm2804_vm8 = vcmask 228352   ;;  %vm2859_vm9 = vcmask 261120   ;;  %vm5213_vm10 = vcmask 293888   ;;  %vm7360_vm11 = vcmask 123904  }
  0x11   : > { %s10620_s22 = smul.u32 480, %s20450_s18  ;;  %s12778_s30 = smov 20   ;;  %vm9431_vm14 = vcmask 326656   ;;  %vm9464_vm15 = vcmask 359424  }
  0x12   : > { %s12779_s6 = smov 24   ;;  %s12780_s7 = smov 28  }
  0x13   : > { %s12846_s25 = scalar_lea.vmem %s19219_s0, %s10620_s22  ;;  %s12781_s8 = smov 32  }
  0x14   : > { %v12849_v0 = vld [vmem:[%s12846_s25 + $0x21] sm:$0xff]  ;;  %v313_v1 = vld [vmem:[%s12846_s25 + $0x29] sm:$0x3]  ;;  %v12856_v5 = vld [vmem:[%s12846_s25 + $0x31] sm:$0xff]  ;;  %s12785_s15 = smov 116   ;;  %s12787_s22 = smov 124  }
  0x15   : > { %v308_v2 = vld [vmem:[%s12846_s25 + $0x1] sm:$0xff]  ;;  %v10673_v3 = vpack.i.bf16 %v313_v1, %v12849_v0  ;;  %v309_v4 = vld [vmem:[%s12846_s25 + $0x9] sm:$0xff]  ;;  %v12859_v6 = vld [vmem:[%s12846_s25 + $0x39] sm:$0xff]  ;;  %s12790_s10 = smov 52   ;;  %s12791_s11 = smov 60  }
  0x16   : > { %v10663_v7 = vpack.i.bf16 %v309_v4, %v308_v2  ;;  %v310_v8 = vld [vmem:[%s12846_s25 + $0x11] sm:$0x3]  ;;  %v12863_v9 = vld [vmem:[%s12846_s25 + $0x19] sm:$0xff]  ;;  %v10678_v10 = vpack.i.bf16 %v12859_v6, %v12856_v5  ;;  %v316_v14 = vld [vmem:[%s12846_s25 + $0x41] sm:$0x3] }
  0x17   : > { %10674 = vrot.lane.b32.xlu1 %v10673_v3, %s12774_s26  ;;  %v10668_v11 = vpack.i.bf16 %v12863_v9, %v310_v8  ;;  %v318_v12 = vld [vmem:[%s12846_s25 + $0x51] sm:$0xff]  ;;  %v319_v13 = vld [vmem:[%s12846_s25 + $0x59] sm:$0x3]  ;;  %v317_v15 = vld [vmem:[%s12846_s25 + $0x49] sm:$0xff]  ;;  %v11068_v58 = vpack.i.bf16 %v12849_v0, %v12863_v9 }
  0x18   : > { %10664 = vrot.lane.b32.xlu0 %v10663_v7, %s12774_s26  ;;  %v10688_v16 = vpack.i.bf16 %v319_v13, %v318_v12  ;;  %v10683_v17 = vpack.i.bf16 %v317_v15, %v316_v14  ;;  %v322_v18 = vld [vmem:[%s12846_s25 + $0x71] sm:$0x3]  ;;  %v323_v19 = vld [vmem:[%s12846_s25 + $0x79] sm:$0xff]  ;;  %v12879_v20 = vld [vmem:[%s12846_s25 + $0x61] sm:$0xff] }
  0x19   : > { %v321_v21 = vld [vmem:[%s12846_s25 + $0x69] sm:$0xff]  ;;  %v10698_v22 = vpack.i.bf16 %v323_v19, %v322_v18  ;;  %v326_v24 = vld [vmem:[%s12846_s25 + $0x91] sm:$0xff]  ;;  %v327_v25 = vld [vmem:[%s12846_s25 + $0x99] sm:$0xff] }
  0x1a   : > { %v10693_v23 = vpack.i.bf16 %v321_v21, %v12879_v20  ;;  %v324_v26 = vld [vmem:[%s12846_s25 + $0x81] sm:$0xff]  ;;  %v325_v27 = vld [vmem:[%s12846_s25 + $0x89] sm:$0x3]  ;;  %v10708_v28 = vpack.i.bf16 %v327_v25, %v326_v24  ;;  %v330_v30 = vld [vmem:[%s12846_s25 + $0xb1] sm:$0xff] }
  0x1b   : > { %10679 = vrot.lane.b32.xlu1 %v10678_v10, %s12774_s26  ;;  %v10703_v29 = vpack.i.bf16 %v325_v27, %v324_v26  ;;  %v331_v31 = vld [vmem:[%s12846_s25 + $0xb9] sm:$0x3]  ;;  %v328_v32 = vld [vmem:[%s12846_s25 + $0xa1] sm:$0x3]  ;;  %v329_v33 = vld [vmem:[%s12846_s25 + $0xa9] sm:$0xff] }
  0x1c   : > { %10669 = vrot.lane.b32.xlu0 %v10668_v11, %s12774_s26  ;;  %v10718_v34 = vpack.i.bf16 %v331_v31, %v330_v30  ;;  %v10713_v35 = vpack.i.bf16 %v329_v33, %v328_v32  ;;  %v334_v36 = vld [vmem:[%s12846_s25 + $0xd1] sm:$0x3]  ;;  %v335_v37 = vld [vmem:[%s12846_s25 + $0xd9] sm:$0xff]  ;;  %v332_v38 = vld [vmem:[%s12846_s25 + $0xc1] sm:$0xff] }
  0x1d   : > { %v333_v39 = vld [vmem:[%s12846_s25 + $0xc9] sm:$0xff]  ;;  %v10728_v40 = vpack.i.bf16 %v335_v37, %v334_v36  ;;  %v338_v42 = vld [vmem:[%s12846_s25 + $0xf1] sm:$0xff]  ;;  %v339_v43 = vld [vmem:[%s12846_s25 + $0xf9] sm:$0xff] }
  0x1e   : > { %v10723_v41 = vpack.i.bf16 %v333_v39, %v332_v38  ;;  %v336_v44 = vld [vmem:[%s12846_s25 + $0xe1] sm:$0xff]  ;;  %v337_v45 = vld [vmem:[%s12846_s25 + $0xe9] sm:$0x3]  ;;  %v10738_v46 = vpack.i.bf16 %v339_v43, %v338_v42  ;;  %v342_v48 = vld [vmem:[%s12846_s25 + $0x111] sm:$0xff] }
  0x1f   : > { %10689 = vrot.lane.b32.xlu1 %v10688_v16, %s12774_s26  ;;  %v10733_v47 = vpack.i.bf16 %v337_v45, %v336_v44  ;;  %v343_v49 = vld [vmem:[%s12846_s25 + $0x119] sm:$0x3]  ;;  %v340_v50 = vld [vmem:[%s12846_s25 + $0x101] sm:$0x3]  ;;  %v341_v51 = vld [vmem:[%s12846_s25 + $0x109] sm:$0xff] }
  0x20   : > { %10684 = vrot.lane.b32.xlu0 %v10683_v17, %s12774_s26  ;;  %v10748_v52 = vpack.i.bf16 %v343_v49, %v342_v48  ;;  %v10743_v53 = vpack.i.bf16 %v341_v51, %v340_v50  ;;  %v346_v54 = vld [vmem:[%s12846_s25 + $0x131] sm:$0x3]  ;;  %v347_v55 = vld [vmem:[%s12846_s25 + $0x139] sm:$0xff]  ;;  %v344_v56 = vld [vmem:[%s12846_s25 + $0x121] sm:$0xff] }
  0x21   : > { %v345_v57 = vld [vmem:[%s12846_s25 + $0x129] sm:$0xff]  ;;  %v10758_v59 = vpack.i.bf16 %v347_v55, %v346_v54  ;;  %v350_v61 = vld [vmem:[%s12846_s25 + $0x151] sm:$0xff]  ;;  %v351_v62 = vld [vmem:[%s12846_s25 + $0x159] sm:$0xff] }
  0x22   : > { %v10753_v60 = vpack.i.bf16 %v345_v57, %v344_v56  ;;  %v348_v63 = vld [vmem:[%s12846_s25 + $0x141] sm:$0xff]  ;;  %v349_v1 = vld [vmem:[%s12846_s25 + $0x149] sm:$0x3]  ;;  %v10768_v2 = vpack.i.bf16 %v351_v62, %v350_v61  ;;  %v354_v4 = vld [vmem:[%s12846_s25 + $0x171] sm:$0xff] }
  0x23   : > { %10699 = vrot.lane.b32.xlu1 %v10698_v22, %s12774_s26  ;;  %v10763_v3 = vpack.i.bf16 %v349_v1, %v348_v63  ;;  %v355_v7 = vld [vmem:[%s12846_s25 + $0x179] sm:$0x3]  ;;  %v352_v8 = vld [vmem:[%s12846_s25 + $0x161] sm:$0x3]  ;;  %v353_v10 = vld [vmem:[%s12846_s25 + $0x169] sm:$0xff] }
  0x24   : > { %10694 = vrot.lane.b32.xlu0 %v10693_v23, %s12774_s26  ;;  %v10778_v11 = vpack.i.bf16 %v355_v7, %v354_v4  ;;  %v10773_v12 = vpack.i.bf16 %v353_v10, %v352_v8  ;;  %v358_v13 = vld [vmem:[%s12846_s25 + $0x191] sm:$0x3]  ;;  %v359_v14 = vld [vmem:[%s12846_s25 + $0x199] sm:$0xff]  ;;  %v356_v15 = vld [vmem:[%s12846_s25 + $0x181] sm:$0xff] }
  0x25   : > { %v357_v16 = vld [vmem:[%s12846_s25 + $0x189] sm:$0xff]  ;;  %v10788_v17 = vpack.i.bf16 %v359_v14, %v358_v13  ;;  %v360_v22 = vld [vmem:[%s12846_s25 + $0x1a1] sm:$0xff]  ;;  %v10097_v9 = vld [vmem:[%s12846_s25 + $0x79] sm:$0xff] }
  0x26   : > { %v10783_v18 = vpack.i.bf16 %v357_v16, %v356_v15  ;;  %v362_v19 = vld [vmem:[%s12846_s25 + $0x2] sm:$0xff]  ;;  %v363_v21 = vld [vmem:[%s12846_s25 + $0xa] sm:$0xff] }
  0x27   : > { %10709 = vrot.lane.b32.xlu1 %v10708_v28, %s12774_s26  ;;  %v361_v23 = vld [vmem:[%s12846_s25 + $0x1a9] sm:$0x3]  ;;  %v10798_v24 = vpack.i.bf16 %v363_v21, %v362_v19  ;;  %v364_v28 = vld [vmem:[%s12846_s25 + $0x12] sm:$0x3]  ;;  %v370_v32 = vld [vmem:[%s12846_s25 + $0x42] sm:$0x3] }
  0x28   : > { %10704 = vrot.lane.b32.xlu0 %v10703_v29, %s12774_s26  ;;  %v10793_v25 = vpack.i.bf16 %v361_v23, %v360_v22  ;;  %v366_v26 = vld [vmem:[%s12846_s25 + $0x22] sm:$0xff]  ;;  %v367_v27 = vld [vmem:[%s12846_s25 + $0x2a] sm:$0x3]  ;;  %v365_v29 = vld [vmem:[%s12846_s25 + $0x1a] sm:$0xff] }
  0x29   : > { %v10808_v30 = vpack.i.bf16 %v367_v27, %v366_v26  ;;  %v10803_v31 = vpack.i.bf16 %v365_v29, %v364_v28  ;;  %v371_v33 = vld [vmem:[%s12846_s25 + $0x4a] sm:$0xff]  ;;  %v374_v38 = vld [vmem:[%s12846_s25 + $0x62] sm:$0xff] }
  0x2a   : > { %v10818_v36 = vpack.i.bf16 %v371_v33, %v370_v32  ;;  %v375_v39 = vld [vmem:[%s12846_s25 + $0x6a] sm:$0xff]  ;;  %v378_v44 = vld [vmem:[%s12846_s25 + $0x82] sm:$0xff] }
  0x2b   : > { %10719 = vrot.lane.b32.xlu1 %v10718_v34, %s12774_s26  ;;  %v368_v34 = vld [vmem:[%s12846_s25 + $0x32] sm:$0xff]  ;;  %v10828_v42 = vpack.i.bf16 %v375_v39, %v374_v38  ;;  %v379_v45 = vld [vmem:[%s12846_s25 + $0x8a] sm:$0x3]  ;;  %v382_v50 = vld [vmem:[%s12846_s25 + $0xa2] sm:$0x3] }
  0x2c   : > { %10714 = vrot.lane.b32.xlu0 %v10713_v35, %s12774_s26  ;;  %v369_v35 = vld [vmem:[%s12846_s25 + $0x3a] sm:$0xff]  ;;  %v10838_v48 = vpack.i.bf16 %v379_v45, %v378_v44  ;;  %v383_v51 = vld [vmem:[%s12846_s25 + $0xaa] sm:$0xff]  ;;  %v386_v56 = vld [vmem:[%s12846_s25 + $0xc2] sm:$0xff] }
  0x2d   : > { %v10813_v37 = vpack.i.bf16 %v369_v35, %v368_v34  ;;  %v10848_v54 = vpack.i.bf16 %v383_v51, %v382_v50  ;;  %v387_v57 = vld [vmem:[%s12846_s25 + $0xca] sm:$0xff]  ;;  %v390_v63 = vld [vmem:[%s12846_s25 + $0xe2] sm:$0xff] }
  0x2e   : > { %v10858_v61 = vpack.i.bf16 %v387_v57, %v386_v56  ;;  %v391_v1 = vld [vmem:[%s12846_s25 + $0xea] sm:$0x3]  ;;  %v394_v8 = vld [vmem:[%s12846_s25 + $0x102] sm:$0x3] }
  0x2f   : > { %10729 = vrot.lane.b32.xlu1 %v10728_v40, %s12774_s26  ;;  %v372_v40 = vld [vmem:[%s12846_s25 + $0x52] sm:$0xff]  ;;  %v10868_v4 = vpack.i.bf16 %v391_v1, %v390_v63  ;;  %v395_v10 = vld [vmem:[%s12846_s25 + $0x10a] sm:$0xff]  ;;  %v398_v15 = vld [vmem:[%s12846_s25 + $0x122] sm:$0xff] }
  0x30   : > { %10724 = vrot.lane.b32.xlu0 %v10723_v41, %s12774_s26  ;;  %v373_v41 = vld [vmem:[%s12846_s25 + $0x5a] sm:$0x3]  ;;  %v10878_v13 = vpack.i.bf16 %v395_v10, %v394_v8  ;;  %v399_v16 = vld [vmem:[%s12846_s25 + $0x12a] sm:$0xff]  ;;  %v402_v22 = vld [vmem:[%s12846_s25 + $0x142] sm:$0xff] }
  0x31   : > { %v10823_v43 = vpack.i.bf16 %v373_v41, %v372_v40  ;;  %v10888_v19 = vpack.i.bf16 %v399_v16, %v398_v15  ;;  %v403_v23 = vld [vmem:[%s12846_s25 + $0x14a] sm:$0x3]  ;;  %v406_v28 = vld [vmem:[%s12846_s25 + $0x162] sm:$0x3]  ;;  %v10047_v16 = vld [vmem:[%s12846_s25 + $0x98] sm:$0xff] }
  0x32   : > { %v10898_v26 = vpack.i.bf16 %v403_v23, %v402_v22  ;;  %v407_v29 = vld [vmem:[%s12846_s25 + $0x16a] sm:$0xff]  ;;  %v410_v34 = vld [vmem:[%s12846_s25 + $0x182] sm:$0xff] }
  0x33   : > { %10739 = vrot.lane.b32.xlu1 %v10738_v46, %s12774_s26  ;;  %v376_v46 = vld [vmem:[%s12846_s25 + $0x72] sm:$0x3]  ;;  %v10908_v32 = vpack.i.bf16 %v407_v29, %v406_v28  ;;  %v411_v35 = vld [vmem:[%s12846_s25 + $0x18a] sm:$0xff]  ;;  %v414_v40 = vld [vmem:[%s12846_s25 + $0x1a2] sm:$0xff] }
  0x34   : > { %10734 = vrot.lane.b32.xlu0 %v10733_v47, %s12774_s26  ;;  %v377_v47 = vld [vmem:[%s12846_s25 + $0x7a] sm:$0xff]  ;;  %v10918_v38 = vpack.i.bf16 %v411_v35, %v410_v34  ;;  %v415_v41 = vld [vmem:[%s12846_s25 + $0x1aa] sm:$0x3]  ;;  %v10054_v23 = vld [vmem:[%s12846_s25 + $0xd0] sm:$0x3] }
  0x35   : > { %v10833_v49 = vpack.i.bf16 %v377_v47, %v376_v46  ;;  %v10928_v44 = vpack.i.bf16 %v415_v41, %v414_v40  ;;  %v10033_v46 = vld [vmem:[%s12846_s25 + $0x28] sm:$0x3]  ;;  %v10034_v47 = vld [vmem:[%s12846_s25 + $0x30] sm:$0xff]  ;;  %v10044_v8 = vld [vmem:[%s12846_s25 + $0x80] sm:$0xff] }
  0x36   : > { %v10938_v50 = vpack.i.bf16 %v10034_v47, %v10033_v46  ;;  %v10053_v22 = vld [vmem:[%s12846_s25 + $0xc8] sm:$0xff]  ;;  %v10056_v34 = vld [vmem:[%s12846_s25 + $0xe0] sm:$0xff]  ;;  %v10059_v41 = vld [vmem:[%s12846_s25 + $0xf8] sm:$0xff] }
  0x37   : > { %10749 = vrot.lane.b32.xlu1 %v10748_v52, %s12774_s26  ;;  %v380_v52 = vld [vmem:[%s12846_s25 + $0x92] sm:$0xff]  ;;  %v10988_v28 = vpack.i.bf16 %v10054_v23, %v10053_v22  ;;  %v10065_v46 = vld [vmem:[%s12846_s25 + $0x128] sm:$0xff]  ;;  %v10066_v47 = vld [vmem:[%s12846_s25 + $0x130] sm:$0x3] }
  0x38   : > { %10744 = vrot.lane.b32.xlu0 %v10743_v53, %s12774_s26  ;;  %v381_v53 = vld [vmem:[%s12846_s25 + $0x9a] sm:$0xff] }
  0x39   : > { %v10843_v55 = vpack.i.bf16 %v381_v53, %v380_v52  ;;  %v10037_v52 = vld [vmem:[%s12846_s25 + $0x48] sm:$0xff]  ;;  %v10038_v53 = vld [vmem:[%s12846_s25 + $0x50] sm:$0xff] }
  0x3a   : > { %v10948_v56 = vpack.i.bf16 %v10038_v53, %v10037_v52  ;;  %v11018_v52 = vpack.i.bf16 %v10066_v47, %v10065_v46 }
  0x3b   : > { %10759 = vrot.lane.b32.xlu1 %v10758_v59, %s12774_s26  ;;  %v384_v59 = vld [vmem:[%s12846_s25 + $0xb2] sm:$0xff] }
  0x3c   : > { %10754 = vrot.lane.b32.xlu0 %v10753_v60, %s12774_s26  ;;  %v385_v60 = vld [vmem:[%s12846_s25 + $0xba] sm:$0x3] }
  0x3d   : > { %v10853_v62 = vpack.i.bf16 %v385_v60, %v384_v59  ;;  %v10041_v59 = vld [vmem:[%s12846_s25 + $0x68] sm:$0xff]  ;;  %v10042_v60 = vld [vmem:[%s12846_s25 + $0x70] sm:$0x3] }
  0x3e   : > { %v10958_v63 = vpack.i.bf16 %v10042_v60, %v10041_v59  ;;  %v10068_v59 = vld [vmem:[%s12846_s25 + $0x140] sm:$0xff] }
  0x3f   : > { %10769 = vrot.lane.b32.xlu1 %v10768_v2, %s12774_s26  ;;  %v388_v2 = vld [vmem:[%s12846_s25 + $0xd2] sm:$0x3] }
  0x40   : > { %10764 = vrot.lane.b32.xlu0 %v10763_v3, %s12774_s26  ;;  %v389_v3 = vld [vmem:[%s12846_s25 + $0xda] sm:$0xff] }
  0x41   : > { %v10863_v7 = vpack.i.bf16 %v389_v3, %v388_v2  ;;  %v10045_v2 = vld [vmem:[%s12846_s25 + $0x88] sm:$0x3]  ;;  %v10046_v3 = vld [vmem:[%s12846_s25 + $0x90] sm:$0xff] }
  0x43   : > { %10779 = vrot.lane.b32.xlu1 %v10778_v11, %s12774_s26  ;;  %v392_v11 = vld [vmem:[%s12846_s25 + $0xf2] sm:$0xff] }
  0x44   : > { %10774 = vrot.lane.b32.xlu0 %v10773_v12, %s12774_s26  ;;  %v393_v12 = vld [vmem:[%s12846_s25 + $0xfa] sm:$0xff] }
  0x45   : > { %v10873_v14 = vpack.i.bf16 %v393_v12, %v392_v11  ;;  %v10968_v11 = vpack.i.bf16 %v10046_v3, %v10045_v2  ;;  %v10071_v3 = vld [vmem:[%s12846_s25 + $0x158] sm:$0xff] }
  0x47   : > { %10789 = vrot.lane.b32.xlu1 %v10788_v17, %s12774_s26  ;;  %v396_v17 = vld [vmem:[%s12846_s25 + $0x112] sm:$0xff] }
  0x48   : > { %10784 = vrot.lane.b32.xlu0 %v10783_v18, %s12774_s26  ;;  %v397_v18 = vld [vmem:[%s12846_s25 + $0x11a] sm:$0x3] }
  0x49   : > { %v10883_v21 = vpack.i.bf16 %v397_v18, %v396_v17  ;;  %v10048_v17 = vld [vmem:[%s12846_s25 + $0xa0] sm:$0x3] }
  0x4b   : > { %10799 = vrot.lane.b32.xlu1 %v10798_v24, %s12775_s27  ;;  %v400_v24 = vld [vmem:[%s12846_s25 + $0x132] sm:$0x3] }
  0x4c   : > { %10794 = vrot.lane.b32.xlu0 %v10793_v25, %s12774_s26  ;;  %v401_v25 = vld [vmem:[%s12846_s25 + $0x13a] sm:$0xff] }
  0x4d   : > { %v10893_v27 = vpack.i.bf16 %v401_v25, %v400_v24  ;;  %v10051_v25 = vld [vmem:[%s12846_s25 + $0xb8] sm:$0x3] }
  0x4f   : > { %10809 = vrot.lane.b32.xlu1 %v10808_v30, %s12775_s27  ;;  %v404_v30 = vld [vmem:[%s12846_s25 + $0x152] sm:$0xff] }
  0x50   : > { %10804 = vrot.lane.b32.xlu0 %v10803_v31, %s12775_s27  ;;  %v405_v31 = vld [vmem:[%s12846_s25 + $0x15a] sm:$0xff] }
  0x51   : > { %v10903_v33 = vpack.i.bf16 %v405_v31, %v404_v30  ;;  %v10057_v30 = vld [vmem:[%s12846_s25 + $0xe8] sm:$0x3]  ;;  %v10058_v31 = vld [vmem:[%s12846_s25 + $0xf0] sm:$0xff] }
  0x53   : > { %10819 = vrot.lane.b32.xlu1 %v10818_v36, %s12775_s27  ;;  %v408_v36 = vld [vmem:[%s12846_s25 + $0x172] sm:$0xff] }
  0x54   : > { %10814 = vrot.lane.b32.xlu0 %v10813_v37, %s12775_s27  ;;  %v409_v37 = vld [vmem:[%s12846_s25 + $0x17a] sm:$0x3] }
  0x55   : > { %v10913_v39 = vpack.i.bf16 %v409_v37, %v408_v36  ;;  %v10998_v36 = vpack.i.bf16 %v10058_v31, %v10057_v30  ;;  %v10080_v30 = vld [vmem:[%s12846_s25 + $0x1a0] sm:$0xff] }
  0x57   : > { %10829 = vrot.lane.b32.xlu1 %v10828_v42, %s12775_s27  ;;  %v412_v42 = vld [vmem:[%s12846_s25 + $0x192] sm:$0x3] }
  0x58   : > { %10824 = vrot.lane.b32.xlu0 %v10823_v43, %s12775_s27  ;;  %v413_v43 = vld [vmem:[%s12846_s25 + $0x19a] sm:$0xff] }
  0x59   : > { %v10923_v45 = vpack.i.bf16 %v413_v43, %v412_v42  ;;  %v10060_v42 = vld [vmem:[%s12846_s25 + $0x100] sm:$0x3] }
  0x5b   : > { %10839 = vrot.lane.b32.xlu1 %v10838_v48, %s12775_s27  ;;  %v10031_v48 = vld [vmem:[%s12846_s25 + $0x18] sm:$0xff] }
  0x5c   : > { %10834 = vrot.lane.b32.xlu0 %v10833_v49, %s12775_s27  ;;  %v10032_v49 = vld [vmem:[%s12846_s25 + $0x20] sm:$0xff] }
  0x5d   : > { %v10933_v51 = vpack.i.bf16 %v10032_v49, %v10031_v48  ;;  %v10063_v49 = vld [vmem:[%s12846_s25 + $0x118] sm:$0x3] }
  0x5f   : > { %10849 = vrot.lane.b32.xlu1 %v10848_v54, %s12775_s27  ;;  %v10035_v54 = vld [vmem:[%s12846_s25 + $0x38] sm:$0xff] }
  0x60   : > { %10844 = vrot.lane.b32.xlu0 %v10843_v55, %s12775_s27  ;;  %v10036_v55 = vld [vmem:[%s12846_s25 + $0x40] sm:$0x3] }
  0x61   : > { %v10943_v57 = vpack.i.bf16 %v10036_v55, %v10035_v54  ;;  %v10069_v54 = vld [vmem:[%s12846_s25 + $0x148] sm:$0x3]  ;;  %v10070_v55 = vld [vmem:[%s12846_s25 + $0x150] sm:$0xff] }
  0x63   : > { %10859 = vrot.lane.b32.xlu1 %v10858_v61, %s12775_s27  ;;  %v10039_v61 = vld [vmem:[%s12846_s25 + $0x58] sm:$0x3] }
  0x64   : > { %10854 = vrot.lane.b32.xlu0 %v10853_v62, %s12775_s27  ;;  %v10040_v62 = vld [vmem:[%s12846_s25 + $0x60] sm:$0xff] }
  0x65   : > { %v10953_v1 = vpack.i.bf16 %v10040_v62, %v10039_v61  ;;  %v11028_v61 = vpack.i.bf16 %v10070_v55, %v10069_v54  ;;  %v10092_v54 = vld [vmem:[%s12846_s25 + $0x51] sm:$0xff] }
  0x67   : > { %10869 = vrot.lane.b32.xlu1 %v10868_v4, %s12775_s27 }
  0x68   : > { %10864 = vrot.lane.b32.xlu0 %v10863_v7, %s12775_s27  ;;  %v10043_v7 = vld [vmem:[%s12846_s25 + $0x78] sm:$0xff] }
  0x69   : > { %v10963_v12 = vpack.i.bf16 %v10044_v8, %v10043_v7  ;;  %v10072_v7 = vld [vmem:[%s12846_s25 + $0x160] sm:$0x3] }
  0x6b   : > { %10879 = vrot.lane.b32.xlu1 %v10878_v13, %s12775_s27  ;;  %v10049_v13 = vld [vmem:[%s12846_s25 + $0xa8] sm:$0xff] }
  0x6c   : > { %10874 = vrot.lane.b32.xlu0 %v10873_v14, %s12775_s27  ;;  %v10050_v14 = vld [vmem:[%s12846_s25 + $0xb0] sm:$0xff] }
  0x6f   : > { %10889 = vrot.lane.b32.xlu1 %v10888_v19, %s12775_s27  ;;  %v10978_v19 = vpack.i.bf16 %v10050_v14, %v10049_v13  ;;  %v10077_v13 = vld [vmem:[%s12846_s25 + $0x188] sm:$0xff]  ;;  %v10078_v14 = vld [vmem:[%s12846_s25 + $0x190] sm:$0x3] }
  0x70   : > { %10884 = vrot.lane.b32.xlu0 %v10883_v21, %s12775_s27  ;;  %v10973_v21 = vpack.i.bf16 %v10048_v17, %v10047_v16  ;;  %v10075_v17 = vld [vmem:[%s12846_s25 + $0x178] sm:$0x3]  ;;  %v11048_v22 = vpack.i.bf16 %v10078_v14, %v10077_v13 }
  0x73   : > { %10899 = vrot.lane.b32.xlu1 %v10898_v26, %s12775_s27  ;;  %v10052_v26 = vld [vmem:[%s12846_s25 + $0xc0] sm:$0xff] }
  0x74   : > { %10894 = vrot.lane.b32.xlu0 %v10893_v27, %s12775_s27  ;;  %v10983_v29 = vpack.i.bf16 %v10052_v26, %v10051_v25  ;;  %v10081_v25 = vld [vmem:[%s12846_s25 + $0x1a8] sm:$0x3]  ;;  %v10082_v26 = vld [vmem:[%s12846_s25 + $0x1b0] sm:$0xff] }
  0x77   : > { %10909 = vrot.lane.b32.xlu1 %v10908_v32, %s12775_s27 }
  0x78   : > { %10904 = vrot.lane.b32.xlu0 %v10903_v33, %s12775_s27  ;;  %v10055_v33 = vld [vmem:[%s12846_s25 + $0xd8] sm:$0xff] }
  0x79   : > { %v10993_v37 = vpack.i.bf16 %v10056_v34, %v10055_v33  ;;  %v11058_v33 = vpack.i.bf16 %v10082_v26, %v10081_v25  ;;  %v10104_v25 = vld [vmem:[%s12846_s25 + $0xb1] sm:$0xff] }
  0x7b   : > { %10919 = vrot.lane.b32.xlu1 %v10918_v38, %s12775_s27  ;;  %v10061_v38 = vld [vmem:[%s12846_s25 + $0x108] sm:$0xff] }
  0x7c   : > { %10914 = vrot.lane.b32.xlu0 %v10913_v39, %s12775_s27  ;;  %v10062_v39 = vld [vmem:[%s12846_s25 + $0x110] sm:$0xff] }
  0x7f   : > { %10929 = vrot.lane.b32.xlu1 %v10928_v44, %s12775_s27  ;;  %v11008_v44 = vpack.i.bf16 %v10062_v39, %v10061_v38  ;;  %v10084_v38 = vld [vmem:[%s12846_s25 + $0x1c0] sm:$0x3] }
  0x80   : > { %10924 = vrot.lane.b32.xlu0 %v10923_v45, %s12775_s27  ;;  %v11003_v45 = vpack.i.bf16 %v10060_v42, %v10059_v41  ;;  %v10090_v42 = vld [vmem:[%s12846_s25 + $0x41] sm:$0x3]  ;;  %s12788_s27 = smov 36  }
  0x81   : > { %v11078_v47 = vpack.i.bf16 %v10090_v42, %v12859_v6 }
  0x83   : > { %10939 = vrot.lane.b32.xlu1 %v10938_v50, %s12776_s28  ;;  %v10064_v50 = vld [vmem:[%s12846_s25 + $0x120] sm:$0xff] }
  0x84   : > { %10934 = vrot.lane.b32.xlu0 %v10933_v51, %s12776_s28  ;;  %v11013_v53 = vpack.i.bf16 %v10064_v50, %v10063_v49  ;;  %v10093_v50 = vld [vmem:[%s12846_s25 + $0x59] sm:$0x3] }
  0x85   : > { %v11088_v0 = vpack.i.bf16 %v12879_v20, %v10093_v50  ;;  %v10114_v50 = vld [vmem:[%s12846_s25 + $0x101] sm:$0x3] }
  0x87   : > { %10949 = vrot.lane.b32.xlu1 %v10948_v56, %s12776_s28 }
  0x88   : > { %10944 = vrot.lane.b32.xlu0 %v10943_v57, %s12776_s28  ;;  %v10067_v57 = vld [vmem:[%s12846_s25 + $0x138] sm:$0xff] }
  0x89   : > { %v13045_v4 = vpop.permute.xlu1 %10674  ;;  %v11023_v62 = vpack.i.bf16 %v10068_v59, %v10067_v57  ;;  %v10095_v57 = vld [vmem:[%s12846_s25 + $0x69] sm:$0xff]  ;;  %v10096_v59 = vld [vmem:[%s12846_s25 + $0x71] sm:$0x3] }
  0x8a   : > { %v13049_v10 = vpop.permute.xlu0 %10664  ;;  %v11093_v20 = vpack.i.bf16 %v10096_v59, %v10095_v57  ;;  %v10117_v57 = vld [vmem:[%s12846_s25 + $0x119] sm:$0x3]  ;;  %v10118_v59 = vld [vmem:[%s12846_s25 + $0x121] sm:$0xff] }
  0x8b   : > { %10959 = vrot.lane.b32.xlu1 %v10958_v63, %s12776_s28  ;;  %v10073_v63 = vld [vmem:[%s12846_s25 + $0x168] sm:$0xff] }
  0x8c   : > { %10954 = vrot.lane.b32.xlu0 %v10953_v1, %s12776_s28  ;;  %v10074_v1 = vld [vmem:[%s12846_s25 + $0x170] sm:$0xff] }
  0x8d   : > { %v13055_v15 = vpop.permute.xlu1 %10679 }
  0x8e   : > { %v13059_v18 = vpop.permute.xlu0 %10669 }
  0x8f   : > { %10969 = vrot.lane.b32.xlu1 %v10968_v11, %s12776_s28  ;;  %v11038_v11 = vpack.i.bf16 %v10074_v1, %v10073_v63  ;;  %v10101_v63 = vld [vmem:[%s12846_s25 + $0x99] sm:$0xff]  ;;  %v10102_v1 = vld [vmem:[%s12846_s25 + $0xa1] sm:$0x3] }
  0x90   : > { %10964 = vrot.lane.b32.xlu0 %v10963_v12, %s12776_s28  ;;  %v11033_v12 = vpack.i.bf16 %v10072_v7, %v10071_v3  ;;  %v10099_v7 = vld [vmem:[%s12846_s25 + $0x89] sm:$0x3]  ;;  %v11108_v13 = vpack.i.bf16 %v10102_v1, %v10101_v63  ;;  %v10116_v63 = vld [vmem:[%s12846_s25 + $0x111] sm:$0xff] }
  0x91   : > { %v13065_v24 = vpop.permute.xlu1 %10689 }
  0x92   : > { %v13069_v27 = vpop.permute.xlu0 %10684 }
  0x93   : > { %10979 = vrot.lane.b32.xlu1 %v10978_v19, %s12776_s28  ;;  %v10076_v19 = vld [vmem:[%s12846_s25 + $0x180] sm:$0xff] }
  0x94   : > { %10974 = vrot.lane.b32.xlu0 %v10973_v21, %s12776_s28  ;;  %v11043_v23 = vpack.i.bf16 %v10076_v19, %v10075_v17  ;;  %v10105_v17 = vld [vmem:[%s12846_s25 + $0xb9] sm:$0x3]  ;;  %v10106_v19 = vld [vmem:[%s12846_s25 + $0xc1] sm:$0xff] }
  0x95   : > { %v13075_v32 = vpop.permute.xlu1 %10699 }
  0x96   : > { %v13079_v35 = vpop.permute.xlu0 %10694 }
  0x97   : > { %10989 = vrot.lane.b32.xlu1 %v10988_v28, %s12776_s28 }
  0x98   : > { %10984 = vrot.lane.b32.xlu0 %v10983_v29, %s12776_s28  ;;  %v10079_v29 = vld [vmem:[%s12846_s25 + $0x198] sm:$0xff] }
  0x99   : > { %v13085_v40 = vpop.permute.xlu1 %10709  ;;  %v11053_v34 = vpack.i.bf16 %v10080_v30, %v10079_v29  ;;  %v11118_v29 = vpack.i.bf16 %v10106_v19, %v10105_v17  ;;  %v10119_v19 = vld [vmem:[%s12846_s25 + $0x129] sm:$0xff] }
  0x9a   : > { %v13089_v43 = vpop.permute.xlu0 %10704 }
  0x9b   : > { %10999 = vrot.lane.b32.xlu1 %v10998_v36, %s12776_s28 }
  0x9c   : > { %10994 = vrot.lane.b32.xlu0 %v10993_v37, %s12776_s28  ;;  %v10083_v37 = vld [vmem:[%s12846_s25 + $0x1b8] sm:$0xff] }
  0x9d   : > { %v13095_v48 = vpop.permute.xlu1 %10719  ;;  %v11063_v41 = vpack.i.bf16 %v10084_v38, %v10083_v37  ;;  %v10107_v38 = vld [vmem:[%s12846_s25 + $0xc9] sm:$0xff] }
  0x9e   : > { %v13099_v51 = vpop.permute.xlu0 %10714 }
  0x9f   : > { %11009 = vrot.lane.b32.xlu1 %v11008_v44, %s12776_s28 }
  0xa0   : > { %11004 = vrot.lane.b32.xlu0 %v11003_v45, %s12776_s28  ;;  %v10087_v45 = vld [vmem:[%s12846_s25 + $0x29] sm:$0x3] }
  0xa1   : > { %v13105_v56 = vpop.permute.xlu1 %10729  ;;  %v11073_v49 = vpack.i.bf16 %v12856_v5, %v10087_v45  ;;  %v10098_v5 = vld [vmem:[%s12846_s25 + $0x81] sm:$0xff] }
  0xa2   : > { %v13109_v60 = vpop.permute.xlu0 %10724 }
  0xa3   : > { %11019 = vrot.lane.b32.xlu1 %v11018_v52, %s12776_s28 }
  0xa4   : > { %11014 = vrot.lane.b32.xlu0 %v11013_v53, %s12776_s28  ;;  %v10091_v53 = vld [vmem:[%s12846_s25 + $0x49] sm:$0xff] }
  0xa5   : > { %v13115_v2 = vpop.permute.xlu1 %10739  ;;  %v11083_v6 = vpack.i.bf16 %v10092_v54, %v10091_v53  ;;  %v10111_v54 = vld [vmem:[%s12846_s25 + $0xe9] sm:$0x3] }
  0xa6   : > { %v13119_v8 = vpop.permute.xlu0 %10734 }
  0xa7   : > { %11029 = vrot.lane.b32.xlu1 %v11028_v61, %s12776_s28 }
  0xa8   : > { %11024 = vrot.lane.b32.xlu0 %v11023_v62, %s12776_s28  ;;  %v11098_v62 = vpack.i.bf16 %v10098_v5, %v10097_v9 }
  0xa9   : > { %v13125_v16 = vpop.permute.xlu1 %10749 }
  0xaa   : > { %v13129_v21 = vpop.permute.xlu0 %10744 }
  0xab   : > { %11039 = vrot.lane.b32.xlu1 %v11038_v11, %s12776_s28  ;;  %v10100_v11 = vld [vmem:[%s12846_s25 + $0x91] sm:$0xff] }
  0xac   : > { %11034 = vrot.lane.b32.xlu0 %v11033_v12, %s12776_s28  ;;  %v11103_v14 = vpack.i.bf16 %v10100_v11, %v10099_v7  ;;  %v11148_v7 = vpack.i.bf16 %v10118_v59, %v10117_v57  ;;  %v10128_v57 = vld [vmem:[%s12846_s25 + $0x171] sm:$0xff] }
  0xad   : > { %v13135_v28 = vpop.permute.xlu1 %10759 }
  0xae   : > { %v13139_v31 = vpop.permute.xlu0 %10754 }
  0xaf   : > { %11049 = vrot.lane.b32.xlu1 %v11048_v22, %s12776_s28 }
  0xb0   : > { %11044 = vrot.lane.b32.xlu0 %v11043_v23, %s12776_s28  ;;  %v10103_v23 = vld [vmem:[%s12846_s25 + $0xa9] sm:$0xff] }
  0xb1   : > { %v13143_v36 = vpop.permute.xlu1 %10769  ;;  %v11113_v30 = vpack.i.bf16 %v10104_v25, %v10103_v23  ;;  %v10120_v23 = vld [vmem:[%s12846_s25 + $0x131] sm:$0x3] }
  0xb2   : > { %v13147_v39 = vpop.permute.xlu0 %10764 }
  0xb3   : > { %11059 = vrot.lane.b32.xlu1 %v11058_v33, %s12776_s28  ;;  %v10109_v33 = vld [vmem:[%s12846_s25 + $0xd9] sm:$0xff] }
  0xb4   : > { %11054 = vrot.lane.b32.xlu0 %v11053_v34, %s12776_s28  ;;  %v10110_v34 = vld [vmem:[%s12846_s25 + $0xe1] sm:$0xff] }
  0xb5   : > { %v13152_v44 = vpop.permute.xlu1 %10779  ;;  %v11128_v45 = vpack.i.bf16 %v10110_v34, %v10109_v33  ;;  %v10125_v33 = vld [vmem:[%s12846_s25 + $0x159] sm:$0xff]  ;;  %v10126_v34 = vld [vmem:[%s12846_s25 + $0x161] sm:$0x3] }
  0xb6   : > { %v13155_v46 = vpop.permute.xlu0 %10774 }
  0xb7   : > { %11069 = vrot.lane.b32.xlu1 %v11068_v58, %s12777_s29 }
  0xb8   : > { %11064 = vrot.lane.b32.xlu0 %v11063_v41, %s12776_s28  ;;  %v10108_v41 = vld [vmem:[%s12846_s25 + $0xd1] sm:$0x3] }
  0xb9   : > { %v13165_v52 = vpop.permute.xlu1 %10789 }
  0xba   : > { %v13169_v55 = vpop.permute.xlu0 %10784 }
  0xbb   : > { %11079 = vrot.lane.b32.xlu1 %v11078_v47, %s12777_s29  ;;  %v11123_v47 = vpack.i.bf16 %v10108_v41, %v10107_v38  ;;  %v10123_v41 = vld [vmem:[%s12846_s25 + $0x149] sm:$0x3] }
  0xbc   : > { %11074 = vrot.lane.b32.xlu0 %v11073_v49, %s12777_s29  ;;  %v10113_v49 = vld [vmem:[%s12846_s25 + $0xf9] sm:$0xff] }
  0xbd   : > { %v13176_v58 = vpop.permute.xlu1 %10799  ;;  %v11138_v9 = vpack.i.bf16 %v10114_v50, %v10113_v49  ;;  %v11168_v49 = vpack.i.bf16 %v10126_v34, %v10125_v33  ;;  %v10137_v33 = vld [vmem:[%s12846_s25 + $0x1b9] sm:$0xff]  ;;  %v10138_v34 = vld [vmem:[%s12846_s25 + $0x1c1] sm:$0x3] }
  0xbe   : > { %v13180_v61 = vpop.permute.xlu0 %10794 }
  0xbf   : > { %11089 = vrot.lane.b32.xlu1 %v11088_v0, %s12777_s29  ;;  %v10112_v0 = vld [vmem:[%s12846_s25 + $0xf1] sm:$0xff] }
  0xc0   : > { %11084 = vrot.lane.b32.xlu0 %v11083_v6, %s12777_s29  ;;  %v11133_v5 = vpack.i.bf16 %v10112_v0, %v10111_v54  ;;  %v10129_v54 = vld [vmem:[%s12846_s25 + $0x179] sm:$0x3]  ;;  %v10130_v0 = vld [vmem:[%s12846_s25 + $0x181] sm:$0xff] }
  0xc1   : > { %v13186_v3 = vpop.permute.xlu1 %10809 }
  0xc2   : > { %v13190_v12 = vpop.permute.xlu0 %10804 }
  0xc3   : > { %11099 = vrot.lane.b32.xlu1 %v11098_v62, %s12777_s29 }
  0xc4   : > { %11094 = vrot.lane.b32.xlu0 %v11093_v20, %s12777_s29  ;;  %v10115_v20 = vld [vmem:[%s12846_s25 + $0x109] sm:$0xff] }
  0xc5   : > { %v13196_v22 = vpop.permute.xlu1 %10819  ;;  %v11143_v11 = vpack.i.bf16 %v10116_v63, %v10115_v20  ;;  %v11178_v20 = vpack.i.bf16 %v10130_v0, %v10129_v54  ;;  %v11198_v54 = vpack.i.bf16 %v10138_v34, %v10137_v33  ;;  %v10143_v34 = vld [vmem:[%s12846_s25 + $0x3a] sm:$0xff] }
  0xc6   : > { %v13200_v26 = vpop.permute.xlu0 %10814 }
  0xc7   : > { %11109 = vrot.lane.b32.xlu1 %v11108_v13, %s12777_s29  ;;  %v10121_v13 = vld [vmem:[%s12846_s25 + $0x139] sm:$0xff] }
  0xc8   : > { %11104 = vrot.lane.b32.xlu0 %v11103_v14, %s12777_s29  ;;  %v10122_v14 = vld [vmem:[%s12846_s25 + $0x141] sm:$0xff] }
  0xc9   : > { %v13206_v37 = vpop.permute.xlu1 %10829 }
  0xca   : > { %v13210_v42 = vpop.permute.xlu0 %10824 }
  0xcb   : > { %11119 = vrot.lane.b32.xlu1 %v11118_v29, %s12777_s29  ;;  %v11158_v29 = vpack.i.bf16 %v10122_v14, %v10121_v13  ;;  %v10131_v14 = vld [vmem:[%s12846_s25 + $0x189] sm:$0xff] }
  0xcc   : > { %11114 = vrot.lane.b32.xlu0 %v11113_v30, %s12777_s29  ;;  %v11153_v30 = vpack.i.bf16 %v10120_v23, %v10119_v19  ;;  %v10132_v19 = vld [vmem:[%s12846_s25 + $0x191] sm:$0x3] }
  0xcd   : > { %v13216_v53 = vpop.permute.xlu1 %10839 }
  0xce   : > { %v13220_v6 = vpop.permute.xlu0 %10834 }
  0xcf   : > { %11129 = vrot.lane.b32.xlu1 %v11128_v45, %s12777_s29  ;;  %v10124_v45 = vld [vmem:[%s12846_s25 + $0x151] sm:$0xff] }
  0xd0   : > { %11124 = vrot.lane.b32.xlu0 %v11123_v47, %s12777_s29  ;;  %v11163_v50 = vpack.i.bf16 %v10124_v45, %v10123_v41  ;;  %v10135_v45 = vld [vmem:[%s12846_s25 + $0x1a9] sm:$0x3] }
  0xd1   : > { %v13226_v62 = vpop.permute.xlu1 %10849 }
  0xd2   : > { %v13230_v1 = vpop.permute.xlu0 %10844 }
  0xd3   : > { %19542 = vst [vmem:[#allocation3_spill] sm:$0xff] %v13230_v1  ;;  %11139 = vrot.lane.b32.xlu1 %v11138_v9, %s12777_s29 }
  0xd4   : > { %11134 = vrot.lane.b32.xlu0 %v11133_v5, %s12777_s29  ;;  %v10127_v5 = vld [vmem:[%s12846_s25 + $0x169] sm:$0xff] }
  0xd5   : > { %v13236_v17 = vpop.permute.xlu1 %10859  ;;  %v11173_v63 = vpack.i.bf16 %v10128_v57, %v10127_v5  ;;  %v10141_v5 = vld [vmem:[%s12846_s25 + $0x2a] sm:$0x3]  ;;  %v10142_v57 = vld [vmem:[%s12846_s25 + $0x32] sm:$0xff] }
  0xd6   : > { %19543 = vst [vmem:[#allocation4_spill] sm:$0xff] %v13236_v17  ;;  %v13240_v25 = vpop.permute.xlu0 %10854 }
  0xd7   : > { %19544 = vst [vmem:[#allocation5_spill] sm:$0xff] %v13240_v25  ;;  %11149 = vrot.lane.b32.xlu1 %v11148_v7, %s12777_s29  ;;  %v10133_v7 = vld [vmem:[%s12846_s25 + $0x199] sm:$0xff] }
  0xd8   : > { %11144 = vrot.lane.b32.xlu0 %v11143_v11, %s12777_s29  ;;  %v10134_v11 = vld [vmem:[%s12846_s25 + $0x1a1] sm:$0xff] }
  0xd9   : > { %v13246_v38 = vpop.permute.xlu1 %10869 }
  0xda   : > { %19545 = vst [vmem:[#allocation6_spill] sm:$0xff] %v13246_v38  ;;  %v13250_v47 = vpop.permute.xlu0 %10864 }
  0xdb   : > { %19546 = vst [vmem:[#allocation7_spill] sm:$0xff] %v13250_v47  ;;  %11159 = vrot.lane.b32.xlu1 %v11158_v29, %s12777_s29  ;;  %v11188_v29 = vpack.i.bf16 %v10134_v11, %v10133_v7  ;;  %v10140_v7 = vld [vmem:[%s12846_s25 + $0x22] sm:$0xff]  ;;  %v12712_v47 = vld [vmem:[%s12846_s25 + $0x38] sm:$0xff] }
  0xdc   : > { %11154 = vrot.lane.b32.xlu0 %v11153_v30, %s12777_s29  ;;  %v11183_v30 = vpack.i.bf16 %v10132_v19, %v10131_v14  ;;  %v11208_v14 = vpack.i.bf16 %v10142_v57, %v10141_v5  ;;  %v10149_v5 = vld [vmem:[%s12846_s25 + $0x6a] sm:$0xff]  ;;  %v10150_v57 = vld [vmem:[%s12846_s25 + $0x72] sm:$0x3] }
  0xdd   : > { %v13256_v9 = vpop.permute.xlu1 %10879 }
  0xde   : > { %19547 = vst [vmem:[#allocation8_spill] sm:$0xff] %v13256_v9  ;;  %v13260_v59 = vpop.permute.xlu0 %10874  ;;  %v262_v9 = vld [vmem:[%s12846_s25 + $0x40] sm:$0x3] }
  0xdf   : > { %19548 = vst [vmem:[#allocation9_spill] sm:$0xff] %v13260_v59  ;;  %11169 = vrot.lane.b32.xlu1 %v11168_v49, %s12777_s29  ;;  %v10136_v49 = vld [vmem:[%s12846_s25 + $0x1b1] sm:$0xff] }
  0xe0   : > { %11164 = vrot.lane.b32.xlu0 %v11163_v50, %s12777_s29  ;;  %v11193_v0 = vpack.i.bf16 %v10136_v49, %v10135_v45  ;;  %v10144_v45 = vld [vmem:[%s12846_s25 + $0x42] sm:$0x3] }
  0xe1   : > { %v13266_v13 = vpop.permute.xlu1 %10889 }
  0xe2   : > { %19549 = vst [vmem:[#allocation10_spill] sm:$0xff] %v13266_v13  ;;  %v13270_v23 = vpop.permute.xlu0 %10884  ;;  %v12710_v13 = vld [vmem:[%s12846_s25 + $0x20] sm:$0xff] }
  0xe3   : > { %19550 = vst [vmem:[#allocation11_spill] sm:$0xff] %v13270_v23  ;;  %11179 = vrot.lane.b32.xlu1 %v11178_v20, %s12777_s29  ;;  %v10242_v23 = vld [vmem:[%s12846_s25 + $0x1b8] sm:$0xff] }
  0xe4   : > { %11174 = vrot.lane.b32.xlu0 %v11173_v63, %s12777_s29  ;;  %v10139_v63 = vld [vmem:[%s12846_s25 + $0x1a] sm:$0xff] }
  0xe5   : > { %v13276_v41 = vpop.permute.xlu1 %10899  ;;  %v11203_v19 = vpack.i.bf16 %v10140_v7, %v10139_v63  ;;  %v10147_v7 = vld [vmem:[%s12846_s25 + $0x5a] sm:$0x3] }
  0xe6   : > { %19551 = vst [vmem:[#allocation12_spill] sm:$0xff] %v13276_v41  ;;  %v13280_v50 = vpop.permute.xlu0 %10894  ;;  %v10671_v41 = vunpack.i.l.bf16 %v13059_v18 }
  0xe7   : > { %19552 = vst [vmem:[#allocation13_spill] sm:$0xff] %v13280_v50  ;;  %11189 = vrot.lane.b32.xlu1 %v11188_v29, %s12777_s29  ;;  %v10145_v29 = vld [vmem:[%s12846_s25 + $0x4a] sm:$0xff]  ;;  %v10672_v50 = vunpack.i.h.bf16 %v13059_v18  ;;  %v10239_v18 = vld [vmem:[%s12846_s25 + $0x1a0] sm:$0xff] }
  0xe8   : > { %11184 = vrot.lane.b32.xlu0 %v11183_v30, %s12777_s29  ;;  %v10146_v30 = vld [vmem:[%s12846_s25 + $0x52] sm:$0xff] }
  0xe9   : > { %v13286_v20 = vpop.permute.xlu1 %10909 }
  0xea   : > { %19553 = vst [vmem:[#allocation14_spill] sm:$0xff] %v13286_v20  ;;  %v13290_v11 = vpop.permute.xlu0 %10904  ;;  %v10236_v20 = vld [vmem:[%s12846_s25 + $0x188] sm:$0xff] }
  0xeb   : > { %19554 = vst [vmem:[#allocation15_spill] sm:$0xff] %v13290_v11  ;;  %11199 = vrot.lane.b32.xlu1 %v11198_v54, %s12777_s29  ;;  %v11218_v54 = vpack.i.bf16 %v10146_v30, %v10145_v29  ;;  %v10154_v29 = vld [vmem:[%s12846_s25 + $0x92] sm:$0xff] }
  0xec   : > { %11194 = vrot.lane.b32.xlu0 %v11193_v0, %s12777_s29  ;;  %v11213_v0 = vpack.i.bf16 %v10144_v45, %v10143_v34  ;;  %v10151_v34 = vld [vmem:[%s12846_s25 + $0x7a] sm:$0xff]  ;;  %v10152_v45 = vld [vmem:[%s12846_s25 + $0x82] sm:$0xff] }
  0xed   : > { %v13296_v33 = vpop.permute.xlu1 %10919 }
  0xee   : > { %19555 = vst [vmem:[#allocation16_spill] sm:$0xff] %v13296_v33  ;;  %v13300_v49 = vpop.permute.xlu0 %10914  ;;  %v10148_v33 = vld [vmem:[%s12846_s25 + $0x62] sm:$0xff] }
  0xef   : > { %19556 = vst [vmem:[#allocation17_spill] sm:$0xff] %v13300_v49  ;;  %11209 = vrot.lane.b32.xlu1 %v11208_v14, %s12778_s30  ;;  %v11228_v49 = vpack.i.bf16 %v10150_v57, %v10149_v5  ;;  %v11223_v14 = vpack.i.bf16 %v10148_v33, %v10147_v7  ;;  %v10158_v33 = vld [vmem:[%s12846_s25 + $0xb2] sm:$0xff]  ;;  %v10155_v57 = vld [vmem:[%s12846_s25 + $0x9a] sm:$0xff]  ;;  %v10156_v7 = vld [vmem:[%s12846_s25 + $0xa2] sm:$0x3] }
  0xf0   : > { %11204 = vrot.lane.b32.xlu0 %v11203_v19, %s12778_s30  ;;  %v10153_v19 = vld [vmem:[%s12846_s25 + $0x8a] sm:$0x3] }
  0xf1   : > { %v13306_v63 = vpop.permute.xlu1 %10929 }
  0xf2   : > { %19557 = vst [vmem:[#allocation18_spill] sm:$0xff] %v13306_v63  ;;  %v13310_v11 = vpop.permute.xlu0 %10924 }
  0xf3   : > { %19558 = vst [vmem:[#allocation19_spill] sm:$0xff] %v13310_v11  ;;  %11219 = vrot.lane.b32.xlu1 %v11218_v54, %s12778_s30  ;;  %v11238_v11 = vpack.i.bf16 %v10154_v29, %v10153_v19  ;;  %v11233_v54 = vpack.i.bf16 %v10152_v45, %v10151_v34  ;;  %v10162_v19 = vld [vmem:[%s12846_s25 + $0xd2] sm:$0x3]  ;;  %v10159_v34 = vld [vmem:[%s12846_s25 + $0xba] sm:$0x3]  ;;  %v10160_v45 = vld [vmem:[%s12846_s25 + $0xc2] sm:$0xff] }
  0xf4   : > { %11214 = vrot.lane.b32.xlu0 %v11213_v0, %s12778_s30  ;;  %v10157_v0 = vld [vmem:[%s12846_s25 + $0xaa] sm:$0xff] }
  0xf5   : > { %v13316_v30 = vpop.permute.xlu1 %10939 }
  0xf6   : > { %19559 = vst [vmem:[#allocation20_spill] sm:$0xff] %v13316_v30  ;;  %v13320_v63 = vpop.permute.xlu0 %10934 }
  0xf7   : > { %19560 = vst [vmem:[#allocation21_spill] sm:$0xff] %v13320_v63  ;;  %11229 = vrot.lane.b32.xlu1 %v11228_v49, %s12778_s30  ;;  %v11248_v63 = vpack.i.bf16 %v10158_v33, %v10157_v0  ;;  %v11243_v49 = vpack.i.bf16 %v10156_v7, %v10155_v57  ;;  %v10166_v0 = vld [vmem:[%s12846_s25 + $0xf2] sm:$0xff]  ;;  %v10163_v57 = vld [vmem:[%s12846_s25 + $0xda] sm:$0xff]  ;;  %v10164_v7 = vld [vmem:[%s12846_s25 + $0xe2] sm:$0xff] }
  0xf8   : > { %11224 = vrot.lane.b32.xlu0 %v11223_v14, %s12778_s30  ;;  %v10161_v14 = vld [vmem:[%s12846_s25 + $0xca] sm:$0xff] }
  0xf9   : > { %v13326_v5 = vpop.permute.xlu1 %10949 }
  0xfa   : > { %19561 = vst [vmem:[#allocation22_spill] sm:$0xff] %v13326_v5  ;;  %v13330_v30 = vpop.permute.xlu0 %10944 }
  0xfb   : > { %19562 = vst [vmem:[#allocation23_spill] sm:$0xff] %v13330_v30  ;;  %11239 = vrot.lane.b32.xlu1 %v11238_v11, %s12778_s30  ;;  %v11258_v30 = vpack.i.bf16 %v10162_v19, %v10161_v14  ;;  %v11253_v11 = vpack.i.bf16 %v10160_v45, %v10159_v34  ;;  %v10170_v14 = vld [vmem:[%s12846_s25 + $0x112] sm:$0xff]  ;;  %v10167_v34 = vld [vmem:[%s12846_s25 + $0xfa] sm:$0xff]  ;;  %v10168_v45 = vld [vmem:[%s12846_s25 + $0x102] sm:$0x3] }
  0xfc   : > { %11234 = vrot.lane.b32.xlu0 %v11233_v54, %s12778_s30  ;;  %v10165_v54 = vld [vmem:[%s12846_s25 + $0xea] sm:$0x3] }
  0xfd   : > { %v13336_v29 = vpop.permute.xlu1 %10959 }
  0xfe   : > { %19563 = vst [vmem:[#allocation24_spill] sm:$0xff] %v13336_v29  ;;  %v13340_v5 = vpop.permute.xlu0 %10954 }
  0xff   : > { %19564 = vst [vmem:[#allocation25_spill] sm:$0xff] %v13340_v5  ;;  %11249 = vrot.lane.b32.xlu1 %v11248_v63, %s12778_s30  ;;  %v11268_v5 = vpack.i.bf16 %v10166_v0, %v10165_v54  ;;  %v11263_v63 = vpack.i.bf16 %v10164_v7, %v10163_v57  ;;  %v10174_v54 = vld [vmem:[%s12846_s25 + $0x132] sm:$0x3]  ;;  %v10171_v57 = vld [vmem:[%s12846_s25 + $0x11a] sm:$0x3]  ;;  %v10172_v7 = vld [vmem:[%s12846_s25 + $0x122] sm:$0xff] }
 0x100   : > { %11244 = vrot.lane.b32.xlu0 %v11243_v49, %s12778_s30  ;;  %v10169_v49 = vld [vmem:[%s12846_s25 + $0x10a] sm:$0xff] }
 0x101   : > { %v13346_v33 = vpop.permute.xlu1 %10969 }
 0x102   : > { %19565 = vst [vmem:[#allocation26_spill] sm:$0xff] %v13346_v33  ;;  %v13350_v29 = vpop.permute.xlu0 %10964 }
 0x103   : > { %19566 = vst [vmem:[#allocation27_spill] sm:$0xff] %v13350_v29  ;;  %11259 = vrot.lane.b32.xlu1 %v11258_v30, %s12778_s30  ;;  %v11278_v29 = vpack.i.bf16 %v10170_v14, %v10169_v49  ;;  %v11273_v30 = vpack.i.bf16 %v10168_v45, %v10167_v34  ;;  %v10178_v49 = vld [vmem:[%s12846_s25 + $0x152] sm:$0xff]  ;;  %v10175_v34 = vld [vmem:[%s12846_s25 + $0x13a] sm:$0xff]  ;;  %v10176_v45 = vld [vmem:[%s12846_s25 + $0x142] sm:$0xff] }
 0x104   : > { %11254 = vrot.lane.b32.xlu0 %v11253_v11, %s12778_s30  ;;  %v10173_v11 = vld [vmem:[%s12846_s25 + $0x12a] sm:$0xff] }
 0x105   : > { %v13356_v19 = vpop.permute.xlu1 %10979 }
 0x106   : > { %19567 = vst [vmem:[#allocation28_spill] sm:$0xff] %v13356_v19  ;;  %v13360_v33 = vpop.permute.xlu0 %10974 }
 0x107   : > { %19568 = vst [vmem:[#allocation29_spill] sm:$0xff] %v13360_v33  ;;  %11269 = vrot.lane.b32.xlu1 %v11268_v5, %s12778_s30  ;;  %v11288_v33 = vpack.i.bf16 %v10174_v54, %v10173_v11  ;;  %v11283_v5 = vpack.i.bf16 %v10172_v7, %v10171_v57  ;;  %v10182_v11 = vld [vmem:[%s12846_s25 + $0x172] sm:$0xff]  ;;  %v10179_v57 = vld [vmem:[%s12846_s25 + $0x15a] sm:$0xff]  ;;  %v10180_v7 = vld [vmem:[%s12846_s25 + $0x162] sm:$0x3] }
 0x108   : > { %11264 = vrot.lane.b32.xlu0 %v11263_v63, %s12778_s30  ;;  %v10177_v63 = vld [vmem:[%s12846_s25 + $0x14a] sm:$0x3] }
 0x109   : > { %v13366_v0 = vpop.permute.xlu1 %10989 }
 0x10a   : > { %19569 = vst [vmem:[#allocation30_spill] sm:$0xff] %v13366_v0  ;;  %v13370_v19 = vpop.permute.xlu0 %10984 }
 0x10b   : > { %19570 = vst [vmem:[#allocation31_spill] sm:$0xff] %v13370_v19  ;;  %11279 = vrot.lane.b32.xlu1 %v11278_v29, %s12778_s30  ;;  %v11298_v19 = vpack.i.bf16 %v10178_v49, %v10177_v63  ;;  %v11293_v29 = vpack.i.bf16 %v10176_v45, %v10175_v34  ;;  %v10186_v63 = vld [vmem:[%s12846_s25 + $0x192] sm:$0x3]  ;;  %v10183_v34 = vld [vmem:[%s12846_s25 + $0x17a] sm:$0x3]  ;;  %v10184_v45 = vld [vmem:[%s12846_s25 + $0x182] sm:$0xff] }
 0x10c   : > { %11274 = vrot.lane.b32.xlu0 %v11273_v30, %s12778_s30  ;;  %v10181_v30 = vld [vmem:[%s12846_s25 + $0x16a] sm:$0xff] }
 0x10d   : > { %v13376_v14 = vpop.permute.xlu1 %10999 }
 0x10e   : > { %19571 = vst [vmem:[#allocation32_spill] sm:$0xff] %v13376_v14  ;;  %v13380_v0 = vpop.permute.xlu0 %10994 }
 0x10f   : > { %19572 = vst [vmem:[#allocation33_spill] sm:$0xff] %v13380_v0  ;;  %11289 = vrot.lane.b32.xlu1 %v11288_v33, %s12778_s30  ;;  %v11308_v0 = vpack.i.bf16 %v10182_v11, %v10181_v30  ;;  %v11303_v33 = vpack.i.bf16 %v10180_v7, %v10179_v57  ;;  %v10190_v30 = vld [vmem:[%s12846_s25 + $0x1b2] sm:$0xff]  ;;  %v10187_v57 = vld [vmem:[%s12846_s25 + $0x19a] sm:$0xff]  ;;  %v10188_v7 = vld [vmem:[%s12846_s25 + $0x1a2] sm:$0xff] }
 0x110   : > { %11284 = vrot.lane.b32.xlu0 %v11283_v5, %s12778_s30  ;;  %v10185_v5 = vld [vmem:[%s12846_s25 + $0x18a] sm:$0xff] }
 0x111   : > { %v13386_v54 = vpop.permute.xlu1 %11009 }
 0x112   : > { %19573 = vst [vmem:[#allocation34_spill] sm:$0xff] %v13386_v54  ;;  %v13390_v14 = vpop.permute.xlu0 %11004 }
 0x113   : > { %19574 = vst [vmem:[#allocation35_spill] sm:$0xff] %v13390_v14  ;;  %11299 = vrot.lane.b32.xlu1 %v11298_v19, %s12778_s30  ;;  %v11318_v14 = vpack.i.bf16 %v10186_v63, %v10185_v5  ;;  %v11313_v19 = vpack.i.bf16 %v10184_v45, %v10183_v34  ;;  %v10194_v5 = vld [vmem:[%s12846_s25 + $0x38] sm:$0xff]  ;;  %v10192_v45 = vld [vmem:[%s12846_s25 + $0x1c2] sm:$0x3] }
 0x114   : > { %11294 = vrot.lane.b32.xlu0 %v11293_v29, %s12778_s30  ;;  %v10189_v29 = vld [vmem:[%s12846_s25 + $0x1aa] sm:$0x3]  ;;  %v10191_v34 = vld [vmem:[%s12846_s25 + $0x1ba] sm:$0xff] }
 0x115   : > { %v13396_v49 = vpop.permute.xlu1 %11019 }
 0x116   : > { %19575 = vst [vmem:[#allocation36_spill] sm:$0xff] %v13396_v49  ;;  %v13400_v54 = vpop.permute.xlu0 %11014 }
 0x117   : > { %19576 = vst [vmem:[#allocation37_spill] sm:$0xff] %v13400_v54  ;;  %11309 = vrot.lane.b32.xlu1 %v11308_v0, %s12778_s30  ;;  %v11328_v54 = vpack.i.bf16 %v10190_v30, %v10189_v29  ;;  %v11323_v0 = vpack.i.bf16 %v10188_v7, %v10187_v57  ;;  %v10198_v29 = vld [vmem:[%s12846_s25 + $0x58] sm:$0x3]  ;;  %v10195_v57 = vld [vmem:[%s12846_s25 + $0x40] sm:$0x3]  ;;  %v10196_v7 = vld [vmem:[%s12846_s25 + $0x48] sm:$0xff] }
 0x118   : > { %11304 = vrot.lane.b32.xlu0 %v11303_v33, %s12778_s30  ;;  %v10193_v33 = vld [vmem:[%s12846_s25 + $0x30] sm:$0xff] }
 0x119   : > { %v13406_v11 = vpop.permute.xlu1 %11029 }
 0x11a   : > { %19577 = vst [vmem:[#allocation38_spill] sm:$0xff] %v13406_v11  ;;  %v13410_v49 = vpop.permute.xlu0 %11024 }
 0x11b   : > { %19578 = vst [vmem:[#allocation39_spill] sm:$0xff] %v13410_v49  ;;  %11319 = vrot.lane.b32.xlu1 %v11318_v14, %s12778_s30  ;;  %v11338_v49 = vpack.i.bf16 %v10194_v5, %v10193_v33  ;;  %v11333_v14 = vpack.i.bf16 %v10192_v45, %v10191_v34  ;;  %v10201_v33 = vld [vmem:[%s12846_s25 + $0x70] sm:$0x3]  ;;  %v10202_v5 = vld [vmem:[%s12846_s25 + $0x78] sm:$0xff]  ;;  %v10199_v45 = vld [vmem:[%s12846_s25 + $0x60] sm:$0xff] }
 0x11c   : > { %11314 = vrot.lane.b32.xlu0 %v11313_v19, %s12778_s30  ;;  %v10197_v19 = vld [vmem:[%s12846_s25 + $0x50] sm:$0xff] }
 0x11d   : > { %v13416_v63 = vpop.permute.xlu1 %11039 }
 0x11e   : > { %19579 = vst [vmem:[#allocation40_spill] sm:$0xff] %v13416_v63  ;;  %v13420_v11 = vpop.permute.xlu0 %11034 }
 0x11f   : > { %19580 = vst [vmem:[#allocation41_spill] sm:$0xff] %v13420_v11  ;;  %11329 = vrot.lane.b32.xlu1 %v11328_v54, %s12778_s30  ;;  %v11348_v54 = vpack.i.bf16 %v10198_v29, %v10197_v19  ;;  %v10206_v19 = vld [vmem:[%s12846_s25 + $0x98] sm:$0xff] }
 0x120   : > { %11324 = vrot.lane.b32.xlu0 %v11323_v0, %s12778_s30  ;;  %v11343_v0 = vpack.i.bf16 %v10196_v7, %v10195_v57  ;;  %v10203_v57 = vld [vmem:[%s12846_s25 + $0x80] sm:$0xff]  ;;  %v10204_v7 = vld [vmem:[%s12846_s25 + $0x88] sm:$0x3] }
 0x121   : > { %v13426_v30 = vpop.permute.xlu1 %11049 }
 0x122   : > { %19581 = vst [vmem:[#allocation42_spill] sm:$0xff] %v13426_v30  ;;  %v13430_v63 = vpop.permute.xlu0 %11044  ;;  %v10200_v30 = vld [vmem:[%s12846_s25 + $0x68] sm:$0xff] }
 0x123   : > { %19582 = vst [vmem:[#allocation43_spill] sm:$0xff] %v13430_v63  ;;  %11339 = vrot.lane.b32.xlu1 %v11338_v49, %s12779_s6  ;;  %v11358_v63 = vpack.i.bf16 %v10202_v5, %v10201_v33  ;;  %v11353_v49 = vpack.i.bf16 %v10200_v30, %v10199_v45  ;;  %v10210_v30 = vld [vmem:[%s12846_s25 + $0xb8] sm:$0x3]  ;;  %v10207_v5 = vld [vmem:[%s12846_s25 + $0xa0] sm:$0x3]  ;;  %v10208_v45 = vld [vmem:[%s12846_s25 + $0xa8] sm:$0xff] }
 0x124   : > { %11334 = vrot.lane.b32.xlu0 %v11333_v14, %s12778_s30  ;;  %v10205_v14 = vld [vmem:[%s12846_s25 + $0x90] sm:$0xff] }
 0x125   : > { %v13436_v34 = vpop.permute.xlu1 %11059 }
 0x126   : > { %19583 = vst [vmem:[#allocation44_spill] sm:$0xff] %v13436_v34  ;;  %v13440_v11 = vpop.permute.xlu0 %11054 }
 0x127   : > { %19584 = vst [vmem:[#allocation45_spill] sm:$0xff] %v13440_v11  ;;  %11349 = vrot.lane.b32.xlu1 %v11348_v54, %s12779_s6  ;;  %v11368_v11 = vpack.i.bf16 %v10206_v19, %v10205_v14  ;;  %v11363_v54 = vpack.i.bf16 %v10204_v7, %v10203_v57  ;;  %v10214_v14 = vld [vmem:[%s12846_s25 + $0xd8] sm:$0xff]  ;;  %v10211_v57 = vld [vmem:[%s12846_s25 + $0xc0] sm:$0xff]  ;;  %v10212_v7 = vld [vmem:[%s12846_s25 + $0xc8] sm:$0xff] }
 0x128   : > { %11344 = vrot.lane.b32.xlu0 %v11343_v0, %s12779_s6  ;;  %v10209_v0 = vld [vmem:[%s12846_s25 + $0xb0] sm:$0xff] }
 0x129   : > { %v13446_v29 = vpop.permute.xlu1 %11069 }
 0x12a   : > { %19585 = vst [vmem:[#allocation46_spill] sm:$0xff] %v13446_v29  ;;  %v13450_v34 = vpop.permute.xlu0 %11064 }
 0x12b   : > { %19586 = vst [vmem:[#allocation47_spill] sm:$0xff] %v13450_v34  ;;  %11359 = vrot.lane.b32.xlu1 %v11358_v63, %s12779_s6  ;;  %v11378_v34 = vpack.i.bf16 %v10210_v30, %v10209_v0  ;;  %v11373_v63 = vpack.i.bf16 %v10208_v45, %v10207_v5  ;;  %v10218_v0 = vld [vmem:[%s12846_s25 + $0xf8] sm:$0xff]  ;;  %v10215_v5 = vld [vmem:[%s12846_s25 + $0xe0] sm:$0xff]  ;;  %v10216_v45 = vld [vmem:[%s12846_s25 + $0xe8] sm:$0x3] }
 0x12c   : > { %11354 = vrot.lane.b32.xlu0 %v11353_v49, %s12779_s6  ;;  %v10213_v49 = vld [vmem:[%s12846_s25 + $0xd0] sm:$0x3] }
 0x12d   : > { %v13456_v33 = vpop.permute.xlu1 %11079 }
 0x12e   : > { %19587 = vst [vmem:[#allocation48_spill] sm:$0xff] %v13456_v33  ;;  %v13460_v29 = vpop.permute.xlu0 %11074 }
 0x12f   : > { %19588 = vst [vmem:[#allocation49_spill] sm:$0xff] %v13460_v29  ;;  %11369 = vrot.lane.b32.xlu1 %v11368_v11, %s12779_s6  ;;  %v11388_v29 = vpack.i.bf16 %v10214_v14, %v10213_v49  ;;  %v11383_v11 = vpack.i.bf16 %v10212_v7, %v10211_v57  ;;  %v10222_v49 = vld [vmem:[%s12846_s25 + $0x118] sm:$0x3]  ;;  %v10219_v57 = vld [vmem:[%s12846_s25 + $0x100] sm:$0x3]  ;;  %v10220_v7 = vld [vmem:[%s12846_s25 + $0x108] sm:$0xff] }
 0x130   : > { %11364 = vrot.lane.b32.xlu0 %v11363_v54, %s12779_s6  ;;  %v10217_v54 = vld [vmem:[%s12846_s25 + $0xf0] sm:$0xff] }
 0x131   : > { %v13466_v19 = vpop.permute.xlu1 %11089 }
 0x132   : > { %19589 = vst [vmem:[#allocation50_spill] sm:$0xff] %v13466_v19  ;;  %v13470_v33 = vpop.permute.xlu0 %11084 }
 0x133   : > { %19590 = vst [vmem:[#allocation51_spill] sm:$0xff] %v13470_v33  ;;  %11379 = vrot.lane.b32.xlu1 %v11378_v34, %s12779_s6  ;;  %v11398_v33 = vpack.i.bf16 %v10218_v0, %v10217_v54  ;;  %v11393_v34 = vpack.i.bf16 %v10216_v45, %v10215_v5  ;;  %v10226_v54 = vld [vmem:[%s12846_s25 + $0x138] sm:$0xff]  ;;  %v10223_v5 = vld [vmem:[%s12846_s25 + $0x120] sm:$0xff]  ;;  %v10224_v45 = vld [vmem:[%s12846_s25 + $0x128] sm:$0xff] }
 0x134   : > { %11374 = vrot.lane.b32.xlu0 %v11373_v63, %s12779_s6  ;;  %v10221_v63 = vld [vmem:[%s12846_s25 + $0x110] sm:$0xff] }
 0x135   : > { %v13476_v30 = vpop.permute.xlu1 %11099 }
 0x136   : > { %19591 = vst [vmem:[#allocation52_spill] sm:$0xff] %v13476_v30  ;;  %v13480_v19 = vpop.permute.xlu0 %11094 }
 0x137   : > { %19592 = vst [vmem:[#allocation53_spill] sm:$0xff] %v13480_v19  ;;  %11389 = vrot.lane.b32.xlu1 %v11388_v29, %s12779_s6  ;;  %v11408_v19 = vpack.i.bf16 %v10222_v49, %v10221_v63  ;;  %v11403_v29 = vpack.i.bf16 %v10220_v7, %v10219_v57  ;;  %v10230_v63 = vld [vmem:[%s12846_s25 + $0x158] sm:$0xff]  ;;  %v10227_v57 = vld [vmem:[%s12846_s25 + $0x140] sm:$0xff]  ;;  %v10228_v7 = vld [vmem:[%s12846_s25 + $0x148] sm:$0x3] }
 0x138   : > { %11384 = vrot.lane.b32.xlu0 %v11383_v11, %s12779_s6  ;;  %v10225_v11 = vld [vmem:[%s12846_s25 + $0x130] sm:$0x3] }
 0x139   : > { %v13486_v14 = vpop.permute.xlu1 %11109 }
 0x13a   : > { %19593 = vst [vmem:[#allocation54_spill] sm:$0xff] %v13486_v14  ;;  %v13490_v30 = vpop.permute.xlu0 %11104 }
 0x13b   : > { %19594 = vst [vmem:[#allocation55_spill] sm:$0xff] %v13490_v30  ;;  %11399 = vrot.lane.b32.xlu1 %v11398_v33, %s12779_s6  ;;  %v11418_v30 = vpack.i.bf16 %v10226_v54, %v10225_v11  ;;  %v11413_v33 = vpack.i.bf16 %v10224_v45, %v10223_v5  ;;  %v10234_v11 = vld [vmem:[%s12846_s25 + $0x178] sm:$0x3]  ;;  %v10231_v5 = vld [vmem:[%s12846_s25 + $0x160] sm:$0x3]  ;;  %v10232_v45 = vld [vmem:[%s12846_s25 + $0x168] sm:$0xff] }
 0x13c   : > { %11394 = vrot.lane.b32.xlu0 %v11393_v34, %s12779_s6  ;;  %v10229_v34 = vld [vmem:[%s12846_s25 + $0x150] sm:$0xff] }
 0x13d   : > { %v13496_v0 = vpop.permute.xlu1 %11119 }
 0x13e   : > { %19595 = vst [vmem:[#allocation56_spill] sm:$0xff] %v13496_v0  ;;  %v13500_v14 = vpop.permute.xlu0 %11114 }
 0x13f   : > { %19596 = vst [vmem:[#allocation57_spill] sm:$0xff] %v13500_v14  ;;  %11409 = vrot.lane.b32.xlu1 %v11408_v19, %s12779_s6  ;;  %v11428_v14 = vpack.i.bf16 %v10230_v63, %v10229_v34  ;;  %v11423_v19 = vpack.i.bf16 %v10228_v7, %v10227_v57  ;;  %v10238_v34 = vld [vmem:[%s12846_s25 + $0x198] sm:$0xff]  ;;  %v10677_v63 = vunpack.i.h.bf16 %v13045_v4  ;;  %v10676_v57 = vunpack.i.l.bf16 %v13045_v4 }
 0x140   : > { %11404 = vrot.lane.b32.xlu0 %v11403_v29, %s12779_s6  ;;  %v10233_v29 = vld [vmem:[%s12846_s25 + $0x170] sm:$0xff] }
 0x141   : > { %v13506_v49 = vpop.permute.xlu1 %11129  ;;  %v13549_v59 = vsel %vm2474_vm0, %v12710_v13, %v10676_v57  ;;  %v10686_v13 = vunpack.i.l.bf16 %v13069_v27 }
 0x142   : > { %19597 = vst [vmem:[#allocation58_spill] sm:$0xff] %v13506_v49  ;;  %v13510_v0 = vpop.permute.xlu0 %11124 }
 0x143   : > { %19598 = vst [vmem:[#allocation59_spill] sm:$0xff] %v13510_v0  ;;  %11419 = vrot.lane.b32.xlu1 %v11418_v30, %s12779_s6  ;;  %v11438_v0 = vpack.i.bf16 %v10234_v11, %v10233_v29  ;;  %v11433_v30 = vpack.i.bf16 %v10232_v45, %v10231_v5  ;;  %v10666_v29 = vunpack.i.l.bf16 %v13049_v10  ;;  %v10667_v11 = vunpack.i.h.bf16 %v13049_v10  ;;  %v254_v5 = vld [vmem:[%s12846_s25] sm:$0xff]  ;;  %v10241_v10 = vld [vmem:[%s12846_s25 + $0x1b0] sm:$0xff] }
 0x144   : > { %11414 = vrot.lane.b32.xlu0 %v11413_v33, %s12779_s6  ;;  %v10237_v33 = vld [vmem:[%s12846_s25 + $0x190] sm:$0x3]  ;;  %v10681_v45 = vunpack.i.l.bf16 %v13055_v15 }
 0x145   : > { %v13516_v54 = vpop.permute.xlu1 %11139  ;;  %v11448_v4 = vpack.i.bf16 %v10238_v34, %v10237_v33  ;;  %v10240_v34 = vld [vmem:[%s12846_s25 + $0x1a8] sm:$0x3] }
 0x146   : > { %19599 = vst [vmem:[#allocation60_spill] sm:$0xff] %v13516_v54  ;;  %v13520_v49 = vpop.permute.xlu0 %11134  ;;  %v10235_v54 = vld [vmem:[%s12846_s25 + $0x180] sm:$0xff] }
 0x147   : > { %19600 = vst [vmem:[#allocation61_spill] sm:$0xff] %v13520_v49  ;;  %11429 = vrot.lane.b32.xlu1 %v11428_v14, %s12779_s6  ;;  %v259_v14 = vld [vmem:[%s12846_s25 + $0x28] sm:$0x3]  ;;  %v10682_v49 = vunpack.i.h.bf16 %v13055_v15  ;;  %v256_v15 = vld [vmem:[%s12846_s25 + $0x10] sm:$0x3] }
 0x148   : > { %11424 = vrot.lane.b32.xlu0 %v11423_v19, %s12779_s6 }
 0x149   : > { %v13528_v7 = vpop.permute.xlu1 %11149 }
 0x14a   : > { %19601 = vst [vmem:[#allocation62_spill] sm:$0xff] %v13528_v7  ;;  %v13534_v19 = vpop.permute.xlu0 %11144  ;;  %v255_v7 = vld [vmem:[%s12846_s25 + $0x8] sm:$0xff] }
 0x14b   : > { %19602 = vst [vmem:[#allocation63_spill] sm:$0xff] %v13534_v19  ;;  %11439 = vrot.lane.b32.xlu1 %v11438_v0, %s12779_s6  ;;  %v11443_v19 = vpack.i.bf16 %v10236_v20, %v10235_v54  ;;  %v13552_v0 = vsel %vm2474_vm0, %v259_v14, %v10677_v63  ;;  %v13560_v20 = vsel %vm2474_vm0, %v254_v5, %v10666_v29  ;;  %v10692_v54 = vunpack.i.h.bf16 %v13065_v24  ;;  %v12711_v14 = vld [vmem:[%s12846_s25 + $0x30] sm:$0xff]  ;;  %v265_v29 = vld [vmem:[%s12846_s25 + $0x58] sm:$0x3] }
 0x14c   : > { %11434 = vrot.lane.b32.xlu0 %v11433_v30, %s12779_s6  ;;  %v10691_v30 = vunpack.i.l.bf16 %v13065_v24  ;;  %v13568_v63 = vsel %vm2474_vm0, %v255_v7, %v10667_v11  ;;  %v10687_v5 = vunpack.i.h.bf16 %v13069_v27  ;;  %v11458_v24 = vpack.i.bf16 %v10242_v23, %v10241_v10  ;;  %v12713_v11 = vld [vmem:[%s12846_s25 + $0x18] sm:$0xff] }
 0x14d   : > { %v13555_v33 = vpop.permute.xlu1 %11159  ;;  %v13583_v7 = vsel %vm2474_vm0, %v256_v15, %v10671_v41  ;;  %v11453_v27 = vpack.i.bf16 %v10240_v34, %v10239_v18  ;;  %v10246_v23 = vld [vmem:[%s12846_s25 + $0x1d8] sm:$0x3]  ;;  %v10702_v10 = vunpack.i.h.bf16 %v13075_v32  ;;  %v10696_v41 = vunpack.i.l.bf16 %v13079_v35  ;;  %v10243_v15 = vld [vmem:[%s12846_s25 + $0x1c0] sm:$0x3] }
 0x14e   : > { %19603 = vst [vmem:[#allocation64_spill] sm:$0xff] %v13555_v33  ;;  %v13565_v57 = vpop.permute.xlu0 %11154  ;;  %v13572_v33 = vsel %vm2474_vm0, %v12711_v14, %v10681_v45  ;;  %v13587_v45 = vsel %vm2474_vm0, %v12713_v11, %v10672_v50  ;;  %v10701_v14 = vunpack.i.l.bf16 %v13075_v32  ;;  %v10244_v50 = vld [vmem:[%s12846_s25 + $0x1c8] sm:$0xff]  ;;  %v12714_v11 = vld [vmem:[%s12846_s25 + $0x50] sm:$0xff]  ;;  %v13605_v18 = vsel %vm2474_vm0, %v265_v29, %v10692_v54 }
 0x14f   : > { %19604 = vst [vmem:[#allocation65_spill] sm:$0xff] %v13565_v57  ;;  %11449 = vrot.lane.b32.xlu1 %v11448_v4, %s12779_s6  ;;  %v13580_v57 = vsel %vm2474_vm0, %v12712_v47, %v10682_v49  ;;  %v10245_v4 = vld [vmem:[%s12846_s25 + $0x1d0] sm:$0xff]  ;;  %v10697_v47 = vunpack.i.h.bf16 %v13079_v35  ;;  %19606 = vst [vmem:[#allocation67_spill] sm:$0xff] %v13605_v18  ;;  %v13608_v34 = vsel %vm2474_vm0, %v262_v9, %v10686_v13  ;;  %v10711_v35 = vunpack.i.l.bf16 %v13085_v40  ;;  %v271_v29 = vld [vmem:[%s12846_s25 + $0x88] sm:$0x3] }
 0x150   : > { %11444 = vrot.lane.b32.xlu0 %v11443_v19, %s12779_s6  ;;  %v13602_v19 = vsel %vm2474_vm0, %v12714_v11, %v10691_v30  ;;  %v268_v32 = vld [vmem:[%s12846_s25 + $0x70] sm:$0x3]  ;;  %v10712_v30 = vunpack.i.h.bf16 %v13085_v40  ;;  %v10706_v54 = vunpack.i.l.bf16 %v13089_v43  ;;  %v11468_v9 = vpack.i.bf16 %v10246_v23, %v10245_v4  ;;  %v12717_v4 = vld [vmem:[%s12846_s25 + $0x60] sm:$0xff] }
 0x151   : > { %v13596_v49 = vpop.permute.xlu1 %11169  ;;  %v10707_v13 = vunpack.i.h.bf16 %v13089_v43  ;;  %v10722_v11 = vunpack.i.h.bf16 %v13095_v48  ;;  %v11463_v40 = vpack.i.bf16 %v10244_v50, %v10243_v15  ;;  %v13629_v17 = vsel %vm2474_vm0, %v268_v32, %v10701_v14  ;;  %v277_v15 = vld [vmem:[%s12846_s25 + $0xb8] sm:$0x3]  ;;  %v12722_v18 = vld [vmem:[%s12846_s25 + $0xb0] sm:$0xff] }
 0x152   : > { %19605 = vst [vmem:[#allocation66_spill] sm:$0xff] %v13596_v49  ;;  %v13612_v38 = vpop.permute.xlu0 %11164  ;;  %v12715_v49 = vld [vmem:[%s12846_s25 + $0x48] sm:$0xff]  ;;  %19608 = vst [vmem:[#allocation69_spill] sm:$0xff] %v13629_v17  ;;  %v13637_v23 = vsel %vm2474_vm0, %v12717_v4, %v10696_v41  ;;  %v10247_v14 = vld [vmem:[%s12846_s25 + $0x31] sm:$0xff]  ;;  %v10716_v41 = vunpack.i.l.bf16 %v13099_v51  ;;  %v10731_v4 = vunpack.i.l.bf16 %v13105_v56 }
 0x153   : > { %19607 = vst [vmem:[#allocation68_spill] sm:$0xff] %v13612_v38  ;;  %v13616_v25 = vsel %vm2474_vm0, %v12715_v49, %v10687_v5  ;;  %11459 = vrot.lane.b32.xlu1 %v11458_v24, %s12779_s6  ;;  %v10721_v5 = vunpack.i.l.bf16 %v13095_v48  ;;  %v10249_v49 = vld [vmem:[%s12846_s25 + $0x41] sm:$0x3]  ;;  %v10250_v38 = vld [vmem:[%s12846_s25 + $0x49] sm:$0xff]  ;;  %v12716_v24 = vld [vmem:[%s12846_s25 + $0x78] sm:$0xff] }
 0x154   : > { %11454 = vrot.lane.b32.xlu0 %v11453_v27, %s12779_s6  ;;  %v13633_v43 = vsel %vm2474_vm0, %v12716_v24, %v10702_v10  ;;  %v12718_v48 = vld [vmem:[%s12846_s25 + $0x68] sm:$0xff]  ;;  %v10248_v32 = vld [vmem:[%s12846_s25 + $0x39] sm:$0xff]  ;;  %v12719_v17 = vld [vmem:[%s12846_s25 + $0x90] sm:$0xff]  ;;  %v10717_v24 = vunpack.i.h.bf16 %v13099_v51  ;;  %v11478_v51 = vpack.i.bf16 %v10250_v38, %v10249_v49  ;;  %v10726_v38 = vunpack.i.l.bf16 %v13109_v60 }
 0x155   : > { %19609 = vst [vmem:[#allocation70_spill] sm:$0xff] %v13633_v43  ;;  %v13641_v27 = vsel %vm2474_vm0, %v12718_v48, %v10697_v47  ;;  %v13644_v50 = vpop.permute.xlu1 %11179  ;;  %v13650_v10 = vsel %vm2474_vm0, %v12719_v17, %v10711_v35  ;;  %v12720_v47 = vld [vmem:[%s12846_s25 + $0x98] sm:$0xff]  ;;  %v274_v17 = vld [vmem:[%s12846_s25 + $0xa0] sm:$0x3]  ;;  %v10732_v35 = vunpack.i.h.bf16 %v13105_v56  ;;  %v11473_v56 = vpack.i.bf16 %v10248_v32, %v10247_v14  ;;  %v12723_v49 = vld [vmem:[%s12846_s25 + $0xa8] sm:$0xff] }
 0x156   : > { %19610 = vst [vmem:[#allocation71_spill] sm:$0xff] %v13644_v50  ;;  %19611 = vst [vmem:[#allocation72_spill] sm:$0xff] %v13650_v10  ;;  %v13655_v43 = vpop.permute.xlu0 %11174  ;;  %v13659_v48 = vsel %vm2474_vm0, %v12720_v47, %v10712_v30  ;;  %v12721_v50 = vld [vmem:[%s12846_s25 + $0x80] sm:$0xff]  ;;  %v280_v10 = vld [vmem:[%s12846_s25 + $0xd0] sm:$0x3]  ;;  %v13674_v30 = vsel %vm2474_vm0, %v12722_v18, %v10721_v5 }
 0x157   : > { %19612 = vst [vmem:[#allocation73_spill] sm:$0xff] %v13655_v43  ;;  %v13663_v1 = vsel %vm2474_vm0, %v12721_v50, %v10706_v54  ;;  %11469 = vrot.lane.b32.xlu1 %v11468_v9, %s12779_s6  ;;  %v13670_v43 = vsel %vm2474_vm0, %v271_v29, %v10707_v13  ;;  %19613 = vst [vmem:[#allocation74_spill] sm:$0xff] %v13674_v30  ;;  %v13677_v54 = vsel %vm2474_vm0, %v277_v15, %v10722_v11  ;;  %v10253_v50 = vld [vmem:[%s12846_s25 + $0x61] sm:$0xff]  ;;  %v10254_v47 = vld [vmem:[%s12846_s25 + $0x69] sm:$0xff] }
 0x158   : > { %19614 = vst [vmem:[#allocation75_spill] sm:$0xff] %v13677_v54  ;;  %11464 = vrot.lane.b32.xlu0 %v11463_v40, %s12779_s6  ;;  %v10727_v9 = vunpack.i.h.bf16 %v13109_v60  ;;  %v10742_v13 = vunpack.i.h.bf16 %v13115_v2  ;;  %v10741_v29 = vunpack.i.l.bf16 %v13115_v2  ;;  %v10251_v5 = vld [vmem:[%s12846_s25 + $0x51] sm:$0xff]  ;;  %v10252_v11 = vld [vmem:[%s12846_s25 + $0x59] sm:$0x3]  ;;  %v13691_v40 = vsel %vm2474_vm0, %v274_v17, %v10716_v41  ;;  %v283_v17 = vld [vmem:[%s12846_s25 + $0xe8] sm:$0x3] }
 0x159   : > { %v13686_v18 = vpop.permute.xlu1 %11189  ;;  %v13695_v15 = vsel %vm2474_vm0, %v12723_v49, %v10717_v24  ;;  %v13698_v14 = vsel %vm2474_vm0, %v280_v10, %v10731_v4  ;;  %v10736_v60 = vunpack.i.l.bf16 %v13119_v8  ;;  %v12724_v2 = vld [vmem:[%s12846_s25 + $0xd8] sm:$0xff]  ;;  %v10737_v41 = vunpack.i.h.bf16 %v13119_v8  ;;  %v10255_v30 = vld [vmem:[%s12846_s25 + $0x71] sm:$0x3]  ;;  %s12789_s6 = smov 44  }
 0x15a   : > { %19615 = vst [vmem:[#allocation76_spill] sm:$0xff] %v13686_v18  ;;  %19616 = vst [vmem:[#allocation77_spill] sm:$0xff] %v13698_v14  ;;  %v13701_v32 = vpop.permute.xlu0 %11184  ;;  %v13705_v18 = vsel %vm2474_vm0, %v12724_v2, %v10732_v35  ;;  %v10751_v24 = vunpack.i.l.bf16 %v13125_v16  ;;  %v11488_v10 = vpack.i.bf16 %v10254_v47, %v10253_v50  ;;  %v10752_v4 = vunpack.i.h.bf16 %v13125_v16  ;;  %v289_v49 = vld [vmem:[%s12846_s25 + $0x118] sm:$0x3]  ;;  %v10257_v2 = vld [vmem:[%s12846_s25 + $0x81] sm:$0xff] }
 0x15b   : > { %19617 = vst [vmem:[#allocation78_spill] sm:$0xff] %v13701_v32  ;;  %19618 = vst [vmem:[#allocation79_spill] sm:$0xff] %v13705_v18  ;;  %11479 = vrot.lane.b32.xlu1 %v11478_v51, %s12780_s7  ;;  %v10747_v32 = vunpack.i.h.bf16 %v13129_v21  ;;  %v10746_v35 = vunpack.i.l.bf16 %v13129_v21  ;;  %v11483_v8 = vpack.i.bf16 %v10252_v11, %v10251_v5  ;;  %v10258_v18 = vld [vmem:[%s12846_s25 + $0x89] sm:$0x3]  ;;  %v12725_v14 = vld [vmem:[%s12846_s25 + $0xc0] sm:$0xff] }
 0x15c   : > { %11474 = vrot.lane.b32.xlu0 %v11473_v56, %s12780_s7  ;;  %v13720_v51 = vsel %vm2474_vm0, %v12725_v14, %v10726_v38  ;;  %v12726_v50 = vld [vmem:[%s12846_s25 + $0xc8] sm:$0xff]  ;;  %v12727_v47 = vld [vmem:[%s12846_s25 + $0xf0] sm:$0xff]  ;;  %v12728_v21 = vld [vmem:[%s12846_s25 + $0xf8] sm:$0xff] }
 0x15d   : > { %v13724_v16 = vsel %vm2474_vm0, %v12726_v50, %v10727_v9  ;;  %v13728_v54 = vsel %vm2474_vm0, %v12727_v47, %v10741_v29  ;;  %v13732_v56 = vsel %vm2474_vm0, %v12728_v21, %v10742_v13  ;;  %v286_v5 = vld [vmem:[%s12846_s25 + $0x100] sm:$0x3]  ;;  %v13735_v11 = vpop.permute.xlu1 %11199  ;;  %v10762_v50 = vunpack.i.h.bf16 %v13135_v28  ;;  %v12730_v21 = vld [vmem:[%s12846_s25 + $0x110] sm:$0xff] }
 0x15e   : > { %19619 = vst [vmem:[#allocation80_spill] sm:$0xff] %v13728_v54  ;;  %19620 = vst [vmem:[#allocation81_spill] sm:$0xff] %v13732_v56  ;;  %v10256_v38 = vld [vmem:[%s12846_s25 + $0x79] sm:$0xff]  ;;  %v10761_v29 = vunpack.i.l.bf16 %v13135_v28  ;;  %v10756_v47 = vunpack.i.l.bf16 %v13139_v31  ;;  %v13746_v54 = vpop.permute.xlu0 %11194  ;;  %v13749_v13 = vsel %vm2474_vm0, %v283_v17, %v10737_v41  ;;  %v292_v56 = vld [vmem:[%s12846_s25 + $0x130] sm:$0x3]  ;;  %v11498_v28 = vpack.i.bf16 %v10258_v18, %v10257_v2 }
 0x15f   : > { %19621 = vst [vmem:[#allocation82_spill] sm:$0xff] %v13735_v11  ;;  %v12729_v14 = vld [vmem:[%s12846_s25 + $0xe0] sm:$0xff]  ;;  %19622 = vst [vmem:[#allocation83_spill] sm:$0xff] %v13746_v54  ;;  %v13753_v11 = vsel %vm2474_vm0, %v12730_v21, %v10751_v24  ;;  %11489 = vrot.lane.b32.xlu1 %v11488_v10, %s12780_s7  ;;  %v13762_v41 = vsel %vm2474_vm0, %v286_v5, %v10746_v35  ;;  %v12731_v17 = vld [vmem:[%s12846_s25 + $0x108] sm:$0xff]  ;;  %v10772_v18 = vunpack.i.h.bf16 %v13143_v36  ;;  %v10766_v35 = vunpack.i.l.bf16 %v13147_v39 }
 0x160   : > { %v13741_v9 = vsel %vm2474_vm0, %v12729_v14, %v10736_v60  ;;  %19623 = vst [vmem:[#allocation84_spill] sm:$0xff] %v13753_v11  ;;  %v10757_v60 = vunpack.i.h.bf16 %v13139_v31  ;;  %v13759_v14 = vsel %vm2474_vm0, %v289_v49, %v10752_v4  ;;  %v13766_v24 = vsel %vm2474_vm0, %v12731_v17, %v10747_v32  ;;  %11484 = vrot.lane.b32.xlu0 %v11483_v8, %s12780_s7  ;;  %v10261_v21 = vld [vmem:[%s12846_s25 + $0xa1] sm:$0x3]  ;;  %v10262_v10 = vld [vmem:[%s12846_s25 + $0xa9] sm:$0xff]  ;;  %v10259_v32 = vld [vmem:[%s12846_s25 + $0x91] sm:$0xff] }
 0x161   : > { %19624 = vst [vmem:[#allocation85_spill] sm:$0xff] %v13759_v14  ;;  %v11493_v31 = vpack.i.bf16 %v10256_v38, %v10255_v30  ;;  %v10771_v4 = vunpack.i.l.bf16 %v13143_v36  ;;  %v10767_v49 = vunpack.i.h.bf16 %v13147_v39  ;;  %v13775_v2 = vpop.permute.xlu1 %11209  ;;  %v10260_v5 = vld [vmem:[%s12846_s25 + $0x99] sm:$0xff]  ;;  %v13780_v8 = vsel %vm2474_vm0, %v292_v56, %v10761_v29  ;;  %v295_v54 = vld [vmem:[%s12846_s25 + $0x148] sm:$0x3]  ;;  %v12735_v11 = vld [vmem:[%s12846_s25 + $0x150] sm:$0xff] }
 0x162   : > { %19625 = vst [vmem:[#allocation86_spill] sm:$0xff] %v13775_v2  ;;  %19626 = vst [vmem:[#allocation87_spill] sm:$0xff] %v13780_v8  ;;  %v12732_v30 = vld [vmem:[%s12846_s25 + $0x138] sm:$0xff]  ;;  %v12733_v17 = vld [vmem:[%s12846_s25 + $0x120] sm:$0xff]  ;;  %v10781_v39 = vunpack.i.l.bf16 %v13152_v44  ;;  %v13792_v2 = vpop.permute.xlu0 %11204 }
 0x163   : > { %v13784_v38 = vsel %vm2474_vm0, %v12732_v30, %v10762_v50  ;;  %v13788_v36 = vsel %vm2474_vm0, %v12733_v17, %v10756_v47  ;;  %19629 = vst [vmem:[#allocation90_spill] sm:$0xff] %v13792_v2  ;;  %v12734_v14 = vld [vmem:[%s12846_s25 + $0x128] sm:$0xff]  ;;  %v10782_v50 = vunpack.i.h.bf16 %v13152_v44  ;;  %v301_v29 = vld [vmem:[%s12846_s25 + $0x178] sm:$0x3]  ;;  %v10776_v47 = vunpack.i.l.bf16 %v13155_v46  ;;  %11499 = vrot.lane.b32.xlu1 %v11498_v28, %s12780_s7 }
 0x164   : > { %19627 = vst [vmem:[#allocation88_spill] sm:$0xff] %v13784_v38  ;;  %19628 = vst [vmem:[#allocation89_spill] sm:$0xff] %v13788_v36  ;;  %v13796_v56 = vsel %vm2474_vm0, %v12734_v14, %v10757_v60  ;;  %v11508_v30 = vpack.i.bf16 %v10262_v10, %v10261_v21  ;;  %v10777_v17 = vunpack.i.h.bf16 %v13155_v46  ;;  %v298_v38 = vld [vmem:[%s12846_s25 + $0x160] sm:$0x3]  ;;  %v10792_v2 = vunpack.i.h.bf16 %v13165_v52  ;;  %11494 = vrot.lane.b32.xlu0 %v11493_v31, %s12780_s7  ;;  %v10266_v8 = vld [vmem:[%s12846_s25 + $0xc9] sm:$0xff] }
 0x165   : > { %19630 = vst [vmem:[#allocation91_spill] sm:$0xff] %v13796_v56  ;;  %v10791_v60 = vunpack.i.l.bf16 %v13165_v52  ;;  %v11503_v44 = vpack.i.bf16 %v10260_v5, %v10259_v32  ;;  %v10265_v14 = vld [vmem:[%s12846_s25 + $0xc1] sm:$0xff]  ;;  %v13811_v28 = vsel %vm2474_vm0, %v12735_v11, %v10771_v4  ;;  %v12736_v21 = vld [vmem:[%s12846_s25 + $0x158] sm:$0xff]  ;;  %v13822_v52 = vsel %vm2474_vm0, %v295_v54, %v10767_v49  ;;  %v304_v31 = vld [vmem:[%s12846_s25 + $0x190] sm:$0x3]  ;;  %v13825_v32 = vpop.permute.xlu1 %11219 }
 0x166   : > { %v13815_v46 = vsel %vm2474_vm0, %v12736_v21, %v10772_v18  ;;  %v12737_v10 = vld [vmem:[%s12846_s25 + $0x140] sm:$0xff]  ;;  %19631 = vst [vmem:[#allocation92_spill] sm:$0xff] %v13825_v32  ;;  %v10263_v5 = vld [vmem:[%s12846_s25 + $0xb1] sm:$0xff]  ;;  %v10264_v36 = vld [vmem:[%s12846_s25 + $0xb9] sm:$0x3]  ;;  %v10787_v18 = vunpack.i.h.bf16 %v13169_v55  ;;  %v10801_v54 = vunpack.i.l.bf16 %v13176_v58  ;;  %v13836_v49 = vpop.permute.xlu0 %11214  ;;  %v13839_v21 = vsel %vm2474_vm0, %v301_v29, %v10782_v50 }
 0x167   : > { %v13819_v56 = vsel %vm2474_vm0, %v12737_v10, %v10766_v35  ;;  %v12738_v11 = vld [vmem:[%s12846_s25 + $0x170] sm:$0xff]  ;;  %v10786_v35 = vunpack.i.l.bf16 %v13169_v55  ;;  %19632 = vst [vmem:[#allocation93_spill] sm:$0xff] %v13836_v49  ;;  %v13842_v10 = vsel %vm2474_vm0, %v298_v38, %v10776_v47  ;;  %v10802_v32 = vunpack.i.h.bf16 %v13176_v58  ;;  %11509 = vrot.lane.b32.xlu1 %v11508_v30, %s12780_s7  ;;  %v12740_v50 = vld [vmem:[%s12846_s25 + $0x198] sm:$0xff]  ;;  %v10269_v29 = vld [vmem:[%s12846_s25 + $0xe1] sm:$0xff] }
 0x168   : > { %v13831_v4 = vsel %vm2474_vm0, %v12738_v11, %v10781_v39  ;;  %v11518_v39 = vpack.i.bf16 %v10266_v8, %v10265_v14  ;;  %v12739_v11 = vld [vmem:[%s12846_s25 + $0x168] sm:$0xff]  ;;  %v13851_v49 = vsel %vm2474_vm0, %v304_v31, %v10791_v60  ;;  %v13855_v38 = vsel %vm2474_vm0, %v12740_v50, %v10792_v2  ;;  %11504 = vrot.lane.b32.xlu0 %v11503_v44, %s12780_s7  ;;  %v10267_v31 = vld [vmem:[%s12846_s25 + $0xd1] sm:$0x3]  ;;  %v12741_v2 = vld [vmem:[%s12846_s25 + $0x180] sm:$0xff] }
 0x169   : > { %v13848_v55 = vsel %vm2474_vm0, %v12739_v11, %v10777_v17  ;;  %19633 = vst [vmem:[#allocation94_spill] sm:$0xff] %v13855_v38  ;;  %v11513_v58 = vpack.i.bf16 %v10264_v36, %v10263_v5  ;;  %v10270_v8 = vld [vmem:[%s12846_s25 + $0xe9] sm:$0x3]  ;;  %v10797_v47 = vunpack.i.h.bf16 %v13180_v61  ;;  %v10796_v30 = vunpack.i.l.bf16 %v13180_v61  ;;  %v13864_v14 = vpop.permute.xlu1 %11229  ;;  %v10268_v11 = vld [vmem:[%s12846_s25 + $0xd9] sm:$0xff] }
 0x16a   : > { %v10812_v17 = vunpack.i.h.bf16 %v13186_v3  ;;  %v10811_v60 = vunpack.i.l.bf16 %v13186_v3  ;;  %19634 = vst [vmem:[#allocation95_spill] sm:$0xff] %v13864_v14  ;;  %v13870_v50 = vsel %vm2474_vm0, %v12741_v2, %v10786_v35  ;;  %v12742_v44 = vld [vmem:[%s12846_s25 + $0x188] sm:$0xff]  ;;  %v13878_v61 = vsel %vm2529_vm1, %v13560_v20, %v10801_v54  ;;  %v13882_v14 = vpop.permute.xlu0 %11224 }
 0x16b   : > { %v13874_v36 = vsel %vm2474_vm0, %v12742_v44, %v10787_v18  ;;  %19635 = vst [vmem:[#allocation96_spill] sm:$0xff] %v13878_v61  ;;  %v307_v3 = vld [vmem:[%s12846_s25 + $0x1a8] sm:$0x3]  ;;  %v10806_v5 = vunpack.i.l.bf16 %v13190_v12  ;;  %19636 = vst [vmem:[#allocation97_spill] sm:$0xff] %v13882_v14  ;;  %v13886_v35 = vsel %vm2529_vm1, %v13568_v63, %v10802_v32  ;;  %v10807_v2 = vunpack.i.h.bf16 %v13190_v12  ;;  %11519 = vrot.lane.b32.xlu1 %v11518_v39, %s12780_s7  ;;  %v10273_v63 = vld [vmem:[%s12846_s25 + $0x101] sm:$0x3] }
 0x16c   : > { %19637 = vst [vmem:[#allocation98_spill] sm:$0xff] %v13886_v35  ;;  %v10821_v18 = vunpack.i.l.bf16 %v13196_v22  ;;  %v11528_v20 = vpack.i.bf16 %v10270_v8, %v10269_v29  ;;  %v10822_v54 = vunpack.i.h.bf16 %v13196_v22  ;;  %v10817_v44 = vunpack.i.h.bf16 %v13200_v26  ;;  %11514 = vrot.lane.b32.xlu0 %v11513_v58, %s12780_s7  ;;  %v10274_v32 = vld [vmem:[%s12846_s25 + $0x109] sm:$0xff]  ;;  %v12743_v35 = vld [vmem:[%s12846_s25 + $0x1a0] sm:$0xff]  ;;  %v10271_v58 = vld [vmem:[%s12846_s25 + $0xf1] sm:$0xff] }
 0x16d   : > { %v10816_v61 = vunpack.i.l.bf16 %v13200_v26  ;;  %v11523_v14 = vpack.i.bf16 %v10268_v11, %v10267_v31  ;;  %v13899_v12 = vsel %vm2474_vm0, %v12743_v35, %v10796_v30  ;;  %v13902_v38 = vsel %vm2474_vm0, %v307_v3, %v10797_v47  ;;  %v13912_v26 = vpop.permute.xlu1 %11239  ;;  %v10272_v29 = vld [vmem:[%s12846_s25 + $0xf9] sm:$0xff]  ;;  %v10278_v3 = vld [vmem:[%s12846_s25 + $0x129] sm:$0xff] }
 0x16e   : > { %v13906_v39 = vsel %vm2529_vm1, %v13549_v59, %v10811_v60  ;;  %v13910_v22 = vsel %vm2529_vm1, %v13552_v0, %v10812_v17  ;;  %19638 = vst [vmem:[#allocation99_spill] sm:$0xff] %v13912_v26  ;;  %v13918_v8 = vsel %vm2529_vm1, %v13583_v7, %v10806_v5  ;;  %v10832_v47 = vunpack.i.h.bf16 %v13206_v37  ;;  %v13923_v60 = vpop.permute.xlu0 %11234 }
 0x16f   : > { %v10831_v30 = vunpack.i.l.bf16 %v13206_v37  ;;  %v10826_v59 = vunpack.i.l.bf16 %v13210_v42  ;;  %19639 = vst [vmem:[#allocation100_spill] sm:$0xff] %v13923_v60  ;;  %v13927_v0 = vsel %vm2529_vm1, %v13587_v45, %v10807_v2  ;;  %v13931_v17 = vsel %vm2529_vm1, %v13608_v34, %v10821_v18  ;;  %11529 = vrot.lane.b32.xlu1 %v11528_v20, %s12780_s7 }
 0x170   : > { %v10827_v7 = vunpack.i.h.bf16 %v13210_v42  ;;  %v11538_v31 = vpack.i.bf16 %v10274_v32, %v10273_v63  ;;  %v13937_v37 = vsel %vm2529_vm1, %v13616_v25, %v10822_v54  ;;  %v13941_v11 = vsel %vm2529_vm1, %v13572_v33, %v10816_v61  ;;  %11524 = vrot.lane.b32.xlu0 %v11523_v14, %s12780_s7  ;;  %v10277_v42 = vld [vmem:[%s12846_s25 + $0x121] sm:$0xff]  ;;  %v10275_v33 = vld [vmem:[%s12846_s25 + $0x111] sm:$0xff]  ;;  %v10276_v61 = vld [vmem:[%s12846_s25 + $0x119] sm:$0x3] }
 0x171   : > { %v13945_v45 = vsel %vm2529_vm1, %v13580_v57, %v10817_v44  ;;  %v11533_v34 = vpack.i.bf16 %v10272_v29, %v10271_v58  ;;  %v10842_v5 = vunpack.i.h.bf16 %v13216_v53  ;;  %v10841_v35 = vunpack.i.l.bf16 %v13216_v53  ;;  %v13954_v18 = vpop.permute.xlu1 %11249  ;;  %v19642_v54 = vld [vmem:[#allocation67_spill] sm:$0xff]  ;;  %v19644_v58 = vld [vmem:[#allocation4_spill] sm:$0xff] }
 0x172   : > { %v10837_v25 = vunpack.i.h.bf16 %v13220_v6  ;;  %v10836_v2 = vunpack.i.l.bf16 %v13220_v6  ;;  %19640 = vst [vmem:[#allocation101_spill] sm:$0xff] %v13954_v18  ;;  %v13960_v57 = vsel %vm2529_vm1, %v13637_v23, %v10831_v30  ;;  %v13964_v14 = vsel %vm2529_vm1, %v13641_v27, %v10832_v47  ;;  %v13971_v20 = vpop.permute.xlu0 %11244  ;;  %v19643_v63 = vld [vmem:[#allocation3_spill] sm:$0xff]  ;;  %v19656_v18 = vld [vmem:[#allocation74_spill] sm:$0xff] }
 0x173   : > { %v13968_v53 = vsel %vm2529_vm1, %v13602_v19, %v10826_v59  ;;  %v10851_v6 = vunpack.i.l.bf16 %v13226_v62  ;;  %19641 = vst [vmem:[#allocation102_spill] sm:$0xff] %v13971_v20  ;;  %v13975_v44 = vsel %vm2529_vm1, %v19642_v54, %v10827_v7  ;;  %v10852_v23 = vunpack.i.h.bf16 %v13226_v62  ;;  %11539 = vrot.lane.b32.xlu1 %v11538_v31, %s12780_s7  ;;  %v10281_v59 = vld [vmem:[%s12846_s25 + $0x141] sm:$0xff]  ;;  %v10282_v7 = vld [vmem:[%s12846_s25 + $0x149] sm:$0x3] }
 0x174   : > { %v10846_v32 = vunpack.i.l.bf16 %v19643_v63  ;;  %v11548_v27 = vpack.i.bf16 %v10278_v3, %v10277_v42  ;;  %v10847_v19 = vunpack.i.h.bf16 %v19643_v63  ;;  %v10862_v29 = vunpack.i.h.bf16 %v19644_v58  ;;  %11534 = vrot.lane.b32.xlu0 %v11533_v34, %s12780_s7  ;;  %v19645_v31 = vld [vmem:[#allocation69_spill] sm:$0xff]  ;;  %v19646_v3 = vld [vmem:[#allocation70_spill] sm:$0xff] }
 0x175   : > { %v10861_v47 = vunpack.i.l.bf16 %v19644_v58  ;;  %v11543_v30 = vpack.i.bf16 %v10276_v61, %v10275_v33  ;;  %v13988_v62 = vsel %vm2529_vm1, %v13663_v1, %v10841_v35  ;;  %v13992_v54 = vsel %vm2529_vm1, %v13670_v43, %v10842_v5  ;;  %v14002_v34 = vpop.permute.xlu1 %11259  ;;  %v10279_v33 = vld [vmem:[%s12846_s25 + $0x131] sm:$0x3]  ;;  %v10280_v61 = vld [vmem:[%s12846_s25 + $0x139] sm:$0xff] }
 0x176   : > { %v13996_v42 = vsel %vm2529_vm1, %v19645_v31, %v10836_v2  ;;  %v14000_v63 = vsel %vm2529_vm1, %v19646_v3, %v10837_v25  ;;  %19647 = vst [vmem:[#allocation67_spill] sm:$0xff] %v14002_v34  ;;  %v14008_v1 = vsel %vm2529_vm1, %v13691_v40, %v10851_v6  ;;  %v19648_v35 = vld [vmem:[#allocation5_spill] sm:$0xff]  ;;  %v19649_v2 = vld [vmem:[#allocation6_spill] sm:$0xff]  ;;  %v14013_v31 = vpop.permute.xlu0 %11254  ;;  %v14017_v25 = vsel %vm2529_vm1, %v13695_v15, %v10852_v23  ;;  %v19651_v3 = vld [vmem:[#allocation72_spill] sm:$0xff] }
 0x177   : > { %v10857_v43 = vunpack.i.h.bf16 %v19648_v35  ;;  %v10856_v5 = vunpack.i.l.bf16 %v19648_v35  ;;  %v10871_v58 = vunpack.i.l.bf16 %v19649_v2  ;;  %19650 = vst [vmem:[#allocation3_spill] sm:$0xff] %v14013_v31  ;;  %v14021_v34 = vsel %vm2529_vm1, %v19651_v3, %v10846_v32  ;;  %11549 = vrot.lane.b32.xlu1 %v11548_v27, %s12780_s7  ;;  %v10285_v32 = vld [vmem:[%s12846_s25 + $0x161] sm:$0x3]  ;;  %v19653_v3 = vld [vmem:[#allocation7_spill] sm:$0xff] }
 0x178   : > { %v10872_v40 = vunpack.i.h.bf16 %v19649_v2  ;;  %v11558_v6 = vpack.i.bf16 %v10282_v7, %v10281_v59  ;;  %v14027_v35 = vsel %vm2529_vm1, %v13659_v48, %v10847_v19  ;;  %v14031_v31 = vsel %vm2529_vm1, %v13720_v51, %v10861_v47  ;;  %11544 = vrot.lane.b32.xlu0 %v11543_v30, %s12780_s7  ;;  %v10286_v2 = vld [vmem:[%s12846_s25 + $0x169] sm:$0xff]  ;;  %v19654_v7 = vld [vmem:[#allocation8_spill] sm:$0xff] }
 0x179   : > { %v14035_v15 = vsel %vm2529_vm1, %v13724_v16, %v10862_v29  ;;  %v11553_v23 = vpack.i.bf16 %v10280_v61, %v10279_v33  ;;  %v10867_v27 = vunpack.i.h.bf16 %v19653_v3  ;;  %v10866_v59 = vunpack.i.l.bf16 %v19653_v3  ;;  %v14044_v20 = vpop.permute.xlu1 %11269  ;;  %v10283_v51 = vld [vmem:[%s12846_s25 + $0x151] sm:$0xff]  ;;  %v10284_v47 = vld [vmem:[%s12846_s25 + $0x159] sm:$0xff] }
 0x17a   : > { %19652 = vst [vmem:[#allocation4_spill] sm:$0xff] %v14035_v15  ;;  %v10882_v48 = vunpack.i.h.bf16 %v19654_v7  ;;  %v10881_v19 = vunpack.i.l.bf16 %v19654_v7  ;;  %19655 = vst [vmem:[#allocation69_spill] sm:$0xff] %v14044_v20  ;;  %v14050_v16 = vsel %vm2529_vm1, %v19656_v18, %v10856_v5  ;;  %v19657_v29 = vld [vmem:[#allocation75_spill] sm:$0xff]  ;;  %v14058_v33 = vsel %vm2529_vm1, %v13741_v9, %v10871_v58  ;;  %v19659_v61 = vld [vmem:[#allocation9_spill] sm:$0xff]  ;;  %v14061_v7 = vpop.permute.xlu0 %11264 }
 0x17b   : > { %v14054_v30 = vsel %vm2529_vm1, %v19657_v29, %v10857_v43  ;;  %19658 = vst [vmem:[#allocation70_spill] sm:$0xff] %v14058_v33  ;;  %v10876_v3 = vunpack.i.l.bf16 %v19659_v61  ;;  %19660 = vst [vmem:[#allocation5_spill] sm:$0xff] %v14061_v7  ;;  %v14065_v20 = vsel %vm2529_vm1, %v13749_v13, %v10872_v40  ;;  %v10877_v18 = vunpack.i.h.bf16 %v19659_v61  ;;  %v19662_v5 = vld [vmem:[#allocation10_spill] sm:$0xff]  ;;  %11559 = vrot.lane.b32.xlu1 %v11558_v6, %s12780_s7  ;;  %v19663_v58 = vld [vmem:[#allocation11_spill] sm:$0xff] }
 0x17c   : > { %19661 = vst [vmem:[#allocation6_spill] sm:$0xff] %v14065_v20  ;;  %v10891_v60 = vunpack.i.l.bf16 %v19662_v5  ;;  %v11568_v43 = vpack.i.bf16 %v10286_v2, %v10285_v32  ;;  %v10892_v9 = vunpack.i.h.bf16 %v19662_v5  ;;  %v10887_v29 = vunpack.i.h.bf16 %v19663_v58  ;;  %11554 = vrot.lane.b32.xlu0 %v11553_v23, %s12780_s7  ;;  %v10289_v13 = vld [vmem:[%s12846_s25 + $0x181] sm:$0xff]  ;;  %v10290_v40 = vld [vmem:[%s12846_s25 + $0x189] sm:$0xff]  ;;  %v10287_v2 = vld [vmem:[%s12846_s25 + $0x171] sm:$0xff] }
 0x17d   : > { %v10886_v26 = vunpack.i.l.bf16 %v19663_v58  ;;  %v11563_v7 = vpack.i.bf16 %v10284_v47, %v10283_v51  ;;  %v19664_v20 = vld [vmem:[#allocation77_spill] sm:$0xff]  ;;  %v19665_v33 = vld [vmem:[#allocation79_spill] sm:$0xff]  ;;  %v14086_v6 = vsel %vm2529_vm1, %v13762_v41, %v10881_v19  ;;  %v14090_v32 = vsel %vm2529_vm1, %v13766_v24, %v10882_v48  ;;  %v14092_v23 = vpop.permute.xlu1 %11279  ;;  %v10288_v51 = vld [vmem:[%s12846_s25 + $0x179] sm:$0x3] }
 0x17e   : > { %v14078_v61 = vsel %vm2529_vm1, %v19664_v20, %v10866_v59  ;;  %v14082_v15 = vsel %vm2529_vm1, %v19665_v33, %v10867_v27  ;;  %19666 = vst [vmem:[#allocation72_spill] sm:$0xff] %v14086_v6  ;;  %19667 = vst [vmem:[#allocation7_spill] sm:$0xff] %v14090_v32  ;;  %v19669_v47 = vld [vmem:[#allocation80_spill] sm:$0xff]  ;;  %v19671_v41 = vld [vmem:[#allocation13_spill] sm:$0xff]  ;;  %v14103_v5 = vpop.permute.xlu0 %11274 }
 0x17f   : > { %19668 = vst [vmem:[#allocation8_spill] sm:$0xff] %v14092_v23  ;;  %v14098_v20 = vsel %vm2529_vm1, %v19669_v47, %v10876_v3  ;;  %v19670_v59 = vld [vmem:[#allocation12_spill] sm:$0xff]  ;;  %v10896_v19 = vunpack.i.l.bf16 %v19671_v41  ;;  %19672 = vst [vmem:[#allocation74_spill] sm:$0xff] %v14103_v5  ;;  %v19673_v24 = vld [vmem:[#allocation81_spill] sm:$0xff]  ;;  %v10897_v3 = vunpack.i.h.bf16 %v19671_v41  ;;  %11569 = vrot.lane.b32.xlu1 %v11568_v43, %s12780_s7  ;;  %v11578_v47 = vpack.i.bf16 %v10290_v40, %v10289_v13 }
 0x180   : > { %v10902_v27 = vunpack.i.h.bf16 %v19670_v59  ;;  %v10901_v33 = vunpack.i.l.bf16 %v19670_v59  ;;  %v14107_v48 = vsel %vm2529_vm1, %v19673_v24, %v10877_v18  ;;  %v19674_v58 = vld [vmem:[#allocation89_spill] sm:$0xff]  ;;  %v19676_v59 = vld [vmem:[#allocation91_spill] sm:$0xff]  ;;  %v19678_v5 = vld [vmem:[#allocation84_spill] sm:$0xff]  ;;  %11564 = vrot.lane.b32.xlu0 %v11563_v7, %s12780_s7  ;;  %v11573_v41 = vpack.i.bf16 %v10288_v51, %v10287_v2 }
 0x181   : > { %v14111_v23 = vsel %vm2529_vm1, %v19674_v58, %v10891_v60  ;;  %v14117_v32 = vsel %vm2529_vm1, %v19676_v59, %v10892_v9  ;;  %v14121_v18 = vsel %vm2529_vm1, %v19678_v5, %v10886_v26  ;;  %v19679_v24 = vld [vmem:[#allocation85_spill] sm:$0xff]  ;;  %v19681_v6 = vld [vmem:[#allocation14_spill] sm:$0xff]  ;;  %v19682_v40 = vld [vmem:[#allocation15_spill] sm:$0xff] }
 0x182   : > { %19675 = vst [vmem:[#allocation75_spill] sm:$0xff] %v14111_v23  ;;  %19677 = vst [vmem:[#allocation9_spill] sm:$0xff] %v14117_v32  ;;  %v14125_v60 = vsel %vm2529_vm1, %v19679_v24, %v10887_v29  ;;  %v10293_v58 = vld [vmem:[%s12846_s25 + $0x1a1] sm:$0xff]  ;;  %v10294_v23 = vld [vmem:[%s12846_s25 + $0x1a9] sm:$0x3]  ;;  %v10912_v43 = vunpack.i.h.bf16 %v19681_v6  ;;  %v10911_v13 = vunpack.i.l.bf16 %v19681_v6  ;;  %v10907_v9 = vunpack.i.h.bf16 %v19682_v40  ;;  %v14134_v32 = vpop.permute.xlu1 %11289 }
 0x183   : > { %19680 = vst [vmem:[#allocation10_spill] sm:$0xff] %v14125_v60  ;;  %v10906_v59 = vunpack.i.l.bf16 %v19682_v40  ;;  %19683 = vst [vmem:[#allocation11_spill] sm:$0xff] %v14134_v32  ;;  %v10291_v26 = vld [vmem:[%s12846_s25 + $0x191] sm:$0x3]  ;;  %v10292_v5 = vld [vmem:[%s12846_s25 + $0x199] sm:$0xff]  ;;  %v14140_v29 = vsel %vm2529_vm1, %v13819_v56, %v10901_v33  ;;  %v14144_v7 = vsel %vm2529_vm1, %v13822_v52, %v10902_v27  ;;  %v14151_v40 = vpop.permute.xlu0 %11284  ;;  %11579 = vrot.lane.b32.xlu1 %v11578_v47, %s12780_s7 }
 0x184   : > { %19684 = vst [vmem:[#allocation77_spill] sm:$0xff] %v14140_v29  ;;  %19685 = vst [vmem:[#allocation79_spill] sm:$0xff] %v14144_v7  ;;  %v19686_v2 = vld [vmem:[#allocation87_spill] sm:$0xff]  ;;  %v19687_v51 = vld [vmem:[#allocation16_spill] sm:$0xff]  ;;  %v11588_v52 = vpack.i.bf16 %v10294_v23, %v10293_v58  ;;  %11574 = vrot.lane.b32.xlu0 %v11573_v41, %s12780_s7  ;;  %v14180_v47 = vsel %vm2529_vm1, %v13815_v46, %v10907_v9 }
 0x185   : > { %v14148_v6 = vsel %vm2529_vm1, %v19686_v2, %v10896_v19  ;;  %v10921_v24 = vunpack.i.l.bf16 %v19687_v51  ;;  %19688 = vst [vmem:[#allocation80_spill] sm:$0xff] %v14151_v40  ;;  %v19689_v32 = vld [vmem:[#allocation88_spill] sm:$0xff]  ;;  %v10922_v56 = vunpack.i.h.bf16 %v19687_v51  ;;  %v19691_v33 = vld [vmem:[#allocation17_spill] sm:$0xff]  ;;  %v19692_v19 = vld [vmem:[#allocation18_spill] sm:$0xff]  ;;  %v11583_v40 = vpack.i.bf16 %v10292_v5, %v10291_v26 }
 0x186   : > { %v14155_v60 = vsel %vm2529_vm1, %v19689_v32, %v10897_v3  ;;  %v10916_v29 = vunpack.i.l.bf16 %v19691_v33  ;;  %v10917_v27 = vunpack.i.h.bf16 %v19691_v33  ;;  %v10932_v2 = vunpack.i.h.bf16 %v19692_v19  ;;  %v10297_v32 = vld [vmem:[%s12846_s25 + $0x1c1] sm:$0x3]  ;;  %v10298_v3 = vld [vmem:[%s12846_s25 + $0x1c9] sm:$0xff]  ;;  %v14182_v41 = vpop.permute.xlu1 %11299  ;;  %v10295_v58 = vld [vmem:[%s12846_s25 + $0x1b1] sm:$0xff] }
 0x187   : > { %19690 = vst [vmem:[#allocation12_spill] sm:$0xff] %v14155_v60  ;;  %v10931_v7 = vunpack.i.l.bf16 %v19692_v19  ;;  %v14168_v51 = vsel %vm2529_vm1, %v13842_v10, %v10911_v13  ;;  %v14172_v60 = vsel %vm2529_vm1, %v13848_v55, %v10912_v43  ;;  %v14176_v23 = vsel %vm2529_vm1, %v13811_v28, %v10906_v59  ;;  %19693 = vst [vmem:[#allocation13_spill] sm:$0xff] %v14182_v41  ;;  %v10296_v26 = vld [vmem:[%s12846_s25 + $0x1b9] sm:$0xff]  ;;  %v19694_v13 = vld [vmem:[#allocation19_spill] sm:$0xff]  ;;  %v14193_v5 = vpop.permute.xlu0 %11294 }
 0x188   : > { %v14188_v10 = vsel %vm2529_vm1, %v13870_v50, %v10921_v24  ;;  %v10927_v55 = vunpack.i.h.bf16 %v19694_v13  ;;  %v10926_v43 = vunpack.i.l.bf16 %v19694_v13  ;;  %v19695_v28 = vld [vmem:[#allocation20_spill] sm:$0xff]  ;;  %19696 = vst [vmem:[#allocation81_spill] sm:$0xff] %v14193_v5  ;;  %v14197_v46 = vsel %vm2529_vm1, %v13874_v36, %v10922_v56  ;;  %11589 = vrot.lane.b32.xlu1 %v11588_v52, %s12780_s7  ;;  %11584 = vrot.lane.b32.xlu0 %v11583_v40, %s12780_s7  ;;  %v19698_v52 = vld [vmem:[#allocation21_spill] sm:$0xff]  ;;  %v19701_v40 = vld [vmem:[#allocation94_spill] sm:$0xff] }
 0x189   : > { %v10941_v59 = vunpack.i.l.bf16 %v19695_v28  ;;  %v14201_v9 = vsel %vm2529_vm1, %v13831_v4, %v10916_v29  ;;  %v10942_v50 = vunpack.i.h.bf16 %v19695_v28  ;;  %v11598_v24 = vpack.i.bf16 %v10298_v3, %v10297_v32  ;;  %v10301_v29 = vld [vmem:[%s12846_s25 + $0x32] sm:$0xff]  ;;  %v10302_v56 = vld [vmem:[%s12846_s25 + $0x3a] sm:$0xff]  ;;  %v19699_v3 = vld [vmem:[#allocation22_spill] sm:$0xff] }
 0x18a   : > { %v14207_v33 = vsel %vm2529_vm1, %v13839_v21, %v10917_v27  ;;  %v14211_v19 = vsel %vm2529_vm1, %v13899_v12, %v10931_v7  ;;  %v14215_v36 = vsel %vm2529_vm1, %v13902_v38, %v10932_v2  ;;  %v11593_v4 = vpack.i.bf16 %v10296_v26, %v10295_v58  ;;  %v14224_v12 = vpop.permute.xlu1 %11309  ;;  %v10299_v7 = vld [vmem:[%s12846_s25 + $0x1d1] sm:$0xff]  ;;  %v10300_v28 = vld [vmem:[%s12846_s25 + $0x1d9] sm:$0x3] }
 0x18b   : > { %19697 = vst [vmem:[#allocation89_spill] sm:$0xff] %v14215_v36  ;;  %v10937_v13 = vunpack.i.h.bf16 %v19698_v52  ;;  %v10936_v32 = vunpack.i.l.bf16 %v19698_v52  ;;  %v10952_v21 = vunpack.i.h.bf16 %v19699_v3  ;;  %v10951_v27 = vunpack.i.l.bf16 %v19699_v3  ;;  %19700 = vst [vmem:[#allocation91_spill] sm:$0xff] %v14224_v12  ;;  %v19703_v26 = vld [vmem:[#allocation23_spill] sm:$0xff]  ;;  %v14241_v3 = vpop.permute.xlu0 %11304 }
 0x18c   : > { %v14230_v38 = vsel %vm2529_vm1, %v13851_v49, %v10926_v43  ;;  %v14234_v2 = vsel %vm2529_vm1, %v19701_v40, %v10927_v55  ;;  %v14238_v58 = vsel %vm2584_vm2, %v13918_v8, %v10941_v59  ;;  %v10946_v52 = vunpack.i.l.bf16 %v19703_v26  ;;  %19704 = vst [vmem:[#allocation85_spill] sm:$0xff] %v14241_v3  ;;  %v19706_v43 = vld [vmem:[#allocation24_spill] sm:$0xff]  ;;  %11599 = vrot.lane.b32.xlu1 %v11598_v24, %s12780_s7  ;;  %v19707_v59 = vld [vmem:[#allocation25_spill] sm:$0xff] }
 0x18d   : > { %19702 = vst [vmem:[#allocation84_spill] sm:$0xff] %v14238_v58  ;;  %v14245_v12 = vsel %vm2584_vm2, %v13927_v0, %v10942_v50  ;;  %v10947_v49 = vunpack.i.h.bf16 %v19703_v26  ;;  %v10961_v5 = vunpack.i.l.bf16 %v19706_v43  ;;  %v11608_v55 = vpack.i.bf16 %v10302_v56, %v10301_v29  ;;  %11594 = vrot.lane.b32.xlu0 %v11593_v4, %s12780_s7  ;;  %v10305_v0 = vld [vmem:[%s12846_s25 + $0x52] sm:$0xff]  ;;  %v10306_v50 = vld [vmem:[%s12846_s25 + $0x5a] sm:$0x3]  ;;  %v19709_v58 = vld [vmem:[#allocation98_spill] sm:$0xff] }
 0x18e   : > { %19705 = vst [vmem:[#allocation14_spill] sm:$0xff] %v14245_v12  ;;  %v10962_v8 = vunpack.i.h.bf16 %v19706_v43  ;;  %v10957_v40 = vunpack.i.h.bf16 %v19707_v59  ;;  %v10956_v41 = vunpack.i.l.bf16 %v19707_v59  ;;  %v11603_v3 = vpack.i.bf16 %v10300_v28, %v10299_v7  ;;  %v19708_v12 = vld [vmem:[#allocation96_spill] sm:$0xff]  ;;  %v14272_v4 = vpop.permute.xlu1 %11319  ;;  %v10303_v56 = vld [vmem:[%s12846_s25 + $0x42] sm:$0x3]  ;;  %v10304_v7 = vld [vmem:[%s12846_s25 + $0x4a] sm:$0xff] }
 0x18f   : > { %v14258_v26 = vsel %vm2584_vm2, %v19708_v12, %v10936_v32  ;;  %v14262_v36 = vsel %vm2584_vm2, %v19709_v58, %v10937_v13  ;;  %v14266_v24 = vsel %vm2584_vm2, %v13941_v11, %v10951_v27  ;;  %v14270_v29 = vsel %vm2584_vm2, %v13945_v45, %v10952_v21  ;;  %19710 = vst [vmem:[#allocation15_spill] sm:$0xff] %v14272_v4  ;;  %v19711_v12 = vld [vmem:[#allocation26_spill] sm:$0xff]  ;;  %v19712_v11 = vld [vmem:[#allocation27_spill] sm:$0xff]  ;;  %v14283_v58 = vpop.permute.xlu0 %11314  ;;  %v10310_v59 = vld [vmem:[%s12846_s25 + $0x7a] sm:$0xff] }
 0x190   : > { %v14278_v32 = vsel %vm2584_vm2, %v13906_v39, %v10946_v52  ;;  %v10972_v13 = vunpack.i.h.bf16 %v19711_v12  ;;  %v10971_v28 = vunpack.i.l.bf16 %v19711_v12  ;;  %v10966_v27 = vunpack.i.l.bf16 %v19712_v11  ;;  %19713 = vst [vmem:[#allocation87_spill] sm:$0xff] %v14283_v58  ;;  %11609 = vrot.lane.b32.xlu1 %v11608_v55, %s12781_s8  ;;  %v19714_v12 = vld [vmem:[#allocation28_spill] sm:$0xff]  ;;  %v19724_v4 = vld [vmem:[#allocation33_spill] sm:$0xff] }
 0x191   : > { %v14287_v45 = vsel %vm2584_vm2, %v13910_v22, %v10947_v49  ;;  %v14291_v21 = vsel %vm2584_vm2, %v13968_v53, %v10961_v5  ;;  %v10967_v39 = vunpack.i.h.bf16 %v19712_v11  ;;  %v11618_v52 = vpack.i.bf16 %v10306_v50, %v10305_v0  ;;  %11604 = vrot.lane.b32.xlu0 %v11603_v3, %s12780_s7  ;;  %v10309_v49 = vld [vmem:[%s12846_s25 + $0x72] sm:$0x3]  ;;  %v19715_v50 = vld [vmem:[#allocation29_spill] sm:$0xff] }
 0x192   : > { %v14297_v43 = vsel %vm2584_vm2, %v13975_v44, %v10962_v8  ;;  %v14301_v22 = vsel %vm2584_vm2, %v13931_v17, %v10956_v41  ;;  %v14305_v53 = vsel %vm2584_vm2, %v13937_v37, %v10957_v40  ;;  %v11613_v5 = vpack.i.bf16 %v10304_v7, %v10303_v56  ;;  %v14313_v8 = vpop.permute.xlu1 %11329  ;;  %v10307_v11 = vld [vmem:[%s12846_s25 + $0x62] sm:$0xff]  ;;  %v10308_v17 = vld [vmem:[%s12846_s25 + $0x6a] sm:$0xff] }
 0x193   : > { %v10982_v55 = vunpack.i.h.bf16 %v19714_v12  ;;  %v10981_v0 = vunpack.i.l.bf16 %v19714_v12  ;;  %v10976_v44 = vunpack.i.l.bf16 %v19715_v50  ;;  %19716 = vst [vmem:[#allocation16_spill] sm:$0xff] %v14313_v8  ;;  %v12703_v37 = vld [vmem:[%s19220_s1] sm:$0xff]   ;;  %v14322_v41 = vsel %vm2584_vm2, %v13996_v42, %v10971_v28  ;;  %v14332_v56 = vpop.permute.xlu0 %11324  ;;  %v19719_v12 = vld [vmem:[#allocation31_spill] sm:$0xff] }
 0x194   : > { %v14326_v3 = vsel %vm2584_vm2, %v14000_v63, %v10972_v13  ;;  %v14330_v40 = vsel %vm2584_vm2, %v13960_v57, %v10966_v27  ;;  %19717 = vst [vmem:[#allocation88_spill] sm:$0xff] %v14332_v56  ;;  %v19319_v7 = vmov 0.0   ;;  %v14346_v57 = vsel %vm2584_vm2, %v13964_v14, %v10967_v39  ;;  %v19718_v63 = vld [vmem:[#allocation30_spill] sm:$0xff]  ;;  %11619 = vrot.lane.b32.xlu1 %v11618_v52, %s12781_s8  ;;  %v10313_v39 = vld [vmem:[%s12846_s25 + $0x92] sm:$0xff]  ;;  %v10314_v8 = vld [vmem:[%s12846_s25 + $0x9a] sm:$0xff] }
 0x195   : > { %10484 = vmatprep.subr.bf16.mxu0 %v19319_v7  ;;  %7358 = vst.msk [vmem:[#allocation2] sm:$0xff] %vm2639_vm3, %v19319_v7  ;;  %7359 = vst.msk [vmem:[#allocation2 + $0x8] sm:$0xff] %vm2639_vm3, %v19319_v7  ;;  %10614 = vmatprep.subr.bf16.mxu1 %v19319_v7  ;;  %v10977_v42 = vunpack.i.h.bf16 %v19715_v50  ;;  %v10991_v13 = vunpack.i.l.bf16 %v19718_v63  ;;  %v11628_v28 = vpack.i.bf16 %v10310_v59, %v10309_v49  ;;  %v10992_v27 = vunpack.i.h.bf16 %v19718_v63  ;;  %v19722_v63 = vld [vmem:[#allocation32_spill] sm:$0xff] }
 0x196   : > { %7410 = vst.msk [vmem:[#allocation2 + $0x198] sm:$0xff] %vm2639_vm3, %v19319_v7  ;;  %7411 = vst.msk [vmem:[#allocation2 + $0x1a0] sm:$0xff] %vm2639_vm3, %v19319_v7  ;;  %10485 = vmatpush3.bf16.msra.mxu0 %v12703_v37  ;;  %v10987_v56 = vunpack.i.h.bf16 %v19719_v12  ;;  %v10986_v7 = vunpack.i.l.bf16 %v19719_v12  ;;  %11614 = vrot.lane.b32.xlu0 %v11613_v5, %s12781_s8  ;;  %v11623_v14 = vpack.i.bf16 %v10308_v17, %v10307_v11  ;;  %v19720_v50 = vmov 0.0   ;;  %v14371_v5 = vpop.permute.xlu1 %11339  ;;  %v10311_v11 = vld [vmem:[%s12846_s25 + $0x82] sm:$0xff]  ;;  %v10312_v17 = vld [vmem:[%s12846_s25 + $0x8a] sm:$0x3] }
 0x197   : > { %10486 = vmatprep.subr.bf16.mxu0 %v19720_v50  ;;  %v14360_v52 = vsel %vm2584_vm2, %v14021_v34, %v10981_v0  ;;  %v14364_v49 = vsel %vm2584_vm2, %v14027_v35, %v10982_v55  ;;  %v14368_v59 = vsel %vm2584_vm2, %v13988_v62, %v10976_v44  ;;  %v11001_v12 = vunpack.i.l.bf16 %v19722_v63  ;;  %19723 = vst [vmem:[#allocation18_spill] sm:$0xff] %v14371_v5  ;;  %v19725_v55 = vld [vmem:[#allocation34_spill] sm:$0xff] }
 0x198   : > { %19721 = vst [vmem:[#allocation17_spill] sm:$0xff] %v14364_v49  ;;  %10617 = vmatpush3.bf16.msra.mxu1 %v12703_v37  ;;  %v11002_v58 = vunpack.i.h.bf16 %v19722_v63  ;;  %v10997_v34 = vunpack.i.h.bf16 %v19724_v4  ;;  %v10996_v35 = vunpack.i.l.bf16 %v19724_v4  ;;  %v11011_v0 = vunpack.i.l.bf16 %v19725_v55  ;;  %v14379_v49 = vpop.permute.xlu0 %11334  ;;  %11629 = vrot.lane.b32.xlu1 %v11628_v28, %s12781_s8  ;;  %v19728_v28 = vld [vmem:[#allocation35_spill] sm:$0xff] }
 0x199   : > { %19726 = vst [vmem:[#allocation19_spill] sm:$0xff] %v14379_v49  ;;  %10615 = vmatprep.subr.bf16.mxu1 %v19720_v50  ;;  %v14384_v62 = vsel %vm2584_vm2, %v13992_v54, %v10977_v42  ;;  %v14388_v44 = vsel %vm2584_vm2, %v14050_v16, %v10991_v13  ;;  %v11012_v37 = vunpack.i.h.bf16 %v19725_v55  ;;  %v11638_v4 = vpack.i.bf16 %v10314_v8, %v10313_v39  ;;  %v10317_v42 = vld [vmem:[%s12846_s25 + $0xb2] sm:$0xff]  ;;  %v10318_v13 = vld [vmem:[%s12846_s25 + $0xba] sm:$0x3]  ;;  %v10315_v55 = vld [vmem:[%s12846_s25 + $0xa2] sm:$0x3] }
 0x19a   : > { %v14394_v63 = vsel %vm2584_vm2, %v14054_v30, %v10992_v27  ;;  %v14398_v49 = vsel %vm2584_vm2, %v14008_v1, %v10986_v7  ;;  %v14402_v54 = vsel %vm2584_vm2, %v14017_v25, %v10987_v56  ;;  %11624 = vrot.lane.b32.xlu0 %v11623_v14, %s12781_s8  ;;  %v11633_v16 = vpack.i.bf16 %v10312_v17, %v10311_v11  ;;  %v19729_v39 = vld [vmem:[#allocation36_spill] sm:$0xff]  ;;  %v14414_v7 = vpop.permute.xlu1 %11349  ;;  %v10316_v25 = vld [vmem:[%s12846_s25 + $0xaa] sm:$0xff] }
 0x19b   : > { %v14409_v8 = vsel %vm2584_vm2, %v14078_v61, %v11001_v12  ;;  %v11007_v30 = vunpack.i.h.bf16 %v19728_v28  ;;  %v11006_v27 = vunpack.i.l.bf16 %v19728_v28  ;;  %v11021_v1 = vunpack.i.l.bf16 %v19729_v39  ;;  %19730 = vst [vmem:[#allocation21_spill] sm:$0xff] %v14414_v7  ;;  %v19732_v61 = vld [vmem:[#allocation4_spill] sm:$0xff]  ;;  %10490 = vmatprep.mubr.msk.bf16.mxu0 %vm12783_vm5, %v19720_v50  ;;  %10550 = vmatprep.mubr.msk.bf16.mxu1 %vm12783_vm5, %v19720_v50 }
 0x19c   : > { %19727 = vst [vmem:[#allocation20_spill] sm:$0xff] %v14409_v8  ;;  %v14420_v56 = vsel %vm2584_vm2, %v14082_v15, %v11002_v58  ;;  %v14424_v14 = vsel %vm2584_vm2, %v14031_v31, %v10996_v35  ;;  %v14428_v12 = vsel %vm2584_vm2, %v19732_v61, %v10997_v34  ;;  %v14432_v11 = vsel %vm2584_vm2, %v14098_v20, %v11011_v0  ;;  %v14434_v17 = vpop.permute.xlu0 %11344  ;;  %v12704_v15 = vld [vmem:[%s19220_s1 + $0x8] sm:$0xff]   ;;  %v19736_v35 = vld [vmem:[#allocation37_spill] sm:$0xff] }
 0x19d   : > { %19731 = vst [vmem:[#allocation22_spill] sm:$0xff] %v14420_v56  ;;  %19733 = vst [vmem:[#allocation94_spill] sm:$0xff] %v14432_v11  ;;  %v14441_v58 = vsel %vm2584_vm2, %v14107_v48, %v11012_v37  ;;  %v11022_v31 = vunpack.i.h.bf16 %v19729_v39  ;;  %v11016_v28 = vunpack.i.l.bf16 %v19736_v35  ;;  %11639 = vrot.lane.b32.xlu1 %v11638_v4, %s12781_s8  ;;  %v11648_v20 = vpack.i.bf16 %v10318_v13, %v10317_v42  ;;  %v19737_v0 = vld [vmem:[#allocation38_spill] sm:$0xff]  ;;  %v10321_v48 = vld [vmem:[%s12846_s25 + $0xd2] sm:$0x3] }
 0x19e   : > { %19734 = vst [vmem:[#allocation23_spill] sm:$0xff] %v14434_v17  ;;  %19735 = vst [vmem:[#allocation24_spill] sm:$0xff] %v14441_v58  ;;  %v11017_v34 = vunpack.i.h.bf16 %v19736_v35  ;;  %v11032_v61 = vunpack.i.h.bf16 %v19737_v0  ;;  %v11031_v17 = vunpack.i.l.bf16 %v19737_v0  ;;  %11634 = vrot.lane.b32.xlu0 %v11633_v16, %s12781_s8  ;;  %v11643_v7 = vpack.i.bf16 %v10316_v25, %v10315_v55  ;;  %v10322_v37 = vld [vmem:[%s12846_s25 + $0xda] sm:$0xff]  ;;  %10487 = vmatpush3.bf16.msra.mxu0 %v12704_v15  ;;  %v19738_v39 = vld [vmem:[#allocation70_spill] sm:$0xff]  ;;  %v14465_v0 = vpop.permute.xlu1 %11359 }
 0x19f   : > { %v14454_v5 = vsel %vm2584_vm2, %v19738_v39, %v11006_v27  ;;  %v19739_v58 = vld [vmem:[#allocation6_spill] sm:$0xff]  ;;  %v14462_v42 = vsel %vm2584_vm2, %v14121_v18, %v11021_v1  ;;  %v19741_v13 = vld [vmem:[#allocation39_spill] sm:$0xff]  ;;  %19742 = vst [vmem:[#allocation96_spill] sm:$0xff] %v14465_v0  ;;  %10488 = vmatprep.subr.bf16.mxu0 %v19720_v50  ;;  %10618 = vmatpush3.bf16.msra.mxu1 %v12704_v15  ;;  %v19743_v25 = vld [vmem:[#allocation40_spill] sm:$0xff] }
 0x1a0   : > { %v14458_v4 = vsel %vm2584_vm2, %v19739_v58, %v11007_v30  ;;  %19740 = vst [vmem:[#allocation25_spill] sm:$0xff] %v14462_v42  ;;  %v11026_v35 = vunpack.i.l.bf16 %v19741_v13  ;;  %v10319_v16 = vld [vmem:[%s12846_s25 + $0xc2] sm:$0xff]  ;;  %v10320_v55 = vld [vmem:[%s12846_s25 + $0xca] sm:$0xff]  ;;  %v11027_v27 = vunpack.i.h.bf16 %v19741_v13  ;;  %v11042_v39 = vunpack.i.h.bf16 %v19743_v25  ;;  %v14474_v1 = vpop.permute.xlu0 %11354  ;;  %10616 = vmatprep.subr.bf16.mxu1 %v19720_v50  ;;  %v19748_v11 = vld [vmem:[#allocation72_spill] sm:$0xff] }
 0x1a1   : > { %v11041_v30 = vunpack.i.l.bf16 %v19743_v25  ;;  %v19744_v58 = vld [vmem:[#allocation41_spill] sm:$0xff]  ;;  %19745 = vst [vmem:[#allocation98_spill] sm:$0xff] %v14474_v1  ;;  %v19746_v0 = vld [vmem:[#allocation10_spill] sm:$0xff]  ;;  %v14483_v15 = vsel %vm2584_vm2, %v19748_v11, %v11016_v28  ;;  %11649 = vrot.lane.b32.xlu1 %v11648_v20, %s12781_s8  ;;  %v11658_v25 = vpack.i.bf16 %v10322_v37, %v10321_v48  ;;  %v19749_v56 = vld [vmem:[#allocation7_spill] sm:$0xff]  ;;  %v14493_v8 = vsel %vm2584_vm2, %v14148_v6, %v11031_v17 }
 0x1a2   : > { %v11036_v18 = vunpack.i.l.bf16 %v19744_v58  ;;  %v14479_v42 = vsel %vm2584_vm2, %v19746_v0, %v11022_v31  ;;  %v11037_v13 = vunpack.i.h.bf16 %v19744_v58  ;;  %v14489_v1 = vsel %vm2584_vm2, %v19749_v56, %v11017_v34  ;;  %19750 = vst [vmem:[#allocation27_spill] sm:$0xff] %v14493_v8  ;;  %v19751_v31 = vld [vmem:[#allocation12_spill] sm:$0xff]  ;;  %11644 = vrot.lane.b32.xlu0 %v11643_v7, %s12781_s8  ;;  %v19753_v48 = vld [vmem:[#allocation42_spill] sm:$0xff]  ;;  %v19754_v37 = vld [vmem:[#allocation43_spill] sm:$0xff]  ;;  %v14509_v17 = vpop.permute.xlu1 %11369 }
 0x1a3   : > { %19747 = vst [vmem:[#allocation26_spill] sm:$0xff] %v14479_v42  ;;  %v14497_v0 = vsel %vm2584_vm2, %v19751_v31, %v11032_v61  ;;  %v11653_v11 = vpack.i.bf16 %v10320_v55, %v10319_v16  ;;  %v10325_v28 = vld [vmem:[%s12846_s25 + $0xf2] sm:$0xff]  ;;  %v10326_v58 = vld [vmem:[%s12846_s25 + $0xfa] sm:$0xff]  ;;  %v11052_v56 = vunpack.i.h.bf16 %v19753_v48  ;;  %v11051_v34 = vunpack.i.l.bf16 %v19753_v48  ;;  %19755 = vst [vmem:[#allocation28_spill] sm:$0xff] %v14509_v17 }
 0x1a4   : > { %v19752_v42 = vld [vmem:[#allocation75_spill] sm:$0xff]  ;;  %v11046_v6 = vunpack.i.l.bf16 %v19754_v37  ;;  %v10323_v8 = vld [vmem:[%s12846_s25 + $0xe2] sm:$0xff]  ;;  %v10324_v61 = vld [vmem:[%s12846_s25 + $0xea] sm:$0x3]  ;;  %v14529_v48 = vpop.permute.xlu0 %11364 }
 0x1a5   : > { %v14504_v20 = vsel %vm2584_vm2, %v19752_v42, %v11026_v35  ;;  %v19756_v31 = vld [vmem:[#allocation9_spill] sm:$0xff]  ;;  %v14519_v42 = vsel %vm2584_vm2, %v14176_v23, %v11041_v30  ;;  %v14523_v35 = vsel %vm2584_vm2, %v14180_v47, %v11042_v39  ;;  %19760 = vst [vmem:[#allocation31_spill] sm:$0xff] %v14529_v48  ;;  %v11047_v23 = vunpack.i.h.bf16 %v19754_v37  ;;  %11659 = vrot.lane.b32.xlu1 %v11658_v25, %s12781_s8  ;;  %v19762_v39 = vld [vmem:[#allocation44_spill] sm:$0xff] }
 0x1a6   : > { %v14515_v7 = vsel %vm2584_vm2, %v19756_v31, %v11027_v27  ;;  %19757 = vst [vmem:[#allocation29_spill] sm:$0xff] %v14519_v42  ;;  %19758 = vst [vmem:[#allocation30_spill] sm:$0xff] %v14523_v35  ;;  %v19759_v16 = vld [vmem:[#allocation77_spill] sm:$0xff]  ;;  %v12705_v27 = vld [vmem:[%s19220_s1 + $0x10] ss:$0 sps:$4 sm:$0x33]   ;;  %v11668_v47 = vpack.i.bf16 %v10326_v58, %v10325_v28  ;;  %v11062_v30 = vunpack.i.h.bf16 %v19762_v39  ;;  %11654 = vrot.lane.b32.xlu0 %v11653_v11, %s12781_s8  ;;  %v14557_v28 = vpop.permute.xlu1 %11379 }
 0x1a7   : > { %v14527_v55 = vsel %vm2584_vm2, %v19759_v16, %v11036_v18  ;;  %v19761_v31 = vld [vmem:[#allocation79_spill] sm:$0xff]  ;;  %v11061_v18 = vunpack.i.l.bf16 %v19762_v39  ;;  %v11663_v16 = vpack.i.bf16 %v10324_v61, %v10323_v8  ;;  %v10330_v35 = vld [vmem:[%s12846_s25 + $0x11a] sm:$0x3]  ;;  %v5279_v42 = vsel %vm5277_vm4, %v12705_v27, 0  ;;  %19763 = vst [vmem:[#allocation32_spill] sm:$0xff] %v14557_v28  ;;  %v19764_v8 = vld [vmem:[#allocation45_spill] sm:$0xff] }
 0x1a8   : > { %v14536_v17 = vsel %vm2584_vm2, %v19761_v31, %v11037_v13  ;;  %v10329_v48 = vld [vmem:[%s12846_s25 + $0x112] sm:$0xff]  ;;  %v14547_v13 = vsel %vm2584_vm2, %v14201_v9, %v11051_v34  ;;  %v14551_v37 = vsel %vm2584_vm2, %v14207_v33, %v11052_v56  ;;  %v14555_v25 = vsel %vm2584_vm2, %v14168_v51, %v11046_v6  ;;  %v10327_v58 = vld [vmem:[%s12846_s25 + $0x102] sm:$0x3]  ;;  %v10328_v11 = vld [vmem:[%s12846_s25 + $0x10a] sm:$0xff]  ;;  %10489 = vmatpush3.bf16.msra.mxu0 %v5279_v42  ;;  %v14565_v56 = vpop.permute.xlu0 %11374 }
 0x1a9   : > { %10619 = vmatpush3.bf16.msra.mxu1 %v5279_v42  ;;  %v11057_v61 = vunpack.i.h.bf16 %v19764_v8  ;;  %v11056_v9 = vunpack.i.l.bf16 %v19764_v8  ;;  %v19765_v34 = vld [vmem:[#allocation46_spill] sm:$0xff]  ;;  %19766 = vst [vmem:[#allocation33_spill] sm:$0xff] %v14565_v56  ;;  %v14569_v51 = vsel %vm2584_vm2, %v14172_v60, %v11047_v23  ;;  %v19767_v6 = vld [vmem:[#allocation47_spill] sm:$0xff]  ;;  %11669 = vrot.lane.b32.xlu1 %v11668_v47, %s12781_s8  ;;  %v11678_v42 = vpack.i.bf16 %v10330_v35, %v10329_v48  ;;  %v10334_v56 = vld [vmem:[%s12846_s25 + $0x13a] sm:$0xff] }
 0x1aa   : > { %v11072_v27 = vunpack.i.h.bf16 %v19765_v34  ;;  %v11071_v33 = vunpack.i.l.bf16 %v19765_v34  ;;  %v11066_v31 = vunpack.i.l.bf16 %v19767_v6  ;;  %v14575_v39 = vsel %vm2584_vm2, %v14230_v38, %v11061_v18  ;;  %11664 = vrot.lane.b32.xlu0 %v11663_v16, %s12781_s8  ;;  %v10333_v23 = vld [vmem:[%s12846_s25 + $0x132] sm:$0x3]  ;;  %v19768_v35 = vld [vmem:[#allocation48_spill] sm:$0xff]  ;;  %v19769_v47 = vld [vmem:[#allocation49_spill] sm:$0xff] }
 0x1ab   : > { %v14579_v8 = vsel %vm2584_vm2, %v14234_v2, %v11062_v30  ;;  %v11067_v34 = vunpack.i.h.bf16 %v19767_v6  ;;  %v11673_v60 = vpack.i.bf16 %v10328_v11, %v10327_v58  ;;  %v11082_v48 = vunpack.i.h.bf16 %v19768_v35  ;;  %v14591_v30 = vpop.permute.xlu1 %11389  ;;  %v10331_v16 = vld [vmem:[%s12846_s25 + $0x122] sm:$0xff]  ;;  %v10332_v58 = vld [vmem:[%s12846_s25 + $0x12a] sm:$0xff]  ;;  %v10337_v28 = vld [vmem:[%s12846_s25 + $0x152] sm:$0xff] }
 0x1ac   : > { %v11081_v38 = vunpack.i.l.bf16 %v19768_v35  ;;  %v11077_v18 = vunpack.i.h.bf16 %v19769_v47  ;;  %v11076_v2 = vunpack.i.l.bf16 %v19769_v47  ;;  %19770 = vst [vmem:[#allocation34_spill] sm:$0xff] %v14591_v30  ;;  %v14599_v11 = vsel %vm2584_vm2, %v14188_v10, %v11056_v9  ;;  %v14613_v30 = vpop.permute.xlu0 %11384  ;;  %v19774_v10 = vld [vmem:[#allocation50_spill] sm:$0xff] }
 0x1ad   : > { %v14603_v6 = vsel %vm2584_vm2, %v14197_v46, %v11057_v61  ;;  %v14607_v35 = vsel %vm2639_vm3, %v14258_v26, %v11071_v33  ;;  %v14611_v47 = vsel %vm2639_vm3, %v14262_v36, %v11072_v27  ;;  %19773 = vst [vmem:[#allocation4_spill] sm:$0xff] %v14613_v30  ;;  %v14618_v50 = vsel %vm2584_vm2, %v14211_v19, %v11066_v31  ;;  %v10338_v61 = vld [vmem:[%s12846_s25 + $0x15a] sm:$0xff]  ;;  %v10335_v33 = vld [vmem:[%s12846_s25 + $0x142] sm:$0xff]  ;;  %v19776_v30 = vld [vmem:[#allocation51_spill] sm:$0xff] }
 0x1ae   : > { %19771 = vst [vmem:[#allocation35_spill] sm:$0xff] %v14607_v35  ;;  %19772 = vst [vmem:[#allocation36_spill] sm:$0xff] %v14611_v47  ;;  %v11092_v9 = vunpack.i.h.bf16 %v19774_v10  ;;  %v11091_v46 = vunpack.i.l.bf16 %v19774_v10  ;;  %11679 = vrot.lane.b32.xlu1 %v11678_v42, %s12781_s8  ;;  %v11688_v26 = vpack.i.bf16 %v10334_v56, %v10333_v23  ;;  %v10336_v35 = vld [vmem:[%s12846_s25 + $0x14a] sm:$0x3]  ;;  %v19775_v36 = vld [vmem:[#allocation89_spill] sm:$0xff]  ;;  %v11087_v47 = vunpack.i.h.bf16 %v19776_v30  ;;  %11674 = vrot.lane.b32.xlu0 %v11673_v60, %s12781_s8 }
 0x1af   : > { %v14628_v27 = vsel %vm2584_vm2, %v19775_v36, %v11067_v34  ;;  %v11086_v19 = vunpack.i.l.bf16 %v19776_v30  ;;  %v11683_v31 = vpack.i.bf16 %v10332_v58, %v10331_v16  ;;  %v14635_v56 = vsel %vm2639_vm3, %v14278_v32, %v11081_v38  ;;  %v19779_v34 = vld [vmem:[#allocation84_spill] sm:$0xff]  ;;  %v19780_v10 = vld [vmem:[#allocation14_spill] sm:$0xff]  ;;  %v14649_v30 = vpop.permute.xlu1 %11399 }
 0x1b0   : > { %19777 = vst [vmem:[#allocation37_spill] sm:$0xff] %v14635_v56  ;;  %v14639_v42 = vsel %vm2639_vm3, %v14287_v45, %v11082_v48  ;;  %v14643_v23 = vsel %vm2639_vm3, %v19779_v34, %v11076_v2  ;;  %v14647_v36 = vsel %vm2639_vm3, %v19780_v10, %v11077_v18  ;;  %19781 = vst [vmem:[#allocation70_spill] sm:$0xff] %v14649_v30  ;;  %v14652_v60 = vld [vmem:[%s12846_s25 + $0x172] sm:$0xff]  ;;  %v14656_v38 = vpop.permute.xlu0 %11394  ;;  %v10342_v2 = vld [vmem:[%s12846_s25 + $0x17a] sm:$0x3]  ;;  %vm9563_vm4 = vcmask 457728  }
 0x1b1   : > { %19778 = vst [vmem:[#allocation38_spill] sm:$0xff] %v14639_v42  ;;  %v19782_v16 = vld [vmem:[#allocation52_spill] sm:$0xff]  ;;  %19783 = vst [vmem:[#allocation6_spill] sm:$0xff] %v14656_v38  ;;  %v11698_v45 = vpack.i.bf16 %v10338_v61, %v10337_v28  ;;  %v11693_v48 = vpack.i.bf16 %v10336_v35, %v10335_v33  ;;  %v10339_v34 = vld [vmem:[%s12846_s25 + $0x162] sm:$0x3]  ;;  %v14663_v18 = vsel %vm2639_vm3, %v14301_v22, %v11091_v46 }
 0x1b2   : > { %v11102_v58 = vunpack.i.h.bf16 %v19782_v16  ;;  %v11101_v32 = vunpack.i.l.bf16 %v19782_v16  ;;  %v10340_v42 = vld [vmem:[%s12846_s25 + $0x16a] sm:$0xff]  ;;  %19784 = vst [vmem:[#allocation39_spill] sm:$0xff] %v14663_v18  ;;  %v14667_v10 = vsel %vm2639_vm3, %v14305_v53, %v11092_v9  ;;  %v19786_v30 = vld [vmem:[#allocation53_spill] sm:$0xff]  ;;  %11689 = vrot.lane.b32.xlu1 %v11688_v26, %s12781_s8  ;;  %v14674_v28 = vsel %vm2639_vm3, %v14266_v24, %v11086_v19  ;;  %11684 = vrot.lane.b32.xlu0 %v11683_v31, %s12781_s8  ;;  %v14684_v46 = vld [vmem:[%s12846_s25 + $0x192] sm:$0x3] }
 0x1b3   : > { %19785 = vst [vmem:[#allocation40_spill] sm:$0xff] %v14667_v10  ;;  %v11097_v16 = vunpack.i.h.bf16 %v19786_v30  ;;  %v11096_v38 = vunpack.i.l.bf16 %v19786_v30  ;;  %v14678_v22 = vsel %vm2639_vm3, %v14270_v29, %v11087_v47  ;;  %v19787_v35 = vld [vmem:[#allocation54_spill] sm:$0xff]  ;;  %v14687_v61 = vld [vmem:[%s12846_s25 + $0x19a] sm:$0xff]  ;;  %v19788_v26 = vld [vmem:[#allocation55_spill] sm:$0xff]  ;;  %v14691_v19 = vpop.permute.xlu1 %11409  ;;  %v11708_v29 = vpack.i.bf16 %v10342_v2, %v14652_v60 }
 0x1b4   : > { %v11112_v53 = vunpack.i.h.bf16 %v19787_v35  ;;  %v11111_v9 = vunpack.i.l.bf16 %v19787_v35  ;;  %v11107_v24 = vunpack.i.h.bf16 %v19788_v26  ;;  %v11106_v33 = vunpack.i.l.bf16 %v19788_v26  ;;  %19789 = vst [vmem:[#allocation41_spill] sm:$0xff] %v14691_v19  ;;  %v14695_v30 = vld [vmem:[%s12846_s25 + $0x182] sm:$0xff]  ;;  %v14698_v35 = vld [vmem:[%s12846_s25 + $0x18a] sm:$0xff]  ;;  %v14701_v31 = vld [vmem:[%s12846_s25 + $0x1b2] sm:$0xff] }
 0x1b5   : > { %v11703_v47 = vpack.i.bf16 %v10340_v42, %v10339_v34  ;;  %v14705_v10 = vsel %vm2639_vm3, %v14330_v40, %v11101_v32  ;;  %v14709_v18 = vsel %vm2639_vm3, %v14346_v57, %v11102_v58  ;;  %v19790_v26 = vld [vmem:[#allocation56_spill] sm:$0xff]  ;;  %v14713_v42 = vpop.permute.xlu0 %11404  ;;  %v14719_v34 = vld [vmem:[%s12846_s25 + $0x1a2] sm:$0xff]  ;;  %v14722_v19 = vld [vmem:[%s12846_s25 + $0x1aa] sm:$0x3]  ;;  %v14726_v40 = vsel %vm2639_vm3, %v14291_v21, %v11096_v38 }
 0x1b6   : > { %v11122_v56 = vunpack.i.h.bf16 %v19790_v26  ;;  %v11121_v60 = vunpack.i.l.bf16 %v19790_v26  ;;  %19791 = vst [vmem:[#allocation10_spill] sm:$0xff] %v14713_v42  ;;  %v14716_v2 = vld [vmem:[%s12846_s25 + $0x1ba] sm:$0xff]  ;;  %v14730_v57 = vsel %vm2639_vm3, %v14297_v43, %v11097_v16  ;;  %11699 = vrot.lane.b32.xlu1 %v11698_v45, %s12781_s8  ;;  %v11718_v26 = vpack.i.bf16 %v14687_v61, %v14684_v46  ;;  %11694 = vrot.lane.b32.xlu0 %v11693_v48, %s12781_s8  ;;  %v14749_v16 = vld [vmem:[%s12846_s25 + $0x1d2] sm:$0xff] }
 0x1b7   : > { %v19792_v58 = vld [vmem:[#allocation57_spill] sm:$0xff]  ;;  %v14738_v42 = vsel %vm2639_vm3, %v14368_v59, %v11111_v9  ;;  %v14742_v21 = vsel %vm2639_vm3, %v14384_v62, %v11112_v53  ;;  %v11713_v38 = vpack.i.bf16 %v14698_v35, %v14695_v30  ;;  %v14753_v45 = vsel %vm2639_vm3, %v14322_v41, %v11106_v33  ;;  %v14759_v9 = vpop.permute.xlu1 %11419  ;;  %v14766_v53 = vld [vmem:[%s12846_s25 + $0x1da] sm:$0x3]  ;;  %v14772_v61 = vld [vmem:[%s12846_s25 + $0x1ca] sm:$0xff] }
 0x1b8   : > { %v11116_v32 = vunpack.i.l.bf16 %v19792_v58  ;;  %v11117_v43 = vunpack.i.h.bf16 %v19792_v58  ;;  %v14757_v59 = vsel %vm2639_vm3, %v14326_v3, %v11107_v24  ;;  %19793 = vst [vmem:[#allocation72_spill] sm:$0xff] %v14759_v9  ;;  %v11728_v62 = vpack.i.bf16 %v14716_v2, %v14701_v31  ;;  %v14769_v46 = vld [vmem:[%s12846_s25 + $0x1c2] sm:$0x3]  ;;  %v19795_v24 = vld [vmem:[#allocation58_spill] sm:$0xff]  ;;  %v19797_v31 = vld [vmem:[#allocation59_spill] sm:$0xff] }
 0x1b9   : > { %v11723_v48 = vpack.i.bf16 %v14722_v19, %v14719_v34  ;;  %v14776_v41 = vsel %vm2639_vm3, %v14398_v49, %v11121_v60  ;;  %v14780_v3 = vsel %vm2639_vm3, %v14402_v54, %v11122_v56  ;;  %v11132_v33 = vunpack.i.h.bf16 %v19795_v24  ;;  %v14784_v35 = vpop.permute.xlu0 %11414  ;;  %v19798_v49 = vld [vmem:[#allocation60_spill] sm:$0xff]  ;;  %v19799_v54 = vld [vmem:[#allocation17_spill] sm:$0xff]  ;;  %v19801_v9 = vld [vmem:[#allocation62_spill] sm:$0xff] }
 0x1ba   : > { %19794 = vst [vmem:[#allocation7_spill] sm:$0xff] %v14780_v3  ;;  %v11131_v30 = vunpack.i.l.bf16 %v19795_v24  ;;  %19796 = vst [vmem:[#allocation12_spill] sm:$0xff] %v14784_v35  ;;  %v14788_v19 = vsel %vm2639_vm3, %v14360_v52, %v11116_v32  ;;  %v11127_v2 = vunpack.i.h.bf16 %v19797_v31  ;;  %v11126_v34 = vunpack.i.l.bf16 %v19797_v31  ;;  %11709 = vrot.lane.b32.xlu1 %v11708_v29, %s12781_s8  ;;  %11704 = vrot.lane.b32.xlu0 %v11703_v47, %s12781_s8  ;;  %v19800_v24 = vld [vmem:[#allocation61_spill] sm:$0xff] }
 0x1bb   : > { %v11141_v60 = vunpack.i.l.bf16 %v19798_v49  ;;  %v14796_v56 = vsel %vm2639_vm3, %v19799_v54, %v11117_v43  ;;  %v11142_v58 = vunpack.i.h.bf16 %v19798_v49  ;;  %v11738_v52 = vpack.i.bf16 %v14766_v53, %v14749_v16  ;;  %v14808_v43 = vpop.permute.xlu1 %11429  ;;  %v19803_v16 = vld [vmem:[#allocation63_spill] sm:$0xff] }
 0x1bc   : > { %v11733_v32 = vpack.i.bf16 %v14772_v61, %v14769_v46  ;;  %v11137_v31 = vunpack.i.h.bf16 %v19800_v24  ;;  %v11136_v35 = vunpack.i.l.bf16 %v19800_v24  ;;  %v11152_v29 = vunpack.i.h.bf16 %v19801_v9  ;;  %19802 = vst [vmem:[#allocation75_spill] sm:$0xff] %v14808_v43  ;;  %v19821_v43 = vld [vmem:[#allocation76_spill] sm:$0xff] }
 0x1bd   : > { %v11151_v3 = vunpack.i.l.bf16 %v19801_v9  ;;  %v14812_v49 = vsel %vm2639_vm3, %v14424_v14, %v11131_v30  ;;  %v14816_v47 = vsel %vm2639_vm3, %v14428_v12, %v11132_v33  ;;  %v11147_v53 = vunpack.i.h.bf16 %v19803_v16  ;;  %v14820_v61 = vpop.permute.xlu0 %11424  ;;  %v19805_v12 = vld [vmem:[#allocation64_spill] sm:$0xff] }
 0x1be   : > { %v11146_v46 = vunpack.i.l.bf16 %v19803_v16  ;;  %19804 = vst [vmem:[#allocation42_spill] sm:$0xff] %v14820_v61  ;;  %v14824_v54 = vsel %vm2639_vm3, %v14388_v44, %v11126_v34  ;;  %v14828_v9 = vsel %vm2639_vm3, %v14394_v63, %v11127_v2  ;;  %v14832_v14 = vsel %vm2639_vm3, %v14454_v5, %v11141_v60  ;;  %11719 = vrot.lane.b32.xlu1 %v11718_v26, %s12781_s8  ;;  %v19806_v44 = vld [vmem:[#allocation65_spill] sm:$0xff]  ;;  %v19807_v63 = vld [vmem:[#allocation20_spill] sm:$0xff]  ;;  %v19808_v2 = vld [vmem:[#allocation22_spill] sm:$0xff] }
 0x1bf   : > { %v11161_v33 = vunpack.i.l.bf16 %v19805_v12  ;;  %v14838_v30 = vsel %vm2639_vm3, %v14458_v4, %v11142_v58  ;;  %v11162_v24 = vunpack.i.h.bf16 %v19805_v12  ;;  %v11157_v34 = vunpack.i.h.bf16 %v19806_v44  ;;  %11714 = vrot.lane.b32.xlu0 %v11713_v38, %s12781_s8  ;;  %v14860_v58 = vpop.permute.xlu1 %11439  ;;  %v19810_v12 = vld [vmem:[#allocation94_spill] sm:$0xff] }
 0x1c0   : > { %v11156_v16 = vunpack.i.l.bf16 %v19806_v44  ;;  %v14846_v5 = vsel %vm2639_vm3, %v19807_v63, %v11136_v35  ;;  %v14850_v60 = vsel %vm2639_vm3, %v19808_v2, %v11137_v31  ;;  %v14854_v4 = vsel %vm2639_vm3, %v14483_v15, %v11151_v3  ;;  %19809 = vst [vmem:[#allocation43_spill] sm:$0xff] %v14860_v58  ;;  %v19811_v35 = vld [vmem:[#allocation24_spill] sm:$0xff]  ;;  %v19812_v31 = vld [vmem:[#allocation66_spill] sm:$0xff] }
 0x1c1   : > { %v14858_v26 = vsel %vm2639_vm3, %v14489_v1, %v11152_v29  ;;  %v14864_v38 = vsel %vm2639_vm3, %v19810_v12, %v11146_v46  ;;  %v14868_v44 = vsel %vm2639_vm3, %v19811_v35, %v11147_v53  ;;  %v11172_v63 = vunpack.i.h.bf16 %v19812_v31  ;;  %v14872_v15 = vpop.permute.xlu0 %11434  ;;  %v19815_v3 = vld [vmem:[#allocation68_spill] sm:$0xff]  ;;  %v19816_v46 = vld [vmem:[#allocation71_spill] sm:$0xff]  ;;  %v19818_v35 = vld [vmem:[#allocation25_spill] sm:$0xff] }
 0x1c2   : > { %v11171_v2 = vunpack.i.l.bf16 %v19812_v31  ;;  %19813 = vst [vmem:[#allocation9_spill] sm:$0xff] %v14872_v15  ;;  %v14876_v1 = vsel %vm2639_vm3, %v14504_v20, %v11161_v33  ;;  %v11167_v29 = vunpack.i.h.bf16 %v19815_v3  ;;  %v11166_v58 = vunpack.i.l.bf16 %v19815_v3  ;;  %11729 = vrot.lane.b32.xlu1 %v11728_v62, %s12781_s8  ;;  %v19819_v15 = vld [vmem:[#allocation26_spill] sm:$0xff]  ;;  %v19820_v3 = vld [vmem:[#allocation73_spill] sm:$0xff] }
 0x1c3   : > { %19814 = vst [vmem:[#allocation77_spill] sm:$0xff] %v14876_v1  ;;  %v11181_v12 = vunpack.i.l.bf16 %v19816_v46  ;;  %v14884_v53 = vsel %vm2639_vm3, %v14515_v7, %v11162_v24  ;;  %v14888_v31 = vsel %vm2639_vm3, %v19818_v35, %v11156_v16  ;;  %v14892_v20 = vsel %vm2639_vm3, %v19819_v15, %v11157_v34  ;;  %11724 = vrot.lane.b32.xlu0 %v11723_v48, %s12781_s8  ;;  %v14900_v24 = vpop.permute.xlu1 %11449  ;;  %v19823_v15 = vld [vmem:[#allocation78_spill] sm:$0xff] }
 0x1c4   : > { %19817 = vst [vmem:[#allocation79_spill] sm:$0xff] %v14884_v53  ;;  %v11182_v33 = vunpack.i.h.bf16 %v19816_v46  ;;  %v11177_v61 = vunpack.i.h.bf16 %v19820_v3  ;;  %v11176_v62 = vunpack.i.l.bf16 %v19820_v3  ;;  %v11192_v1 = vunpack.i.h.bf16 %v19821_v43  ;;  %19822 = vst [vmem:[#allocation44_spill] sm:$0xff] %v14900_v24  ;;  %v19825_v3 = vld [vmem:[#allocation27_spill] sm:$0xff] }
 0x1c5   : > { %v11191_v7 = vunpack.i.l.bf16 %v19821_v43  ;;  %v14904_v16 = vsel %vm2639_vm3, %v14527_v55, %v11171_v2  ;;  %v14908_v34 = vsel %vm2639_vm3, %v14536_v17, %v11172_v63  ;;  %v11187_v48 = vunpack.i.h.bf16 %v19823_v15  ;;  %v14912_v35 = vpop.permute.xlu0 %11444  ;;  %v19826_v17 = vld [vmem:[#allocation82_spill] sm:$0xff] }
 0x1c6   : > { %v11186_v46 = vunpack.i.l.bf16 %v19823_v15  ;;  %19824 = vst [vmem:[#allocation45_spill] sm:$0xff] %v14912_v35  ;;  %v14916_v53 = vsel %vm2639_vm3, %v19825_v3, %v11166_v58  ;;  %v14920_v43 = vsel %vm2639_vm3, %v14497_v0, %v11167_v29  ;;  %v14924_v55 = vsel %vm2639_vm3, %v14555_v25, %v11181_v12  ;;  %11739 = vrot.lane.b32.xlu1 %v11738_v52, %s12781_s8  ;;  %v19827_v58 = vld [vmem:[#allocation83_spill] sm:$0xff]  ;;  %v19828_v0 = vld [vmem:[#allocation29_spill] sm:$0xff]  ;;  %v19829_v29 = vld [vmem:[#allocation30_spill] sm:$0xff] }
 0x1c7   : > { %v11201_v63 = vunpack.i.l.bf16 %v19826_v17  ;;  %v14930_v2 = vsel %vm2639_vm3, %v14569_v51, %v11182_v33  ;;  %v11202_v15 = vunpack.i.h.bf16 %v19826_v17  ;;  %v11197_v3 = vunpack.i.h.bf16 %v19827_v58  ;;  %11734 = vrot.lane.b32.xlu0 %v11733_v32, %s12781_s8  ;;  %v14952_v33 = vpop.permute.xlu1 %11459 }
 0x1c8   : > { %v11196_v35 = vunpack.i.l.bf16 %v19827_v58  ;;  %v14938_v25 = vsel %vm2639_vm3, %v19828_v0, %v11176_v62  ;;  %v14942_v12 = vsel %vm2639_vm3, %v19829_v29, %v11177_v61  ;;  %v14946_v51 = vsel %vm2639_vm3, %v14599_v11, %v11191_v7  ;;  %19830 = vst [vmem:[#allocation46_spill] sm:$0xff] %v14952_v33  ;;  %v19831_v61 = vld [vmem:[#allocation86_spill] sm:$0xff] }
 0x1c9   : > { %v14950_v52 = vsel %vm2639_vm3, %v14603_v6, %v11192_v1  ;;  %v14956_v32 = vsel %vm2639_vm3, %v14547_v13, %v11186_v46  ;;  %v14960_v62 = vsel %vm2639_vm3, %v14551_v37, %v11187_v48  ;;  %v11212_v17 = vunpack.i.h.bf16 %v19831_v61  ;;  %v14964_v11 = vpop.permute.xlu0 %11454  ;;  %v19833_v1 = vld [vmem:[#allocation90_spill] sm:$0xff]  ;;  %v19834_v13 = vld [vmem:[#allocation92_spill] sm:$0xff] }
 0x1ca   : > { %v11211_v58 = vunpack.i.l.bf16 %v19831_v61  ;;  %19832 = vst [vmem:[#allocation47_spill] sm:$0xff] %v14964_v11  ;;  %v14968_v6 = vsel %vm2639_vm3, %v14618_v50, %v11201_v63  ;;  %v11207_v7 = vunpack.i.h.bf16 %v19833_v1  ;;  %v11206_v0 = vunpack.i.l.bf16 %v19833_v1  ;;  %v19836_v63 = vld [vmem:[#allocation93_spill] sm:$0xff]  ;;  %v19837_v11 = vld [vmem:[#allocation95_spill] sm:$0xff] }
 0x1cb   : > { %v11221_v46 = vunpack.i.l.bf16 %v19834_v13  ;;  %v14975_v37 = vsel %vm2639_vm3, %v14628_v27, %v11202_v15  ;;  %v14979_v48 = vsel %vm2639_vm3, %v14575_v39, %v11196_v35  ;;  %v14983_v29 = vsel %vm2639_vm3, %v14579_v8, %v11197_v3  ;;  %v14990_v27 = vpop.permute.xlu1 %11469  ;;  %v19840_v35 = vld [vmem:[#allocation97_spill] sm:$0xff] }
 0x1cc   : > { %19835 = vst [vmem:[#allocation48_spill] sm:$0xff] %v14975_v37  ;;  %v11222_v50 = vunpack.i.h.bf16 %v19834_v13  ;;  %v11217_v61 = vunpack.i.h.bf16 %v19836_v63  ;;  %v11216_v1 = vunpack.i.l.bf16 %v19836_v63  ;;  %v11232_v33 = vunpack.i.h.bf16 %v19837_v11  ;;  %19838 = vst [vmem:[#allocation49_spill] sm:$0xff] %v14990_v27  ;;  %v19842_v63 = vld [vmem:[#allocation35_spill] sm:$0xff] }
 0x1cd   : > { %v11231_v24 = vunpack.i.l.bf16 %v19837_v11  ;;  %v14994_v39 = vsel %vm2694_vm6, %v14643_v23, %v11211_v58  ;;  %v14998_v8 = vsel %vm2694_vm6, %v14647_v36, %v11212_v17  ;;  %v11227_v15 = vunpack.i.h.bf16 %v19840_v35  ;;  %v15002_v13 = vpop.permute.xlu0 %11464  ;;  %v19843_v11 = vld [vmem:[#allocation36_spill] sm:$0xff]  ;;  %v19844_v36 = vld [vmem:[#allocation99_spill] sm:$0xff] }
 0x1ce   : > { %19839 = vst [vmem:[#allocation50_spill] sm:$0xff] %v14998_v8  ;;  %v11226_v3 = vunpack.i.l.bf16 %v19840_v35  ;;  %19841 = vst [vmem:[#allocation89_spill] sm:$0xff] %v15002_v13  ;;  %v15006_v37 = vsel %vm2694_vm6, %v19842_v63, %v11206_v0  ;;  %v15010_v27 = vsel %vm2694_vm6, %v19843_v11, %v11207_v7  ;;  %v15014_v23 = vsel %vm2694_vm6, %v14674_v28, %v11221_v46  ;;  %v19846_v13 = vld [vmem:[#allocation100_spill] sm:$0xff]  ;;  %v19847_v63 = vld [vmem:[#allocation37_spill] sm:$0xff] }
 0x1cf   : > { %v11241_v17 = vunpack.i.l.bf16 %v19844_v36  ;;  %v15019_v58 = vsel %vm2694_vm6, %v14678_v22, %v11222_v50  ;;  %v11242_v35 = vunpack.i.h.bf16 %v19844_v36  ;;  %v11237_v8 = vunpack.i.h.bf16 %v19846_v13  ;;  %v19848_v11 = vld [vmem:[#allocation38_spill] sm:$0xff]  ;;  %v15040_v50 = vpop.permute.xlu1 %11479  ;;  %v19852_v36 = vld [vmem:[#allocation39_spill] sm:$0xff] }
 0x1d0   : > { %19845 = vst [vmem:[#allocation51_spill] sm:$0xff] %v15019_v58  ;;  %v11236_v0 = vunpack.i.l.bf16 %v19846_v13  ;;  %v15026_v7 = vsel %vm2694_vm6, %v19847_v63, %v11216_v1  ;;  %v15030_v28 = vsel %vm2694_vm6, %v19848_v11, %v11217_v61  ;;  %v15034_v46 = vsel %vm2694_vm6, %v14726_v40, %v11231_v24  ;;  %19851 = vst [vmem:[#allocation52_spill] sm:$0xff] %v15040_v50  ;;  %v19853_v1 = vld [vmem:[#allocation40_spill] sm:$0xff]  ;;  %v19854_v61 = vld [vmem:[#allocation101_spill] sm:$0xff] }
 0x1d1   : > { %19849 = vst [vmem:[#allocation84_spill] sm:$0xff] %v15034_v46  ;;  %v15038_v22 = vsel %vm2694_vm6, %v14730_v57, %v11232_v33  ;;  %v15044_v13 = vsel %vm2694_vm6, %v19852_v36, %v11226_v3  ;;  %v15048_v63 = vsel %vm2694_vm6, %v19853_v1, %v11227_v15  ;;  %v11252_v11 = vunpack.i.h.bf16 %v19854_v61  ;;  %v15052_v40 = vpop.permute.xlu0 %11474  ;;  %v19857_v24 = vld [vmem:[#allocation102_spill] sm:$0xff]  ;;  %v19858_v3 = vld [vmem:[#allocation67_spill] sm:$0xff] }
 0x1d2   : > { %19850 = vst [vmem:[#allocation14_spill] sm:$0xff] %v15038_v22  ;;  %v11251_v58 = vunpack.i.l.bf16 %v19854_v61  ;;  %19855 = vst [vmem:[#allocation53_spill] sm:$0xff] %v15052_v40  ;;  %v15056_v57 = vsel %vm2694_vm6, %v14753_v45, %v11241_v17  ;;  %v11247_v33 = vunpack.i.h.bf16 %v19857_v24  ;;  %v11246_v50 = vunpack.i.l.bf16 %v19857_v24  ;;  %v19859_v17 = vld [vmem:[#allocation3_spill] sm:$0xff] }
 0x1d3   : > { %19856 = vst [vmem:[#allocation54_spill] sm:$0xff] %v15056_v57  ;;  %v11261_v36 = vunpack.i.l.bf16 %v19858_v3  ;;  %v15063_v15 = vsel %vm2694_vm6, %v14757_v59, %v11242_v35  ;;  %v15067_v1 = vsel %vm2694_vm6, %v14705_v10, %v11236_v0  ;;  %v15071_v61 = vsel %vm2694_vm6, %v14709_v18, %v11237_v8  ;;  %v19860_v57 = vld [vmem:[#allocation69_spill] sm:$0xff]  ;;  %v15077_v46 = vpop.permute.xlu1 %11489 }
 0x1d4   : > { %v11262_v45 = vunpack.i.h.bf16 %v19858_v3  ;;  %v11257_v40 = vunpack.i.h.bf16 %v19859_v17  ;;  %v11256_v24 = vunpack.i.l.bf16 %v19859_v17  ;;  %v11271_v22 = vunpack.i.l.bf16 %v19860_v57  ;;  %19861 = vst [vmem:[#allocation55_spill] sm:$0xff] %v15077_v46  ;;  %v19862_v8 = vld [vmem:[#allocation5_spill] sm:$0xff] }
 0x1d5   : > { %v15081_v59 = vsel %vm2694_vm6, %v14788_v19, %v11251_v58  ;;  %v15085_v10 = vsel %vm2694_vm6, %v14796_v56, %v11252_v11  ;;  %v11272_v18 = vunpack.i.h.bf16 %v19860_v57  ;;  %v11266_v35 = vunpack.i.l.bf16 %v19862_v8  ;;  %v15089_v0 = vpop.permute.xlu0 %11484  ;;  %v19865_v11 = vld [vmem:[#allocation8_spill] sm:$0xff] }
 0x1d6   : > { %19863 = vst [vmem:[#allocation56_spill] sm:$0xff] %v15089_v0  ;;  %v15093_v3 = vsel %vm2694_vm6, %v14738_v42, %v11246_v50  ;;  %v15097_v17 = vsel %vm2694_vm6, %v14742_v21, %v11247_v33  ;;  %v15101_v19 = vsel %vm2694_vm6, %v14824_v54, %v11261_v36  ;;  %v11267_v56 = vunpack.i.h.bf16 %v19862_v8  ;;  %v19866_v21 = vld [vmem:[#allocation7_spill] sm:$0xff] }
 0x1d7   : > { %v15106_v58 = vsel %vm2694_vm6, %v14828_v9, %v11262_v45  ;;  %v11281_v57 = vunpack.i.l.bf16 %v19865_v11  ;;  %v12784_v0 = vmov 1966171168   ;;  %v3001_v42 = vlaneseq  ;;  %v15122_v36 = vpop.permute.xlu1 %11499 }
 0x1d8   : > { %19864 = vst [vmem:[#allocation57_spill] sm:$0xff] %v15106_v58  ;;  %v2999_v46 = vunpack.c.l.s4 %v12784_v0  ;;  %v15111_v50 = vsel %vm2694_vm6, %v14776_v41, %v11256_v24  ;;  %v15115_v33 = vsel %vm2694_vm6, %v19866_v21, %v11257_v40  ;;  %v15119_v54 = vsel %vm2694_vm6, %v14846_v5, %v11271_v22  ;;  %19868 = vst [vmem:[#allocation59_spill] sm:$0xff] %v15122_v36  ;;  %v19870_v24 = vld [vmem:[#allocation74_spill] sm:$0xff]  ;;  %v19872_v22 = vld [vmem:[#allocation11_spill] sm:$0xff] }
 0x1d9   : > { %19867 = vst [vmem:[#allocation58_spill] sm:$0xff] %v15119_v54  ;;  %v11282_v9 = vunpack.i.h.bf16 %v19865_v11  ;;  %v15126_v45 = vsel %vm2694_vm6, %v14850_v60, %v11272_v18  ;;  %v15130_v41 = vsel %vm2694_vm6, %v14812_v49, %v11266_v35  ;;  %v11277_v8 = vunpack.i.h.bf16 %v19870_v24  ;;  %v15134_v0 = vpop.permute.xlu0 %11494  ;;  %v19873_v60 = vld [vmem:[#allocation80_spill] sm:$0xff] }
 0x1da   : > { %19869 = vst [vmem:[#allocation60_spill] sm:$0xff] %v15126_v45  ;;  %v11276_v40 = vunpack.i.l.bf16 %v19870_v24  ;;  %19871 = vst [vmem:[#allocation17_spill] sm:$0xff] %v15134_v0  ;;  %v15138_v5 = vsel %vm2694_vm6, %v14816_v47, %v11267_v56  ;;  %v11292_v11 = vunpack.i.h.bf16 %v19872_v22  ;;  %v11291_v21 = vunpack.i.l.bf16 %v19872_v22  ;;  %v19875_v47 = vld [vmem:[#allocation13_spill] sm:$0xff] }
 0x1db   : > { %v11286_v18 = vunpack.i.l.bf16 %v19873_v60  ;;  %v15145_v49 = vsel %vm2694_vm6, %v14864_v38, %v11281_v57  ;;  %v11287_v35 = vunpack.i.h.bf16 %v19873_v60  ;;  %v3000_v36 = vunpack.c.0.s8 %v2999_v46  ;;  %v19876_v22 = vld [vmem:[#allocation81_spill] sm:$0xff]  ;;  %v15157_v58 = vpop.permute.xlu1 %11509 }
 0x1dc   : > { %v15148_v24 = vshrl.u32 %v3001_v42, 7  ;;  %v15152_v0 = vsel %vm2694_vm6, %v14868_v44, %v11282_v9  ;;  %v11302_v56 = vunpack.i.h.bf16 %v19875_v47  ;;  %v11301_v45 = vunpack.i.l.bf16 %v19875_v47  ;;  %19877 = vst [vmem:[#allocation62_spill] sm:$0xff] %v15157_v58  ;;  %v19878_v44 = vld [vmem:[#allocation91_spill] sm:$0xff] }
 0x1dd   : > { %v11296_v54 = vunpack.i.l.bf16 %v19876_v22  ;;  %v15161_v38 = vsel %vm2694_vm6, %v14832_v14, %v11276_v40  ;;  %v15165_v46 = vsel %vm2694_vm6, %v14838_v30, %v11277_v8  ;;  %v11297_v57 = vunpack.i.h.bf16 %v19876_v22  ;;  %v15169_v9 = vpop.permute.xlu0 %11504  ;;  %v19880_v40 = vld [vmem:[#allocation85_spill] sm:$0xff] }
 0x1de   : > { %19874 = vst [vmem:[#allocation61_spill] sm:$0xff] %v15148_v24  ;;  %v11311_v42 = vunpack.i.l.bf16 %v19878_v44  ;;  %19879 = vst [vmem:[#allocation63_spill] sm:$0xff] %v15169_v9  ;;  %v15173_v60 = vsel %vm2694_vm6, %v14888_v31, %v11291_v21  ;;  %v15177_v47 = vsel %vm2694_vm6, %v14892_v20, %v11292_v11  ;;  %v15181_v14 = vsel %vm2694_vm6, %v14854_v4, %v11286_v18  ;;  %v19882_v11 = vld [vmem:[#allocation77_spill] sm:$0xff] }
 0x1df   : > { %v11312_v30 = vunpack.i.h.bf16 %v19878_v44  ;;  %v15186_v8 = vsel %vm2694_vm6, %v14858_v26, %v11287_v35  ;;  %v11307_v22 = vunpack.i.h.bf16 %v19880_v40  ;;  %v11306_v9 = vunpack.i.l.bf16 %v19880_v40  ;;  %v19883_v26 = vld [vmem:[#allocation15_spill] sm:$0xff]  ;;  %v15206_v35 = vpop.permute.xlu1 %11519 }
 0x1e0   : > { %v15191_v31 = vsub.s32 %v3000_v36, %v15148_v24  ;;  %v15195_v20 = vsel %vm2694_vm6, %v14916_v53, %v11301_v45  ;;  %v15199_v4 = vsel %vm2694_vm6, %v14920_v43, %v11302_v56  ;;  %v15203_v21 = vsel %vm2694_vm6, %v19882_v11, %v11296_v54  ;;  %19884 = vst [vmem:[#allocation65_spill] sm:$0xff] %v15206_v35  ;;  %v19885_v44 = vld [vmem:[#allocation79_spill] sm:$0xff]  ;;  %v19888_v24 = vld [vmem:[#allocation16_spill] sm:$0xff] }
 0x1e1   : > { %v11321_v18 = vunpack.i.l.bf16 %v19883_v26  ;;  %v15210_v36 = vsel %vm2694_vm6, %v19885_v44, %v11297_v57  ;;  %v15214_v53 = vsel %vm2694_vm6, %v14938_v25, %v11311_v42  ;;  %v11322_v45 = vunpack.i.h.bf16 %v19883_v26  ;;  %v19886_v43 = vld [vmem:[#allocation87_spill] sm:$0xff]  ;;  %v15218_v40 = vpop.permute.xlu0 %11514  ;;  %v19889_v26 = vld [vmem:[#allocation88_spill] sm:$0xff] }
 0x1e2   : > { %19881 = vst [vmem:[#allocation64_spill] sm:$0xff] %v15191_v31  ;;  %v11316_v56 = vunpack.i.l.bf16 %v19886_v43  ;;  %19887 = vst [vmem:[#allocation20_spill] sm:$0xff] %v15218_v40  ;;  %v15222_v54 = vsel %vm2694_vm6, %v14942_v12, %v11312_v30  ;;  %v11317_v11 = vunpack.i.h.bf16 %v19886_v43  ;;  %v11332_v31 = vunpack.i.h.bf16 %v19888_v24  ;;  %v19890_v30 = vld [vmem:[#allocation18_spill] sm:$0xff]  ;;  %v19891_v35 = vld [vmem:[#allocation19_spill] sm:$0xff] }
 0x1e3   : > { %v11331_v57 = vunpack.i.l.bf16 %v19888_v24  ;;  %v15229_v25 = vsel %vm2694_vm6, %v14904_v16, %v11306_v9  ;;  %v15233_v42 = vsel %vm2694_vm6, %v14908_v34, %v11307_v22  ;;  %v11327_v44 = vunpack.i.h.bf16 %v19889_v26  ;;  %v15244_v16 = vpop.permute.xlu1 %11529 }
 0x1e4   : > { %v11326_v40 = vunpack.i.l.bf16 %v19889_v26  ;;  %v15239_v12 = vsel %vm2694_vm6, %v14956_v32, %v11321_v18  ;;  %v11342_v43 = vunpack.i.h.bf16 %v19890_v30  ;;  %v11341_v24 = vunpack.i.l.bf16 %v19890_v30  ;;  %19892 = vst [vmem:[#allocation22_spill] sm:$0xff] %v15244_v16  ;;  %v19893_v32 = vld [vmem:[#allocation21_spill] sm:$0xff] }
 0x1e5   : > { %v11336_v58 = vunpack.i.l.bf16 %v19891_v35  ;;  %v15248_v34 = vsel %vm2694_vm6, %v14960_v62, %v11322_v45  ;;  %v15252_v9 = vsel %vm2694_vm6, %v14924_v55, %v11316_v56  ;;  %v11337_v22 = vunpack.i.h.bf16 %v19891_v35  ;;  %v15256_v26 = vpop.permute.xlu0 %11524 }
 0x1e6   : > { %v11351_v18 = vunpack.i.l.bf16 %v19893_v32  ;;  %19894 = vst [vmem:[#allocation94_spill] sm:$0xff] %v15256_v26  ;;  %v15260_v30 = vsel %vm2694_vm6, %v14930_v2, %v11317_v11  ;;  %v15264_v16 = vsel %vm2694_vm6, %v14979_v48, %v11331_v57  ;;  %v15268_v62 = vsel %vm2694_vm6, %v14983_v29, %v11332_v31  ;;  %v19895_v2 = vld [vmem:[#allocation23_spill] sm:$0xff]  ;;  %v19896_v31 = vld [vmem:[#allocation96_spill] sm:$0xff] }
 0x1e7   : > { %v11352_v55 = vunpack.i.h.bf16 %v19893_v32  ;;  %v15273_v35 = vsel %vm2694_vm6, %v14946_v51, %v11326_v40  ;;  %v15277_v45 = vsel %vm2694_vm6, %v14950_v52, %v11327_v44  ;;  %v11347_v56 = vunpack.i.h.bf16 %v19895_v2  ;;  %v15294_v52 = vpop.permute.xlu1 %11539  ;;  %v19898_v57 = vld [vmem:[#allocation48_spill] sm:$0xff] }
 0x1e8   : > { %v11346_v11 = vunpack.i.l.bf16 %v19895_v2  ;;  %v15283_v48 = vsel %vm2749_vm7, %v15006_v37, %v11341_v24  ;;  %v15287_v29 = vsel %vm2749_vm7, %v15010_v27, %v11342_v43  ;;  %v15291_v51 = vsel %vm2694_vm6, %v14968_v6, %v11336_v58  ;;  %19897 = vst [vmem:[#allocation24_spill] sm:$0xff] %v15294_v52  ;;  %v19900_v27 = vld [vmem:[#allocation98_spill] sm:$0xff]  ;;  %v19903_v2 = vld [vmem:[#allocation28_spill] sm:$0xff] }
 0x1e9   : > { %v11361_v40 = vunpack.i.l.bf16 %v19896_v31  ;;  %v15298_v44 = vsel %vm2694_vm6, %v19898_v57, %v11337_v22  ;;  %v15302_v37 = vsel %vm2749_vm7, %v15026_v7, %v11351_v18  ;;  %v11362_v24 = vunpack.i.h.bf16 %v19896_v31  ;;  %v15306_v32 = vpop.permute.xlu0 %11534  ;;  %v19904_v18 = vld [vmem:[#allocation50_spill] sm:$0xff]  ;;  %v19905_v57 = vld [vmem:[#allocation31_spill] sm:$0xff] }
 0x1ea   : > { %19899 = vst [vmem:[#allocation66_spill] sm:$0xff] %v15302_v37  ;;  %v11356_v43 = vunpack.i.l.bf16 %v19900_v27  ;;  %19901 = vst [vmem:[#allocation68_spill] sm:$0xff] %v15306_v32  ;;  %v15310_v6 = vsel %vm2749_vm7, %v15030_v28, %v11352_v55  ;;  %v11357_v58 = vunpack.i.h.bf16 %v19900_v27  ;;  %v11372_v52 = vunpack.i.h.bf16 %v19903_v2  ;;  %v19907_v55 = vld [vmem:[#allocation32_spill] sm:$0xff] }
 0x1eb   : > { %19902 = vst [vmem:[#allocation71_spill] sm:$0xff] %v15310_v6  ;;  %v11371_v22 = vunpack.i.l.bf16 %v19903_v2  ;;  %v15317_v7 = vsel %vm2749_vm7, %v14994_v39, %v11346_v11  ;;  %v15321_v31 = vsel %vm2749_vm7, %v19904_v18, %v11347_v56  ;;  %v11367_v32 = vunpack.i.h.bf16 %v19905_v57  ;;  %v19908_v6 = vld [vmem:[#allocation33_spill] sm:$0xff]  ;;  %v15332_v39 = vpop.permute.xlu1 %11549 }
 0x1ec   : > { %v11366_v26 = vunpack.i.l.bf16 %v19905_v57  ;;  %v15327_v28 = vsel %vm2749_vm7, %v15044_v13, %v11361_v40  ;;  %v11382_v27 = vunpack.i.h.bf16 %v19907_v55  ;;  %v11381_v2 = vunpack.i.l.bf16 %v19907_v55  ;;  %19909 = vst [vmem:[#allocation26_spill] sm:$0xff] %v15332_v39  ;;  %v19911_v13 = vld [vmem:[#allocation34_spill] sm:$0xff] }
 0x1ed   : > { %19906 = vst [vmem:[#allocation25_spill] sm:$0xff] %v15327_v28  ;;  %v11376_v37 = vunpack.i.l.bf16 %v19908_v6  ;;  %v15336_v56 = vsel %vm2749_vm7, %v15048_v63, %v11362_v24  ;;  %v15340_v11 = vsel %vm2749_vm7, %v15014_v23, %v11356_v43  ;;  %v11377_v18 = vunpack.i.h.bf16 %v19908_v6  ;;  %v15344_v57 = vpop.permute.xlu0 %11544  ;;  %v19913_v28 = vld [vmem:[#allocation51_spill] sm:$0xff]  ;;  %v19914_v24 = vld [vmem:[#allocation84_spill] sm:$0xff]  ;;  %v19915_v6 = vld [vmem:[#allocation14_spill] sm:$0xff] }
 0x1ee   : > { %19910 = vst [vmem:[#allocation73_spill] sm:$0xff] %v15336_v56  ;;  %v11391_v40 = vunpack.i.l.bf16 %v19911_v13  ;;  %19912 = vst [vmem:[#allocation76_spill] sm:$0xff] %v15344_v57  ;;  %v15348_v55 = vsel %vm2749_vm7, %v19913_v28, %v11357_v58  ;;  %v15352_v39 = vsel %vm2749_vm7, %v15067_v1, %v11371_v22  ;;  %v15356_v63 = vsel %vm2749_vm7, %v15071_v61, %v11372_v52  ;;  %v19916_v58 = vld [vmem:[#allocation4_spill] sm:$0xff]  ;;  %v19917_v52 = vld [vmem:[#allocation54_spill] sm:$0xff] }
 0x1ef   : > { %v11392_v23 = vunpack.i.h.bf16 %v19911_v13  ;;  %v15361_v43 = vsel %vm2749_vm7, %v19914_v24, %v11366_v26  ;;  %v15365_v57 = vsel %vm2749_vm7, %v19915_v6, %v11367_v32  ;;  %v11387_v28 = vunpack.i.h.bf16 %v19916_v58  ;;  %v19918_v22 = vld [vmem:[#allocation70_spill] sm:$0xff]  ;;  %v15382_v32 = vpop.permute.xlu1 %11559 }
 0x1f0   : > { %v11386_v56 = vunpack.i.l.bf16 %v19916_v58  ;;  %v15371_v1 = vsel %vm2749_vm7, %v15093_v3, %v11381_v2  ;;  %v15375_v61 = vsel %vm2749_vm7, %v15097_v17, %v11382_v27  ;;  %v15379_v26 = vsel %vm2749_vm7, %v19917_v52, %v11376_v37  ;;  %19919 = vst [vmem:[#allocation78_spill] sm:$0xff] %v15382_v32  ;;  %v19921_v17 = vld [vmem:[#allocation6_spill] sm:$0xff]  ;;  %v19924_v52 = vld [vmem:[#allocation41_spill] sm:$0xff] }
 0x1f1   : > { %v11401_v13 = vunpack.i.l.bf16 %v19918_v22  ;;  %v15386_v24 = vsel %vm2749_vm7, %v15063_v15, %v11377_v18  ;;  %v15390_v3 = vsel %vm2749_vm7, %v15111_v50, %v11391_v40  ;;  %v11402_v2 = vunpack.i.h.bf16 %v19918_v22  ;;  %v15394_v6 = vpop.permute.xlu0 %11554  ;;  %v19925_v40 = vld [vmem:[#allocation10_spill] sm:$0xff] }
 0x1f2   : > { %19920 = vst [vmem:[#allocation27_spill] sm:$0xff] %v15390_v3  ;;  %v11396_v27 = vunpack.i.l.bf16 %v19921_v17  ;;  %19922 = vst [vmem:[#allocation82_spill] sm:$0xff] %v15394_v6  ;;  %v15398_v37 = vsel %vm2749_vm7, %v15115_v33, %v11392_v23  ;;  %v11397_v58 = vunpack.i.h.bf16 %v19921_v17  ;;  %v11412_v32 = vunpack.i.h.bf16 %v19924_v52  ;;  %v19927_v23 = vld [vmem:[#allocation72_spill] sm:$0xff] }
 0x1f3   : > { %19923 = vst [vmem:[#allocation83_spill] sm:$0xff] %v15398_v37  ;;  %v11411_v15 = vunpack.i.l.bf16 %v19924_v52  ;;  %v15405_v50 = vsel %vm2749_vm7, %v15081_v59, %v11386_v56  ;;  %v15409_v18 = vsel %vm2749_vm7, %v15085_v10, %v11387_v28  ;;  %v11407_v22 = vunpack.i.h.bf16 %v19925_v40  ;;  %v19928_v37 = vld [vmem:[#allocation12_spill] sm:$0xff]  ;;  %v15420_v59 = vpop.permute.xlu1 %11569 }
 0x1f4   : > { %v11406_v6 = vunpack.i.l.bf16 %v19925_v40  ;;  %v15415_v33 = vsel %vm2749_vm7, %v15130_v41, %v11401_v13  ;;  %v11422_v17 = vunpack.i.h.bf16 %v19927_v23  ;;  %v11421_v52 = vunpack.i.l.bf16 %v19927_v23  ;;  %19929 = vst [vmem:[#allocation30_spill] sm:$0xff] %v15420_v59  ;;  %v19931_v41 = vld [vmem:[#allocation75_spill] sm:$0xff]  ;;  %v19932_v40 = vld [vmem:[#allocation57_spill] sm:$0xff]  ;;  %v19934_v59 = vld [vmem:[#allocation60_spill] sm:$0xff] }
 0x1f5   : > { %19926 = vst [vmem:[#allocation29_spill] sm:$0xff] %v15415_v33  ;;  %v11416_v3 = vunpack.i.l.bf16 %v19928_v37  ;;  %v15424_v10 = vsel %vm2749_vm7, %v15138_v5, %v11402_v2  ;;  %v15428_v56 = vsel %vm2749_vm7, %v15101_v19, %v11396_v27  ;;  %v11417_v28 = vunpack.i.h.bf16 %v19928_v37  ;;  %v15445_v19 = vpop.permute.xlu0 %11564  ;;  %v19933_v27 = vld [vmem:[#allocation58_spill] sm:$0xff] }
 0x1f6   : > { %19930 = vst [vmem:[#allocation86_spill] sm:$0xff] %v15424_v10  ;;  %v11431_v13 = vunpack.i.l.bf16 %v19931_v41  ;;  %v15434_v33 = vsel %vm2749_vm7, %v19932_v40, %v11397_v58  ;;  %v15438_v23 = vsel %vm2749_vm7, %v15161_v38, %v11411_v15  ;;  %v15442_v5 = vsel %vm2749_vm7, %v15165_v46, %v11412_v32  ;;  %v19935_v40 = vld [vmem:[#allocation42_spill] sm:$0xff]  ;;  %v19937_v15 = vld [vmem:[#allocation43_spill] sm:$0xff] }
 0x1f7   : > { %v11432_v2 = vunpack.i.h.bf16 %v19931_v41  ;;  %v15449_v37 = vsel %vm2749_vm7, %v19933_v27, %v11406_v6  ;;  %v15453_v58 = vsel %vm2749_vm7, %v19934_v59, %v11407_v22  ;;  %v11427_v10 = vunpack.i.h.bf16 %v19935_v40 }
 0x1f8   : > { %v11426_v38 = vunpack.i.l.bf16 %v19935_v40  ;;  %v15459_v46 = vsel %vm2749_vm7, %v15181_v14, %v11421_v52  ;;  %v15463_v32 = vsel %vm2749_vm7, %v15186_v8, %v11422_v17  ;;  %v15467_v6 = vsel %vm2749_vm7, %v15145_v49, %v11416_v3  ;;  %v19939_v52 = vld [vmem:[#allocation9_spill] sm:$0xff]  ;;  %v15480_v8 = vpop.permute.xlu1 %11579  ;;  %v19941_v17 = vld [vmem:[#allocation44_spill] sm:$0xff] }
 0x1f9   : > { %19936 = vst [vmem:[#allocation90_spill] sm:$0xff] %v15463_v32  ;;  %v11441_v41 = vunpack.i.l.bf16 %v19937_v15  ;;  %v15472_v22 = vsel %vm2749_vm7, %v15152_v0, %v11417_v28  ;;  %v15476_v59 = vsel %vm2749_vm7, %v15203_v21, %v11431_v13  ;;  %v11442_v14 = vunpack.i.h.bf16 %v19937_v15  ;;  %v19943_v40 = vld [vmem:[#allocation45_spill] sm:$0xff] }
 0x1fa   : > { %19938 = vst [vmem:[#allocation92_spill] sm:$0xff] %v15476_v59  ;;  %v11436_v27 = vunpack.i.l.bf16 %v19939_v52  ;;  %v15484_v49 = vsel %vm2749_vm7, %v15210_v36, %v11432_v2  ;;  %v11437_v3 = vunpack.i.h.bf16 %v19939_v52  ;;  %v11452_v0 = vunpack.i.h.bf16 %v19941_v17  ;;  %v19944_v2 = vld [vmem:[#allocation46_spill] sm:$0xff] }
 0x1fb   : > { %19940 = vst [vmem:[#allocation93_spill] sm:$0xff] %v15484_v49  ;;  %v11451_v28 = vunpack.i.l.bf16 %v19941_v17  ;;  %v15491_v21 = vsel %vm2749_vm7, %v15173_v60, %v11426_v38  ;;  %v15495_v13 = vsel %vm2749_vm7, %v15177_v47, %v11427_v10  ;;  %v11447_v15 = vunpack.i.h.bf16 %v19943_v40  ;;  %v19945_v49 = vld [vmem:[#allocation47_spill] sm:$0xff]  ;;  %v15506_v60 = vpop.permute.xlu0 %11574 }
 0x1fc   : > { %19942 = vst [vmem:[#allocation95_spill] sm:$0xff] %v15495_v13  ;;  %v11446_v59 = vunpack.i.l.bf16 %v19943_v40  ;;  %v15501_v36 = vsel %vm2749_vm7, %v15229_v25, %v11441_v41  ;;  %v11462_v52 = vunpack.i.h.bf16 %v19944_v2  ;;  %v11461_v17 = vunpack.i.l.bf16 %v19944_v2  ;;  %v19946_v25 = vld [vmem:[#allocation49_spill] sm:$0xff] }
 0x1fd   : > { %v11456_v32 = vunpack.i.l.bf16 %v19945_v49  ;;  %v15510_v47 = vsel %vm2749_vm7, %v15233_v42, %v11442_v14  ;;  %v15514_v10 = vsel %vm2749_vm7, %v15195_v20, %v11436_v27  ;;  %v11457_v38 = vunpack.i.h.bf16 %v19945_v49 }
 0x1fe   : > { %v11471_v41 = vunpack.i.l.bf16 %v19946_v25  ;;  %v15520_v40 = vsel %vm2749_vm7, %v15199_v4, %v11437_v3  ;;  %v15524_v2 = vsel %vm2749_vm7, %v15252_v9, %v11451_v28  ;;  %v15528_v42 = vsel %vm2749_vm7, %v15260_v30, %v11452_v0  ;;  %v19947_v4 = vld [vmem:[#allocation89_spill] sm:$0xff]  ;;  %v15541_v9 = vpop.permute.xlu1 %11589 }
 0x1ff   : > { %v11472_v14 = vunpack.i.h.bf16 %v19946_v25  ;;  %v15533_v20 = vsel %vm2749_vm7, %v15214_v53, %v11446_v59  ;;  %v15537_v27 = vsel %vm2749_vm7, %v15222_v54, %v11447_v15  ;;  %v11467_v49 = vunpack.i.h.bf16 %v19947_v4  ;;  %v19949_v54 = vld [vmem:[#allocation52_spill] sm:$0xff] }
 0x200   : > { %v11466_v3 = vunpack.i.l.bf16 %v19947_v4  ;;  %v15545_v30 = vsel %vm2749_vm7, %v15273_v35, %v11461_v17  ;;  %v15549_v0 = vsel %vm2749_vm7, %v15277_v45, %v11462_v52  ;;  %v15553_v53 = vsel %vm2749_vm7, %v15239_v12, %v11456_v32  ;;  %v19951_v17 = vld [vmem:[#allocation53_spill] sm:$0xff]  ;;  %v19953_v32 = vld [vmem:[#allocation55_spill] sm:$0xff] }
 0x201   : > { %19948 = vst [vmem:[#allocation97_spill] sm:$0xff] %v15549_v0  ;;  %v11481_v59 = vunpack.i.l.bf16 %v19949_v54  ;;  %v15558_v28 = vsel %vm2749_vm7, %v15248_v34, %v11457_v38  ;;  %v15562_v15 = vsel %vm2749_vm7, %v15291_v51, %v11471_v41  ;;  %v11482_v35 = vunpack.i.h.bf16 %v19949_v54  ;;  %v15573_v34 = vpop.permute.xlu0 %11584  ;;  %v19954_v41 = vld [vmem:[#allocation56_spill] sm:$0xff] }
 0x202   : > { %19950 = vst [vmem:[#allocation35_spill] sm:$0xff] %v15562_v15  ;;  %v11476_v25 = vunpack.i.l.bf16 %v19951_v17  ;;  %v15568_v45 = vsel %vm2749_vm7, %v15298_v44, %v11472_v14  ;;  %v11477_v12 = vunpack.i.h.bf16 %v19951_v17  ;;  %v11492_v52 = vunpack.i.h.bf16 %v19953_v32  ;;  %v19956_v17 = vld [vmem:[#allocation59_spill] sm:$0xff] }
 0x203   : > { %19952 = vst [vmem:[#allocation36_spill] sm:$0xff] %v15568_v45  ;;  %v11491_v4 = vunpack.i.l.bf16 %v19953_v32  ;;  %v15577_v51 = vsel %vm2749_vm7, %v15264_v16, %v11466_v3  ;;  %v15581_v38 = vsel %vm2749_vm7, %v15268_v62, %v11467_v49  ;;  %v11487_v54 = vunpack.i.h.bf16 %v19954_v41  ;;  %v19957_v45 = vld [vmem:[#allocation17_spill] sm:$0xff]  ;;  %v19958_v3 = vld [vmem:[#allocation62_spill] sm:$0xff] }
 0x204   : > { %v11486_v44 = vunpack.i.l.bf16 %v19954_v41  ;;  %v15587_v14 = vsel %vm2804_vm8, %v15317_v7, %v11481_v59  ;;  %v11502_v32 = vunpack.i.h.bf16 %v19956_v17  ;;  %v11501_v13 = vunpack.i.l.bf16 %v19956_v17  ;;  %v15602_v7 = vpop.permute.xlu1 %11599 }
 0x205   : > { %19955 = vst [vmem:[#allocation99_spill] sm:$0xff] %v15587_v14  ;;  %v11496_v15 = vunpack.i.l.bf16 %v19957_v45  ;;  %v15594_v16 = vsel %vm2804_vm8, %v15321_v31, %v11482_v35  ;;  %v15598_v62 = vsel %vm2804_vm8, %v15283_v48, %v11476_v25  ;;  %v11497_v49 = vunpack.i.h.bf16 %v19957_v45  ;;  %v19959_v35 = vld [vmem:[#allocation66_spill] sm:$0xff]  ;;  %v19960_v45 = vld [vmem:[#allocation71_spill] sm:$0xff] }
 0x206   : > { %v11511_v41 = vunpack.i.l.bf16 %v19958_v3  ;;  %v2806_v59 = vsel %vm2804_vm8, %v15287_v29, %v11477_v12  ;;  %v15608_v17 = vsel %vm2804_vm8, %v15340_v11, %v11491_v4  ;;  %v15612_v31 = vsel %vm2804_vm8, %v15348_v55, %v11492_v52  ;;  %v19961_v14 = vld [vmem:[#allocation63_spill] sm:$0xff]  ;;  %v19964_v52 = vld [vmem:[#allocation25_spill] sm:$0xff] }
 0x207   : > { %v11512_v48 = vunpack.i.h.bf16 %v19958_v3  ;;  %v15617_v25 = vsel %vm2804_vm8, %v19959_v35, %v11486_v44  ;;  %v15621_v0 = vsel %vm2804_vm8, %v19960_v45, %v11487_v54  ;;  %v11507_v29 = vunpack.i.h.bf16 %v19961_v14  ;;  %v19965_v44 = vld [vmem:[#allocation65_spill] sm:$0xff]  ;;  %v15638_v54 = vpop.permute.xlu0 %11594 }
 0x208   : > { %v11506_v12 = vunpack.i.l.bf16 %v19961_v14  ;;  %v15627_v11 = vsel %vm2804_vm8, %v15361_v43, %v11501_v13  ;;  %v15631_v55 = vsel %vm2804_vm8, %v15365_v57, %v11502_v32  ;;  %v15635_v4 = vsel %vm2804_vm8, %v19964_v52, %v11496_v15  ;;  %v19966_v35 = vld [vmem:[#allocation73_spill] sm:$0xff]  ;;  %v19969_v13 = vld [vmem:[#allocation20_spill] sm:$0xff]  ;;  %v19971_v52 = vld [vmem:[#allocation22_spill] sm:$0xff] }
 0x209   : > { %19962 = vst [vmem:[#allocation100_spill] sm:$0xff] %v15627_v11  ;;  %19963 = vst [vmem:[#allocation37_spill] sm:$0xff] %v15631_v55  ;;  %v11521_v3 = vunpack.i.l.bf16 %v19965_v44  ;;  %v15642_v14 = vsel %vm2804_vm8, %v19966_v35, %v11497_v49  ;;  %v15646_v43 = vsel %vm2804_vm8, %v15379_v26, %v11511_v41  ;;  %v11522_v57 = vunpack.i.h.bf16 %v19965_v44  ;;  %v19972_v41 = vld [vmem:[#allocation94_spill] sm:$0xff] }
 0x20a   : > { %19967 = vst [vmem:[#allocation38_spill] sm:$0xff] %v15642_v14  ;;  %19968 = vst [vmem:[#allocation39_spill] sm:$0xff] %v15646_v43  ;;  %v11516_v32 = vunpack.i.l.bf16 %v19969_v13  ;;  %v15652_v15 = vsel %vm2804_vm8, %v15386_v24, %v11512_v48  ;;  %v11517_v45 = vunpack.i.h.bf16 %v19969_v13  ;;  %v11532_v55 = vunpack.i.h.bf16 %v19971_v52  ;;  %v11610_v24 = vpop.permute.xlu1 %11609  ;;  %v19973_v13 = vld [vmem:[#allocation24_spill] sm:$0xff] }
 0x20b   : > { %19970 = vst [vmem:[#allocation40_spill] sm:$0xff] %v15652_v15  ;;  %v11531_v11 = vunpack.i.l.bf16 %v19971_v52  ;;  %v15659_v49 = vsel %vm2804_vm8, %v15352_v39, %v11506_v12  ;;  %v15663_v26 = vsel %vm2804_vm8, %v15356_v63, %v11507_v29  ;;  %v11527_v44 = vunpack.i.h.bf16 %v19972_v41  ;;  %v19974_v15 = vld [vmem:[#allocation68_spill] sm:$0xff] }
 0x20c   : > { %v11526_v35 = vunpack.i.l.bf16 %v19972_v41  ;;  %v15669_v48 = vsel %vm2804_vm8, %v15405_v50, %v11521_v3  ;;  %v11542_v43 = vunpack.i.h.bf16 %v19973_v13  ;;  %v11541_v52 = vunpack.i.l.bf16 %v19973_v13  ;;  %v19976_v41 = vld [vmem:[#allocation26_spill] sm:$0xff]  ;;  %v19978_v13 = vld [vmem:[#allocation83_spill] sm:$0xff] }
 0x20d   : > { %v11536_v39 = vunpack.i.l.bf16 %v19974_v15  ;;  %v15676_v12 = vsel %vm2804_vm8, %v15409_v18, %v11522_v57  ;;  %v15680_v63 = vsel %vm2804_vm8, %v15371_v1, %v11516_v32  ;;  %v11537_v29 = vunpack.i.h.bf16 %v19974_v15  ;;  %v15697_v1 = vpop.permute.xlu0 %11604  ;;  %v19977_v32 = vld [vmem:[#allocation27_spill] sm:$0xff] }
 0x20e   : > { %19975 = vst [vmem:[#allocation101_spill] sm:$0xff] %v15676_v12  ;;  %v11551_v14 = vunpack.i.l.bf16 %v19976_v41  ;;  %v15686_v50 = vsel %vm2804_vm8, %v15375_v61, %v11517_v45  ;;  %v15690_v3 = vsel %vm2804_vm8, %v15428_v56, %v11531_v11  ;;  %v15694_v18 = vsel %vm2804_vm8, %v15434_v33, %v11532_v55  ;;  %v19981_v11 = vld [vmem:[#allocation29_spill] sm:$0xff] }
 0x20f   : > { %v11552_v57 = vunpack.i.h.bf16 %v19976_v41  ;;  %v15701_v15 = vsel %vm2804_vm8, %v19977_v32, %v11526_v35  ;;  %v15705_v61 = vsel %vm2804_vm8, %v19978_v13, %v11527_v44  ;;  %v11612_v45 = vunpack.i.h.bf16 %v11610_v24  ;;  %v19982_v35 = vld [vmem:[#allocation76_spill] sm:$0xff]  ;;  %v19983_v32 = vld [vmem:[#allocation86_spill] sm:$0xff] }
 0x210   : > { %v11611_v12 = vunpack.i.l.bf16 %v11610_v24  ;;  %v15709_v56 = vsel %vm2804_vm8, %v15449_v37, %v11541_v52  ;;  %v15713_v33 = vsel %vm2804_vm8, %v15453_v58, %v11542_v43  ;;  %v15717_v55 = vsel %vm2804_vm8, %v19981_v11, %v11536_v39  ;;  %v19985_v52 = vld [vmem:[#allocation78_spill] sm:$0xff]  ;;  %v11620_v58 = vpop.permute.xlu1 %11619 }
 0x211   : > { %19979 = vst [vmem:[#allocation102_spill] sm:$0xff] %v15709_v56  ;;  %19980 = vst [vmem:[#allocation67_spill] sm:$0xff] %v15713_v33  ;;  %v11546_v41 = vunpack.i.l.bf16 %v19982_v35  ;;  %v15722_v44 = vsel %vm2804_vm8, %v19983_v32, %v11537_v29  ;;  %v15726_v24 = vsel %vm2804_vm8, %v15467_v6, %v11551_v14  ;;  %v11547_v37 = vunpack.i.h.bf16 %v19982_v35  ;;  %v19987_v39 = vld [vmem:[#allocation82_spill] sm:$0xff] }
 0x212   : > { %19984 = vst [vmem:[#allocation3_spill] sm:$0xff] %v15726_v24  ;;  %v11561_v13 = vunpack.i.l.bf16 %v19985_v52  ;;  %v15732_v43 = vsel %vm2804_vm8, %v15472_v22, %v11552_v57  ;;  %v11557_v11 = vunpack.i.h.bf16 %v19987_v39  ;;  %v11556_v56 = vunpack.i.l.bf16 %v19987_v39  ;;  %v19988_v33 = vld [vmem:[#allocation30_spill] sm:$0xff] }
 0x213   : > { %19986 = vst [vmem:[#allocation69_spill] sm:$0xff] %v15732_v43  ;;  %v11572_v29 = vunpack.i.h.bf16 %v19988_v33  ;;  %v11571_v32 = vunpack.i.l.bf16 %v19988_v33  ;;  %v11566_v6 = vunpack.i.l.bf16 %v15445_v19  ;;  %v2860_v14 = vsel %vm2859_vm9, %v15598_v62, %v11611_v12  ;;  %v11615_v43 = vpop.permute.xlu0 %11614 }
 0x214   : > { %v2861_v35 = vsel %vm2859_vm9, %v2806_v59, %v11612_v45  ;;  %v15744_v52 = vsel %vm2804_vm8, %v15438_v23, %v11546_v41  ;;  %v11567_v22 = vunpack.i.h.bf16 %v15445_v19  ;;  %v11581_v57 = vunpack.i.l.bf16 %v15480_v8  ;;  %v19989_v19 = vld [vmem:[#allocation90_spill] sm:$0xff] }
 0x215   : > { %v11621_v39 = vunpack.i.l.bf16 %v11620_v58  ;;  %v15750_v33 = vsel %vm2804_vm8, %v15442_v5, %v11547_v37  ;;  %v15754_v24 = vsel %vm2804_vm8, %v15491_v21, %v11561_v13  ;;  %v11582_v62 = vunpack.i.h.bf16 %v15480_v8  ;;  %v19991_v21 = vld [vmem:[#allocation92_spill] sm:$0xff] }
 0x216   : > { %v11576_v59 = vunpack.i.l.bf16 %v15506_v60  ;;  %v15760_v23 = vsel %vm2804_vm8, %v15459_v46, %v11556_v56  ;;  %v15764_v12 = vsel %vm2804_vm8, %v19989_v19, %v11557_v11  ;;  %v11577_v45 = vunpack.i.h.bf16 %v15506_v60  ;;  %v19992_v56 = vld [vmem:[#allocation93_spill] sm:$0xff] }
 0x217   : > { %v2914_v5 = vpack.c.bf16 %v2861_v35, %v2860_v14  ;;  %v15769_v41 = vsel %vm2804_vm8, %v15514_v10, %v11571_v32  ;;  %v15773_v8 = vsel %vm2804_vm8, %v15520_v40, %v11572_v29  ;;  %v15777_v37 = vsel %vm2804_vm8, %v19991_v21, %v11566_v6  ;;  %v19993_v14 = vld [vmem:[#allocation64_spill] sm:$0xff] }
 0x218   : > { %19990 = vst [vmem:[#allocation5_spill] sm:$0xff] %v15769_v41  ;;  %v11591_v46 = vunpack.i.l.bf16 %v15541_v9  ;;  %v15782_v13 = vsel %vm2804_vm8, %v19992_v56, %v11567_v22  ;;  %v15786_v60 = vsel %vm2804_vm8, %v15533_v20, %v11581_v57  ;;  %v11592_v10 = vunpack.i.h.bf16 %v15541_v9  ;;  %v15806_v57 = vpop.permute.xlu1 %11629 }
 0x219   : > { %v2864_v40 = vsel %vm2859_vm9, %v15617_v25, %v11621_v39  ;;  %v15793_v11 = vsel %vm2804_vm8, %v15537_v27, %v11582_v62  ;;  %v15797_v29 = vsel %vm2804_vm8, %v15501_v36, %v11576_v59  ;;  %v11586_v32 = vunpack.i.l.bf16 %v15573_v34  ;;  %v11625_v27 = vpop.permute.xlu0 %11624 }
 0x21a   : > { %v10356_v6 = vpack.c.bf16 %v2861_v35, %v2861_v35  ;;  %v15802_v20 = vsel %vm2804_vm8, %v15510_v47, %v11577_v45  ;;  %v11587_v9 = vunpack.i.h.bf16 %v15573_v34  ;;  %v3004_v22 = vrot.slane %v2914_v5, %v19993_v14 }
 0x21b   : > { %v11622_v25 = vunpack.i.h.bf16 %v11620_v58  ;;  %v15810_v39 = vsel %vm2804_vm8, %v15553_v53, %v11591_v46  ;;  %v11601_v36 = vunpack.i.l.bf16 %v15602_v7  ;;  %v10357_v62 = vpack.c.bf16 %v2864_v40, %v2864_v40 }
 0x21c   : > { %19994 = vst [vmem:[#allocation8_spill] sm:$0xff] %v15810_v39  ;;  %v11617_v35 = vunpack.i.h.bf16 %v11615_v43  ;;  %v15815_v47 = vsel %vm2804_vm8, %v15558_v28, %v11592_v10  ;;  %v11602_v34 = vunpack.i.h.bf16 %v15602_v7  ;;  %v11596_v59 = vunpack.i.l.bf16 %v15638_v54 }
 0x21d   : > { %19995 = vst [vmem:[#allocation7_spill] sm:$0xff] %v15815_v47  ;;  %v11616_v58 = vunpack.i.l.bf16 %v11615_v43  ;;  %v15821_v19 = vsel %vm2804_vm8, %v15524_v2, %v11586_v32  ;;  %v11597_v53 = vunpack.i.h.bf16 %v15638_v54  ;;  %v3011_v45 = vrot.slane %v10356_v6, %v19993_v14  ;;  %v20000_v32 = vld [vmem:[#allocation99_spill] sm:$0xff]  ;;  %v11640_v6 = vpop.permute.xlu1 %11639 }
 0x21e   : > { %v11627_v5 = vunpack.i.h.bf16 %v11625_v27  ;;  %v15827_v21 = vsel %vm2804_vm8, %v15528_v42, %v11587_v9  ;;  %v3012_v28 = vcombine.high %v3004_v22, %v3004_v22  ;;  %v11606_v46 = vunpack.i.l.bf16 %v15697_v1  ;;  %v20001_v9 = vld [vmem:[#allocation97_spill] sm:$0xff] }
 0x21f   : > { %19996 = vst [vmem:[#allocation74_spill] sm:$0xff] %v15827_v21  ;;  %v2865_v7 = vsel %vm2859_vm9, %v15621_v0, %v11622_v25  ;;  %v15834_v43 = vsel %vm2804_vm8, %v15577_v51, %v11601_v36  ;;  %v3074_v2 = vrot.slane %v10357_v62, %v19993_v14  ;;  %v2863_v54 = vsel %vm2859_vm9, %v15594_v16, %v11617_v35  ;;  %v20002_v62 = vld [vmem:[#allocation35_spill] sm:$0xff] }
 0x220   : > { %19997 = vst [vmem:[#allocation11_spill] sm:$0xff] %v15834_v43  ;;  %v11626_v56 = vunpack.i.l.bf16 %v11625_v27  ;;  %v15841_v42 = vsel %vm2804_vm8, %v15581_v38, %v11602_v34  ;;  %v15845_v10 = vsel %vm2804_vm8, %v15545_v30, %v11596_v59  ;;  %v11607_v0 = vunpack.i.h.bf16 %v15697_v1 }
 0x221   : > { %19998 = vst [vmem:[#allocation80_spill] sm:$0xff] %v15841_v42  ;;  %19999 = vst [vmem:[#allocation13_spill] sm:$0xff] %v15845_v10  ;;  %v2862_v51 = vsel %vm2859_vm9, %v20000_v32, %v11616_v58  ;;  %v15852_v25 = vsel %vm2804_vm8, %v20001_v9, %v11597_v53  ;;  %v3013_v16 = vcombine.high %v3011_v45, %v3011_v45  ;;  %v11631_v35 = vunpack.i.l.bf16 %v15806_v57  ;;  %v11635_v32 = vpop.permute.xlu0 %11634  ;;  %v20004_v9 = vld [vmem:[#allocation36_spill] sm:$0xff] }
 0x222   : > { %v2917_v27 = vpack.c.bf16 %v2865_v7, %v2865_v7  ;;  %v2867_v38 = vsel %vm2859_vm9, %v15612_v31, %v11627_v5  ;;  %v3034_v36 = vrot.slane %v3012_v28, %v19993_v14  ;;  %v15859_v30 = vsel %vm2804_vm8, %v20002_v62, %v11606_v46 }
 0x223   : > { %20003 = vst [vmem:[#allocation81_spill] sm:$0xff] %v15859_v30  ;;  %v2916_v1 = vpack.c.bf16 %v2864_v40, %v2863_v54  ;;  %v3076_v34 = vcombine.high %v3074_v2, %v3074_v2  ;;  %v2915_v59 = vpack.c.bf16 %v2862_v51, %v2862_v51  ;;  %v2866_v58 = vsel %vm2859_vm9, %v15608_v17, %v11626_v56 }
 0x224   : > { %v11642_v53 = vunpack.i.h.bf16 %v11640_v6  ;;  %v3020_v7 = vrot.slane %v3004_v22, %v19993_v14  ;;  %v15867_v31 = vsel %vm2804_vm8, %v20004_v9, %v11607_v0  ;;  %v10358_v5 = vpack.c.bf16 %v2867_v38, %v2867_v38 }
 0x225   : > { %20005 = vst [vmem:[#allocation91_spill] sm:$0xff] %v15867_v31  ;;  %v11641_v28 = vunpack.i.l.bf16 %v11640_v6  ;;  %v3027_v46 = vrot.slane %v3011_v45, %v19993_v14  ;;  %v3041_v40 = vrot.slane %v3013_v16, %v19993_v14  ;;  %v3115_v54 = vrot.slane %v2917_v27, %v19993_v14  ;;  %v20006_v31 = vld [vmem:[#allocation100_spill] sm:$0xff] }
 0x226   : > { %v11632_v51 = vunpack.i.h.bf16 %v15806_v57  ;;  %v3067_v17 = vrot.slane %v2916_v1, %v19993_v14  ;;  %v2868_v56 = vsel %vm2859_vm9, %v15635_v4, %v11631_v35  ;;  %v2918_v22 = vpack.c.bf16 %v2867_v38, %v2866_v58 }
 0x227   : > { %v11636_v62 = vunpack.i.l.bf16 %v11635_v32  ;;  %v4148_v43 = vcombine.low %v3020_v7, %v3034_v36  ;;  %v15877_v0 = vrot.slane %v3076_v34, %v19993_v14  ;;  %v3052_v6 = vrot.slane %v2915_v59, %v19993_v14 }
 0x228   : > { %v2873_v45 = vsel %vm2859_vm9, %v15663_v26, %v11642_v53  ;;  %v10374_v16 = vcombine.high %v3020_v7, %v3034_v36  ;;  %v15883_v27 = vrot.slane %v3074_v2, %v19993_v14  ;;  %v3137_v57 = vrot.slane %v10358_v5, %v19993_v14  ;;  %v20007_v5 = vld [vmem:[#allocation38_spill] sm:$0xff] }
 0x229   : > { %v2872_v4 = vsel %vm2859_vm9, %v15659_v49, %v11641_v28  ;;  %v4150_v38 = vcombine.low %v3027_v46, %v3041_v40  ;;  %v10375_v1 = vcombine.high %v3027_v46, %v3041_v40  ;;  %v3122_v35 = vrot.slane %v3115_v54, %v19993_v14 }
 0x22a   : > { %v2919_v34 = vpack.c.bf16 %v2868_v56, %v2868_v56  ;;  %v3075_v58 = vcombine.high %v3067_v17, %v3067_v17  ;;  %v3130_v59 = vrot.slane %v2918_v22, %v19993_v14  ;;  %v10360_v9 = vpack.c.bf16 %v2873_v45, %v2873_v45  ;;  %v11650_v22 = vpop.permute.xlu1 %11649 }
 0x22b   : > { %v2870_v26 = vsel %vm2859_vm9, %v20006_v31, %v11636_v62  ;;  %v3108_v2 = vcombine.high %v15877_v0, %v15877_v0  ;;  %v3059_v36 = vrot.slane %v3052_v6, %v19993_v14  ;;  %v15896_v53 = vrot.slane %v3067_v17, %v19993_v14 }
 0x22c   : > { %v2922_v49 = vpack.c.bf16 %v2873_v45, %v2872_v4  ;;  %v2869_v28 = vsel %vm2859_vm9, %v20007_v5, %v11632_v51  ;;  %v3139_v46 = vcombine.high %v3137_v57, %v3137_v57  ;;  %v11637_v40 = vunpack.i.h.bf16 %v11635_v32 }
 0x22d   : > { %v15903_v54 = vrot.slane %v2919_v34, %v19993_v14  ;;  %v2920_v31 = vpack.c.bf16 %v2870_v26, %v2869_v28  ;;  %v10359_v56 = vpack.c.bf16 %v2870_v26, %v2870_v26  ;;  %v4158_v62 = vrot.slane %v4148_v43, %v19993_v14  ;;  %v15924_v28 = vpop.permute.xlu0 %11644 }
 0x22e   : > { %v15907_v17 = vrot.slane %v3075_v58, %v19993_v14  ;;  %v3138_v6 = vcombine.high %v3130_v59, %v3130_v59  ;;  %v3263_v45 = vrot.slane %v10360_v9, %v19993_v14  ;;  %v4165_v4 = vrot.slane %v10374_v16, %v19993_v14  ;;  %v20008_v58 = vld [vmem:[#allocation37_spill] sm:$0xff] }
 0x22f   : > { %v15911_v51 = vcombine.low %v3108_v2, %v3122_v35  ;;  %v15916_v34 = vcombine.low %v3059_v36, %v15896_v53  ;;  %v3256_v26 = vrot.slane %v2922_v49, %v19993_v14  ;;  %v15920_v43 = vrot.slane %v3139_v46, %v19993_v14 }
 0x230   : > { %v2871_v5 = vsel %vm2859_vm9, %v20008_v58, %v11637_v40  ;;  %v11651_v9 = vunpack.i.l.bf16 %v11650_v22  ;;  %v4172_v16 = vrot.slane %v4150_v38, %v19993_v14  ;;  %v3193_v35 = vrot.slane %v2920_v31, %v19993_v14 }
 0x231   : > { %v3200_v2 = vrot.slane %v10359_v56, %v19993_v14  ;;  %v4179_v36 = vrot.slane %v10375_v1, %v19993_v14  ;;  %v4180_v7 = vcombine.low %v4158_v62, %v4165_v4  ;;  %v3185_v49 = vrot.slane %v15903_v54, %v19993_v14 }
 0x232   : > { %v15933_v46 = vrot.slane %v3137_v57, %v19993_v14  ;;  %v15936_v40 = vrot.slane %v3138_v6, %v19993_v14  ;;  %v3265_v58 = vcombine.high %v3263_v45, %v3263_v45  ;;  %v3264_v32 = vcombine.high %v3256_v26, %v3256_v26 }
 0x233   : > { %v11652_v42 = vunpack.i.h.bf16 %v11650_v22  ;;  %v4181_v38 = vcombine.low %v4172_v16, %v4179_v36  ;;  %v4188_v31 = vrot.slane %v4180_v7, %v19993_v14  ;;  %v3107_v56 = vcombine.high %v15907_v17, %v15907_v17 }
 0x234   : > { %v15942_v1 = vrot.slane %v3130_v59, %v19993_v14  ;;  %v2921_v62 = vpack.c.bf16 %v2871_v5, %v2871_v5  ;;  %v15946_v57 = vsel %vm2859_vm9, %v15680_v63, %v11651_v9  ;;  %v3201_v6 = vcombine.high %v3193_v35, %v3193_v35  ;;  %v15961_v63 = vpop.permute.xlu1 %11659  ;;  %v11655_v9 = vpop.permute.xlu0 %11654 }
 0x235   : > { %v3202_v4 = vcombine.high %v3200_v2, %v3200_v2  ;;  %v4195_v22 = vrot.slane %v4181_v38, %v19993_v14  ;;  %v15956_v59 = vrot.slane %v3263_v45, %v19993_v14  ;;  %v15959_v5 = vrot.slane %v3265_v58, %v19993_v14 }
 0x236   : > { %v15964_v36 = vrot.slane %v3264_v32, %v19993_v14  ;;  %v2877_v38 = vsel %vm2859_vm9, %v15686_v50, %v11652_v42  ;;  %v10361_v54 = vpack.c.bf16 %v15946_v57, %v15946_v57  ;;  %v15971_v16 = vrot.slane %v3256_v26, %v19993_v14  ;;  %v20015_v26 = vld [vmem:[#allocation40_spill] sm:$0xff] }
 0x237   : > { %20009 = vst [vmem:[#allocation85_spill] sm:$0xff] %v15956_v59  ;;  %20010 = vst [vmem:[#allocation77_spill] sm:$0xff] %v15959_v5  ;;  %v4196_v7 = vcombine.low %v4188_v31, %v4195_v22  ;;  %v15974_v45 = vrot.slane %v3193_v35, %v19993_v14  ;;  %v3241_v58 = vrot.slane %v2921_v62, %v19993_v14  ;;  %v11647_v30 = vunpack.i.h.bf16 %v15924_v28 }
 0x238   : > { %20011 = vst [vmem:[#allocation15_spill] sm:$0xff] %v15964_v36  ;;  %20012 = vst [vmem:[#allocation79_spill] sm:$0xff] %v15971_v16  ;;  %v15979_v32 = vrot.slane %v3201_v6, %v19993_v14  ;;  %v15982_v47 = vrot.slane %v3202_v4, %v19993_v14  ;;  %v11657_v50 = vunpack.i.h.bf16 %v11655_v9  ;;  %v11656_v42 = vunpack.i.l.bf16 %v11655_v9  ;;  %v11670_v21 = vpop.permute.xlu1 %11669  ;;  %v20016_v4 = vld [vmem:[#allocation101_spill] sm:$0xff]  ;;  %v16015_v5 = vpop.permute.xlu0 %11664  ;;  %v20017_v36 = vld [vmem:[#allocation39_spill] sm:$0xff] }
 0x239   : > { %10491 = vmatmul.mubr.msk.bf16.vlgmr.msra.gmra.mrb[0].mxu0 %vm5213_vm10, %v4196_v7  ;;  %v15990_v31 = vrot.slane %v3200_v2, %v19993_v14  ;;  %v2925_v62 = vpack.c.bf16 %v2877_v38, %v2877_v38  ;;  %v20014_v22 = vmov 0.0   ;;  %v3326_v7 = vrot.slane %v10361_v54, %v19993_v14 }
 0x23a   : > { %20013 = vst [vmem:[#allocation87_spill] sm:$0xff] %v15982_v47  ;;  %10494 = vmatprep.mubr.msk.bf16.mxu0 %vm12783_vm5, %v20014_v22  ;;  %v11646_v9 = vunpack.i.l.bf16 %v15924_v28  ;;  %v3248_v38 = vrot.slane %v3241_v58, %v19993_v14  ;;  %v2875_v41 = vsel %vm2859_vm9, %v20015_v26, %v11647_v30  ;;  %v3233_v6 = vcombine.high %v15979_v32, %v15979_v32 }
 0x23b   : > { %v3234_v54 = vcombine.high %v15982_v47, %v15982_v47  ;;  %v2878_v28 = vsel %vm2859_vm9, %v15669_v48, %v11656_v42  ;;  %v2879_v35 = vsel %vm2859_vm9, %v20016_v4, %v11657_v50  ;;  %v16020_v30 = vcombine.low %v3185_v49, %v15974_v45  ;;  %7361 = vst.msk [vmem:[#allocation2 + $0x10] sm:$0x3] %vm7360_vm11, %v20014_v22 }
 0x23c   : > { %v3367_v26 = vrot.slane %v2925_v62, %v19993_v14  ;;  %v11661_v2 = vunpack.i.l.bf16 %v15961_v63  ;;  %v3328_v59 = vcombine.high %v3326_v7, %v3326_v7  ;;  %v2874_v16 = vsel %vm2859_vm9, %v20017_v36, %v11646_v9  ;;  %7412 = vst.msk [vmem:[#allocation2 + $0x1a8] sm:$0x3] %vm7360_vm11, %v20014_v22 }
 0x23d   : > { %v2924_v48 = vpack.c.bf16 %v15946_v57, %v2875_v41  ;;  %v11672_v42 = vunpack.i.h.bf16 %v11670_v21  ;;  %v11662_v50 = vunpack.i.h.bf16 %v15961_v63  ;;  %v2926_v4 = vpack.c.bf16 %v2879_v35, %v2878_v28 }
 0x23e   : > { %v11671_v47 = vunpack.i.l.bf16 %v11670_v21  ;;  %v11666_v58 = vunpack.i.l.bf16 %v16015_v5  ;;  %v16030_v49 = vcombine.low %v3233_v6, %v15990_v31  ;;  %v16032_v39 = vcombine.low %v3234_v54, %v3248_v38 }
 0x23f   : > { %v20018_v62 = vcombine.high %v15896_v53, %v15896_v53  ;;  %v4199_v36 = vcombine.low %v3107_v56, %v15883_v27  ;;  %v16040_v41 = vrot.slane %v3326_v7, %v19993_v14  ;;  %v3374_v57 = vrot.slane %v3367_v26, %v19993_v14 }
 0x240   : > { %v2923_v21 = vpack.c.bf16 %v2874_v16, %v2874_v16  ;;  %v2880_v63 = vsel %vm2859_vm9, %v15701_v15, %v11661_v2  ;;  %v16046_v6 = vrot.slane %v3328_v59, %v19993_v14  ;;  %v3319_v9 = vrot.slane %v2924_v48, %v19993_v14 }
 0x241   : > { %v4198_v10 = vcombine.low %v15907_v17, %v20018_v62  ;;  %v2885_v53 = vsel %vm2859_vm9, %v15722_v44, %v11672_v42  ;;  %v20019_v17 = vcombine.high %v15883_v27, %v15883_v27  ;;  %v10362_v7 = vpack.c.bf16 %v2879_v35, %v2879_v35 }
 0x242   : > { %v3382_v38 = vrot.slane %v2926_v4, %v19993_v14  ;;  %v2884_v16 = vsel %vm2859_vm9, %v15717_v55, %v11671_v47  ;;  %v2882_v15 = vsel %vm2859_vm9, %v15690_v3, %v11666_v58  ;;  %v4207_v59 = vrot.slane %v15916_v34, %v19993_v14  ;;  %v16068_v55 = vpop.permute.xlu0 %11674  ;;  %v11680_v4 = vpop.permute.xlu1 %11679 }
 0x243   : > { %v4200_v56 = vcombine.low %v15877_v0, %v20019_v17  ;;  %v4214_v2 = vrot.slane %v4198_v10, %v19993_v14  ;;  %v4221_v44 = vrot.slane %v4199_v36, %v19993_v14  ;;  %v3304_v0 = vrot.slane %v2923_v21, %v19993_v14 }
 0x244   : > { %v2881_v35 = vsel %vm2859_vm9, %v15705_v61, %v11662_v50  ;;  %v2927_v54 = vpack.c.bf16 %v2880_v63, %v2880_v63  ;;  %v10364_v28 = vpack.c.bf16 %v2885_v53, %v2885_v53  ;;  %v3360_v3 = vcombine.high %v16046_v6, %v16046_v6 }
 0x245   : > { %v4228_v27 = vrot.slane %v4200_v56, %v19993_v14  ;;  %v3327_v47 = vcombine.high %v3319_v9, %v3319_v9  ;;  %v4229_v34 = vcombine.low %v4207_v59, %v4214_v2  ;;  %v16073_v10 = vrot.slane %v3319_v9, %v19993_v14 }
 0x246   : > { %v2930_v26 = vpack.c.bf16 %v2885_v53, %v2884_v16  ;;  %v11667_v48 = vunpack.i.h.bf16 %v16015_v5  ;;  %v2928_v42 = vpack.c.bf16 %v2882_v15, %v2881_v35  ;;  %v3389_v61 = vrot.slane %v10362_v7, %v19993_v14 }
 0x247   : > { %v4230_v58 = vcombine.low %v4221_v44, %v4228_v27  ;;  %v3390_v50 = vcombine.high %v3382_v38, %v3382_v38  ;;  %v4237_v62 = vrot.slane %v4229_v34, %v19993_v14  ;;  %v3311_v21 = vrot.slane %v3304_v0, %v19993_v14  ;;  %v16095_v27 = vpop.permute.xlu0 %11684 }
 0x248   : > { %v16081_v63 = vrot.slane %v2927_v54, %v19993_v14  ;;  %v3515_v9 = vrot.slane %v10364_v28, %v19993_v14  ;;  %v10363_v17 = vpack.c.bf16 %v2882_v15, %v2882_v15  ;;  %v16086_v53 = vcombine.low %v3360_v3, %v3374_v57 }
 0x249   : > { %v4244_v36 = vrot.slane %v4230_v58, %v19993_v14  ;;  %v11681_v56 = vunpack.i.l.bf16 %v11680_v4  ;;  %v16089_v16 = vrot.slane %v3327_v47, %v19993_v14  ;;  %v3508_v59 = vrot.slane %v2930_v26, %v19993_v14  ;;  %v16110_v47 = vpop.permute.xlu1 %11689 }
 0x24a   : > { %v2883_v2 = vsel %vm2859_vm9, %v15694_v18, %v11667_v48  ;;  %v3445_v44 = vrot.slane %v2928_v42, %v19993_v14  ;;  %v3391_v0 = vcombine.high %v3389_v61, %v3389_v61  ;;  %v16100_v57 = vrot.slane %v3390_v50, %v19993_v14 }
 0x24b   : > { %v4245_v7 = vcombine.low %v4237_v62, %v4244_v36  ;;  %v11677_v35 = vunpack.i.h.bf16 %v16068_v55  ;;  %v16105_v54 = vcombine.low %v3311_v21, %v16073_v10  ;;  %v3437_v18 = vrot.slane %v16081_v63, %v19993_v14 }
 0x24c   : > { %v3517_v28 = vcombine.high %v3515_v9, %v3515_v9  ;;  %v3452_v3 = vrot.slane %v10363_v17, %v19993_v14  ;;  %v16115_v34 = vrot.slane %v3382_v38, %v19993_v14  ;;  %v2929_v58 = vpack.c.bf16 %v2883_v2, %v2883_v2  ;;  %v16138_v2 = vpop.permute.xlu0 %11694 }
 0x24d   : > { %10495 = vmatmul.mubr.msk.bf16.gmra.mrb[4].mxu0 %vm5213_vm10, %v4245_v7  ;;  %v11682_v26 = vunpack.i.h.bf16 %v11680_v4  ;;  %v2888_v48 = vsel %vm2859_vm9, %v15744_v52, %v11681_v56  ;;  %v3516_v50 = vcombine.high %v3508_v59, %v3508_v59  ;;  %v3453_v62 = vcombine.high %v3445_v44, %v3445_v44  ;;  %v20020_v4 = vld [vmem:[#allocation67_spill] sm:$0xff]  ;;  %20023 = vst [vmem:[#allocation18_spill] sm:$0xff] %v16138_v2 }
 0x24e   : > { %10498 = vmatprep.mubr.msk.bf16.mxu0 %vm12783_vm5, %v20014_v22  ;;  %v11676_v36 = vunpack.i.l.bf16 %v16068_v55  ;;  %v16123_v21 = vrot.slane %v3389_v61, %v19993_v14  ;;  %v16126_v63 = vrot.slane %v3391_v0, %v19993_v14  ;;  %v2887_v17 = vsel %vm2859_vm9, %v20020_v4, %v11677_v35  ;;  %v20026_v4 = vld [vmem:[#allocation102_spill] sm:$0xff] }
 0x24f   : > { %v16133_v52 = vrot.slane %v3515_v9, %v19993_v14  ;;  %v16136_v56 = vrot.slane %v3517_v28, %v19993_v14  ;;  %v3454_v7 = vcombine.high %v3452_v3, %v3452_v3  ;;  %v10365_v55 = vpack.c.bf16 %v2888_v48, %v2888_v48 }
 0x250   : > { %v16141_v61 = vrot.slane %v3445_v44, %v19993_v14  ;;  %v16144_v0 = vrot.slane %v3452_v3, %v19993_v14  ;;  %v3493_v38 = vrot.slane %v2929_v58, %v19993_v14  ;;  %v2889_v35 = vsel %vm2859_vm9, %v15750_v33, %v11682_v26  ;;  %v16157_v44 = vpop.permute.xlu1 %11699 }
 0x251   : > { %20021 = vst [vmem:[#allocation16_spill] sm:$0xff] %v16133_v52  ;;  %20022 = vst [vmem:[#allocation88_spill] sm:$0xff] %v16136_v56  ;;  %v16150_v9 = vrot.slane %v3516_v50, %v19993_v14  ;;  %v16153_v28 = vrot.slane %v3453_v62, %v19993_v14  ;;  %v2886_v5 = vsel %vm2859_vm9, %v20026_v4, %v11676_v36 }
 0x252   : > { %v2932_v42 = vpack.c.bf16 %v2888_v48, %v2887_v17  ;;  %v16166_v26 = vrot.slane %v3508_v59, %v19993_v14  ;;  %v16171_v62 = vrot.slane %v3454_v7, %v19993_v14  ;;  %v2933_v48 = vpack.c.bf16 %v2889_v35, %v2889_v35  ;;  %v16186_v35 = vpop.permute.xlu0 %11704 }
 0x253   : > { %20024 = vst [vmem:[#allocation19_spill] sm:$0xff] %v16150_v9  ;;  %20025 = vst [vmem:[#allocation21_spill] sm:$0xff] %v16153_v28  ;;  %v3578_v36 = vrot.slane %v10365_v55, %v19993_v14  ;;  %v3500_v58 = vrot.slane %v3493_v38, %v19993_v14  ;;  %v2931_v3 = vpack.c.bf16 %v2886_v5, %v2886_v5  ;;  %v11687_v9 = vunpack.i.h.bf16 %v16095_v27 }
 0x254   : > { %20027 = vst [vmem:[#allocation23_spill] sm:$0xff] %v16166_v26  ;;  %20028 = vst [vmem:[#allocation96_spill] sm:$0xff] %v16171_v62  ;;  %v3485_v7 = vcombine.high %v16153_v28, %v16153_v28  ;;  %v3571_v55 = vrot.slane %v2932_v42, %v19993_v14  ;;  %v4256_v17 = vrot.slane %v15911_v51, %v19993_v14  ;;  %v11686_v26 = vunpack.i.l.bf16 %v16095_v27 }
 0x255   : > { %v20029_v5 = vcombine.low %v15942_v1, %v15936_v40  ;;  %v20030_v59 = vcombine.high %v15942_v1, %v15936_v40  ;;  %v20031_v4 = vcombine.low %v15933_v46, %v15920_v43  ;;  %v3486_v51 = vcombine.high %v16171_v62, %v16171_v62 }
 0x256   : > { %v3580_v15 = vcombine.high %v3578_v36, %v3578_v36  ;;  %v16207_v56 = vrot.slane %v2933_v48, %v19993_v14  ;;  %v16212_v40 = vcombine.low %v3437_v18, %v16141_v61  ;;  %v3556_v1 = vrot.slane %v2931_v3, %v19993_v14  ;;  %v11715_v27 = vpop.permute.xlu0 %11714 }
 0x257   : > { %v4263_v38 = vrot.slane %v20029_v5, %v19993_v14  ;;  %v4270_v50 = vrot.slane %v20030_v59, %v19993_v14  ;;  %v4277_v42 = vrot.slane %v20031_v4, %v19993_v14  ;;  %v16209_v5 = vpop.permute.xlu1 %11709  ;;  %v16216_v4 = vcombine.low %v3485_v7, %v16144_v0 }
 0x258   : > { %20032 = vst [vmem:[#allocation48_spill] sm:$0xff] %v16207_v56  ;;  %v3579_v33 = vcombine.high %v3571_v55, %v3571_v55  ;;  %v16221_v48 = vrot.slane %v3578_v36, %v19993_v14  ;;  %v11711_v28 = vunpack.i.l.bf16 %v16209_v5  ;;  %v16226_v3 = vcombine.low %v3486_v51, %v3500_v58  ;;  %v20037_v51 = vld [vmem:[#allocation3_spill] sm:$0xff] }
 0x259   : > { %v4278_v59 = vcombine.low %v4256_v17, %v4263_v38  ;;  %v4279_v52 = vcombine.low %v4270_v50, %v4277_v42  ;;  %v16229_v50 = vrot.slane %v3580_v15, %v19993_v14  ;;  %v11691_v7 = vunpack.i.l.bf16 %v16110_v47 }
 0x25a   : > { %20033 = vst [vmem:[#allocation98_spill] sm:$0xff] %v16226_v3  ;;  %v3563_v36 = vrot.slane %v3556_v1, %v19993_v14  ;;  %v16236_v38 = vrot.slane %v3571_v55, %v19993_v14  ;;  %v16240_v58 = vrot.slane %v3579_v33, %v19993_v14  ;;  %v2890_v15 = vsel %vm2859_vm9, %v20037_v51, %v11686_v26 }
 0x25b   : > { %v4286_v62 = vrot.slane %v4278_v59, %v19993_v14  ;;  %v4293_v18 = vrot.slane %v4279_v52, %v19993_v14  ;;  %20034 = vst [vmem:[#allocation28_spill] sm:$0xff] %v16229_v50  ;;  %v11692_v52 = vunpack.i.h.bf16 %v16110_v47  ;;  %v20038_v59 = vld [vmem:[#allocation69_spill] sm:$0xff]  ;;  %v11707_v56 = vunpack.i.h.bf16 %v16186_v35  ;;  %v16247_v3 = vpop.permute.xlu1 %11719  ;;  %v20059_v50 = vld [vmem:[#allocation80_spill] sm:$0xff] }
 0x25c   : > { %20035 = vst [vmem:[#allocation50_spill] sm:$0xff] %v16236_v38  ;;  %20036 = vst [vmem:[#allocation31_spill] sm:$0xff] %v16240_v58  ;;  %v2891_v17 = vsel %vm2859_vm9, %v20038_v59, %v11687_v9  ;;  %v2900_v47 = vsel %vm2859_vm9, %v15797_v29, %v11711_v28  ;;  %v11717_v33 = vunpack.i.h.bf16 %v11715_v27  ;;  %v16258_v9 = vsel %vm2859_vm9, %v15760_v23, %v11691_v7 }
 0x25d   : > { %v4294_v42 = vcombine.low %v4286_v62, %v4293_v18  ;;  %v11716_v62 = vunpack.i.l.bf16 %v11715_v27  ;;  %20039 = vst [vmem:[#allocation32_spill] sm:$0xff] %v16258_v9  ;;  %v11702_v1 = vunpack.i.h.bf16 %v16157_v44  ;;  %v11701_v18 = vunpack.i.l.bf16 %v16157_v44  ;;  %v20055_v9 = vld [vmem:[#allocation15_spill] sm:$0xff] }
 0x25e   : > { %v16268_v29 = vsel %vm2859_vm9, %v15764_v12, %v11692_v52  ;;  %v2934_v28 = vpack.c.bf16 %v2891_v17, %v2890_v15  ;;  %v10366_v27 = vpack.c.bf16 %v2891_v17, %v2891_v17  ;;  %v16273_v7 = vcombine.low %v3563_v36, %v16236_v38 }
 0x25f   : > { %10499 = vmatmul.mubr.msk.bf16.gmra.mrb[8].mxu0 %vm5213_vm10, %v4294_v42  ;;  %v10369_v51 = vpack.c.bf16 %v2900_v47, %v2900_v47  ;;  %v2899_v44 = vsel %vm2859_vm9, %v15773_v8, %v11707_v56  ;;  %v2902_v26 = vsel %vm2859_vm9, %v15786_v60, %v11716_v62  ;;  %v2903_v12 = vsel %vm2859_vm9, %v15793_v11, %v11717_v33  ;;  %v11730_v15 = vpop.permute.xlu1 %11729 }
 0x260   : > { %10502 = vmatprep.mubr.msk.bf16.mxu0 %vm12783_vm5, %v20014_v22  ;;  %20040 = vst [vmem:[#allocation33_spill] sm:$0xff] %v16273_v7  ;;  %v20041_v17 = vcombine.high %v15974_v45, %v15974_v45  ;;  %v16289_v36 = vsel %vm2859_vm9, %v15777_v37, %v11701_v18  ;;  %v16293_v8 = vsel %vm2859_vm9, %v15782_v13, %v11702_v1  ;;  %v11696_v56 = vunpack.i.l.bf16 %v16138_v2 }
 0x261   : > { %20042 = vst [vmem:[#allocation34_spill] sm:$0xff] %v16289_v36  ;;  %20043 = vst [vmem:[#allocation51_spill] sm:$0xff] %v16293_v8  ;;  %v11712_v60 = vunpack.i.h.bf16 %v16209_v5  ;;  %v16298_v11 = vrot.slane %v2934_v28, %v19993_v14  ;;  %v16301_v45 = vrot.slane %v10366_v27, %v19993_v14  ;;  %v11721_v33 = vunpack.i.l.bf16 %v16247_v3 }
 0x262   : > { %v4297_v52 = vcombine.low %v15979_v32, %v20041_v17  ;;  %v2940_v32 = vpack.c.bf16 %v2900_v47, %v2899_v44  ;;  %v3830_v37 = vrot.slane %v10369_v51, %v19993_v14  ;;  %v2942_v62 = vpack.c.bf16 %v2903_v12, %v2902_v26 }
 0x263   : > { %v20044_v13 = vcombine.high %v15933_v46, %v15920_v43  ;;  %v4312_v5 = vrot.slane %v16020_v30, %v19993_v14  ;;  %v10370_v18 = vpack.c.bf16 %v2903_v12, %v2903_v12  ;;  %v4326_v27 = vrot.slane %v16030_v49, %v19993_v14  ;;  %v11725_v49 = vpop.permute.xlu0 %11724 }
 0x264   : > { %v4319_v28 = vrot.slane %v4297_v52, %v19993_v14  ;;  %v11732_v47 = vunpack.i.h.bf16 %v11730_v15  ;;  %v16316_v44 = vsel %vm2859_vm9, %v15754_v24, %v11696_v56  ;;  %v2901_v26 = vsel %vm2859_vm9, %v15802_v20, %v11712_v60  ;;  %v20045_v56 = vld [vmem:[#allocation13_spill] sm:$0xff] }
 0x265   : > { %v4305_v1 = vrot.slane %v20044_v13, %v19993_v14  ;;  %v11731_v43 = vunpack.i.l.bf16 %v11730_v15  ;;  %v16321_v46 = vrot.slane %v2940_v32, %v19993_v14  ;;  %v11722_v30 = vunpack.i.h.bf16 %v16247_v3 }
 0x266   : > { %v4328_v12 = vcombine.low %v4319_v28, %v4326_v27  ;;  %v2909_v17 = vsel %vm2859_vm9, %v15852_v25, %v11732_v47  ;;  %v3832_v52 = vcombine.high %v3830_v37, %v3830_v37  ;;  %v2904_v24 = vsel %vm2859_vm9, %v15821_v19, %v11721_v33 }
 0x267   : > { %v4327_v51 = vcombine.low %v4305_v1, %v4312_v5  ;;  %v2908_v13 = vsel %vm2859_vm9, %v20045_v56, %v11731_v43  ;;  %v10372_v20 = vpack.c.bf16 %v2909_v17, %v2909_v17  ;;  %v3886_v60 = vrot.slane %v2942_v62, %v19993_v14 }
 0x268   : > { %v3893_v15 = vrot.slane %v10370_v18, %v19993_v14  ;;  %v4342_v3 = vrot.slane %v4328_v12, %v19993_v14  ;;  %v2941_v1 = vpack.c.bf16 %v2901_v26, %v2901_v26  ;;  %v11706_v5 = vunpack.i.l.bf16 %v16186_v35  ;;  %v20048_v35 = vld [vmem:[#allocation74_spill] sm:$0xff] }
 0x269   : > { %v4335_v32 = vrot.slane %v4327_v51, %v19993_v14  ;;  %v11726_v28 = vunpack.i.l.bf16 %v11725_v49  ;;  %v2943_v19 = vpack.c.bf16 %v2904_v24, %v2904_v24  ;;  %v2946_v27 = vpack.c.bf16 %v2909_v17, %v2908_v13  ;;  %v20046_v51 = vld [vmem:[#allocation8_spill] sm:$0xff]  ;;  %v20049_v13 = vld [vmem:[#allocation5_spill] sm:$0xff] }
 0x26a   : > { %v11727_v47 = vunpack.i.h.bf16 %v11725_v49  ;;  %v16338_v43 = vrot.slane %v3832_v52, %v19993_v14  ;;  %v3831_v62 = vcombine.high %v16321_v46, %v16321_v46  ;;  %v4019_v18 = vrot.slane %v10372_v20, %v19993_v14 }
 0x26b   : > { %v4343_v33 = vcombine.low %v4335_v32, %v4342_v3  ;;  %v2906_v12 = vsel %vm2859_vm9, %v20046_v51, %v11726_v28  ;;  %v16347_v26 = vrot.slane %v16301_v45, %v19993_v14  ;;  %v2905_v24 = vsel %vm2859_vm9, %v20048_v35, %v11722_v30  ;;  %v16394_v30 = vpop.permute.xlu1 %11739 }
 0x26c   : > { %v3894_v17 = vcombine.high %v3886_v60, %v3886_v60  ;;  %v3895_v49 = vcombine.high %v3893_v15, %v3893_v15  ;;  %v16353_v52 = vrot.slane %v3830_v37, %v19993_v14  ;;  %v3871_v56 = vrot.slane %v2941_v1, %v19993_v14 }
 0x26d   : > { %20047 = vst [vmem:[#allocation84_spill] sm:$0xff] %v16347_v26  ;;  %10503 = vmatmul.mubr.msk.bf16.gmra.mrb[12].mxu0 %vm5213_vm10, %v4343_v33  ;;  %v16358_v20 = vsel %vm2859_vm9, %v20049_v13, %v11706_v5  ;;  %v2944_v32 = vpack.c.bf16 %v2906_v12, %v2905_v24  ;;  %v3934_v3 = vrot.slane %v2943_v19, %v19993_v14  ;;  %v20050_v33 = vld [vmem:[#allocation7_spill] sm:$0xff]  ;;  %v11741_v13 = vunpack.i.l.bf16 %v16394_v30 }
 0x26e   : > { %10506 = vmatprep.mubr.msk.bf16.mxu0 %vm12783_vm5, %v20014_v22  ;;  %v4012_v28 = vrot.slane %v2946_v27, %v19993_v14  ;;  %v2907_v37 = vsel %vm2859_vm9, %v20050_v33, %v11727_v47  ;;  %v3864_v1 = vcombine.high %v16338_v43, %v16338_v43  ;;  %v16371_v5 = vrot.slane %v3831_v62, %v19993_v14 }
 0x26f   : > { %v4021_v51 = vcombine.high %v4019_v18, %v4019_v18  ;;  %v10371_v35 = vpack.c.bf16 %v2906_v12, %v2906_v12  ;;  %v16378_v19 = vrot.slane %v3894_v17, %v19993_v14  ;;  %v16381_v27 = vrot.slane %v3895_v49, %v19993_v14 }
 0x270   : > { %20051 = vst [vmem:[#allocation14_spill] sm:$0xff] %v16371_v5  ;;  %v3862_v47 = vcombine.high %v16353_v52, %v16353_v52  ;;  %v3878_v62 = vrot.slane %v3871_v56, %v19993_v14  ;;  %v2945_v33 = vpack.c.bf16 %v2907_v37, %v2907_v37  ;;  %v3949_v12 = vrot.slane %v2944_v32, %v19993_v14  ;;  %v16402_v37 = vpop.permute.xlu0 %11734 }
 0x271   : > { %v3941_v59 = vrot.slane %v3934_v3, %v19993_v14  ;;  %v16389_v55 = vrot.slane %v3886_v60, %v19993_v14  ;;  %v16392_v42 = vrot.slane %v3893_v15, %v19993_v14  ;;  %v4020_v17 = vcombine.high %v4012_v28, %v4012_v28 }
 0x272   : > { %v4885_v49 = vcombine.low %v3864_v1, %v3878_v62  ;;  %v3863_v23 = vcombine.high %v16371_v5, %v16371_v5  ;;  %v16399_v56 = vrot.slane %v4021_v51, %v19993_v14  ;;  %v3956_v32 = vrot.slane %v10371_v35, %v19993_v14  ;;  %v20053_v62 = vld [vmem:[#allocation87_spill] sm:$0xff]  ;;  %v20058_v5 = vld [vmem:[#allocation81_spill] sm:$0xff] }
 0x273   : > { %v4886_v60 = vcombine.low %v16389_v55, %v16378_v19  ;;  %v20052_v1 = vcombine.high %v15990_v31, %v15990_v31  ;;  %v16415_v51 = vrot.slane %v4019_v18, %v19993_v14  ;;  %v3957_v35 = vcombine.high %v3949_v12, %v3949_v12 }
 0x274   : > { %v16418_v25 = vrot.slane %v2945_v33, %v19993_v14  ;;  %v10389_v15 = vcombine.high %v16392_v42, %v16381_v27  ;;  %v16424_v8 = vrot.slane %v4012_v28, %v19993_v14  ;;  %v16427_v3 = vrot.slane %v4020_v17, %v19993_v14  ;;  %v20054_v17 = vld [vmem:[#allocation79_spill] sm:$0xff] }
 0x275   : > { %v4344_v24 = vcombine.low %v20053_v62, %v20052_v1  ;;  %v11737_v31 = vunpack.i.h.bf16 %v16402_v37  ;;  %v3958_v1 = vcombine.high %v3956_v32, %v3956_v32  ;;  %v16433_v33 = vrot.slane %v3949_v12, %v19993_v14  ;;  %v20062_v12 = vld [vmem:[#allocation77_spill] sm:$0xff] }
 0x276   : > { %v16436_v62 = vrot.slane %v3956_v32, %v19993_v14  ;;  %v4361_v28 = vrot.slane %v16032_v39, %v19993_v14  ;;  %v20056_v7 = vcombine.low %v20054_v17, %v20055_v9  ;;  %v20057_v18 = vcombine.high %v20054_v17, %v20055_v9 }
 0x277   : > { %v4354_v36 = vrot.slane %v4344_v24, %v19993_v14  ;;  %v3979_v32 = vrot.slane %v3957_v35, %v19993_v14  ;;  %v4004_v24 = vrot.slane %v16418_v25, %v19993_v14  ;;  %v16456_v39 = vsel %vm2859_vm9, %v20058_v5, %v11741_v13  ;;  %v20061_v25 = vld [vmem:[#allocation85_spill] sm:$0xff] }
 0x278   : > { %v4368_v26 = vrot.slane %v20056_v7, %v19993_v14  ;;  %v4375_v2 = vrot.slane %v20057_v18, %v19993_v14  ;;  %v2911_v7 = vsel %vm2859_vm9, %v20059_v50, %v11737_v31  ;;  %v20060_v9 = vcombine.high %v16073_v10, %v16073_v10 }
 0x279   : > { %v4376_v38 = vcombine.low %v4354_v36, %v4361_v28  ;;  %v3987_v35 = vcombine.high %v16433_v33, %v16433_v33  ;;  %v4935_v17 = vcombine.low %v3941_v59, %v16433_v33  ;;  %v20063_v5 = vcombine.low %v20061_v25, %v20062_v12 }
 0x27a   : > { %v4377_v58 = vcombine.low %v4368_v26, %v4375_v2  ;;  %v4396_v18 = vcombine.low %v16089_v16, %v20060_v9  ;;  %v20064_v50 = vcombine.high %v20061_v25, %v20062_v12  ;;  %v3986_v36 = vrot.slane %v3958_v1, %v19993_v14 }
 0x27b   : > { %v4403_v13 = vrot.slane %v20063_v5, %v19993_v14  ;;  %v3988_v10 = vcombine.high %v16436_v62, %v16436_v62  ;;  %v4384_v26 = vrot.slane %v4376_v38, %v19993_v14  ;;  %v2948_v59 = vpack.c.bf16 %v16456_v39, %v2911_v7 }
 0x27c   : > { %v4410_v2 = vrot.slane %v20064_v50, %v19993_v14  ;;  %v4391_v31 = vrot.slane %v4377_v58, %v19993_v14  ;;  %v4417_v33 = vrot.slane %v16105_v54, %v19993_v14  ;;  %v4424_v28 = vrot.slane %v4396_v18, %v19993_v14 }
 0x27d   : > { %v4883_v9 = vcombine.low %v3863_v23, %v16353_v52  ;;  %v4884_v25 = vcombine.low %v16338_v43, %v3862_v47  ;;  %v4907_v1 = vrot.slane %v4885_v49, %v19993_v14  ;;  %v4914_v5 = vrot.slane %v4886_v60, %v19993_v14 }
 0x27e   : > { %v4392_v12 = vcombine.low %v4384_v26, %v4391_v31  ;;  %v4425_v50 = vcombine.low %v4403_v13, %v4410_v2  ;;  %v4426_v38 = vcombine.low %v4417_v33, %v4424_v28  ;;  %v20065_v7 = vcombine.high %v16089_v16, %v16089_v16 }
 0x27f   : > { %v4893_v58 = vrot.slane %v4883_v9, %v19993_v14  ;;  %v10373_v18 = vpack.c.bf16 %v16456_v39, %v16456_v39  ;;  %v11736_v23 = vunpack.i.l.bf16 %v16402_v37  ;;  %v4900_v43 = vrot.slane %v4884_v25, %v19993_v14 }
 0x280   : > { %v4442_v54 = vcombine.low %v20065_v7, %v16040_v41  ;;  %10507 = vmatmul.mubr.msk.bf16.gmra.mrb[16].mxu0 %vm5213_vm10, %v4392_v12  ;;  %v4916_v52 = vcombine.low %v4907_v1, %v4914_v5  ;;  %v3989_v47 = vcombine.high %v3979_v32, %v3979_v32  ;;  %v3990_v49 = vcombine.high %v3986_v36, %v3986_v36 }
 0x281   : > { %v4075_v60 = vrot.slane %v2948_v59, %v19993_v14  ;;  %10510 = vmatprep.mubr.msk.bf16.mxu0 %vm12783_vm5, %v20014_v22  ;;  %v20066_v16 = vcombine.high %v16040_v41, %v16040_v41  ;;  %v4440_v39 = vrot.slane %v4426_v38, %v19993_v14  ;;  %v4915_v37 = vcombine.low %v4893_v58, %v4900_v43 }
 0x282   : > { %v4930_v2 = vrot.slane %v4916_v52, %v19993_v14  ;;  %v20067_v26 = vcombine.low %v16115_v34, %v16100_v57  ;;  %v4433_v59 = vrot.slane %v4425_v50, %v19993_v14  ;;  %v4452_v33 = vrot.slane %v4442_v54, %v19993_v14 }
 0x283   : > { %v4443_v13 = vcombine.low %v16046_v6, %v20066_v16  ;;  %v4466_v28 = vrot.slane %v16086_v53, %v19993_v14  ;;  %v4963_v41 = vrot.slane %v4935_v17, %v19993_v14  ;;  %v4923_v6 = vrot.slane %v4915_v37, %v19993_v14  ;;  %v20070_v53 = vld [vmem:[#allocation11_spill] sm:$0xff] }
 0x284   : > { %v4473_v31 = vrot.slane %v20067_v26, %v19993_v14  ;;  %v20068_v9 = vcombine.high %v16389_v55, %v16378_v19  ;;  %v20069_v25 = vcombine.low %v16392_v42, %v16381_v27  ;;  %v4956_v5 = vrot.slane %v10389_v15, %v19993_v14 }
 0x285   : > { %v4982_v50 = vcombine.low %v3989_v47, %v16436_v62  ;;  %v4984_v38 = vcombine.low %v3990_v49, %v4004_v24  ;;  %v2910_v17 = vsel %vm2859_vm9, %v20070_v53, %v11736_v23  ;;  %v4459_v58 = vrot.slane %v4443_v13, %v19993_v14 }
 0x286   : > { %v4942_v12 = vrot.slane %v20068_v9, %v19993_v14  ;;  %v4949_v1 = vrot.slane %v20069_v25, %v19993_v14  ;;  %v4441_v7 = vcombine.low %v4433_v59, %v4440_v39  ;;  %v4931_v54 = vcombine.low %v4923_v6, %v4930_v2 }
 0x287   : > { %v4475_v43 = vcombine.low %v4466_v28, %v4473_v31  ;;  %v4965_v55 = vcombine.low %v4956_v5, %v4963_v41  ;;  %v5030_v19 = vcombine.low %v16424_v8, %v16427_v3  ;;  %v4083_v52 = vcombine.high %v4075_v60, %v4075_v60  ;;  %v20075_v5 = vld [vmem:[#allocation21_spill] sm:$0xff] }
 0x288   : > { %v4474_v42 = vcombine.low %v4452_v33, %v4459_v58  ;;  %v4981_v27 = vcombine.low %v3979_v32, %v3987_v35  ;;  %10511 = vmatmul.mubr.msk.bf16.gmra.mrb[20].mxu0 %vm5213_vm10, %v4441_v7  ;;  %10551 = vmatmul.mubr.msk.bf16.vlgmr.msra.gmra.mrb[0].mxu1 %vm5213_vm10, %v4931_v54  ;;  %v4964_v15 = vcombine.low %v4942_v12, %v4949_v1 }
 0x289   : > { %v4522_v62 = vrot.slane %v16212_v40, %v19993_v14  ;;  %v4983_v24 = vcombine.low %v3986_v36, %v3988_v10  ;;  %v4082_v23 = vrot.slane %v10373_v18, %v19993_v14  ;;  %v2947_v47 = vpack.c.bf16 %v2910_v17, %v2910_v17  ;;  %10514 = vmatprep.mubr.msk.bf16.mxu0 %vm12783_vm5, %v20014_v22 }
 0x28a   : > { %10554 = vmatprep.mubr.msk.bf16.mxu1 %vm12783_vm5, %v20014_v22  ;;  %v4998_v32 = vrot.slane %v4982_v50, %v19993_v14  ;;  %v4489_v35 = vrot.slane %v4475_v43, %v19993_v14  ;;  %v4979_v49 = vrot.slane %v4965_v55, %v19993_v14  ;;  %v20071_v40 = vcombine.high %v16123_v21, %v16126_v63 }
 0x28b   : > { %v5012_v10 = vrot.slane %v4984_v38, %v19993_v14  ;;  %v4105_v18 = vrot.slane %v4083_v52, %v19993_v14  ;;  %v20072_v16 = vcombine.high %v16115_v34, %v16100_v57  ;;  %v20073_v39 = vcombine.low %v16123_v21, %v16126_v63 }
 0x28c   : > { %v4515_v36 = vrot.slane %v20071_v40, %v19993_v14  ;;  %v4991_v2 = vrot.slane %v4981_v27, %v19993_v14  ;;  %v4482_v26 = vrot.slane %v4474_v42, %v19993_v14  ;;  %v4972_v31 = vrot.slane %v4964_v15, %v19993_v14 }
 0x28d   : > { %v4501_v13 = vrot.slane %v20072_v16, %v19993_v14  ;;  %v4508_v37 = vrot.slane %v20073_v39, %v19993_v14  ;;  %v5005_v33 = vrot.slane %v4983_v24, %v19993_v14  ;;  %v10390_v28 = vcombine.high %v16424_v8, %v16427_v3  ;;  %v20077_v3 = vld [vmem:[#allocation96_spill] sm:$0xff]  ;;  %v20082_v39 = vld [vmem:[#allocation91_spill] sm:$0xff] }
 0x28e   : > { %v4524_v59 = vcombine.low %v4515_v36, %v4522_v62  ;;  %v4084_v41 = vcombine.high %v4082_v23, %v4082_v23  ;;  %v4098_v57 = vrot.slane %v4082_v23, %v19993_v14  ;;  %v5013_v34 = vcombine.low %v4991_v2, %v4998_v32  ;;  %v20084_v2 = vld [vmem:[#allocation19_spill] sm:$0xff] }
 0x28f   : > { %v4060_v6 = vrot.slane %v2947_v47, %v19993_v14  ;;  %v4490_v21 = vcombine.low %v4482_v26, %v4489_v35  ;;  %v4980_v63 = vcombine.low %v4972_v31, %v4979_v49  ;;  %v5014_v9 = vcombine.low %v5005_v33, %v5012_v10 }
 0x290   : > { %v4091_v12 = vrot.slane %v4075_v60, %v19993_v14  ;;  %v4523_v25 = vcombine.low %v4501_v13, %v4508_v37  ;;  %v20074_v1 = vcombine.high %v16141_v61, %v16141_v61  ;;  %v20076_v8 = vcombine.high %v16144_v0, %v16144_v0  ;;  %v20078_v0 = vld [vmem:[#allocation98_spill] sm:$0xff]  ;;  %v20083_v37 = vld [vmem:[#allocation23_spill] sm:$0xff] }
 0x291   : > { %v4115_v53 = vcombine.high %v4105_v18, %v4105_v18  ;;  %10515 = vmatmul.mubr.msk.bf16.gmra.mrb[24].mxu0 %vm5213_vm10, %v4490_v21  ;;  %10555 = vmatmul.mubr.msk.bf16.gmra.mrb[4].mxu1 %vm5213_vm10, %v4980_v63  ;;  %v4538_v17 = vrot.slane %v4524_v59, %v19993_v14  ;;  %v4557_v60 = vrot.slane %v16216_v4, %v19993_v14  ;;  %v11742_v27 = vunpack.i.h.bf16 %v16394_v30 }
 0x292   : > { %v4540_v50 = vcombine.low %v20075_v5, %v20074_v1  ;;  %v4542_v38 = vcombine.low %v20077_v3, %v20076_v8  ;;  %10518 = vmatprep.mubr.msk.bf16.mxu0 %vm12783_vm5, %v20014_v22  ;;  %10558 = vmatprep.mubr.msk.bf16.mxu1 %vm12783_vm5, %v20014_v22  ;;  %v5021_v61 = vrot.slane %v5013_v34, %v19993_v14 }
 0x293   : > { %v4571_v58 = vrot.slane %v20078_v0, %v19993_v14  ;;  %v5040_v7 = vrot.slane %v5030_v19, %v19993_v14  ;;  %v5028_v54 = vrot.slane %v5014_v9, %v19993_v14  ;;  %v5047_v43 = vrot.slane %v10390_v28, %v19993_v14  ;;  %v20087_v28 = vld [vmem:[#allocation16_spill] sm:$0xff] }
 0x294   : > { %v20079_v4 = vcombine.low %v16415_v51, %v16399_v56  ;;  %v20080_v52 = vcombine.high %v16415_v51, %v16399_v56  ;;  %v4531_v15 = vrot.slane %v4523_v25, %v19993_v14  ;;  %v4550_v19 = vrot.slane %v4540_v50, %v19993_v14 }
 0x295   : > { %v4564_v62 = vrot.slane %v4542_v38, %v19993_v14  ;;  %v20081_v24 = vpack.c.bf16 %v16358_v20, %v16358_v20  ;;  %v16607_v47 = vrot.slane %v4084_v41, %v19993_v14  ;;  %v4114_v32 = vcombine.high %v4098_v57, %v4098_v57 }
 0x296   : > { %v5054_v55 = vrot.slane %v20079_v4, %v19993_v14  ;;  %v5061_v42 = vrot.slane %v20080_v52, %v19993_v14  ;;  %v4113_v35 = vcombine.high %v4091_v12, %v4091_v12  ;;  %v4067_v56 = vrot.slane %v4060_v6, %v19993_v14 }
 0x297   : > { %v3808_v23 = vrot.slane %v20081_v24, %v19993_v14  ;;  %v4539_v51 = vcombine.low %v4531_v15, %v4538_v17  ;;  %v4572_v30 = vcombine.low %v4550_v19, %v4557_v60  ;;  %v4573_v49 = vcombine.low %v4564_v62, %v4571_v58 }
 0x298   : > { %v5029_v40 = vcombine.low %v5021_v61, %v5028_v54  ;;  %v5062_v36 = vcombine.low %v5040_v7, %v5047_v43  ;;  %v5063_v10 = vcombine.low %v5054_v55, %v5061_v42  ;;  %v5081_v16 = vcombine.low %v4115_v53, %v4098_v57 }
 0x299   : > { %v3839_v13 = vrot.slane %v16321_v46, %v19993_v14  ;;  %v2913_v20 = vsel %vm2859_vm9, %v20082_v39, %v11742_v27  ;;  %v20085_v26 = vcombine.low %v20083_v37, %v20084_v2  ;;  %v20086_v59 = vcombine.high %v20083_v37, %v20084_v2  ;;  %10519 = vmatmul.mubr.msk.bf16.gmra.mrb[28].mxu0 %vm5213_vm10, %v4539_v51  ;;  %v20088_v46 = vld [vmem:[#allocation88_spill] sm:$0xff] }
 0x29a   : > { %10559 = vmatmul.mubr.msk.bf16.gmra.mrb[8].mxu1 %vm5213_vm10, %v5029_v40  ;;  %v20089_v41 = vcombine.low %v20087_v28, %v20088_v46  ;;  %v5080_v34 = vcombine.low %v4105_v18, %v4113_v35  ;;  %v5082_v6 = vcombine.low %v16607_v47, %v4114_v32  ;;  %10522 = vmatprep.mubr.msk.bf16.mxu0 %vm12783_vm5, %v20014_v22  ;;  %v20098_v35 = vld [vmem:[#allocation78_spill] sm:$0xff] }
 0x29b   : > { %v4599_v31 = vrot.slane %v20085_v26, %v19993_v14  ;;  %v4606_v33 = vrot.slane %v20086_v59, %v19993_v14  ;;  %v4580_v21 = vrot.slane %v4572_v30, %v19993_v14  ;;  %v4587_v63 = vrot.slane %v4573_v49, %v19993_v14  ;;  %10562 = vmatprep.mubr.msk.bf16.mxu1 %vm12783_vm5, %v20014_v22  ;;  %v20101_v40 = vld [vmem:[#allocation14_spill] sm:$0xff] }
 0x29c   : > { %v4613_v57 = vrot.slane %v20089_v41, %v19993_v14  ;;  %v20090_v9 = vcombine.high %v20087_v28, %v20088_v46  ;;  %v5079_v1 = vcombine.low %v4067_v56, %v4091_v12  ;;  %v5070_v18 = vrot.slane %v5062_v36, %v19993_v14 }
 0x29d   : > { %v5077_v5 = vrot.slane %v5063_v10, %v19993_v14  ;;  %v5103_v50 = vrot.slane %v5081_v16, %v19993_v14  ;;  %v16644_v8 = vrot.slane %v16298_v11, %v19993_v14  ;;  %v10367_v3 = vpack.c.bf16 %v16316_v44, %v16316_v44  ;;  %v20102_v10 = vld [vmem:[#allocation18_spill] sm:$0xff] }
 0x29e   : > { %v4620_v25 = vrot.slane %v20090_v9, %v19993_v14  ;;  %v3815_v38 = vrot.slane %v3808_v23, %v19993_v14  ;;  %v2949_v53 = vpack.c.bf16 %v2913_v20, %v2913_v20  ;;  %v20091_v12 = vcombine.high %v16301_v45, %v16301_v45  ;;  %v20093_v45 = vld [vmem:[#allocation31_spill] sm:$0xff] }
 0x29f   : > { %v3861_v60 = vcombine.high %v3839_v13, %v3839_v13  ;;  %v5096_v61 = vrot.slane %v5080_v34, %v19993_v14  ;;  %v5110_v0 = vrot.slane %v5082_v6, %v19993_v14  ;;  %v20092_v58 = vpack.c.bf16 %v16316_v44, %v16268_v29  ;;  %v20096_v44 = vld [vmem:[#allocation50_spill] sm:$0xff] }
 0x2a0   : > { %v16653_v17 = vrot.slane %v20091_v12, %v19993_v14  ;;  %v4588_v54 = vcombine.low %v4580_v21, %v4587_v63  ;;  %v4621_v43 = vcombine.low %v4599_v31, %v4606_v33  ;;  %v4622_v4 = vcombine.low %v4613_v57, %v4620_v25  ;;  %v20103_v31 = vld [vmem:[#allocation84_spill] sm:$0xff] }
 0x2a1   : > { %v3697_v7 = vrot.slane %v20092_v58, %v19993_v14  ;;  %v5078_v55 = vcombine.low %v5070_v18, %v5077_v5  ;;  %v5089_v52 = vrot.slane %v5079_v1, %v19993_v14  ;;  %v5112_v42 = vcombine.low %v5103_v50, %v5110_v0  ;;  %v20104_v18 = vld [vmem:[#allocation33_spill] sm:$0xff] }
 0x2a2   : > { %v20094_v27 = vcombine.high %v20093_v45, %v20093_v45  ;;  %v20095_v19 = vcombine.high %v16298_v11, %v16298_v11  ;;  %v4836_v24 = vcombine.low %v3815_v38, %v3839_v13  ;;  %v4123_v29 = vrot.slane %v2949_v53, %v19993_v14  ;;  %10523 = vmatmul.mubr.msk.bf16.gmra.mrb[32].mxu0 %vm5213_vm10, %v4588_v54  ;;  %v20100_v11 = vld [vmem:[#allocation28_spill] sm:$0xff]  ;;  %v20111_v54 = vld [vmem:[#allocation34_spill] sm:$0xff] }
 0x2a3   : > { %v20097_v23 = vcombine.high %v20096_v44, %v20096_v44  ;;  %v11562_v56 = vunpack.i.h.bf16 %v20098_v35  ;;  %10563 = vmatmul.mubr.msk.bf16.gmra.mrb[12].mxu1 %vm5213_vm10, %v5078_v55  ;;  %v5111_v51 = vcombine.low %v5089_v52, %v5096_v61  ;;  %v20099_v30 = vcombine.high %v16221_v48, %v16221_v48  ;;  %10526 = vmatprep.mubr.msk.bf16.mxu0 %vm12783_vm5, %v20014_v22  ;;  %v20106_v53 = vld [vmem:[#allocation48_spill] sm:$0xff] }
 0x2a4   : > { %v4640_v15 = vcombine.low %v20094_v27, %v16221_v48  ;;  %v3664_v62 = vrot.slane %v20095_v19, %v19993_v14  ;;  %v4837_v36 = vcombine.low %v20101_v40, %v3861_v60  ;;  %v11697_v16 = vunpack.i.h.bf16 %v20102_v10  ;;  %10566 = vmatprep.mubr.msk.bf16.mxu1 %vm12783_vm5, %v20014_v22  ;;  %v20109_v61 = vld [vmem:[#allocation32_spill] sm:$0xff] }
 0x2a5   : > { %v4639_v32 = vcombine.low %v20093_v45, %v20097_v23  ;;  %v4641_v49 = vcombine.low %v20100_v11, %v20099_v30  ;;  %v3704_v13 = vrot.slane %v10367_v3, %v19993_v14  ;;  %v3705_v39 = vcombine.high %v3697_v7, %v3697_v7  ;;  %v20105_v3 = vld [vmem:[#allocation95_spill] sm:$0xff] }
 0x2a6   : > { %v4116_v20 = vcombine.high %v16607_v47, %v16607_v47  ;;  %v4629_v48 = vrot.slane %v4621_v43, %v19993_v14  ;;  %v4636_v37 = vrot.slane %v4622_v4, %v19993_v14  ;;  %v5126_v2 = vrot.slane %v5112_v42, %v19993_v14  ;;  %v20112_v43 = vld [vmem:[#allocation51_spill] sm:$0xff] }
 0x2a7   : > { %v4662_v26 = vrot.slane %v4640_v15, %v19993_v14  ;;  %v4690_v59 = vcombine.low %v20103_v31, %v16653_v17  ;;  %v4130_v33 = vrot.slane %v4123_v29, %v19993_v14  ;;  %v4858_v28 = vrot.slane %v4836_v24, %v19993_v14 }
 0x2a8   : > { %v4865_v46 = vrot.slane %v4837_v36, %v19993_v14  ;;  %v4688_v41 = vcombine.low %v16644_v8, %v3664_v62  ;;  %v5119_v47 = vrot.slane %v5111_v51, %v19993_v14  ;;  %v4655_v57 = vrot.slane %v4639_v32, %v19993_v14 }
 0x2a9   : > { %v4669_v34 = vrot.slane %v4641_v49, %v19993_v14  ;;  %v10384_v6 = vcombine.high %v16644_v8, %v3664_v62  ;;  %v3727_v21 = vrot.slane %v3705_v39, %v19993_v14  ;;  %v5128_v63 = vcombine.low %v4116_v20, %v4130_v33 }
 0x2aa   : > { %v16706_v9 = vcombine.low %v4858_v28, %v4865_v46  ;;  %v4637_v25 = vcombine.low %v4629_v48, %v4636_v37  ;;  %v5127_v1 = vcombine.low %v5119_v47, %v5126_v2  ;;  %v4648_v5 = vrot.slane %v20104_v18, %v19993_v14 }
 0x2ab   : > { %v4671_v50 = vcombine.low %v4662_v26, %v4669_v34  ;;  %v2840_v38 = vsel %vm2804_vm8, %v20105_v3, %v11562_v56  ;;  %v20107_v12 = vrot.slane %v20106_v53, %v19993_v14  ;;  %v20108_v8 = vcombine.high %v20100_v11, %v20100_v11 }
 0x2ac   : > { %v20110_v0 = vpack.c.bf16 %v20109_v61, %v20109_v61  ;;  %v2938_v4 = vpack.c.bf16 %v20112_v43, %v20111_v54  ;;  %v2895_v55 = vsel %vm2859_vm9, %v2840_v38, %v11697_v16  ;;  %v3713_v52 = vrot.slane %v3697_v7, %v19993_v14  ;;  %10527 = vmatmul.mubr.msk.bf16.gmra.mrb[36].mxu0 %vm5213_vm10, %v4637_v25 }
 0x2ad   : > { %v4687_v60 = vcombine.low %v20108_v8, %v20107_v12  ;;  %10567 = vmatmul.mubr.msk.bf16.gmra.mrb[16].mxu1 %vm5213_vm10, %v5127_v1  ;;  %v4670_v42 = vcombine.low %v4648_v5, %v4655_v57  ;;  %v3706_v45 = vcombine.high %v3704_v13, %v3704_v13  ;;  %v3737_v27 = vcombine.high %v3727_v21, %v3727_v21 }
 0x2ae   : > { %v3682_v58 = vrot.slane %v20110_v0, %v19993_v14  ;;  %10530 = vmatprep.mubr.msk.bf16.mxu0 %vm12783_vm5, %v20014_v22  ;;  %10570 = vmatprep.mubr.msk.bf16.mxu1 %vm12783_vm5, %v20014_v22  ;;  %v5135_v15 = vrot.slane %v5128_v63, %v19993_v14  ;;  %v4685_v19 = vrot.slane %v4671_v50, %v19993_v14 }
 0x2af   : > { %v4704_v62 = vrot.slane %v4688_v41, %v19993_v14  ;;  %v4711_v7 = vrot.slane %v10384_v6, %v19993_v14  ;;  %v4718_v24 = vrot.slane %v4690_v59, %v19993_v14  ;;  %v3760_v29 = vrot.slane %v2938_v4, %v19993_v14 }
 0x2b0   : > { %v3720_v44 = vrot.slane %v3704_v13, %v19993_v14  ;;  %v2937_v23 = vpack.c.bf16 %v2895_v55, %v2895_v55  ;;  %v3735_v32 = vcombine.high %v3713_v52, %v3713_v52  ;;  %v4678_v35 = vrot.slane %v4670_v42, %v19993_v14 }
 0x2b1   : > { %v4697_v56 = vrot.slane %v4687_v60, %v19993_v14  ;;  %v3689_v51 = vrot.slane %v3682_v58, %v19993_v14  ;;  %v3734_v30 = vrot.slane %v3706_v45, %v19993_v14  ;;  %v5142_v40 = vrot.slane %v5135_v15, %v19993_v14 }
 0x2b2   : > { %v4739_v11 = vcombine.low %v3737_v27, %v3720_v44  ;;  %v4686_v49 = vcombine.low %v4678_v35, %v4685_v19  ;;  %v4720_v10 = vcombine.low %v4711_v7, %v4718_v24  ;;  %v10368_v16 = vpack.c.bf16 %v20112_v43, %v20112_v43 }
 0x2b3   : > { %v4719_v36 = vcombine.low %v4697_v56, %v4704_v62  ;;  %v3768_v13 = vcombine.high %v3760_v29, %v3760_v29  ;;  %v3745_v39 = vrot.slane %v2937_v23, %v19993_v14  ;;  %v4737_v20 = vcombine.low %v3689_v51, %v3713_v52  ;;  %v20113_v51 = vld [vmem:[#allocation61_spill] sm:$0xff] }
 0x2b4   : > { %10531 = vmatmul.mubr.msk.bf16.gmra.mrb[40].mxu0 %vm5213_vm10, %v4686_v49  ;;  %v4738_v48 = vcombine.low %v3727_v21, %v3735_v32  ;;  %v10385_v37 = vcombine.high %v20103_v31, %v16653_v17  ;;  %v3738_v2 = vcombine.high %v3734_v30, %v3734_v30  ;;  %v4734_v59 = vrot.slane %v4720_v10, %v19993_v14 }
 0x2b5   : > { %10571 = vmatmul.mubr.msk.bf16.gmra.mrb[20].mxu1 %vm5213_vm10, %v5142_v40  ;;  %10534 = vmatprep.mubr.msk.bf16.mxu0 %vm12783_vm5, %v20014_v22  ;;  %v4727_v26 = vrot.slane %v4719_v36, %v19993_v14  ;;  %v4767_v33 = vrot.slane %v4739_v11, %v19993_v14  ;;  %v3767_v28 = vrot.slane %v10368_v16, %v19993_v14  ;;  %v12786_v32 = vmov 1983009808  }
 0x2b6   : > { %v3790_v46 = vrot.slane %v3768_v13, %v19993_v14  ;;  %v3736_v41 = vcombine.high %v3720_v44, %v3720_v44  ;;  %v3752_v47 = vrot.slane %v3745_v39, %v19993_v14  ;;  %v4753_v57 = vrot.slane %v4737_v20, %v19993_v14  ;;  %v7414_v44 = vld [vmem:[#allocation2 + $0x8] sm:$0xff] }
 0x2b7   : > { %v4760_v17 = vrot.slane %v4738_v48, %v19993_v14  ;;  %v3776_v31 = vrot.slane %v3760_v29, %v19993_v14  ;;  %v4735_v6 = vcombine.low %v4727_v26, %v4734_v59  ;;  %v4746_v21 = vrot.slane %v10385_v37, %v19993_v14  ;;  %v7413_v29 = vld [vmem:[#allocation2] sm:$0xff] }
 0x2b8   : > { %v4786_v34 = vcombine.low %v3738_v2, %v3752_v47  ;;  %v3769_v25 = vcombine.high %v3767_v28, %v3767_v28  ;;  %v4785_v50 = vcombine.low %v3734_v30, %v3736_v41  ;;  %v3783_v0 = vrot.slane %v3767_v28, %v19993_v14 }
 0x2b9   : > { %v4769_v63 = vcombine.low %v4760_v17, %v4767_v33  ;;  %v4787_v1 = vcombine.low %v3776_v31, %v3790_v46  ;;  %v10386_v18 = vcombine.high %v3776_v31, %v3790_v46  ;;  %v4768_v5 = vcombine.low %v4746_v21, %v4753_v57 }
 0x2ba   : > { %v4802_v38 = vrot.slane %v4786_v34, %v19993_v14  ;;  %v3797_v53 = vrot.slane %v3769_v25, %v19993_v14  ;;  %v4795_v8 = vrot.slane %v4785_v50, %v19993_v14  ;;  %v4881_v62 = vrot.slane %v16706_v9, %v19993_v14 }
 0x2bb   : > { %v4783_v3 = vrot.slane %v4769_v63, %v19993_v14  ;;  %v4776_v12 = vrot.slane %v4768_v5, %v19993_v14  ;;  %v4809_v60 = vrot.slane %v4787_v1, %v19993_v14  ;;  %v4816_v61 = vrot.slane %v10386_v18, %v19993_v14 }
 0x2bc   : > { %10535 = vmatmul.mubr.msk.bf16.gmra.mrb[44].mxu0 %vm5213_vm10, %v4735_v6  ;;  %v4817_v54 = vcombine.low %v4795_v8, %v4802_v38  ;;  %v4834_v43 = vcombine.low %v3783_v0, %v3797_v53  ;;  %v10387_v4 = vcombine.high %v3783_v0, %v3797_v53  ;;  %v11743_v23 = vpack.i.bf16 %v7414_v44, %v7413_v29 }
 0x2bd   : > { %10538 = vmatprep.mubr.msk.bf16.mxu0 %vm12783_vm5, %v20014_v22  ;;  %v4784_v58 = vcombine.low %v4776_v12, %v4783_v3  ;;  %v4818_v55 = vcombine.low %v4809_v60, %v4816_v61  ;;  %v4133_v35 = vunpack.c.l.s4 %v12786_v32  ;;  %v16824_v18 = vadd.s32 4294967295, %v20113_v51 }
 0x2be   : > { %v4825_v52 = vrot.slane %v4817_v54, %v19993_v14  ;;  %v4844_v45 = vrot.slane %v4834_v43, %v19993_v14  ;;  %v4851_v27 = vrot.slane %v10387_v4, %v19993_v14  ;;  %11744 = vrot.lane.b32.xlu0 %v11743_v23, %s12785_s15  ;;  %v6232_v4 = vadd.s32 16, %v20113_v51 }
 0x2bf   : > { %v4832_v42 = vrot.slane %v4818_v55, %v19993_v14  ;;  %v4134_v56 = vunpack.c.0.s8 %v4133_v35  ;;  %vm6290_vm12 = vcmp.ge.s32.totalorder %v16824_v18, 0 }
 0x2c0   : > { %v4866_v19 = vcombine.low %v4844_v45, %v4851_v27 }
 0x2c1   : > { %v4833_v15 = vcombine.low %v4825_v52, %v4832_v42  ;;  %v16797_v9 = vsub.s32 %v4134_v56, %v20113_v51 }
 0x2c2   : > { %v4874_v7 = vrot.slane %v4866_v19, %v19993_v14 }
 0x2c4   : > { %10539 = vmatmul.mubr.msk.bf16.gmra.mrb[48].mxu0 %vm5213_vm10, %v4784_v58  ;;  %v4882_v24 = vcombine.low %v4874_v7, %v4881_v62 }
 0x2c5   : > { %10542 = vmatprep.mubr.msk.bf16.mxu0 %vm12783_vm5, %v20014_v22 }
 0x2cc   : > { %10543 = vmatmul.mubr.msk.bf16.gmra.mrb[52].mxu0 %vm5213_vm10, %v4833_v15  ;;  %v16849_v15 = vadd.s32 4294967295, %v6232_v4 }
 0x2cd   : > { %10546 = vmatprep.mubr.msk.bf16.mxu0 %vm12783_vm5, %v20014_v22  ;;  %v10355_v22 = vld [vmem:[%s19221_s2] ss:$0 sm:$0xff]  ;;  %vm9596_vm5 = vcmask 490496  }
 0x2ce   : > { %v4131_v14 = vcombine.high %v10355_v22, %v10355_v22  ;;  %v4138_v49 = vrot.slane %v10355_v22, %v16797_v9  ;;  %vm6349_vm13 = vcmp.lt.s32.totalorder %v16849_v15, 16 }
 0x2d0   : > { %v4145_v10 = vrot.slane %v4131_v14, %v16797_v9  ;;  %v4146_v16 = vcombine.high %v4138_v49, %v4138_v49  ;;  %v5175_v39 = vcombine.low %v4138_v49, %v4138_v49 }
 0x2d2   : > { %v4147_v13 = vcombine.high %v4145_v10, %v4145_v10  ;;  %v5176_v20 = vcombine.low %v4146_v16, %v4145_v10  ;;  %v16802_v37 = vrot.slane %v5175_v39, %v16797_v9  ;;  %v5158_v50 = vcombine.low %v4138_v49, %v4146_v16 }
 0x2d4   : > { %10547 = vmatmul.mubr.msk.bf16.gmra.mrb[56].mxu0 %vm5213_vm10, %v4882_v24  ;;  %v5192_v48 = vcombine.low %v4147_v13, %v4138_v49  ;;  %v16805_v2 = vrot.slane %v5176_v20, %v16797_v9  ;;  %v5159_v53 = vcombine.low %v4145_v10, %v4147_v13  ;;  %v16830_v8 = vrot.slane %v5158_v50, %v16797_v9 }
 0x2d6   : > { %v16808_v26 = vrot.slane %v5192_v48, %v16797_v9  ;;  %v16812_v59 = vcombine.low %v16802_v37, %v16805_v2  ;;  %v16835_v0 = vrot.slane %v5159_v53, %v16797_v9 }
 0x2d8   : > { %v16816_v33 = vcombine.low %v16808_v26, %v16805_v2  ;;  %v16840_v58 = vcombine.low %v16808_v26, %v16830_v8  ;;  %v16846_v55 = vcombine.low %v16835_v0, %v16830_v8  ;;  %v16868_v48 = vcombine.low %v16835_v0, %v16802_v37 }
 0x30c   : > { %v5315_v30 = vpop.f32.mrb[0].mxu0 }
 0x30d   : > { %v10492_v11 = vpop.f32.mrb[1].mxu0 }
 0x30e   : > { %v5318_v40 = vpop.f32.mrb[2].mxu0 }
 0x30f   : > { %v10493_v36 = vpop.f32.mrb[3].mxu0 }
 0x320   : > { %v5323_v28 = vpop.f32.mrb[4].mxu0 }
 0x321   : > { %v5324_v46 = vadd.f32 %v5323_v28, %v16812_v59  ;;  %v10496_v41 = vpop.f32.mrb[5].mxu0 }
 0x322   : > { %v5326_v47 = vpop.f32.mrb[6].mxu0 }
 0x323   : > { %v5556_v57 = vcombine.high %v5324_v46, %v5324_v46  ;;  %v5563_v17 = vrot.slane %v5324_v46, %v16797_v9  ;;  %v5327_v31 = vadd.f32 %v5326_v47, %v16816_v33  ;;  %v10497_v34 = vpop.f32.mrb[7].mxu0  ;;  %v16872_v46 = vcombine.low %v16805_v2, %v16808_v26 }
 0x325   : > { %v5570_v6 = vrot.slane %v5556_v57, %v16797_v9  ;;  %v5571_v21 = vcombine.high %v5563_v17, %v5563_v17  ;;  %v5580_v1 = vrot.slane %v5327_v31, %v16797_v9  ;;  %v5573_v60 = vcombine.high %v5327_v31, %v5327_v31 }
 0x327   : > { %v6553_v63 = vcombine.low %v5571_v21, %v5570_v6  ;;  %v5572_v25 = vcombine.high %v5570_v6, %v5570_v6  ;;  %v5587_v54 = vrot.slane %v5573_v60, %v16797_v9  ;;  %v5588_v43 = vcombine.high %v5580_v1, %v5580_v1 }
 0x329   : > { %v6554_v5 = vcombine.low %v5572_v25, %v5580_v1  ;;  %v6561_v3 = vrot.slane %v6553_v63, %v16797_v9  ;;  %v6570_v27 = vcombine.low %v5588_v43, %v5587_v54  ;;  %v5589_v62 = vcombine.high %v5587_v54, %v5587_v54 }
 0x32b   : > { %v6568_v38 = vrot.slane %v6554_v5, %v16797_v9  ;;  %v6578_v22 = vrot.slane %v6570_v27, %v16797_v9 }
 0x32d   : > { %v6569_v12 = vcombine.low %v6561_v3, %v6568_v38 }
 0x32f   : > { %v7307_v61 = vsel %vm6290_vm12, %v6569_v12, 0.0 }
 0x330   : > { %7362 = vst.msk [vmem:[#allocation2 + $0x18] sm:$0xff] %vm2639_vm3, %v7307_v61 }
 0x332   : > { %v5331_v52 = vpop.f32.mrb[8].mxu0 }
 0x333   : > { %v5332_v42 = vadd.f32 %v5331_v52, %v16840_v58  ;;  %v10500_v45 = vpop.f32.mrb[9].mxu0 }
 0x334   : > { %v5334_v19 = vpop.f32.mrb[10].mxu0 }
 0x335   : > { %v5590_v7 = vcombine.high %v5332_v42, %v5332_v42  ;;  %v5597_v24 = vrot.slane %v5332_v42, %v16797_v9  ;;  %v5335_v29 = vadd.f32 %v5334_v19, %v16846_v55  ;;  %v10501_v44 = vpop.f32.mrb[11].mxu0 }
 0x337   : > { %v5604_v23 = vrot.slane %v5590_v7, %v16797_v9  ;;  %v5605_v32 = vcombine.high %v5597_v24, %v5597_v24  ;;  %v6571_v35 = vcombine.low %v5589_v62, %v5597_v24  ;;  %v5614_v56 = vrot.slane %v5335_v29, %v16797_v9  ;;  %v7415_v34 = vld [vmem:[#allocation2 + $0x18] sm:$0xff] }
 0x338   : > { %v5607_v11 = vcombine.high %v5335_v29, %v5335_v29  ;;  %v16878_v6 = vld [vmem:[#allocation2 + $0x18] sm:$0xff] }
 0x339   : > { %v5606_v51 = vcombine.high %v5604_v23, %v5604_v23  ;;  %v6585_v14 = vrot.slane %v6571_v35, %v16797_v9  ;;  %v6593_v30 = vrot.slane %v5605_v32, %v16797_v9  ;;  %v5622_v49 = vcombine.high %v5614_v56, %v5614_v56 }
 0x33a   : > { %v5621_v39 = vrot.slane %v5607_v11, %v16797_v9 }
 0x33b   : > { %v6586_v40 = vcombine.low %v6578_v22, %v6585_v14  ;;  %v6594_v36 = vcombine.low %v5604_v23, %v5606_v51  ;;  %v7309_v10 = vsel %vm6349_vm13, %v6593_v30, 0.0  ;;  %v6595_v16 = vcombine.low %v5614_v56, %v5622_v49 }
 0x33c   : > { %7364 = vst.msk [vmem:[#allocation2 + $0x28] sm:$0x3] %vm7360_vm11, %v7309_v10  ;;  %v5623_v41 = vcombine.high %v5621_v39, %v5621_v39  ;;  %v16912_v30 = vcombine.low %v16830_v8, %v16835_v0 }
 0x33d   : > { %v6602_v13 = vrot.slane %v6594_v36, %v16797_v9  ;;  %7363 = vst.msk [vmem:[#allocation2 + $0x20] sm:$0xff] %vm2639_vm3, %v6586_v40  ;;  %v6609_v20 = vrot.slane %v6595_v16, %v16797_v9 }
 0x33e   : > { %v6611_v12 = vcombine.low %v5621_v39, %v5623_v41 }
 0x33f   : > { %v6610_v28 = vcombine.low %v6602_v13, %v6609_v20 }
 0x340   : > { %v5339_v57 = vpop.f32.mrb[12].mxu0  ;;  %v6619_v24 = vrot.slane %v6611_v12, %v16797_v9 }
 0x341   : > { %v7310_v47 = vsel %vm6290_vm12, %v6610_v28, 0.0  ;;  %v5340_v17 = vadd.f32 %v5339_v57, %v16868_v48  ;;  %v10504_v31 = vpop.f32.mrb[13].mxu0 }
 0x342   : > { %7365 = vst.msk [vmem:[#allocation2 + $0x30] sm:$0xff] %vm2639_vm3, %v7310_v47  ;;  %v5342_v37 = vpop.f32.mrb[14].mxu0 }
 0x343   : > { %v5624_v1 = vcombine.high %v5340_v17, %v5340_v17  ;;  %v5631_v2 = vrot.slane %v5340_v17, %v16797_v9  ;;  %v5343_v26 = vadd.f32 %v5342_v37, %v16872_v46  ;;  %v10505_v5 = vpop.f32.mrb[15].mxu0 }
 0x344   : > { %v7416_v21 = vld [vmem:[#allocation2 + $0x20] sm:$0xff] }
 0x345   : > { %v7447_v63 = vld [vmem:[#allocation2 + $0x19] sm:$0xff]  ;;  %v7448_v25 = vld [vmem:[#allocation2 + $0x21] sm:$0xff]  ;;  %v11748_v50 = vpack.i.bf16 %v7416_v21, %v7415_v34  ;;  %v5638_v61 = vrot.slane %v5624_v1, %v16797_v9  ;;  %v5639_v54 = vcombine.high %v5631_v2, %v5631_v2  ;;  %v5641_v43 = vcombine.high %v5343_v26, %v5343_v26 }
 0x346   : > { %v16882_v3 = vld [vmem:[#allocation2 + $0x1a] sm:$0xff]  ;;  %v16884_v38 = vld [vmem:[#allocation2 + $0x22] sm:$0xff]  ;;  %v5648_v4 = vrot.slane %v5343_v26, %v16797_v9  ;;  %v16893_v52 = vpack.i.bf16 %v7448_v25, %v7447_v63 }
 0x347   : > { %v16886_v53 = vld [vmem:[#allocation2 + $0x20] sm:$0xff]  ;;  %11749 = vrot.lane.b32.xlu1 %v11748_v50, %s12785_s15  ;;  %v6612_v45 = vcombine.low %v5631_v2, %v5639_v54  ;;  %v6634_v27 = vrot.slane %v5638_v61, %v16797_v9  ;;  %v5640_v19 = vcombine.high %v5638_v61, %v5638_v61  ;;  %v5655_v62 = vrot.slane %v5641_v43, %v16797_v9  ;;  %v16929_v2 = vld [vmem:[#allocation2 + $0x9] sm:$0xff] }
 0x348   : > { %v5656_v7 = vcombine.high %v5648_v4, %v5648_v4  ;;  %v16927_v1 = vld [vmem:[#allocation2 + $0x1] sm:$0xff] }
 0x349   : > { %v6626_v29 = vrot.slane %v6612_v45, %v16797_v9  ;;  %v7312_v44 = vsel %vm6349_vm13, %v6634_v27, 0.0  ;;  %v6635_v23 = vcombine.low %v5640_v19, %v5648_v4  ;;  %v7417_v11 = vld [vmem:[#allocation2 + $0x30] sm:$0xff]  ;;  %v5657_v0 = vcombine.high %v5655_v62, %v5655_v62 }
 0x34a   : > { %7367 = vst.msk [vmem:[#allocation2 + $0x40] sm:$0x3] %vm7360_vm11, %v7312_v44  ;;  %v6636_v32 = vcombine.low %v5656_v7, %v5655_v62  ;;  %v11793_v45 = vpack.i.bf16 %v16929_v2, %v16927_v1 }
 0x34b   : > { %v6627_v35 = vcombine.low %v6619_v24, %v6626_v29  ;;  %v6643_v56 = vrot.slane %v6635_v23, %v16797_v9 }
 0x34c   : > { %v6650_v22 = vrot.slane %v6636_v32, %v16797_v9 }
 0x34d   : > { %7366 = vst.msk [vmem:[#allocation2 + $0x38] sm:$0xff] %vm2639_vm3, %v6627_v35 }
 0x34e   : > { %v6651_v51 = vcombine.low %v6643_v56, %v6650_v22 }
 0x350   : > { %v7313_v14 = vsel %vm6290_vm12, %v6651_v51, 0.0 }
 0x351   : > { %7368 = vst.msk [vmem:[#allocation2 + $0x48] sm:$0xff] %vm2639_vm3, %v7313_v14 }
 0x353   : > { %v5347_v49 = vpop.f32.mrb[16].mxu0 }
 0x354   : > { %v7418_v40 = vld [vmem:[#allocation2 + $0x38] sm:$0xff]  ;;  %v5348_v16 = vadd.f32 %v5347_v49, %v16872_v46  ;;  %v10508_v13 = vpop.f32.mrb[17].mxu0 }
 0x355   : > { %v7449_v36 = vld [vmem:[#allocation2 + $0x31] sm:$0xff]  ;;  %v7450_v10 = vld [vmem:[#allocation2 + $0x39] sm:$0xff]  ;;  %v11753_v39 = vpack.i.bf16 %v7418_v40, %v7417_v11  ;;  %v5350_v47 = vpop.f32.mrb[18].mxu0 }
 0x356   : > { %v16915_v20 = vld [vmem:[#allocation2 + $0x32] sm:$0xff]  ;;  %v16917_v28 = vld [vmem:[#allocation2 + $0x3a] sm:$0xff]  ;;  %v16919_v41 = vpack.i.bf16 %v7450_v10, %v7449_v36  ;;  %v5658_v57 = vcombine.high %v5348_v16, %v5348_v16  ;;  %v5665_v17 = vrot.slane %v5348_v16, %v16797_v9  ;;  %v5351_v31 = vadd.f32 %v5350_v47, %v16912_v30  ;;  %v10509_v34 = vpop.f32.mrb[19].mxu0 }
 0x357   : > { %20114 = vst [vmem:[#allocation4_spill] sm:$0xff] %v16915_v20  ;;  %11754 = vrot.lane.b32.xlu0 %v11753_v39, %s12785_s15 }
 0x358   : > { %v5672_v37 = vrot.slane %v5658_v57, %v16797_v9  ;;  %v5673_v21 = vcombine.high %v5665_v17, %v5665_v17  ;;  %v6652_v63 = vcombine.low %v5657_v0, %v5665_v17  ;;  %v5675_v25 = vcombine.high %v5351_v31, %v5351_v31 }
 0x359   : > { %v5682_v26 = vrot.slane %v5351_v31, %v16797_v9 }
 0x35a   : > { %v5674_v5 = vcombine.high %v5672_v37, %v5672_v37  ;;  %v6653_v50 = vcombine.low %v5673_v21, %v5672_v37  ;;  %v5689_v12 = vrot.slane %v5675_v25, %v16797_v9  ;;  %v6660_v61 = vrot.slane %v6652_v63, %v16797_v9 }
 0x35b   : > { %v5690_v54 = vcombine.high %v5682_v26, %v5682_v26  ;;  %v5355_v43 = vpop.f32.mrb[20].mxu0  ;;  %v5435_v4 = vpop.f32.mrb[0].mxu1 }
 0x35c   : > { %v6667_v27 = vrot.slane %v6653_v50, %v16797_v9  ;;  %v6675_v19 = vrot.slane %v5674_v5, %v16797_v9  ;;  %v5691_v62 = vcombine.high %v5689_v12, %v5689_v12  ;;  %v5356_v7 = vadd.f32 %v5355_v43, %v16912_v30  ;;  %v10512_v24 = vpop.f32.mrb[21].mxu0  ;;  %v10552_v29 = vpop.f32.mrb[1].mxu1 }
 0x35d   : > { %v6676_v44 = vcombine.low %v5682_v26, %v5690_v54  ;;  %v5358_v23 = vpop.f32.mrb[22].mxu0  ;;  %v5436_v32 = vadd.f32 %v5435_v4, %v16816_v33  ;;  %v5438_v35 = vpop.f32.mrb[2].mxu1 }
 0x35e   : > { %v6668_v56 = vcombine.low %v6660_v61, %v6667_v27  ;;  %v7315_v22 = vsel %vm6349_vm13, %v6675_v19, 0.0  ;;  %v6677_v51 = vcombine.low %v5689_v12, %v5691_v62  ;;  %v5692_v14 = vcombine.high %v5356_v7, %v5356_v7  ;;  %v10513_v11 = vpop.f32.mrb[23].mxu0  ;;  %v10553_v49 = vpop.f32.mrb[3].mxu1 }
 0x35f   : > { %7370 = vst.msk [vmem:[#allocation2 + $0x58] sm:$0x3] %vm7360_vm11, %v7315_v22  ;;  %v6684_v40 = vrot.slane %v6676_v44, %v16797_v9  ;;  %v5699_v36 = vrot.slane %v5356_v7, %v16797_v9  ;;  %v5359_v10 = vadd.f32 %v5358_v23, %v16812_v59  ;;  %v6032_v16 = vcombine.high %v5436_v32, %v5436_v32 }
 0x360   : > { %7369 = vst.msk [vmem:[#allocation2 + $0x50] sm:$0xff] %vm2639_vm3, %v6668_v56  ;;  %v6691_v13 = vrot.slane %v6677_v51, %v16797_v9  ;;  %v5706_v39 = vrot.slane %v5692_v14, %v16797_v9  ;;  %v16950_v47 = vrot.slane %v5436_v32, %v16797_v9  ;;  %v5439_v0 = vadd.f32 %v5438_v35, %v16840_v58 }
 0x361   : > { %v5707_v57 = vcombine.high %v5699_v36, %v5699_v36  ;;  %v5709_v17 = vcombine.high %v5359_v10, %v5359_v10  ;;  %v5716_v31 = vrot.slane %v5359_v10, %v16797_v9  ;;  %v6046_v34 = vrot.slane %v6032_v16, %v16797_v9 }
 0x362   : > { %v6692_v37 = vcombine.low %v6684_v40, %v6691_v13  ;;  %v5708_v21 = vcombine.high %v5706_v39, %v5706_v39  ;;  %v6047_v63 = vcombine.high %v16950_v47, %v16950_v47  ;;  %v6049_v25 = vcombine.high %v5439_v0, %v5439_v0 }
 0x363   : > { %v6693_v26 = vcombine.low %v5699_v36, %v5707_v57  ;;  %v5723_v5 = vrot.slane %v5709_v17, %v16797_v9  ;;  %v5724_v50 = vcombine.high %v5716_v31, %v5716_v31  ;;  %v6716_v12 = vrot.slane %v5716_v31, %v16797_v9 }
 0x364   : > { %v5363_v61 = vpop.f32.mrb[24].mxu0  ;;  %v5443_v54 = vpop.f32.mrb[4].mxu1  ;;  %v7316_v43 = vsel %vm6290_vm12, %v6692_v37, 0.0  ;;  %v6694_v4 = vcombine.low %v5706_v39, %v5708_v21  ;;  %v7062_v27 = vcombine.low %v6047_v63, %v6046_v34  ;;  %v6048_v19 = vcombine.high %v6046_v34, %v6046_v34 }
 0x365   : > { %v10516_v62 = vpop.f32.mrb[25].mxu0  ;;  %v10556_v7 = vpop.f32.mrb[5].mxu1  ;;  %7371 = vst.msk [vmem:[#allocation2 + $0x60] sm:$0xff] %vm2639_vm3, %v7316_v43  ;;  %v6701_v24 = vrot.slane %v6693_v26, %v16797_v9  ;;  %v6717_v29 = vcombine.low %v5724_v50, %v5723_v5  ;;  %v7318_v44 = vsel %vm6349_vm13, %v6716_v12, 0.0  ;;  %v6056_v23 = vrot.slane %v5439_v0, %v16797_v9 }
 0x366   : > { %v5366_v32 = vpop.f32.mrb[26].mxu0  ;;  %v5446_v35 = vpop.f32.mrb[6].mxu1  ;;  %v6708_v56 = vrot.slane %v6694_v4, %v16797_v9  ;;  %7373 = vst.msk [vmem:[#allocation2 + $0x70] sm:$0x3] %vm7360_vm11, %v7318_v44  ;;  %v7070_v22 = vrot.slane %v7062_v27, %v16797_v9  ;;  %v6063_v51 = vrot.slane %v6049_v25, %v16797_v9  ;;  %v5364_v14 = vadd.f32 %v5363_v61, %v16816_v33 }
 0x367   : > { %v10517_v11 = vpop.f32.mrb[27].mxu0  ;;  %v10557_v49 = vpop.f32.mrb[7].mxu1  ;;  %v6725_v40 = vrot.slane %v6717_v29, %v16797_v9  ;;  %v6064_v36 = vcombine.high %v6056_v23, %v6056_v23  ;;  %v7063_v10 = vcombine.low %v6048_v19, %v6056_v23  ;;  %v5725_v16 = vcombine.high %v5723_v5, %v5723_v5 }
 0x368   : > { %v6709_v13 = vcombine.low %v6701_v24, %v6708_v56  ;;  %v6065_v39 = vcombine.high %v6063_v51, %v6063_v51  ;;  %v5726_v0 = vcombine.high %v5364_v14, %v5364_v14  ;;  %v5733_v57 = vrot.slane %v5364_v14, %v16797_v9 }
 0x369   : > { %v7077_v17 = vrot.slane %v7063_v10, %v16797_v9  ;;  %v7085_v31 = vrot.slane %v6064_v36, %v16797_v9  ;;  %v5367_v34 = vadd.f32 %v5366_v32, %v16840_v58  ;;  %v5444_v37 = vadd.f32 %v5443_v54, %v16846_v55 }
 0x36a   : > { %7372 = vst.msk [vmem:[#allocation2 + $0x68] sm:$0xff] %vm2639_vm3, %v6709_v13  ;;  %v16978_v21 = vcombine.low %v6063_v51, %v6065_v39  ;;  %v5740_v63 = vrot.slane %v5726_v0, %v16797_v9  ;;  %v5741_v25 = vcombine.high %v5733_v57, %v5733_v57  ;;  %v6718_v26 = vcombine.low %v5725_v16, %v5733_v57  ;;  %v7420_v57 = vld [vmem:[#allocation2 + $0x50] sm:$0xff] }
 0x36b   : > { %v7078_v5 = vcombine.low %v7070_v22, %v7077_v17  ;;  %v7345_v50 = vsel %vm6349_vm13, %v7085_v31, 0.0  ;;  %v5743_v12 = vcombine.high %v5367_v34, %v5367_v34  ;;  %v5750_v61 = vrot.slane %v5367_v34, %v16797_v9 }
 0x36c   : > { %v5371_v43 = vpop.f32.mrb[28].mxu0  ;;  %v7094_v54 = vrot.slane %v16978_v21, %v16797_v9  ;;  %7400 = vst.msk [vmem:[#allocation2 + $0x148] sm:$0x3] %vm7360_vm11, %v7345_v50  ;;  %v6732_v27 = vrot.slane %v6718_v26, %v16797_v9  ;;  %v6734_v19 = vcombine.low %v5741_v25, %v5740_v63  ;;  %v5742_v62 = vcombine.high %v5740_v63, %v5740_v63  ;;  %v7419_v25 = vld [vmem:[#allocation2 + $0x48] sm:$0xff] }
 0x36d   : > { %v5451_v4 = vpop.f32.mrb[8].mxu1  ;;  %v10520_v7 = vpop.f32.mrb[29].mxu0  ;;  %7399 = vst.msk [vmem:[#allocation2 + $0x140] sm:$0xff] %vm2639_vm3, %v7078_v5  ;;  %v5757_v29 = vrot.slane %v5743_v12, %v16797_v9  ;;  %v5758_v44 = vcombine.high %v5750_v61, %v5750_v61  ;;  %v6066_v23 = vcombine.high %v5444_v37, %v5444_v37  ;;  %v6073_v32 = vrot.slane %v5444_v37, %v16797_v9 }
 0x36e   : > { %v10560_v24 = vpop.f32.mrb[9].mxu1  ;;  %v5374_v56 = vpop.f32.mrb[30].mxu0  ;;  %v6733_v51 = vcombine.low %v6725_v40, %v6732_v27  ;;  %v6742_v14 = vrot.slane %v6734_v19, %v16797_v9  ;;  %v6735_v11 = vcombine.low %v5742_v62, %v5750_v61  ;;  %v5447_v49 = vadd.f32 %v5446_v35, %v16868_v48 }
 0x36f   : > { %v16991_v22 = vpop.f32.mrb[10].mxu1  ;;  %v10521_v36 = vpop.f32.mrb[31].mxu0  ;;  %v5759_v16 = vcombine.high %v5757_v29, %v5757_v29  ;;  %v6757_v13 = vrot.slane %v5758_v44, %v16797_v9  ;;  %v6080_v39 = vrot.slane %v6066_v23, %v16797_v9  ;;  %v6081_v0 = vcombine.high %v6073_v32, %v6073_v32 }
 0x370   : > { %v10561_v10 = vpop.f32.mrb[11].mxu1  ;;  %v7319_v17 = vsel %vm6290_vm12, %v6733_v51, 0.0  ;;  %v6749_v31 = vrot.slane %v6735_v11, %v16797_v9  ;;  %v6083_v40 = vcombine.high %v5447_v49, %v5447_v49  ;;  %v6090_v34 = vrot.slane %v5447_v49, %v16797_v9 }
 0x371   : > { %7374 = vst.msk [vmem:[#allocation2 + $0x78] sm:$0xff] %vm2639_vm3, %v7319_v17  ;;  %v17002_v35 = vcombine.low %v5757_v29, %v5759_v16  ;;  %v7321_v37 = vsel %vm6349_vm13, %v6757_v13, 0.0  ;;  %v6082_v21 = vcombine.high %v6080_v39, %v6080_v39  ;;  %v7087_v63 = vcombine.low %v6073_v32, %v6081_v0 }
 0x372   : > { %v6750_v26 = vcombine.low %v6742_v14, %v6749_v31  ;;  %7376 = vst.msk [vmem:[#allocation2 + $0x88] sm:$0x3] %vm7360_vm11, %v7321_v37  ;;  %v6097_v5 = vrot.slane %v6083_v40, %v16797_v9  ;;  %v6098_v50 = vcombine.high %v6090_v34, %v6090_v34  ;;  %v11758_v12 = vpack.i.bf16 %v7420_v57, %v7419_v25 }
 0x373   : > { %v6766_v61 = vrot.slane %v17002_v35, %v16797_v9  ;;  %v7101_v27 = vrot.slane %v7087_v63, %v16797_v9  ;;  %v7103_v19 = vcombine.low %v6080_v39, %v6082_v21  ;;  %v5372_v62 = vadd.f32 %v5371_v43, %v16846_v55 }
 0x374   : > { %7375 = vst.msk [vmem:[#allocation2 + $0x80] sm:$0xff] %vm2639_vm3, %v6750_v26  ;;  %v7104_v29 = vcombine.low %v6090_v34, %v6098_v50  ;;  %v7126_v44 = vrot.slane %v6097_v5, %v16797_v9  ;;  %11759 = vrot.lane.b32.xlu1 %v11758_v12, %s12785_s15  ;;  %v5375_v23 = vadd.f32 %v5374_v56, %v16868_v48 }
 0x375   : > { %v5379_v7 = vpop.f32.mrb[32].mxu0  ;;  %v5452_v32 = vadd.f32 %v5451_v4, %v16872_v46  ;;  %v7102_v11 = vcombine.low %v7094_v54, %v7101_v27  ;;  %v7111_v49 = vrot.slane %v7103_v19, %v16797_v9  ;;  %v5760_v43 = vcombine.high %v5372_v62, %v5372_v62 }
 0x376   : > { %v17012_v24 = vpop.f32.mrb[12].mxu1  ;;  %v10524_v51 = vpop.f32.mrb[33].mxu0  ;;  %v5767_v36 = vrot.slane %v5372_v62, %v16797_v9  ;;  %v7118_v13 = vrot.slane %v7104_v29, %v16797_v9  ;;  %v7348_v39 = vsel %vm6349_vm13, %v7126_v44, 0.0  ;;  %v5777_v56 = vcombine.high %v5375_v23, %v5375_v23 }
 0x377   : > { %v10564_v14 = vpop.f32.mrb[13].mxu1  ;;  %v17021_v10 = vpop.f32.mrb[34].mxu0  ;;  %v5784_v4 = vrot.slane %v5375_v23, %v16797_v9  ;;  %v7346_v54 = vsel %vm6290_vm12, %v7102_v11, 0.0  ;;  %7403 = vst.msk [vmem:[#allocation2 + $0x160] sm:$0x3] %vm7360_vm11, %v7348_v39  ;;  %v5774_v17 = vrot.slane %v5760_v43, %v16797_v9  ;;  %v6099_v40 = vcombine.high %v6097_v5, %v6097_v5 }
 0x378   : > { %v17023_v16 = vpop.f32.mrb[14].mxu1  ;;  %v10525_v0 = vpop.f32.mrb[35].mxu0  ;;  %v5775_v31 = vcombine.high %v5767_v36, %v5767_v36  ;;  %7401 = vst.msk [vmem:[#allocation2 + $0x150] sm:$0xff] %vm2639_vm3, %v7346_v54  ;;  %v7119_v34 = vcombine.low %v7111_v49, %v7118_v13  ;;  %v5791_v35 = vrot.slane %v5777_v56, %v16797_v9  ;;  %v6100_v21 = vcombine.high %v5452_v32, %v5452_v32 }
 0x379   : > { %v10565_v57 = vpop.f32.mrb[15].mxu1  ;;  %v5792_v37 = vcombine.high %v5784_v4, %v5784_v4  ;;  %v5776_v63 = vcombine.high %v5774_v17, %v5774_v17  ;;  %v6107_v26 = vrot.slane %v5452_v32, %v16797_v9  ;;  %v5455_v50 = vadd.f32 %v16991_v22, %v16872_v46 }
 0x37a   : > { %v6759_v25 = vcombine.low %v5767_v36, %v5775_v31  ;;  %7402 = vst.msk [vmem:[#allocation2 + $0x158] sm:$0xff] %vm2639_vm3, %v7119_v34  ;;  %v6798_v27 = vrot.slane %v5791_v35, %v16797_v9  ;;  %v6114_v5 = vrot.slane %v6100_v21, %v16797_v9  ;;  %v5380_v19 = vadd.f32 %v5379_v7, %v16872_v46 }
 0x37b   : > { %v6776_v12 = vcombine.low %v5784_v4, %v5792_v37  ;;  %v6775_v29 = vcombine.low %v5774_v17, %v5776_v63  ;;  %v6115_v44 = vcombine.high %v6107_v26, %v6107_v26  ;;  %v7127_v23 = vcombine.low %v6099_v40, %v6107_v26  ;;  %v7422_v40 = vld [vmem:[#allocation2 + $0x68] sm:$0xff] }
 0x37c   : > { %v6773_v62 = vrot.slane %v6759_v25, %v16797_v9  ;;  %v7324_v22 = vsel %vm6349_vm13, %v6798_v27, 0.0  ;;  %v6116_v11 = vcombine.high %v6114_v5, %v6114_v5  ;;  %v6117_v49 = vcombine.high %v5455_v50, %v5455_v50 }
 0x37d   : > { %v6790_v32 = vrot.slane %v6776_v12, %v16797_v9  ;;  %v6783_v7 = vrot.slane %v6775_v29, %v16797_v9  ;;  %7379 = vst.msk [vmem:[#allocation2 + $0xa0] sm:$0x3] %vm7360_vm11, %v7324_v22  ;;  %v7128_v39 = vcombine.low %v6115_v44, %v6114_v5  ;;  %v7135_v56 = vrot.slane %v7127_v23, %v16797_v9 }
 0x37e   : > { %v6774_v13 = vcombine.low %v6766_v61, %v6773_v62  ;;  %v6124_v57 = vrot.slane %v5455_v50, %v16797_v9  ;;  %v6131_v54 = vrot.slane %v6117_v49, %v16797_v9  ;;  %v5793_v17 = vcombine.high %v5791_v35, %v5791_v35  ;;  %v7421_v35 = vld [vmem:[#allocation2 + $0x60] sm:$0xff] }
 0x37f   : > { %v5387_v51 = vpop.f32.mrb[36].mxu0  ;;  %v5794_v31 = vcombine.high %v5380_v19, %v5380_v19  ;;  %v6791_v21 = vcombine.low %v6783_v7, %v6790_v32  ;;  %v7142_v63 = vrot.slane %v7128_v39, %v16797_v9  ;;  %v5801_v25 = vrot.slane %v5380_v19, %v16797_v9 }
 0x380   : > { %v17043_v14 = vpop.f32.mrb[16].mxu1  ;;  %v10528_v43 = vpop.f32.mrb[37].mxu0  ;;  %v7322_v61 = vsel %vm6290_vm12, %v6774_v13, 0.0  ;;  %v6132_v26 = vcombine.high %v6124_v57, %v6124_v57  ;;  %v6133_v12 = vcombine.high %v6131_v54, %v6131_v54  ;;  %v7144_v50 = vcombine.low %v6116_v11, %v6124_v57 }
 0x381   : > { %v10568_v36 = vpop.f32.mrb[17].mxu1  ;;  %v17051_v4 = vpop.f32.mrb[38].mxu0  ;;  %7377 = vst.msk [vmem:[#allocation2 + $0x90] sm:$0xff] %vm2639_vm3, %v7322_v61  ;;  %v5808_v27 = vrot.slane %v5794_v31, %v16797_v9  ;;  %7378 = vst.msk [vmem:[#allocation2 + $0x98] sm:$0xff] %vm2639_vm3, %v6791_v21  ;;  %v7143_v5 = vcombine.low %v7135_v56, %v7142_v63  ;;  %v5809_v62 = vcombine.high %v5801_v25, %v5801_v25 }
 0x382   : > { %v5470_v0 = vpop.f32.mrb[18].mxu1  ;;  %v10529_v34 = vpop.f32.mrb[39].mxu0  ;;  %v6799_v29 = vcombine.low %v5793_v17, %v5801_v25  ;;  %v17062_v44 = vpack.i.bf16 %v7422_v40, %v7421_v35  ;;  %v7145_v23 = vcombine.low %v6132_v26, %v6131_v54  ;;  %v7152_v32 = vrot.slane %v7144_v50, %v16797_v9 }
 0x383   : > { %v10569_v37 = vpop.f32.mrb[19].mxu1  ;;  %v7167_v19 = vrot.slane %v6133_v12, %v16797_v9  ;;  %v5383_v22 = vadd.f32 %v17021_v10, %v16872_v46  ;;  %v7349_v11 = vsel %vm6290_vm12, %v7143_v5, 0.0  ;;  %v6800_v49 = vcombine.low %v5809_v62, %v5808_v27 }
 0x384   : > { %v6807_v43 = vrot.slane %v6799_v29, %v16797_v9  ;;  %11764 = vrot.lane.b32.xlu0 %v17062_v44, %s12785_s15  ;;  %v5810_v36 = vcombine.high %v5808_v27, %v5808_v27  ;;  %7404 = vst.msk [vmem:[#allocation2 + $0x168] sm:$0xff] %vm2639_vm3, %v7349_v11  ;;  %v7159_v39 = vrot.slane %v7145_v23, %v16797_v9 }
 0x385   : > { %v7351_v10 = vsel %vm6349_vm13, %v7167_v19, 0.0  ;;  %v5811_v56 = vcombine.high %v5383_v22, %v5383_v22  ;;  %v5818_v0 = vrot.slane %v5383_v22, %v16797_v9  ;;  %v6814_v17 = vrot.slane %v6800_v49, %v16797_v9 }
 0x386   : > { %7406 = vst.msk [vmem:[#allocation2 + $0x178] sm:$0x3] %vm7360_vm11, %v7351_v10  ;;  %v5460_v31 = vadd.f32 %v17012_v24, %v16912_v30  ;;  %v5463_v40 = vadd.f32 %v17023_v16, %v16912_v30  ;;  %v5388_v34 = vadd.f32 %v5387_v51, %v16912_v30  ;;  %v7160_v21 = vcombine.low %v7152_v32, %v7159_v39 }
 0x387   : > { %v17073_v13 = vpop.f32.mrb[40].mxu0  ;;  %v5825_v63 = vrot.slane %v5811_v56, %v16797_v9  ;;  %v5826_v25 = vcombine.high %v5818_v0, %v5818_v0  ;;  %v6816_v26 = vcombine.low %v5810_v36, %v5818_v0  ;;  %v6815_v27 = vcombine.low %v6807_v43, %v6814_v17  ;;  %v7424_v0 = vld [vmem:[#allocation2 + $0x80] sm:$0xff] }
 0x388   : > { %v5475_v7 = vpop.f32.mrb[20].mxu1  ;;  %v10532_v57 = vpop.f32.mrb[41].mxu0  ;;  %v6134_v35 = vcombine.high %v5460_v31, %v5460_v31  ;;  %v6141_v5 = vrot.slane %v5460_v31, %v16797_v9  ;;  %v6151_v24 = vcombine.high %v5463_v40, %v5463_v40  ;;  %7405 = vst.msk [vmem:[#allocation2 + $0x170] sm:$0xff] %vm2639_vm3, %v7160_v21  ;;  %v6158_v29 = vrot.slane %v5463_v40, %v16797_v9  ;;  %v7490_v18 = vld [vmem:[#allocation2 + $0x9a] sm:$0xff] }
 0x389   : > { %v10572_v54 = vpop.f32.mrb[21].mxu1  ;;  %v17087_v37 = vpop.f32.mrb[42].mxu0  ;;  %v5827_v16 = vcombine.high %v5825_v63, %v5825_v63  ;;  %v6817_v62 = vcombine.low %v5826_v25, %v5825_v63  ;;  %v6824_v51 = vrot.slane %v6816_v26, %v16797_v9  ;;  %v7325_v23 = vsel %vm6290_vm12, %v6815_v27, 0.0 }
 0x38a   : > { %v5478_v61 = vpop.f32.mrb[22].mxu1  ;;  %v10533_v12 = vpop.f32.mrb[43].mxu0  ;;  %v6148_v32 = vrot.slane %v6134_v35, %v16797_v9  ;;  %v6149_v19 = vcombine.high %v6141_v5, %v6141_v5  ;;  %v6165_v22 = vrot.slane %v6151_v24, %v16797_v9  ;;  %7380 = vst.msk [vmem:[#allocation2 + $0xa8] sm:$0xff] %vm2639_vm3, %v7325_v23  ;;  %v6166_v43 = vcombine.high %v6158_v29, %v6158_v29 }
 0x38b   : > { %v10573_v50 = vpop.f32.mrb[23].mxu1  ;;  %v6831_v11 = vrot.slane %v6817_v62, %v16797_v9  ;;  %v6839_v49 = vrot.slane %v5827_v16, %v16797_v9  ;;  %v5828_v36 = vcombine.high %v5388_v34, %v5388_v34  ;;  %v5835_v56 = vrot.slane %v5388_v34, %v16797_v9  ;;  %v7423_v12 = vld [vmem:[#allocation2 + $0x78] sm:$0xff] }
 0x38c   : > { %v6150_v7 = vcombine.high %v6148_v32, %v6148_v32  ;;  %v7168_v39 = vcombine.low %v6141_v5, %v6149_v19  ;;  %v6167_v10 = vcombine.high %v6165_v22, %v6165_v22  ;;  %v7185_v31 = vcombine.low %v6158_v29, %v6166_v43 }
 0x38d   : > { %v6832_v54 = vcombine.low %v6824_v51, %v6831_v11  ;;  %v7327_v17 = vsel %vm6349_vm13, %v6839_v49, 0.0  ;;  %v5842_v40 = vrot.slane %v5828_v36, %v16797_v9  ;;  %v5843_v26 = vcombine.high %v5835_v56, %v5835_v56  ;;  %v7426_v11 = vld [vmem:[#allocation2 + $0x98] sm:$0xff] }
 0x38e   : > { %7382 = vst.msk [vmem:[#allocation2 + $0xb8] sm:$0x3] %vm7360_vm11, %v7327_v17  ;;  %v7169_v21 = vcombine.low %v6148_v32, %v6150_v7  ;;  %v7176_v63 = vrot.slane %v7168_v39, %v16797_v9  ;;  %v7186_v25 = vcombine.low %v6165_v22, %v6167_v10  ;;  %v7193_v50 = vrot.slane %v7185_v31, %v16797_v9 }
 0x38f   : > { %v17102_v57 = vpop.f32.mrb[44].mxu0  ;;  %7381 = vst.msk [vmem:[#allocation2 + $0xb0] sm:$0xff] %vm2639_vm3, %v6832_v54  ;;  %v5844_v27 = vcombine.high %v5842_v40, %v5842_v40  ;;  %v17113_v35 = vpack.i.bf16 %v7424_v0, %v7423_v12  ;;  %v5391_v5 = vadd.f32 %v17051_v4, %v16912_v30  ;;  %v6840_v51 = vcombine.low %v5835_v56, %v5843_v26  ;;  %v7425_v4 = vld [vmem:[#allocation2 + $0x90] sm:$0xff] }
 0x390   : > { %v10536_v61 = vpop.f32.mrb[45].mxu0  ;;  %v7183_v16 = vrot.slane %v7169_v21, %v16797_v9  ;;  %v7200_v62 = vrot.slane %v7186_v25, %v16797_v9  ;;  %v5468_v29 = vadd.f32 %v17043_v14, %v16812_v59  ;;  %v5396_v22 = vadd.f32 %v17073_v13, %v16812_v59  ;;  %v7441_v25 = vld [vmem:[#allocation2 + $0x150] sm:$0xff] }
 0x391   : > { %v17109_v34 = vpop.f32.mrb[46].mxu0  ;;  %v6841_v23 = vcombine.low %v5842_v40, %v5844_v27  ;;  %11769 = vrot.lane.b32.xlu1 %v17113_v35, %s12785_s15  ;;  %v5845_v32 = vcombine.high %v5391_v5, %v5391_v5  ;;  %v5852_v19 = vrot.slane %v5391_v5, %v16797_v9  ;;  %v6848_v36 = vrot.slane %v6840_v51, %v16797_v9 }
 0x392   : > { %v10537_v24 = vpop.f32.mrb[47].mxu0  ;;  %v7184_v49 = vcombine.low %v7176_v63, %v7183_v16  ;;  %v7201_v43 = vcombine.low %v7193_v50, %v7200_v62  ;;  %v6175_v7 = vrot.slane %v5468_v29, %v16797_v9  ;;  %v5862_v56 = vcombine.high %v5396_v22, %v5396_v22  ;;  %v7427_v16 = vld [vmem:[#allocation2 + $0xa8] sm:$0xff] }
 0x393   : > { %v6855_v14 = vrot.slane %v6841_v23, %v16797_v9  ;;  %v5859_v39 = vrot.slane %v5845_v32, %v16797_v9  ;;  %v5860_v10 = vcombine.high %v5852_v19, %v5852_v19  ;;  %v5869_v54 = vrot.slane %v5396_v22, %v16797_v9  ;;  %v7442_v24 = vld [vmem:[#allocation2 + $0x158] sm:$0xff] }
 0x394   : > { %v7352_v0 = vsel %vm6290_vm12, %v7184_v49, 0.0  ;;  %7408 = vst.msk [vmem:[#allocation2 + $0x188] sm:$0xff] %vm2639_vm3, %v7201_v43  ;;  %v7208_v13 = vrot.slane %v6175_v7, %v16797_v9  ;;  %v17135_v17 = vpack.i.bf16 %v7426_v11, %v7425_v4  ;;  %v5876_v63 = vrot.slane %v5862_v56, %v16797_v9 }
 0x395   : > { %7407 = vst.msk [vmem:[#allocation2 + $0x180] sm:$0xff] %vm2639_vm3, %v7352_v0  ;;  %v6856_v40 = vcombine.low %v6848_v36, %v6855_v14  ;;  %v5861_v61 = vcombine.high %v5859_v39, %v5859_v39  ;;  %v6857_v21 = vcombine.low %v5852_v19, %v5860_v10  ;;  %v5877_v50 = vcombine.high %v5869_v54, %v5869_v54  ;;  %v7443_v0 = vld [vmem:[#allocation2 + $0x168] sm:$0xff] }
 0x396   : > { %v7354_v12 = vsel %vm6349_vm13, %v7208_v13, 0.0  ;;  %v6880_v27 = vrot.slane %v5869_v54, %v16797_v9  ;;  %11774 = vrot.lane.b32.xlu0 %v17135_v17, %s12785_s15  ;;  %v5399_v5 = vadd.f32 %v17087_v37, %v16816_v33  ;;  %v7428_v62 = vld [vmem:[#allocation2 + $0xb0] sm:$0xff]  ;;  %v5878_v19 = vcombine.high %v5876_v63, %v5876_v63 }
 0x397   : > { %v5411_v31 = vpop.f32.mrb[48].mxu0  ;;  %v7328_v29 = vsel %vm6290_vm12, %v6856_v40, 0.0  ;;  %v6858_v23 = vcombine.low %v5859_v39, %v5861_v61  ;;  %v6865_v32 = vrot.slane %v6857_v21, %v16797_v9  ;;  %7409 = vst.msk [vmem:[#allocation2 + $0x190] sm:$0x3] %vm7360_vm11, %v7354_v12  ;;  %v6881_v4 = vcombine.low %v5877_v50, %v5876_v63  ;;  %v7444_v13 = vld [vmem:[#allocation2 + $0x170] sm:$0xff] }
 0x398   : > { %v10540_v26 = vpop.f32.mrb[49].mxu0  ;;  %7383 = vst.msk [vmem:[#allocation2 + $0xc0] sm:$0xff] %vm2639_vm3, %v7328_v29  ;;  %v7330_v33 = vsel %vm6349_vm13, %v6880_v27, 0.0  ;;  %v5879_v37 = vcombine.high %v5399_v5, %v5399_v5  ;;  %v5886_v11 = vrot.slane %v5399_v5, %v16797_v9  ;;  %v17158_v43 = vpack.i.bf16 %v7442_v24, %v7441_v25 }
 0x399   : > { %v17146_v51 = vpop.f32.mrb[50].mxu0  ;;  %v6872_v49 = vrot.slane %v6858_v23, %v16797_v9  ;;  %7385 = vst.msk [vmem:[#allocation2 + $0xd0] sm:$0x3] %vm7360_vm11, %v7330_v33  ;;  %v5404_v36 = vadd.f32 %v17102_v57, %v16840_v58  ;;  %v17162_v7 = vpack.i.bf16 %v7428_v62, %v7427_v16  ;;  %v6889_v14 = vrot.slane %v6881_v4, %v16797_v9  ;;  %v7451_v33 = vld [vmem:[#allocation2 + $0x49] sm:$0xff] }
 0x39a   : > { %v10541_v22 = vpop.f32.mrb[51].mxu0  ;;  %20115 = vst [vmem:[#allocation54_spill] sm:$0xff] %v17158_v43  ;;  %v5893_v39 = vrot.slane %v5879_v37, %v16797_v9  ;;  %v5894_v10 = vcombine.high %v5886_v11, %v5886_v11  ;;  %v6882_v56 = vcombine.low %v5878_v19, %v5886_v11  ;;  %11779 = vrot.lane.b32.xlu0 %v17158_v43, %s12785_s15  ;;  %v7452_v37 = vld [vmem:[#allocation2 + $0x51] sm:$0xff] }
 0x39b   : > { %v6873_v54 = vcombine.low %v6865_v32, %v6872_v49  ;;  %v5896_v40 = vcombine.high %v5404_v36, %v5404_v36  ;;  %v5903_v61 = vrot.slane %v5404_v36, %v16797_v9  ;;  %11784 = vrot.lane.b32.xlu1 %v17162_v7, %s12785_s15  ;;  %v5407_v63 = vadd.f32 %v17109_v34, %v16846_v55 }
 0x39c   : > { %v6896_v58 = vrot.slane %v6882_v56, %v16797_v9  ;;  %v6898_v57 = vcombine.low %v5894_v10, %v5893_v39  ;;  %v5895_v21 = vcombine.high %v5893_v39, %v5893_v39  ;;  %v17176_v50 = vpack.i.bf16 %v7444_v13, %v7443_v0  ;;  %v7604_v8 = vld [vmem:[#allocation2 + $0x182] sm:$0xff] }
 0x39d   : > { %7384 = vst.msk [vmem:[#allocation2 + $0xc8] sm:$0xff] %vm2639_vm3, %v6873_v54  ;;  %v5910_v26 = vrot.slane %v5896_v40, %v16797_v9  ;;  %v5911_v12 = vcombine.high %v5903_v61, %v5903_v61  ;;  %v5412_v27 = vadd.f32 %v5411_v31, %v16868_v48  ;;  %v5913_v29 = vcombine.high %v5407_v63, %v5407_v63 }
 0x39e   : > { %20116 = vst [vmem:[#allocation70_spill] sm:$0xff] %v17176_v50  ;;  %v6897_v24 = vcombine.low %v6889_v14, %v6896_v58  ;;  %v6906_v16 = vrot.slane %v6898_v57, %v16797_v9  ;;  %v6899_v62 = vcombine.low %v5895_v21, %v5903_v61  ;;  %11794 = vrot.lane.b32.xlu0 %v11793_v45, %s12787_s22  ;;  %v7605_v42 = vld [vmem:[#allocation2 + $0x18a] sm:$0xff] }
 0x39f   : > { %v5419_v25 = vpop.f32.mrb[52].mxu0  ;;  %v5912_v32 = vcombine.high %v5910_v26, %v5910_v26  ;;  %v6921_v55 = vrot.slane %v5911_v12, %v16797_v9  ;;  %v5920_v34 = vrot.slane %v5407_v63, %v16797_v9  ;;  %11789 = vrot.lane.b32.xlu1 %v17176_v50, %s12785_s15  ;;  %v5927_v22 = vrot.slane %v5913_v29, %v16797_v9  ;;  %v7429_v10 = vld [vmem:[#allocation2 + $0xc0] sm:$0xff] }
 0x3a0   : > { %v10544_v5 = vpop.f32.mrb[53].mxu0  ;;  %v7331_v31 = vsel %vm6290_vm12, %v6897_v24, 0.0  ;;  %v6913_v19 = vrot.slane %v6899_v62, %v16797_v9  ;;  %v5930_v4 = vcombine.high %v5412_v27, %v5412_v27  ;;  %v5937_v11 = vrot.slane %v5412_v27, %v16797_v9  ;;  %v7456_v24 = vld [vmem:[#allocation2 + $0x81] sm:$0xff] }
 0x3a1   : > { %v17180_v23 = vpop.f32.mrb[54].mxu0  ;;  %7386 = vst.msk [vmem:[#allocation2 + $0xd8] sm:$0xff] %vm2639_vm3, %v7331_v31  ;;  %v6922_v1 = vcombine.low %v5910_v26, %v5912_v32  ;;  %v7333_v2 = vsel %vm6349_vm13, %v6921_v55, 0.0  ;;  %v5928_v45 = vcombine.high %v5920_v34, %v5920_v34  ;;  %v5929_v36 = vcombine.high %v5927_v22, %v5927_v22  ;;  %v7455_v5 = vld [vmem:[#allocation2 + $0x79] sm:$0xff] }
 0x3a2   : > { %v10545_v48 = vpop.f32.mrb[55].mxu0  ;;  %v6914_v49 = vcombine.low %v6906_v16, %v6913_v19  ;;  %7388 = vst.msk [vmem:[#allocation2 + $0xe8] sm:$0x3] %vm7360_vm11, %v7333_v2  ;;  %v5944_v14 = vrot.slane %v5930_v4, %v16797_v9  ;;  %v5415_v39 = vadd.f32 %v17146_v51, %v16872_v46  ;;  %v5945_v13 = vcombine.high %v5937_v11, %v5937_v11  ;;  %v7454_v2 = vld [vmem:[#allocation2 + $0x69] sm:$0xff] }
 0x3a3   : > { %v6930_v56 = vrot.slane %v6922_v1, %v16797_v9  ;;  %v6923_v0 = vcombine.low %v5920_v34, %v5928_v45  ;;  %11799 = vrot.lane.b32.xlu1 %v16893_v52, %s12787_s22  ;;  %v17205_v54 = vpack.i.bf16 %v7452_v37, %v7451_v33  ;;  %v6939_v40 = vcombine.low %v5927_v22, %v5929_v36 }
 0x3a4   : > { %7387 = vst.msk [vmem:[#allocation2 + $0xe0] sm:$0xff] %vm2639_vm3, %v6914_v49  ;;  %v6962_v61 = vrot.slane %v5944_v14, %v16797_v9  ;;  %v5946_v58 = vcombine.high %v5944_v14, %v5944_v14  ;;  %v5947_v57 = vcombine.high %v5415_v39, %v5415_v39  ;;  %v7430_v21 = vld [vmem:[#allocation2 + $0xc8] sm:$0xff]  ;;  %v6940_v26 = vcombine.low %v5937_v11, %v5945_v13 }
 0x3a5   : > { %v6937_v51 = vrot.slane %v6923_v0, %v16797_v9  ;;  %v5954_v12 = vrot.slane %v5415_v39, %v16797_v9  ;;  %v17211_v27 = vpack.i.bf16 %v7430_v21, %v7429_v10  ;;  %v6947_v62 = vrot.slane %v6939_v40, %v16797_v9 }
 0x3a6   : > { %v7336_v29 = vsel %vm6349_vm13, %v6962_v61, 0.0  ;;  %v5961_v32 = vrot.slane %v5947_v57, %v16797_v9  ;;  %v5420_v55 = vadd.f32 %v5419_v25, %v16872_v46  ;;  %v6954_v31 = vrot.slane %v6940_v26, %v16797_v9  ;;  %v7453_v25 = vld [vmem:[#allocation2 + $0x61] sm:$0xff] }
 0x3a7   : > { %v5427_v63 = vpop.f32.mrb[56].mxu0  ;;  %v6938_v48 = vcombine.low %v6930_v56, %v6937_v51  ;;  %7391 = vst.msk [vmem:[#allocation2 + $0x100] sm:$0x3] %vm7360_vm11, %v7336_v29  ;;  %v5962_v19 = vcombine.high %v5954_v12, %v5954_v12  ;;  %v6963_v22 = vcombine.low %v5946_v58, %v5954_v12  ;;  %11804 = vrot.lane.b32.xlu0 %v17211_v27, %s12785_s15  ;;  %v7458_v29 = vld [vmem:[#allocation2 + $0x99] sm:$0xff] }
 0x3a8   : > { %v10548_v16 = vpop.f32.mrb[57].mxu0  ;;  %11814 = vrot.lane.b32.xlu1 %v17205_v54, %s12787_s22  ;;  %v5963_v33 = vcombine.high %v5961_v32, %v5961_v32  ;;  %v5964_v37 = vcombine.high %v5420_v55, %v5420_v55  ;;  %v5971_v1 = vrot.slane %v5420_v55, %v16797_v9  ;;  %v17225_v46 = vpack.i.bf16 %v7456_v24, %v7455_v5  ;;  %v7431_v51 = vld [vmem:[#allocation2 + $0xd8] sm:$0xff] }
 0x3a9   : > { %v5430_v34 = vpop.f32.mrb[58].mxu0  ;;  %v7334_v45 = vsel %vm6290_vm12, %v6938_v48, 0.0  ;;  %v6955_v11 = vcombine.low %v6947_v62, %v6954_v31  ;;  %v6964_v49 = vcombine.low %v5962_v19, %v5961_v32  ;;  %v6971_v36 = vrot.slane %v6963_v22, %v16797_v9  ;;  %v7459_v19 = vld [vmem:[#allocation2 + $0xa9] sm:$0xff]  ;;  %v7460_v22 = vld [vmem:[#allocation2 + $0xb1] sm:$0xff] }
 0x3aa   : > { %v10549_v4 = vpop.f32.mrb[59].mxu0  ;;  %7389 = vst.msk [vmem:[#allocation2 + $0xf0] sm:$0xff] %vm2639_vm3, %v7334_v45  ;;  %v5978_v14 = vrot.slane %v5964_v37, %v16797_v9  ;;  %v5979_v39 = vcombine.high %v5971_v1, %v5971_v1  ;;  %v6980_v10 = vcombine.low %v5963_v33, %v5971_v1  ;;  %v5423_v56 = vadd.f32 %v17180_v23, %v16912_v30 }
 0x3ab   : > { %7390 = vst.msk [vmem:[#allocation2 + $0xf8] sm:$0xff] %vm2639_vm3, %v6955_v11  ;;  %v6978_v0 = vrot.slane %v6964_v49, %v16797_v9  ;;  %11809 = vrot.lane.b32.xlu0 %v16919_v41, %s12787_s22  ;;  %v17238_v13 = vpack.i.bf16 %v7454_v2, %v7453_v25  ;;  %v7432_v40 = vld [vmem:[#allocation2 + $0xe0] sm:$0xff]  ;;  %v5428_v61 = vadd.f32 %v5427_v63, %v16912_v30  ;;  %v7457_v63 = vld [vmem:[#allocation2 + $0x91] sm:$0xff] }
 0x3ac   : > { %v5980_v58 = vcombine.high %v5978_v14, %v5978_v14  ;;  %v6981_v57 = vcombine.low %v5979_v39, %v5978_v14  ;;  %v6988_v21 = vrot.slane %v6980_v10, %v16797_v9  ;;  %11824 = vrot.lane.b32.xlu1 %v17225_v46, %s12787_s22  ;;  %v5981_v23 = vcombine.high %v5423_v56, %v5423_v56  ;;  %v7461_v49 = vld [vmem:[#allocation2 + $0xc1] sm:$0xff] }
 0x3ad   : > { %v6979_v26 = vcombine.low %v6971_v36, %v6978_v0  ;;  %v5988_v12 = vrot.slane %v5423_v56, %v16797_v9  ;;  %v17245_v5 = vpack.i.bf16 %v7432_v40, %v7431_v51  ;;  %v5998_v24 = vcombine.high %v5428_v61, %v5428_v61  ;;  %v7462_v36 = vld [vmem:[#allocation2 + $0xc9] sm:$0xff] }
 0x3ae   : > { %v6995_v16 = vrot.slane %v6981_v57, %v16797_v9  ;;  %v7003_v62 = vrot.slane %v5980_v58, %v16797_v9  ;;  %v5995_v30 = vrot.slane %v5981_v23, %v16797_v9  ;;  %v6005_v32 = vrot.slane %v5428_v61, %v16797_v9  ;;  %v7463_v61 = vld [vmem:[#allocation2 + $0xd9] sm:$0xff]  ;;  %v7464_v58 = vld [vmem:[#allocation2 + $0xe1] sm:$0xff] }
 0x3af   : > { %v7337_v55 = vsel %vm6290_vm12, %v6979_v26, 0.0  ;;  %v5996_v48 = vcombine.high %v5988_v12, %v5988_v12  ;;  %11819 = vrot.lane.b32.xlu0 %v17238_v13, %s12787_s22  ;;  %v6012_v31 = vrot.slane %v5998_v24, %v16797_v9  ;;  %v17262_v2 = vpack.i.bf16 %v7458_v29, %v7457_v63 }
 0x3b0   : > { %7392 = vst.msk [vmem:[#allocation2 + $0x108] sm:$0xff] %vm2639_vm3, %v7337_v55  ;;  %v6996_v4 = vcombine.low %v6988_v21, %v6995_v16  ;;  %v7339_v33 = vsel %vm6349_vm13, %v7003_v62, 0.0  ;;  %v5997_v37 = vcombine.high %v5995_v30, %v5995_v30  ;;  %11834 = vrot.lane.b32.xlu1 %v17245_v5, %s12785_s15  ;;  %v6013_v1 = vcombine.high %v6005_v32, %v6005_v32 }
 0x3b1   : > { %7394 = vst.msk [vmem:[#allocation2 + $0x118] sm:$0x3] %vm7360_vm11, %v7339_v33  ;;  %v7004_v25 = vcombine.low %v5988_v12, %v5996_v48  ;;  %v6014_v45 = vcombine.high %v6012_v31, %v6012_v31  ;;  %v5431_v11 = vadd.f32 %v5430_v34, %v16812_v59  ;;  %v17266_v10 = vpack.i.bf16 %v7460_v22, %v7459_v19  ;;  %v7433_v16 = vld [vmem:[#allocation2 + $0xf0] sm:$0xff] }
 0x3b2   : > { %7393 = vst.msk [vmem:[#allocation2 + $0x110] sm:$0xff] %vm2639_vm3, %v6996_v4  ;;  %v7005_v14 = vcombine.low %v5995_v30, %v5997_v37  ;;  %v7021_v39 = vcombine.low %v6005_v32, %v6013_v1  ;;  %v7434_v57 = vld [vmem:[#allocation2 + $0xf8] sm:$0xff]  ;;  %v17276_v23 = vpack.i.bf16 %v7462_v36, %v7461_v49  ;;  %v17281_v30 = vpack.i.bf16 %v7464_v58, %v7463_v61  ;;  %v7486_v61 = vld [vmem:[#allocation2 + $0x6a] sm:$0xff] }
 0x3b3   : > { %11829 = vrot.lane.b32.xlu0 %v17262_v2, %s12787_s22  ;;  %v7022_v56 = vcombine.low %v6012_v31, %v6014_v45  ;;  %v6015_v0 = vcombine.high %v5431_v11, %v5431_v11  ;;  %v6022_v40 = vrot.slane %v5431_v11, %v16797_v9  ;;  %v7012_v59 = vrot.slane %v7004_v25, %v16797_v9  ;;  %v7475_v31 = vld [vmem:[#allocation2 + $0x169] sm:$0xff]  ;;  %v7476_v19 = vld [vmem:[#allocation2 + $0x171] sm:$0xff]  ;;  %v7466_v1 = vld [vmem:[#allocation2 + $0xf9] sm:$0xff] }
 0x3b4   : > { %v7019_v34 = vrot.slane %v7005_v14, %v16797_v9  ;;  %v7029_v21 = vrot.slane %v7021_v39, %v16797_v9  ;;  %11839 = vrot.lane.b32.xlu1 %v17266_v10, %s12787_s22  ;;  %20117 = vst [vmem:[#allocation6_spill] sm:$0xff] %v17281_v30  ;;  %v17283_v63 = vpack.i.bf16 %v7434_v57, %v7433_v16  ;;  %v7465_v37 = vld [vmem:[#allocation2 + $0xf1] sm:$0xff] }
 0x3b5   : > { %v7036_v51 = vrot.slane %v7022_v56, %v16797_v9  ;;  %v6029_v26 = vrot.slane %v6015_v0, %v16797_v9  ;;  %v6030_v12 = vcombine.high %v6022_v40, %v6022_v40  ;;  %v7044_v24 = vrot.slane %v6022_v40, %v16797_v9  ;;  %v7483_v14 = vld [vmem:[#allocation2 + $0x4a] sm:$0xff]  ;;  %v7484_v39 = vld [vmem:[#allocation2 + $0x52] sm:$0xff]  ;;  %v7485_v56 = vld [vmem:[#allocation2 + $0x62] sm:$0xff] }
 0x3b6   : > { %v7020_v62 = vcombine.low %v7012_v59, %v7019_v34  ;;  %v17297_v33 = vpack.i.bf16 %v7476_v19, %v7475_v31  ;;  %v7473_v0 = vld [vmem:[#allocation2 + $0x151] sm:$0xff]  ;;  %v7474_v40 = vld [vmem:[#allocation2 + $0x159] sm:$0xff]  ;;  %v7493_v31 = vld [vmem:[#allocation2 + $0xc2] sm:$0xff]  ;;  %v17377_v60 = vpack.i.bf16 %v7605_v42, %v7604_v8 }
 0x3b7   : > { %v7037_v29 = vcombine.low %v7029_v21, %v7036_v51  ;;  %v6031_v32 = vcombine.high %v6029_v26, %v6029_v26  ;;  %v7045_v55 = vcombine.low %v6030_v12, %v6029_v26  ;;  %v7342_v48 = vsel %vm6349_vm13, %v7044_v24, 0.0  ;;  %11844 = vrot.lane.b32.xlu0 %v17276_v23, %s12787_s22  ;;  %v7435_v11 = vld [vmem:[#allocation2 + $0x108] sm:$0xff]  ;;  %v7487_v34 = vld [vmem:[#allocation2 + $0x7a] sm:$0xff]  ;;  %v7489_v12 = vld [vmem:[#allocation2 + $0x92] sm:$0xff] }
 0x3b8   : > { %v7340_v22 = vsel %vm6290_vm12, %v7020_v62, 0.0  ;;  %7397 = vst.msk [vmem:[#allocation2 + $0x130] sm:$0x3] %vm7360_vm11, %v7342_v48  ;;  %11849 = vrot.lane.b32.xlu1 %v17281_v30, %s12787_s22  ;;  %20118 = vst [vmem:[#allocation41_spill] sm:$0xff] %v17297_v33  ;;  %v7488_v21 = vld [vmem:[#allocation2 + $0x82] sm:$0xff]  ;;  %v17316_v51 = vpack.i.bf16 %v7484_v39, %v7483_v14  ;;  %v17318_v26 = vpack.i.bf16 %v7474_v40, %v7473_v0  ;;  %v7494_v19 = vld [vmem:[#allocation2 + $0xca] sm:$0xff] }
 0x3b9   : > { %7395 = vst.msk [vmem:[#allocation2 + $0x120] sm:$0xff] %vm2639_vm3, %v7340_v22  ;;  %7396 = vst.msk [vmem:[#allocation2 + $0x128] sm:$0xff] %vm2639_vm3, %v7037_v29  ;;  %v7046_v15 = vcombine.low %v6031_v32, %v16950_v47  ;;  %v7436_v4 = vld [vmem:[#allocation2 + $0x110] sm:$0xff]  ;;  %v7053_v25 = vrot.slane %v7045_v55, %v16797_v9  ;;  %v17307_v47 = vpack.i.bf16 %v7466_v1, %v7465_v37  ;;  %v12744_v37 = vld [vmem:[#allocation2 + $0x1a] sm:$0xff]  ;;  %vm9684_vm11 = vcmask 523264  }
 0x3ba   : > { %v17305_v49 = vpack.i.bf16 %v7436_v4, %v7435_v11  ;;  %v7467_v58 = vld [vmem:[#allocation2 + $0x109] sm:$0xff]  ;;  %v7468_v57 = vld [vmem:[#allocation2 + $0x111] sm:$0xff]  ;;  %20120 = vst [vmem:[#allocation72_spill] sm:$0xff] %v17318_v26  ;;  %v17320_v24 = vpack.i.bf16 %v7486_v61, %v7485_v56  ;;  %v17328_v48 = vpack.i.bf16 %v7488_v21, %v7487_v34  ;;  %v17332_v22 = vpack.i.bf16 %v7490_v18, %v7489_v12  ;;  %v7495_v4 = vld [vmem:[#allocation2 + $0xda] sm:$0xff] }
 0x3bb   : > { %v7060_v45 = vrot.slane %v7046_v15, %v16797_v9  ;;  %11854 = vrot.lane.b32.xlu0 %v17283_v63, %s12785_s15  ;;  %20119 = vst [vmem:[#allocation10_spill] sm:$0xff] %v17307_v47  ;;  %v17322_v16 = vpack.i.bf16 %v7468_v57, %v7467_v58  ;;  %v7491_v32 = vld [vmem:[#allocation2 + $0xaa] sm:$0xff]  ;;  %v7492_v55 = vld [vmem:[#allocation2 + $0xb2] sm:$0xff]  ;;  %v7440_v15 = vld [vmem:[#allocation2 + $0x140] sm:$0xff]  ;;  %v17340_v40 = vpack.i.bf16 %v7494_v19, %v7493_v31 }
 0x3bc   : > { %11869 = vrot.lane.b32.xlu1 %v17297_v33, %s12787_s22  ;;  %v12745_v1 = vld [vmem:[#allocation2 + $0x22] sm:$0xff]  ;;  %v17336_v14 = vpack.i.bf16 %v7492_v55, %v7491_v32  ;;  %v7497_v56 = vld [vmem:[#allocation2 + $0xf2] sm:$0xff]  ;;  %v7498_v0 = vld [vmem:[#allocation2 + $0xfa] sm:$0xff]  ;;  %20134 = vst [vmem:[#allocation89_spill] sm:$0xff] %v17377_v60 }
 0x3bd   : > { %v7061_v36 = vcombine.low %v7053_v25, %v7060_v45  ;;  %20121 = vst [vmem:[#allocation12_spill] sm:$0xff] %v17322_v16  ;;  %v17334_v25 = vpack.i.bf16 %v12745_v1, %v12744_v37  ;;  %v7478_v58 = vld [vmem:[#allocation2 + $0xa] sm:$0xff]  ;;  %v7500_v21 = vld [vmem:[#allocation2 + $0x112] sm:$0xff]  ;;  %v7472_v31 = vld [vmem:[#allocation2 + $0x141] sm:$0xff] }
 0x3be   : > { %v7506_v37 = vld [vmem:[#allocation2 + $0x15a] sm:$0xff]  ;;  %v7512_v8 = vld [vmem:[#allocation2 + $0x30] sm:$0xff] }
 0x3bf   : > { %v7343_v9 = vsel %vm6290_vm12, %v7061_v36, 0.0  ;;  %11859 = vrot.lane.b32.xlu0 %v17307_v47, %s12787_s22  ;;  %v7496_v36 = vld [vmem:[#allocation2 + $0xe2] sm:$0xff]  ;;  %v7513_v42 = vld [vmem:[#allocation2 + $0x38] sm:$0xff] }
 0x3c0   : > { %7398 = vst.msk [vmem:[#allocation2 + $0x138] sm:$0xff] %vm2639_vm3, %v7343_v9  ;;  %11874 = vrot.lane.b32.xlu1 %v17305_v49, %s12785_s15  ;;  %v7438_v59 = vld [vmem:[#allocation2 + $0x128] sm:$0xff]  ;;  %v7437_v62 = vld [vmem:[#allocation2 + $0x120] sm:$0xff]  ;;  %v17348_v34 = vpack.i.bf16 %v7496_v36, %v7495_v4 }
 0x3c1   : > { %v17326_v29 = vpack.i.bf16 %v7438_v59, %v7437_v62  ;;  %v7469_v45 = vld [vmem:[#allocation2 + $0x121] sm:$0xff]  ;;  %v7470_v11 = vld [vmem:[#allocation2 + $0x129] sm:$0xff]  ;;  %v17350_v62 = vpack.i.bf16 %v7498_v0, %v7497_v56 }
 0x3c2   : > { %v7477_v9 = vld [vmem:[#allocation2 + $0x2] sm:$0xff]  ;;  %v17346_v57 = vpack.i.bf16 %v7470_v11, %v7469_v45  ;;  %v7499_v59 = vld [vmem:[#allocation2 + $0x10a] sm:$0xff]  ;;  %20125 = vst [vmem:[#allocation60_spill] sm:$0xff] %v17348_v34 }
 0x3c3   : > { %11864 = vrot.lane.b32.xlu0 %v17318_v26, %s12787_s22  ;;  %20122 = vst [vmem:[#allocation75_spill] sm:$0xff] %v17326_v29  ;;  %v7501_v12 = vld [vmem:[#allocation2 + $0x122] sm:$0xff]  ;;  %v7502_v18 = vld [vmem:[#allocation2 + $0x12a] sm:$0xff]  ;;  %20126 = vst [vmem:[#allocation42_spill] sm:$0xff] %v17350_v62  ;;  %v11893_v55 = vpack.i.bf16 %v7478_v58, %v7477_v9  ;;  %v17358_v4 = vpack.i.bf16 %v7500_v21, %v7499_v59 }
 0x3c4   : > { %11879 = vrot.lane.b32.xlu1 %v17322_v16, %s12787_s22  ;;  %20124 = vst [vmem:[#allocation58_spill] sm:$0xff] %v17346_v57  ;;  %v17356_v1 = vpack.i.bf16 %v7502_v18, %v7501_v12  ;;  %v7504_v11 = vld [vmem:[#allocation2 + $0x142] sm:$0xff]  ;;  %v7507_v36 = vld [vmem:[#allocation2 + $0x16a] sm:$0xff]  ;;  %v7508_v58 = vld [vmem:[#allocation2 + $0x172] sm:$0xff] }
 0x3c5   : > { %20128 = vst [vmem:[#allocation9_spill] sm:$0xff] %v17358_v4  ;;  %v7540_v56 = vld [vmem:[#allocation2 + $0x180] sm:$0xff]  ;;  %v7573_v9 = vld [vmem:[#allocation2 + $0x189] sm:$0xff]  ;;  %v12746_v21 = vld [vmem:[#allocation2 + $0x32] sm:$0xff]  ;;  %v17379_v20 = vpack.i.bf16 %v7508_v58, %v7507_v36 }
 0x3c6   : > { %20127 = vst [vmem:[#allocation43_spill] sm:$0xff] %v17356_v1  ;;  %v7572_v0 = vld [vmem:[#allocation2 + $0x181] sm:$0xff]  ;;  %v7515_v36 = vld [vmem:[#allocation2 + $0x50] sm:$0xff] }
 0x3c7   : > { %11884 = vrot.lane.b32.xlu0 %v17326_v29, %s12785_s15  ;;  %v7439_v39 = vld [vmem:[#allocation2 + $0x138] sm:$0xff]  ;;  %20135 = vst [vmem:[#allocation52_spill] sm:$0xff] %v17379_v20 }
 0x3c8   : > { %11899 = vrot.lane.b32.xlu1 %v17334_v25, %s12774_s26  ;;  %v17344_v61 = vpack.i.bf16 %v7440_v15, %v7439_v39  ;;  %v7471_v32 = vld [vmem:[#allocation2 + $0x139] sm:$0xff]  ;;  %v7541_v39 = vld [vmem:[#allocation2 + $0x188] sm:$0xff] }
 0x3c9   : > { %v7503_v19 = vld [vmem:[#allocation2 + $0x13a] sm:$0xff]  ;;  %v7505_v15 = vld [vmem:[#allocation2 + $0x152] sm:$0xff]  ;;  %v17360_v45 = vpack.i.bf16 %v7472_v31, %v7471_v32  ;;  %v17371_v31 = vpack.i.bf16 %v7541_v39, %v7540_v56  ;;  %v7514_v39 = vld [vmem:[#allocation2 + $0x48] sm:$0xff] }
 0x3ca   : > { %20123 = vst [vmem:[#allocation57_spill] sm:$0xff] %v17344_v61  ;;  %v17365_v12 = vpack.i.bf16 %v7506_v37, %v7505_v15  ;;  %v17367_v59 = vpack.i.bf16 %v7504_v11, %v7503_v19  ;;  %v12747_v18 = vld [vmem:[#allocation2 + $0x3a] sm:$0xff]  ;;  %v17407_v11 = vpack.i.bf16 %v7513_v42, %v7512_v8  ;;  %v17412_v56 = vpack.i.bf16 %v7515_v36, %v7514_v39 }
 0x3cb   : > { %11889 = vrot.lane.b32.xlu0 %v17346_v57, %s12787_s22  ;;  %20129 = vst [vmem:[#allocation44_spill] sm:$0xff] %v17360_v45  ;;  %v17369_v32 = vpack.i.bf16 %v12747_v18, %v12746_v21  ;;  %20132 = vst [vmem:[#allocation47_spill] sm:$0xff] %v17371_v31  ;;  %v12748_v19 = vld [vmem:[#allocation2 + $0x18] sm:$0xff]  ;;  %v12749_v15 = vld [vmem:[#allocation2 + $0x20] sm:$0xff] }
 0x3cc   : > { %11909 = vrot.lane.b32.xlu1 %v17344_v61, %s12785_s15  ;;  %20130 = vst [vmem:[#allocation45_spill] sm:$0xff] %v17365_v12  ;;  %20131 = vst [vmem:[#allocation46_spill] sm:$0xff] %v17367_v59  ;;  %v11983_v37 = vpack.i.bf16 %v12749_v15, %v12748_v19 }
 0x3cf   : > { %11894 = vrot.lane.b32.xlu0 %v11893_v55, %s12774_s26  ;;  %v17373_v55 = vpack.i.bf16 %v7573_v9, %v7572_v0  ;;  %v17422_v0 = vpop.permute.xlu0 %11744  ;;  %v17432_v9 = vpop.permute.xlu1 %11749 }
 0x3d0   : > { %11914 = vrot.lane.b32.xlu1 %v17360_v45, %s12787_s22 }
 0x3d1   : > { %20133 = vst [vmem:[#allocation49_spill] sm:$0xff] %v17373_v55 }
 0x3d3   : > { %11904 = vrot.lane.b32.xlu0 %v17369_v32, %s12774_s26  ;;  %v17434_v58 = vpop.permute.xlu0 %11754 }
 0x3d4   : > { %11919 = vrot.lane.b32.xlu1 %v17316_v51, %s12774_s26  ;;  %20136 = vst [vmem:[#allocation53_spill] sm:$0xff] %v17434_v58 }
 0x3d7   : > { %11924 = vrot.lane.b32.xlu0 %v17320_v24, %s12774_s26 }
 0x3d8   : > { %11929 = vrot.lane.b32.xlu1 %v17328_v48, %s12774_s26 }
 0x3db   : > { %11934 = vrot.lane.b32.xlu0 %v17332_v22, %s12774_s26 }
 0x3dc   : > { %11939 = vrot.lane.b32.xlu1 %v17336_v14, %s12774_s26 }
 0x3df   : > { %11944 = vrot.lane.b32.xlu0 %v17340_v40, %s12774_s26 }
 0x3e0   : > { %11949 = vrot.lane.b32.xlu1 %v17348_v34, %s12774_s26 }
 0x3e3   : > { %11954 = vrot.lane.b32.xlu0 %v17350_v62, %s12774_s26 }
 0x3e4   : > { %11959 = vrot.lane.b32.xlu1 %v17358_v4, %s12774_s26 }
 0x3e6   : > { %v17440_v21 = vpop.permute.xlu1 %11759 }
 0x3e7   : > { %11964 = vrot.lane.b32.xlu0 %v17356_v1, %s12774_s26 }
 0x3e8   : > { %11969 = vrot.lane.b32.xlu1 %v17367_v59, %s12774_s26 }
 0x3eb   : > { %11974 = vrot.lane.b32.xlu0 %v17365_v12, %s12774_s26 }
 0x3ec   : > { %11979 = vrot.lane.b32.xlu1 %v17379_v20, %s12774_s26 }
 0x3ef   : > { %11984 = vrot.lane.b32.xlu0 %v11983_v37, %s12776_s28 }
 0x3f0   : > { %11989 = vrot.lane.b32.xlu1 %v17407_v11, %s12776_s28 }
 0x3f3   : > { %11994 = vrot.lane.b32.xlu0 %v17412_v56, %s12776_s28 }
 0x3f4   : > { %11999 = vrot.lane.b32.xlu1 %v17062_v44, %s12776_s28 }
 0x3f6   : > { %v17442_v18 = vpop.permute.xlu0 %11764 }
 0x3f7   : > { %12004 = vrot.lane.b32.xlu0 %v17113_v35, %s12776_s28 }
 0x3f8   : > { %12009 = vrot.lane.b32.xlu1 %v17135_v17, %s12776_s28 }
 0x3fb   : > { %12014 = vrot.lane.b32.xlu0 %v17162_v7, %s12776_s28 }
 0x3fc   : > { %12019 = vrot.lane.b32.xlu1 %v17211_v27, %s12776_s28 }
 0x3ff   : > { %12024 = vrot.lane.b32.xlu0 %v17245_v5, %s12776_s28 }
 0x400   : > { %12029 = vrot.lane.b32.xlu1 %v17283_v63, %s12776_s28 }
 0x403   : > { %12034 = vrot.lane.b32.xlu0 %v17305_v49, %s12776_s28  ;;  %v17448_v42 = vpop.permute.xlu1 %11769 }
 0x404   : > { %12039 = vrot.lane.b32.xlu1 %v17326_v29, %s12776_s28 }
 0x407   : > { %12044 = vrot.lane.b32.xlu0 %v17344_v61, %s12776_s28 }
 0x408   : > { %12049 = vrot.lane.b32.xlu1 %v17158_v43, %s12776_s28  ;;  %v17450_v8 = vpop.permute.xlu0 %11774 }
 0x40b   : > { %12054 = vrot.lane.b32.xlu0 %v17176_v50, %s12776_s28 }
 0x40c   : > { %12059 = vrot.lane.b32.xlu1 %v17371_v31, %s12776_s28  ;;  %v17458_v15 = vpop.permute.xlu0 %11779 }
 0x40d   : > { %v17456_v19 = vpop.permute.xlu1 %11784 }
 0x40e   : > { %20137 = vst [vmem:[#allocation55_spill] sm:$0xff] %v17456_v19 }
 0x40f   : > { %12064 = vrot.lane.b32.xlu0 %v16893_v52, %s12778_s30 }
 0x410   : > { %12069 = vrot.lane.b32.xlu1 %v16919_v41, %s12778_s30  ;;  %v17470_v36 = vpop.permute.xlu0 %11794 }
 0x411   : > { %v17464_v37 = vpop.permute.xlu1 %11789 }
 0x412   : > { %20138 = vst [vmem:[#allocation56_spill] sm:$0xff] %v17464_v37 }
 0x413   : > { %12074 = vrot.lane.b32.xlu0 %v17205_v54, %s12778_s30 }
 0x414   : > { %12079 = vrot.lane.b32.xlu1 %v17238_v13, %s12778_s30 }
 0x415   : > { %v17472_v39 = vpop.permute.xlu1 %11799 }
 0x417   : > { %12084 = vrot.lane.b32.xlu0 %v17225_v46, %s12778_s30 }
 0x418   : > { %12089 = vrot.lane.b32.xlu1 %v17262_v2, %s12778_s30 }
 0x419   : > { %v17478_v31 = vpop.permute.xlu0 %11804 }
 0x41a   : > { %20139 = vst [vmem:[#allocation59_spill] sm:$0xff] %v17478_v31  ;;  %v17480_v50 = vpop.permute.xlu1 %11814 }
 0x41b   : > { %12094 = vrot.lane.b32.xlu0 %v17266_v10, %s12778_s30 }
 0x41c   : > { %12099 = vrot.lane.b32.xlu1 %v17276_v23, %s12778_s30 }
 0x41d   : > { %v17486_v43 = vpop.permute.xlu0 %11809 }
 0x41e   : > { %v17488_v61 = vpop.permute.xlu1 %11824 }
 0x41f   : > { %12104 = vrot.lane.b32.xlu0 %v17281_v30, %s12778_s30 }
 0x420   : > { %12109 = vrot.lane.b32.xlu1 %v17307_v47, %s12778_s30 }
 0x421   : > { %v17494_v29 = vpop.permute.xlu0 %11819 }
 0x422   : > { %20140 = vst [vmem:[#allocation17_spill] sm:$0xff] %v17494_v29  ;;  %v17496_v31 = vpop.permute.xlu1 %11834  ;;  %v17874_v29 = vld [vmem:[#allocation2 + $0x188] sm:$0xff] }
 0x423   : > { %20141 = vst [vmem:[#allocation62_spill] sm:$0xff] %v17496_v31  ;;  %12114 = vrot.lane.b32.xlu0 %v17322_v16, %s12778_s30  ;;  %v17844_v31 = vld [vmem:[#allocation2 + $0x139] sm:$0xff]  ;;  %20230 = vst [vmem:[#allocation114_spill] sm:$0xff] %v17874_v29  ;;  %v11801_v29 = vunpack.i.l.bf16 %v17472_v39 }
 0x424   : > { %12119 = vrot.lane.b32.xlu1 %v17346_v57, %s12778_s30 }
 0x425   : > { %v17502_v37 = vpop.permute.xlu0 %11829 }
 0x426   : > { %20142 = vst [vmem:[#allocation66_spill] sm:$0xff] %v17502_v37  ;;  %v17504_v19 = vpop.permute.xlu1 %11839  ;;  %v17852_v37 = vld [vmem:[#allocation2 + $0x142] sm:$0xff] }
 0x427   : > { %20143 = vst [vmem:[#allocation71_spill] sm:$0xff] %v17504_v19  ;;  %12124 = vrot.lane.b32.xlu0 %v17360_v45, %s12778_s30  ;;  %v17846_v19 = vld [vmem:[#allocation2 + $0x141] sm:$0xff] }
 0x428   : > { %12129 = vrot.lane.b32.xlu1 %v17318_v26, %s12778_s30 }
 0x429   : > { %v17510_v47 = vpop.permute.xlu0 %11844 }
 0x42a   : > { %20144 = vst [vmem:[#allocation63_spill] sm:$0xff] %v17510_v47  ;;  %v17512_v30 = vpop.permute.xlu1 %11849  ;;  %v17886_v47 = vld [vmem:[#allocation2 + $0x180] sm:$0xff] }
 0x42b   : > { %20145 = vst [vmem:[#allocation25_spill] sm:$0xff] %v17512_v30  ;;  %12134 = vrot.lane.b32.xlu0 %v17297_v33, %s12778_s30  ;;  %20232 = vst [vmem:[#allocation116_spill] sm:$0xff] %v17886_v47  ;;  %v11762_v30 = vunpack.i.h.bf16 %v17440_v21  ;;  %v11772_v47 = vunpack.i.h.bf16 %v17448_v42 }
 0x42c   : > { %12139 = vrot.lane.b32.xlu1 %v17373_v55, %s12778_s30 }
 0x42d   : > { %v17518_v57 = vpop.permute.xlu0 %11854 }
 0x42e   : > { %20146 = vst [vmem:[#allocation65_spill] sm:$0xff] %v17518_v57  ;;  %v17520_v16 = vpop.permute.xlu1 %11869 }
 0x42f   : > { %20147 = vst [vmem:[#allocation73_spill] sm:$0xff] %v17520_v16  ;;  %12144 = vrot.lane.b32.xlu0 %v17334_v25, %s12780_s7  ;;  %v17856_v16 = vld [vmem:[#allocation2 + $0x15a] sm:$0xff] }
 0x430   : > { %12149 = vrot.lane.b32.xlu1 %v17369_v32, %s12780_s7  ;;  %20227 = vst [vmem:[#allocation111_spill] sm:$0xff] %v17856_v16 }
 0x431   : > { %v17526_v26 = vpop.permute.xlu0 %11859 }
 0x432   : > { %20148 = vst [vmem:[#allocation20_spill] sm:$0xff] %v17526_v26  ;;  %v17528_v45 = vpop.permute.xlu1 %11874  ;;  %v17854_v26 = vld [vmem:[#allocation2 + $0x152] sm:$0xff] }
 0x433   : > { %20149 = vst [vmem:[#allocation22_spill] sm:$0xff] %v17528_v45  ;;  %12154 = vrot.lane.b32.xlu0 %v17316_v51, %s12780_s7  ;;  %20226 = vst [vmem:[#allocation110_spill] sm:$0xff] %v17854_v26 }
 0x434   : > { %12159 = vrot.lane.b32.xlu1 %v17320_v24, %s12780_s7 }
 0x435   : > { %v17534_v55 = vpop.permute.xlu0 %11864 }
 0x436   : > { %20150 = vst [vmem:[#allocation94_spill] sm:$0xff] %v17534_v55  ;;  %v17536_v33 = vpop.permute.xlu1 %11879  ;;  %v17835_v55 = vld [vmem:[#allocation2 + $0x159] sm:$0xff] }
 0x437   : > { %20151 = vst [vmem:[#allocation24_spill] sm:$0xff] %v17536_v33  ;;  %12164 = vrot.lane.b32.xlu0 %v17328_v48, %s12780_s7  ;;  %20225 = vst [vmem:[#allocation109_spill] sm:$0xff] %v17835_v55  ;;  %v11826_v55 = vunpack.i.l.bf16 %v17488_v61 }
 0x438   : > { %12169 = vrot.lane.b32.xlu1 %v17332_v22, %s12780_s7 }
 0x439   : > { %v17542_v25 = vpop.permute.xlu0 %11884 }
 0x43a   : > { %20152 = vst [vmem:[#allocation68_spill] sm:$0xff] %v17542_v25  ;;  %v17544_v32 = vpop.permute.xlu1 %11899 }
 0x43b   : > { %20153 = vst [vmem:[#allocation26_spill] sm:$0xff] %v17544_v32  ;;  %12174 = vrot.lane.b32.xlu0 %v17336_v14, %s12780_s7 }
 0x43c   : > { %12179 = vrot.lane.b32.xlu1 %v17340_v40, %s12780_s7 }
 0x43d   : > { %v17550_v45 = vpop.permute.xlu0 %11889 }
 0x43e   : > { %20154 = vst [vmem:[#allocation27_spill] sm:$0xff] %v17550_v45  ;;  %v17552_v57 = vpop.permute.xlu1 %11909 }
 0x43f   : > { %20155 = vst [vmem:[#allocation83_spill] sm:$0xff] %v17552_v57  ;;  %12184 = vrot.lane.b32.xlu0 %v17348_v34, %s12780_s7  ;;  %v17831_v34 = vld [vmem:[#allocation2 + $0x171] sm:$0xff] }
 0x440   : > { %12189 = vrot.lane.b32.xlu1 %v17350_v62, %s12780_s7  ;;  %v17825_v62 = vld [vmem:[#allocation2 + $0x150] sm:$0xff]  ;;  %20223 = vst [vmem:[#allocation107_spill] sm:$0xff] %v17831_v34 }
 0x441   : > { %v17558_v33 = vpop.permute.xlu0 %11894  ;;  %20220 = vst [vmem:[#allocation104_spill] sm:$0xff] %v17825_v62 }
 0x442   : > { %20156 = vst [vmem:[#allocation29_spill] sm:$0xff] %v17558_v33  ;;  %v17560_v25 = vpop.permute.xlu1 %11914 }
 0x443   : > { %20157 = vst [vmem:[#allocation76_spill] sm:$0xff] %v17560_v25  ;;  %12194 = vrot.lane.b32.xlu0 %v17358_v4, %s12780_s7  ;;  %v17819_v25 = vld [vmem:[#allocation2 + $0x122] sm:$0xff] }
 0x444   : > { %12199 = vrot.lane.b32.xlu1 %v17356_v1, %s12780_s7 }
 0x445   : > { %v17566_v32 = vpop.permute.xlu0 %11904 }
 0x446   : > { %20158 = vst [vmem:[#allocation86_spill] sm:$0xff] %v17566_v32  ;;  %v17568_v45 = vpop.permute.xlu1 %11919  ;;  %v17817_v32 = vld [vmem:[#allocation2 + $0x129] sm:$0xff] }
 0x447   : > { %20159 = vst [vmem:[#allocation82_spill] sm:$0xff] %v17568_v45  ;;  %12204 = vrot.lane.b32.xlu0 %v17367_v59, %s12780_s7  ;;  %v20164_v59 = vpack.i.bf16 %v16886_v53, %v16878_v6 }
 0x448   : > { %12209 = vrot.lane.b32.xlu1 %v17365_v12, %s12780_s7 }
 0x449   : > { %v17574_v57 = vpop.permute.xlu0 %11924 }
 0x44a   : > { %20160 = vst [vmem:[#allocation30_spill] sm:$0xff] %v17574_v57  ;;  %v17576_v33 = vpop.permute.xlu1 %11929  ;;  %v17801_v57 = vld [vmem:[#allocation2 + $0x121] sm:$0xff] }
 0x44b   : > { %20161 = vst [vmem:[#allocation90_spill] sm:$0xff] %v17576_v33  ;;  %12214 = vrot.lane.b32.xlu0 %v17379_v20, %s12780_s7 }
 0x44c   : > { %12219 = vrot.lane.b32.xlu1 %v17377_v60, %s12780_s7 }
 0x44d   : > { %v17582_v1 = vpop.permute.xlu0 %11934 }
 0x44e   : > { %20162 = vst [vmem:[#allocation92_spill] sm:$0xff] %v17582_v1  ;;  %v17584_v4 = vpop.permute.xlu1 %11939  ;;  %v17799_v1 = vld [vmem:[#allocation2 + $0x128] sm:$0xff] }
 0x44f   : > { %20163 = vst [vmem:[#allocation93_spill] sm:$0xff] %v17584_v4  ;;  %12224 = vrot.lane.b32.xlu0 %v20164_v59, %s12778_s30  ;;  %v17793_v4 = vld [vmem:[#allocation2 + $0xf0] sm:$0xff] }
 0x450   : > { %12229 = vrot.lane.b32.xlu1 %v17407_v11, %s12778_s30 }
 0x451   : > { %v17592_v12 = vpop.permute.xlu0 %11944 }
 0x452   : > { %20165 = vst [vmem:[#allocation64_spill] sm:$0xff] %v17592_v12  ;;  %v17594_v33 = vpop.permute.xlu1 %11949 }
 0x453   : > { %20166 = vst [vmem:[#allocation99_spill] sm:$0xff] %v17594_v33  ;;  %12234 = vrot.lane.b32.xlu0 %v17412_v56, %s12778_s30 }
 0x454   : > { %12239 = vrot.lane.b32.xlu1 %v17062_v44, %s12778_s30 }
 0x455   : > { %v17600_v60 = vpop.permute.xlu0 %11954 }
 0x456   : > { %20167 = vst [vmem:[#allocation97_spill] sm:$0xff] %v17600_v60  ;;  %v17602_v20 = vpop.permute.xlu1 %11959  ;;  %v17827_v60 = vld [vmem:[#allocation2 + $0x158] sm:$0xff] }
 0x457   : > { %20168 = vst [vmem:[#allocation35_spill] sm:$0xff] %v17602_v20  ;;  %12244 = vrot.lane.b32.xlu0 %v17113_v35, %s12778_s30  ;;  %v7642_v20 = vld [vmem:[#allocation2 + $0x51] sm:$0xff]  ;;  %20221 = vst [vmem:[#allocation105_spill] sm:$0xff] %v17827_v60 }
 0x458   : > { %12249 = vrot.lane.b32.xlu1 %v17135_v17, %s12778_s30  ;;  %v12706_v17 = vld [vmem:[%s19222_s3] sm:$0xff]  }
 0x459   : > { %v17608_v6 = vpop.permute.xlu0 %11964  ;;  %10574 = vmatprep.subr.bf16.mxu1 %v12706_v17 }
 0x45a   : > { %20169 = vst [vmem:[#allocation36_spill] sm:$0xff] %v17608_v6  ;;  %v17610_v53 = vpop.permute.xlu1 %11969  ;;  %10575 = vmatpush3.bf16.msra.mxu1 %v12706_v17  ;;  %v7640_v6 = vld [vmem:[#allocation2 + $0x39] sm:$0xff] }
 0x45b   : > { %20170 = vst [vmem:[#allocation100_spill] sm:$0xff] %v17610_v53  ;;  %12254 = vrot.lane.b32.xlu0 %v17162_v7, %s12778_s30  ;;  %v7639_v53 = vld [vmem:[#allocation2 + $0x31] sm:$0xff] }
 0x45c   : > { %12259 = vrot.lane.b32.xlu1 %v17211_v27, %s12778_s30 }
 0x45d   : > { %v17616_v44 = vpop.permute.xlu0 %11974 }
 0x45e   : > { %20171 = vst [vmem:[#allocation38_spill] sm:$0xff] %v17616_v44  ;;  %v17618_v59 = vpop.permute.xlu1 %11979  ;;  %v20180_v44 = vld [vmem:[#allocation4_spill] sm:$0xff] }
 0x45f   : > { %20172 = vst [vmem:[#allocation37_spill] sm:$0xff] %v17618_v59  ;;  %12264 = vrot.lane.b32.xlu0 %v17245_v5, %s12778_s30  ;;  %v12708_v59 = vld [vmem:[%s19222_s3 + $0x10] sm:$0xff]  }
 0x460   : > { %12269 = vrot.lane.b32.xlu1 %v17283_v63, %s12778_s30  ;;  %v12707_v63 = vld [vmem:[%s19222_s3 + $0x8] sm:$0xff]  }
 0x461   : > { %v17624_v35 = vpop.permute.xlu0 %11984  ;;  %10576 = vmatprep.subr.bf16.mxu1 %v12707_v63 }
 0x462   : > { %20173 = vst [vmem:[#allocation40_spill] sm:$0xff] %v17624_v35  ;;  %v17629_v7 = vpop.permute.xlu1 %11989  ;;  %10577 = vmatpush3.bf16.msra.mxu1 %v12707_v63  ;;  %v12308_v63 = vpack.i.bf16 %v7640_v6, %v7639_v53  ;;  %v17813_v35 = vld [vmem:[#allocation2 + $0x138] sm:$0xff] }
 0x463   : > { %20174 = vst [vmem:[#allocation101_spill] sm:$0xff] %v17629_v7  ;;  %12274 = vrot.lane.b32.xlu0 %v17305_v49, %s12778_s30  ;;  %v20177_v49 = vpack.i.bf16 %v16884_v38, %v16882_v3  ;;  %10578 = vmatprep.subr.bf16.mxu1 %v12708_v59  ;;  %20217 = vst [vmem:[#allocation61_spill] sm:$0xff] %v17813_v35  ;;  %v17823_v7 = vld [vmem:[#allocation2 + $0x170] sm:$0xff] }
 0x464   : > { %12279 = vrot.lane.b32.xlu1 %v16893_v52, %s12780_s7  ;;  %20219 = vst [vmem:[#allocation103_spill] sm:$0xff] %v17823_v7  ;;  %v17904_v35 = vld [vmem:[#allocation2 + $0x18a] sm:$0xff] }
 0x465   : > { %v17635_v27 = vpop.permute.xlu0 %11994  ;;  %20237 = vst [vmem:[#allocation121_spill] sm:$0xff] %v17904_v35  ;;  %v20241_v35 = vunpack.i.h.bf16 %v17422_v0 }
 0x466   : > { %20175 = vst [vmem:[#allocation39_spill] sm:$0xff] %v17635_v27  ;;  %v17637_v5 = vpop.permute.xlu1 %11999  ;;  %10579 = vmatpush3.bf16.msra.mxu1 %v12708_v59  ;;  %v17786_v27 = vld [vmem:[#allocation2 + $0x10a] sm:$0xff] }
 0x467   : > { %20176 = vst [vmem:[#allocation67_spill] sm:$0xff] %v17637_v5  ;;  %12284 = vrot.lane.b32.xlu0 %v16919_v41, %s12780_s7  ;;  %v20181_v41 = vpack.i.bf16 %v16917_v28, %v20180_v44  ;;  %v12709_v28 = vld [vmem:[%s19222_s3 + $0x18] sm:$0xff]   ;;  %v17782_v5 = vld [vmem:[#allocation2 + $0x109] sm:$0xff] }
 0x468   : > { %12289 = vrot.lane.b32.xlu1 %v20177_v49, %s12788_s27  ;;  %v7641_v49 = vld [vmem:[#allocation2 + $0x49] sm:$0xff]  ;;  %v7671_v44 = vld [vmem:[#allocation2 + $0x32] sm:$0xff]  ;;  %10580 = vmatprep.subr.bf16.mxu1 %v12709_v28 }
 0x469   : > { %v17648_v52 = vpop.permute.xlu0 %12004  ;;  %v12313_v59 = vpack.i.bf16 %v7642_v20, %v7641_v49  ;;  %v7612_v49 = vld [vmem:[#allocation2 + $0x68] sm:$0xff] }
 0x46a   : > { %20178 = vst [vmem:[#allocation102_spill] sm:$0xff] %v17648_v52  ;;  %v17650_v17 = vpop.permute.xlu1 %12009  ;;  %10581 = vmatpush3.bf16.msra.mxu1 %v12709_v28 }
 0x46b   : > { %20179 = vst [vmem:[#allocation3_spill] sm:$0xff] %v17650_v17  ;;  %12294 = vrot.lane.b32.xlu0 %v20181_v41, %s12788_s27  ;;  %v7672_v41 = vld [vmem:[#allocation2 + $0x3a] sm:$0xff] }
 0x46c   : > { %12299 = vrot.lane.b32.xlu1 %v17407_v11, %s12789_s6  ;;  %v12318_v53 = vpack.i.bf16 %v7672_v41, %v7671_v44  ;;  %v7614_v44 = vld [vmem:[#allocation2 + $0x80] sm:$0xff]  ;;  %v7644_v41 = vld [vmem:[#allocation2 + $0x69] sm:$0xff] }
 0x46d   : > { %v17661_v3 = vpop.permute.xlu0 %12014 }
 0x46e   : > { %20182 = vst [vmem:[#allocation69_spill] sm:$0xff] %v17661_v3  ;;  %v17663_v38 = vpop.permute.xlu1 %12019  ;;  %v7673_v3 = vld [vmem:[#allocation2 + $0x4a] sm:$0xff] }
 0x46f   : > { %20183 = vst [vmem:[#allocation13_spill] sm:$0xff] %v17663_v38  ;;  %12304 = vrot.lane.b32.xlu0 %v17412_v56, %s12789_s6  ;;  %v7674_v38 = vld [vmem:[#allocation2 + $0x52] sm:$0xff] }
 0x470   : > { %12309 = vrot.lane.b32.xlu1 %v12308_v63, %s12790_s10  ;;  %v12323_v52 = vpack.i.bf16 %v7674_v38, %v7673_v3  ;;  %v7611_v3 = vld [vmem:[#allocation2 + $0x60] sm:$0xff] }
 0x471   : > { %v17671_v11 = vpop.permute.xlu0 %12024 }
 0x472   : > { %20184 = vst [vmem:[#allocation8_spill] sm:$0xff] %v17671_v11  ;;  %v17673_v6 = vpop.permute.xlu1 %12029  ;;  %v17770_v11 = vld [vmem:[#allocation2 + $0xf1] sm:$0xff] }
 0x473   : > { %20185 = vst [vmem:[#allocation74_spill] sm:$0xff] %v17673_v6  ;;  %12314 = vrot.lane.b32.xlu0 %v12313_v59, %s12790_s10  ;;  %v7613_v59 = vld [vmem:[#allocation2 + $0x78] sm:$0xff]  ;;  %v7678_v6 = vld [vmem:[#allocation2 + $0x82] sm:$0xff]  ;;  %20212 = vst [vmem:[#allocation95_spill] sm:$0xff] %v17770_v11 }
 0x474   : > { %12319 = vrot.lane.b32.xlu1 %v12318_v53, %s12791_s11  ;;  %v12353_v53 = vpack.i.bf16 %v7614_v44, %v7613_v59  ;;  %v7616_v59 = vld [vmem:[#allocation2 + $0x98] sm:$0xff] }
 0x475   : > { %v17677_v56 = vpop.permute.xlu0 %12034 }
 0x476   : > { %20186 = vst [vmem:[#allocation5_spill] sm:$0xff] %v17677_v56  ;;  %v17679_v17 = vpop.permute.xlu1 %12039  ;;  %v7677_v56 = vld [vmem:[#allocation2 + $0x7a] sm:$0xff] }
 0x477   : > { %20187 = vst [vmem:[#allocation7_spill] sm:$0xff] %v17679_v17  ;;  %12324 = vrot.lane.b32.xlu0 %v12323_v52, %s12791_s11  ;;  %v12348_v52 = vpack.i.bf16 %v7612_v49, %v7611_v3  ;;  %v7675_v49 = vld [vmem:[#allocation2 + $0x62] sm:$0xff]  ;;  %v7676_v3 = vld [vmem:[#allocation2 + $0x6a] sm:$0xff] }
 0x478   : > { %12329 = vrot.lane.b32.xlu1 %v17205_v54, %s12780_s7  ;;  %v7643_v54 = vld [vmem:[#allocation2 + $0x61] sm:$0xff] }
 0x479   : > { %v17684_v20 = vpop.permute.xlu0 %12044 }
 0x47a   : > { %20188 = vst [vmem:[#allocation87_spill] sm:$0xff] %v17684_v20  ;;  %v17686_v63 = vpop.permute.xlu1 %12049  ;;  %v7646_v20 = vld [vmem:[#allocation2 + $0x81] sm:$0xff] }
 0x47b   : > { %20189 = vst [vmem:[#allocation79_spill] sm:$0xff] %v17686_v63  ;;  %12334 = vrot.lane.b32.xlu0 %v17238_v13, %s12780_s7 }
 0x47c   : > { %12339 = vrot.lane.b32.xlu1 %v17316_v51, %s12788_s27  ;;  %v12358_v51 = vpack.i.bf16 %v7644_v41, %v7643_v54  ;;  %v12373_v54 = vpack.i.bf16 %v7678_v6, %v7677_v56 }
 0x47d   : > { %v17692_v28 = vpop.permute.xlu0 %12054 }
 0x47e   : > { %20190 = vst [vmem:[#allocation15_spill] sm:$0xff] %v17692_v28  ;;  %v17694_v38 = vpop.permute.xlu1 %12059  ;;  %v7645_v28 = vld [vmem:[#allocation2 + $0x79] sm:$0xff] }
 0x47f   : > { %20191 = vst [vmem:[#allocation81_spill] sm:$0xff] %v17694_v38  ;;  %12344 = vrot.lane.b32.xlu0 %v17320_v24, %s12788_s27  ;;  %v12363_v38 = vpack.i.bf16 %v7646_v20, %v7645_v28 }
 0x480   : > { %12349 = vrot.lane.b32.xlu1 %v12348_v52, %s12789_s6  ;;  %v12368_v52 = vpack.i.bf16 %v7676_v3, %v7675_v49  ;;  %v7618_v49 = vld [vmem:[#allocation2 + $0xb0] sm:$0xff]  ;;  %v7648_v3 = vld [vmem:[#allocation2 + $0x99] sm:$0xff] }
 0x481   : > { %v17699_v13 = vpop.permute.xlu0 %12064 }
 0x482   : > { %20192 = vst [vmem:[#allocation80_spill] sm:$0xff] %v17699_v13  ;;  %v17701_v63 = vpop.permute.xlu1 %12069  ;;  %v17795_v13 = vld [vmem:[#allocation2 + $0x108] sm:$0xff] }
 0x483   : > { %20193 = vst [vmem:[#allocation85_spill] sm:$0xff] %v17701_v63  ;;  %12354 = vrot.lane.b32.xlu0 %v12353_v53, %s12789_s6  ;;  %v17772_v63 = vld [vmem:[#allocation2 + $0xf9] sm:$0xff] }
 0x484   : > { %12359 = vrot.lane.b32.xlu1 %v12358_v51, %s12790_s10  ;;  %v7617_v51 = vld [vmem:[#allocation2 + $0xa8] sm:$0xff] }
 0x485   : > { %v17705_v24 = vpop.permute.xlu0 %12074 }
 0x486   : > { %20194 = vst [vmem:[#allocation77_spill] sm:$0xff] %v17705_v24  ;;  %v17707_v17 = vpop.permute.xlu1 %12079  ;;  %v17768_v24 = vld [vmem:[#allocation2 + $0xf8] sm:$0xff] }
 0x487   : > { %20195 = vst [vmem:[#allocation11_spill] sm:$0xff] %v17707_v17  ;;  %12364 = vrot.lane.b32.xlu0 %v12363_v38, %s12790_s10  ;;  %v7615_v38 = vld [vmem:[#allocation2 + $0x90] sm:$0xff]  ;;  %v17766_v17 = vld [vmem:[#allocation2 + $0xd8] sm:$0xff] }
 0x488   : > { %12369 = vrot.lane.b32.xlu1 %v12368_v52, %s12791_s11  ;;  %v12398_v53 = vpack.i.bf16 %v7616_v59, %v7615_v38  ;;  %v12403_v52 = vpack.i.bf16 %v7618_v49, %v7617_v51  ;;  %v7679_v38 = vld [vmem:[#allocation2 + $0x92] sm:$0xff]  ;;  %v7680_v59 = vld [vmem:[#allocation2 + $0x9a] sm:$0xff]  ;;  %v17747_v49 = vld [vmem:[#allocation2 + $0xc9] sm:$0xff] }
 0x489   : > { %v17711_v44 = vpop.permute.xlu0 %12084  ;;  %v17745_v51 = vld [vmem:[#allocation2 + $0xc1] sm:$0xff] }
 0x48a   : > { %20196 = vst [vmem:[#allocation21_spill] sm:$0xff] %v17711_v44  ;;  %v17713_v41 = vpop.permute.xlu1 %12089  ;;  %v17757_v44 = vld [vmem:[#allocation2 + $0xd9] sm:$0xff] }
 0x48b   : > { %20197 = vst [vmem:[#allocation96_spill] sm:$0xff] %v17713_v41  ;;  %12374 = vrot.lane.b32.xlu0 %v12373_v54, %s12791_s11  ;;  %20208 = vst [vmem:[#allocation14_spill] sm:$0xff] %v17757_v44  ;;  %v17870_v44 = vld [vmem:[#allocation2 + $0x120] sm:$0xff] }
 0x48c   : > { %12379 = vrot.lane.b32.xlu1 %v17225_v46, %s12780_s7  ;;  %v7647_v46 = vld [vmem:[#allocation2 + $0x91] sm:$0xff] }
 0x48d   : > { %v17718_v20 = vpop.permute.xlu0 %12094 }
 0x48e   : > { %20198 = vst [vmem:[#allocation98_spill] sm:$0xff] %v17718_v20  ;;  %v17720_v28 = vpop.permute.xlu1 %12099 }
 0x48f   : > { %20199 = vst [vmem:[#allocation91_spill] sm:$0xff] %v17720_v28  ;;  %12384 = vrot.lane.b32.xlu0 %v17262_v2, %s12780_s7  ;;  %v7649_v28 = vld [vmem:[#allocation2 + $0xa9] sm:$0xff] }
 0x490   : > { %12389 = vrot.lane.b32.xlu1 %v17328_v48, %s12788_s27  ;;  %v12408_v48 = vpack.i.bf16 %v7648_v3, %v7647_v46  ;;  %v17749_v46 = vld [vmem:[#allocation2 + $0xe0] sm:$0xff] }
 0x491   : > { %v17726_v6 = vpop.permute.xlu0 %12104  ;;  %v17751_v3 = vld [vmem:[#allocation2 + $0xc2] sm:$0xff] }
 0x492   : > { %20200 = vst [vmem:[#allocation23_spill] sm:$0xff] %v17726_v6  ;;  %v17728_v56 = vpop.permute.xlu1 %12109  ;;  %v7650_v6 = vld [vmem:[#allocation2 + $0xb1] sm:$0xff]  ;;  %20205 = vst [vmem:[#allocation50_spill] sm:$0xff] %v17751_v3 }
 0x493   : > { %20201 = vst [vmem:[#allocation19_spill] sm:$0xff] %v17728_v56  ;;  %12394 = vrot.lane.b32.xlu0 %v17332_v22, %s12788_s27  ;;  %v7681_v56 = vld [vmem:[#allocation2 + $0xaa] sm:$0xff]  ;;  %v7682_v22 = vld [vmem:[#allocation2 + $0xb2] sm:$0xff]  ;;  %v12413_v41 = vpack.i.bf16 %v7650_v6, %v7649_v28  ;;  %v17759_v28 = vld [vmem:[#allocation2 + $0xe1] sm:$0xff] }
 0x494   : > { %12399 = vrot.lane.b32.xlu1 %v12398_v53, %s12789_s6  ;;  %v17741_v53 = vld [vmem:[#allocation2 + $0xc0] sm:$0xff]  ;;  %20209 = vst [vmem:[#allocation18_spill] sm:$0xff] %v17759_v28  ;;  %v12423_v12 = vpack.i.bf16 %v7682_v22, %v7681_v56  ;;  %v17829_v56 = vld [vmem:[#allocation2 + $0x169] sm:$0xff]  ;;  %v17833_v22 = vld [vmem:[#allocation2 + $0x151] sm:$0xff] }
 0x495   : > { %v17733_v2 = vpop.permute.xlu0 %12114  ;;  %v17761_v6 = vld [vmem:[#allocation2 + $0xda] sm:$0xff]  ;;  %20222 = vst [vmem:[#allocation106_spill] sm:$0xff] %v17829_v56  ;;  %20224 = vst [vmem:[#allocation108_spill] sm:$0xff] %v17833_v22  ;;  %v17848_v3 = vld [vmem:[#allocation2 + $0x12a] sm:$0xff]  ;;  %v11797_v56 = vunpack.i.h.bf16 %v17470_v36 }
 0x496   : > { %20202 = vst [vmem:[#allocation16_spill] sm:$0xff] %v17733_v2  ;;  %v17735_v54 = vpop.permute.xlu1 %12119  ;;  %v17743_v2 = vld [vmem:[#allocation2 + $0xc8] sm:$0xff]  ;;  %20210 = vst [vmem:[#allocation84_spill] sm:$0xff] %v17761_v6  ;;  %v17872_v28 = vld [vmem:[#allocation2 + $0x172] sm:$0xff]  ;;  %v11796_v6 = vunpack.i.l.bf16 %v17470_v36  ;;  %v11802_v36 = vunpack.i.h.bf16 %v17472_v39 }
 0x497   : > { %20203 = vst [vmem:[#allocation88_spill] sm:$0xff] %v17735_v54  ;;  %12404 = vrot.lane.b32.xlu0 %v12403_v52, %s12789_s6  ;;  %v17753_v52 = vld [vmem:[#allocation2 + $0xca] sm:$0xff]  ;;  %v12418_v54 = vpack.i.bf16 %v7680_v59, %v7679_v38  ;;  %v17776_v38 = vld [vmem:[#allocation2 + $0xf2] sm:$0xff]  ;;  %v17778_v59 = vld [vmem:[#allocation2 + $0xfa] sm:$0xff]  ;;  %v9144_v39 = vsel %vm2474_vm0, %v20241_v35, %v11797_v56 }
 0x498   : > { %12409 = vrot.lane.b32.xlu1 %v12408_v48, %s12790_s10  ;;  %20206 = vst [vmem:[#allocation78_spill] sm:$0xff] %v17753_v52  ;;  %20213 = vst [vmem:[#allocation48_spill] sm:$0xff] %v17776_v38  ;;  %v17850_v52 = vld [vmem:[#allocation2 + $0x13a] sm:$0xff] }
 0x499   : > { %v17739_v20 = vpop.permute.xlu0 %12124  ;;  %20214 = vst [vmem:[#allocation32_spill] sm:$0xff] %v17778_v59  ;;  %20229 = vst [vmem:[#allocation113_spill] sm:$0xff] %v17872_v28  ;;  %v17888_v38 = vld [vmem:[#allocation2 + $0x181] sm:$0xff]  ;;  %v17890_v59 = vld [vmem:[#allocation2 + $0x189] sm:$0xff] }
 0x49a   : > { %20204 = vst [vmem:[#allocation31_spill] sm:$0xff] %v17739_v20  ;;  %v17755_v48 = vpop.permute.xlu1 %12129  ;;  %v17763_v20 = vld [vmem:[#allocation2 + $0xe2] sm:$0xff]  ;;  %20233 = vst [vmem:[#allocation117_spill] sm:$0xff] %v17888_v38  ;;  %v11771_v38 = vunpack.i.l.bf16 %v17448_v42  ;;  %v20240_v42 = vpack.i.bf16 %v17743_v2, %v17741_v53  ;;  %v20244_v28 = vld [vmem:[#allocation55_spill] sm:$0xff] }
 0x49b   : > { %20207 = vst [vmem:[#allocation28_spill] sm:$0xff] %v17755_v48  ;;  %20211 = vst [vmem:[#allocation33_spill] sm:$0xff] %v17763_v20  ;;  %12414 = vrot.lane.b32.xlu0 %v12413_v41, %s12790_s10  ;;  %v17774_v48 = vld [vmem:[#allocation2 + $0x110] sm:$0xff]  ;;  %v11761_v20 = vunpack.i.l.bf16 %v17440_v21  ;;  %v11776_v21 = vunpack.i.l.bf16 %v17450_v8  ;;  %v11787_v26 = vunpack.i.h.bf16 %v20244_v28  ;;  %v11786_v16 = vunpack.i.l.bf16 %v20244_v28  ;;  %v20245_v2 = vld [vmem:[#allocation56_spill] sm:$0xff] }
 0x49c   : > { %12419 = vrot.lane.b32.xlu1 %v12418_v54, %s12791_s11  ;;  %v17784_v41 = vld [vmem:[#allocation2 + $0x111] sm:$0xff]  ;;  %20234 = vst [vmem:[#allocation118_spill] sm:$0xff] %v17890_v59  ;;  %v11777_v59 = vunpack.i.h.bf16 %v17450_v8  ;;  %v11816_v8 = vunpack.i.l.bf16 %v17480_v50  ;;  %v20249_v28 = vpack.i.bf16 %v17749_v46, %v17766_v17 }
 0x49d   : > { %v17791_v33 = vpop.permute.xlu0 %12134  ;;  %v17797_v54 = vld [vmem:[#allocation2 + $0x112] sm:$0xff] }
 0x49e   : > { %20215 = vst [vmem:[#allocation34_spill] sm:$0xff] %v17791_v33  ;;  %v17803_v45 = vpop.permute.xlu1 %12139  ;;  %v17815_v33 = vld [vmem:[#allocation2 + $0x140] sm:$0xff] }
 0x49f   : > { %20216 = vst [vmem:[#allocation51_spill] sm:$0xff] %v17803_v45  ;;  %v17821_v45 = vld [vmem:[#allocation2 + $0x168] sm:$0xff]  ;;  %12424 = vrot.lane.b32.xlu0 %v12423_v12, %s12791_s11 }
 0x4a0   : > { %20218 = vst [vmem:[#allocation4_spill] sm:$0xff] %v17821_v45  ;;  %v17858_v12 = vld [vmem:[#allocation2 + $0x16a] sm:$0xff]  ;;  %12429 = vrot.lane.b32.xlu1 %v17266_v10, %s12780_s7 }
 0x4a1   : > { %20228 = vst [vmem:[#allocation112_spill] sm:$0xff] %v17858_v12  ;;  %v17876_v58 = vpop.permute.xlu0 %12144  ;;  %v20242_v12 = vunpack.i.l.bf16 %v17422_v0  ;;  %v20247_v0 = vunpack.i.h.bf16 %v17432_v9 }
 0x4a2   : > { %20231 = vst [vmem:[#allocation115_spill] sm:$0xff] %v17876_v58  ;;  %v17892_v11 = vpop.permute.xlu1 %12149  ;;  %v17902_v58 = vld [vmem:[#allocation2 + $0x182] sm:$0xff] }
 0x4a3   : > { %20235 = vst [vmem:[#allocation119_spill] sm:$0xff] %v17892_v11  ;;  %20236 = vst [vmem:[#allocation120_spill] sm:$0xff] %v17902_v58  ;;  %12434 = vrot.lane.b32.xlu0 %v17276_v23, %s12780_s7  ;;  %v11767_v23 = vunpack.i.h.bf16 %v17442_v18  ;;  %v11766_v11 = vunpack.i.l.bf16 %v17442_v18  ;;  %v11817_v58 = vunpack.i.h.bf16 %v17480_v50  ;;  %v9146_v35 = vsel %vm2474_vm0, %v20247_v0, %v11802_v36 }
 0x4a4   : > { %12439 = vrot.lane.b32.xlu1 %v17336_v14, %s12788_s27  ;;  %v11812_v14 = vunpack.i.h.bf16 %v17486_v43  ;;  %v20248_v50 = vunpack.i.l.bf16 %v17432_v9 }
 0x4a5   : > { %v17929_v34 = vpop.permute.xlu0 %12154  ;;  %v9150_v9 = vsel %vm2474_vm0, %v11762_v30, %v11817_v58 }
 0x4a6   : > { %20238 = vst [vmem:[#allocation122_spill] sm:$0xff] %v17929_v34  ;;  %v17937_v10 = vpop.permute.xlu1 %12159 }
 0x4a7   : > { %20239 = vst [vmem:[#allocation123_spill] sm:$0xff] %v17937_v10  ;;  %12444 = vrot.lane.b32.xlu0 %v17340_v40, %s12788_s27  ;;  %v9143_v40 = vsel %vm2474_vm0, %v20242_v12, %v11796_v6  ;;  %v9145_v12 = vsel %vm2474_vm0, %v20248_v50, %v11801_v29  ;;  %v20250_v50 = vpack.i.bf16 %v17747_v49, %v17745_v51  ;;  %v20256_v49 = vld [vmem:[#allocation66_spill] sm:$0xff] }
 0x4a8   : > { %12449 = vrot.lane.b32.xlu1 %v20240_v42, %s12789_s6  ;;  %v11811_v42 = vunpack.i.l.bf16 %v17486_v43  ;;  %v17982_v43 = vsel %vm2529_vm1, %v9144_v39, %v11797_v56  ;;  %v17985_v53 = vsel %vm2529_vm1, %v9143_v40, %v11796_v6  ;;  %v20253_v56 = vld [vmem:[#allocation17_spill] sm:$0xff]  ;;  %v18005_v30 = vsel %vm2529_vm1, %v9145_v12, %v11801_v29  ;;  %v20260_v29 = vld [vmem:[#allocation14_spill] sm:$0xff] }
 0x4a9   : > { %v17961_v18 = vpop.permute.xlu0 %12164  ;;  %v11822_v39 = vunpack.i.h.bf16 %v20253_v56  ;;  %v11821_v6 = vunpack.i.l.bf16 %v20253_v56 }
 0x4aa   : > { %20243 = vst [vmem:[#allocation124_spill] sm:$0xff] %v17961_v18  ;;  %v17967_v22 = vpop.permute.xlu1 %12169  ;;  %v11827_v18 = vunpack.i.h.bf16 %v17488_v61  ;;  %v9149_v61 = vsel %vm2474_vm0, %v11761_v20, %v11816_v8 }
 0x4ab   : > { %20246 = vst [vmem:[#allocation55_spill] sm:$0xff] %v17967_v22  ;;  %12454 = vrot.lane.b32.xlu0 %v20249_v28, %s12789_s6  ;;  %v20251_v22 = vld [vmem:[#allocation53_spill] sm:$0xff]  ;;  %v18002_v28 = vsel %vm2529_vm1, %v9146_v35, %v11802_v36  ;;  %v11831_v36 = vunpack.i.l.bf16 %v20256_v49  ;;  %v20259_v35 = vld [vmem:[#allocation18_spill] sm:$0xff] }
 0x4ac   : > { %12459 = vrot.lane.b32.xlu1 %v20250_v50, %s12790_s10  ;;  %v20252_v17 = vunpack.i.h.bf16 %v20251_v22  ;;  %v20255_v51 = vunpack.i.l.bf16 %v20251_v22  ;;  %v11832_v50 = vunpack.i.h.bf16 %v20256_v49  ;;  %v9154_v56 = vsel %vm2474_vm0, %v11772_v47, %v11827_v18  ;;  %v20262_v47 = vld [vmem:[#allocation78_spill] sm:$0xff] }
 0x4ad   : > { %v17999_v40 = vpop.permute.xlu0 %12174  ;;  %v20261_v12 = vpack.i.bf16 %v20259_v35, %v20260_v29  ;;  %v9152_v35 = vsel %vm2474_vm0, %v11767_v23, %v11822_v39 }
 0x4ae   : > { %v9148_v46 = vsel %vm2474_vm0, %v20252_v17, %v11812_v14  ;;  %20254 = vst [vmem:[#allocation56_spill] sm:$0xff] %v17999_v40  ;;  %v9147_v20 = vsel %vm2474_vm0, %v20255_v51, %v11811_v42  ;;  %v18011_v0 = vpop.permute.xlu1 %12179  ;;  %v20258_v17 = vld [vmem:[#allocation59_spill] sm:$0xff]  ;;  %v9153_v40 = vsel %vm2474_vm0, %v11771_v38, %v11826_v55  ;;  %v18023_v51 = vsel %vm2529_vm1, %v9150_v9, %v11817_v58  ;;  %v20263_v38 = vld [vmem:[#allocation50_spill] sm:$0xff] }
 0x4af   : > { %20257 = vst [vmem:[#allocation53_spill] sm:$0xff] %v18011_v0  ;;  %v11807_v10 = vunpack.i.h.bf16 %v20258_v17  ;;  %12464 = vrot.lane.b32.xlu0 %v20261_v12, %s12790_s10  ;;  %v11806_v22 = vunpack.i.l.bf16 %v20258_v17  ;;  %v18026_v0 = vsel %vm2529_vm1, %v9149_v61, %v11816_v8  ;;  %v18029_v45 = vsel %vm2529_vm1, %v9148_v46, %v11812_v14  ;;  %v20265_v58 = vld [vmem:[#allocation71_spill] sm:$0xff] }
 0x4b0   : > { %v20264_v49 = vpack.i.bf16 %v20262_v47, %v20263_v38  ;;  %v18036_v7 = vsel %vm2529_vm1, %v9147_v20, %v11811_v42  ;;  %v9151_v17 = vsel %vm2474_vm0, %v11766_v11, %v11821_v6  ;;  %v11842_v9 = vunpack.i.h.bf16 %v20265_v58  ;;  %v20268_v20 = vld [vmem:[#allocation62_spill] sm:$0xff]  ;;  %v20269_v12 = vld [vmem:[#allocation63_spill] sm:$0xff] }
 0x4b1   : > { %v18041_v29 = vpop.permute.xlu0 %12184  ;;  %v18044_v8 = vsel %vm2529_vm1, %v9154_v56, %v11827_v18  ;;  %v18047_v14 = vsel %vm2529_vm1, %v9153_v40, %v11826_v55  ;;  %v9156_v61 = vsel %vm2474_vm0, %v11777_v59, %v11832_v50  ;;  %v11841_v46 = vunpack.i.l.bf16 %v20265_v58  ;;  %v20270_v18 = vld [vmem:[#allocation33_spill] sm:$0xff]  ;;  %v20271_v56 = vld [vmem:[#allocation84_spill] sm:$0xff] }
 0x4b2   : > { %12469 = vrot.lane.b32.xlu1 %v20264_v49, %s12791_s11  ;;  %20266 = vst [vmem:[#allocation17_spill] sm:$0xff] %v18041_v29  ;;  %v18051_v42 = vpop.permute.xlu1 %12189  ;;  %v11837_v23 = vunpack.i.h.bf16 %v20268_v20  ;;  %v9155_v11 = vsel %vm2474_vm0, %v11776_v21, %v11831_v36  ;;  %v11847_v47 = vunpack.i.h.bf16 %v20269_v12  ;;  %v11846_v38 = vunpack.i.l.bf16 %v20269_v12  ;;  %v20273_v58 = vld [vmem:[#allocation25_spill] sm:$0xff]  ;;  %v20274_v21 = vld [vmem:[#allocation6_spill] sm:$0xff] }
 0x4b3   : > { %20267 = vst [vmem:[#allocation66_spill] sm:$0xff] %v18051_v42  ;;  %v20272_v49 = vpack.i.bf16 %v20270_v18, %v20271_v56  ;;  %v18062_v55 = vsel %vm2529_vm1, %v9152_v35, %v11822_v39  ;;  %v18065_v59 = vsel %vm2529_vm1, %v9151_v17, %v11821_v6  ;;  %v11836_v40 = vunpack.i.l.bf16 %v20268_v20  ;;  %v20275_v56 = vld [vmem:[#allocation73_spill] sm:$0xff] }
 0x4b4   : > { %v11852_v42 = vunpack.i.h.bf16 %v20273_v58  ;;  %v18072_v12 = vsel %vm2529_vm1, %v9156_v61, %v11832_v50  ;;  %v9158_v29 = vsel %vm2474_vm0, %v11787_v26, %v11842_v9  ;;  %v11851_v18 = vunpack.i.l.bf16 %v20273_v58  ;;  %v20279_v58 = vld [vmem:[#allocation94_spill] sm:$0xff] }
 0x4b5   : > { %12474 = vrot.lane.b32.xlu0 %v20272_v49, %s12791_s11  ;;  %v11872_v39 = vunpack.i.h.bf16 %v20275_v56  ;;  %v18077_v35 = vpop.permute.xlu0 %12194  ;;  %v18080_v6 = vsel %vm2529_vm1, %v9155_v11, %v11831_v36  ;;  %v9157_v17 = vsel %vm2474_vm0, %v11786_v16, %v11841_v46  ;;  %v11871_v20 = vunpack.i.l.bf16 %v20275_v56  ;;  %v20277_v49 = vld [vmem:[#allocation20_spill] sm:$0xff]  ;;  %v20281_v11 = vld [vmem:[#allocation65_spill] sm:$0xff] }
 0x4b6   : > { %12479 = vrot.lane.b32.xlu1 %v20274_v21, %s12780_s7  ;;  %20276 = vst [vmem:[#allocation59_spill] sm:$0xff] %v18077_v35  ;;  %v11862_v21 = vunpack.i.h.bf16 %v20277_v49  ;;  %v18085_v34 = vpop.permute.xlu1 %12199  ;;  %v9160_v50 = vsel %vm2474_vm0, %v11807_v10, %v11847_v47  ;;  %v9159_v26 = vsel %vm2474_vm0, %v11806_v22, %v11846_v38  ;;  %v11861_v61 = vunpack.i.l.bf16 %v20277_v49  ;;  %v20280_v35 = vld [vmem:[#allocation10_spill] sm:$0xff]  ;;  %v20282_v10 = vld [vmem:[#allocation60_spill] sm:$0xff] }
 0x4b7   : > { %20278 = vst [vmem:[#allocation18_spill] sm:$0xff] %v18085_v34  ;;  %v11867_v62 = vunpack.i.h.bf16 %v20279_v58  ;;  %v18094_v36 = vsel %vm2529_vm1, %v9158_v29, %v11842_v9  ;;  %v9162_v16 = vsel %vm2474_vm0, %v11837_v23, %v11852_v42  ;;  %v11857_v56 = vunpack.i.h.bf16 %v20281_v11 }
 0x4b8   : > { %v11866_v34 = vunpack.i.l.bf16 %v20279_v58  ;;  %v18102_v22 = vsel %vm2529_vm1, %v9157_v17, %v11841_v46  ;;  %v9161_v49 = vsel %vm2474_vm0, %v11836_v40, %v11851_v18  ;;  %v11856_v60 = vunpack.i.l.bf16 %v20281_v11 }
 0x4b9   : > { %12484 = vrot.lane.b32.xlu0 %v20280_v35, %s12780_s7  ;;  %v20283_v35 = vunpack.i.h.bf16 %v20245_v2  ;;  %v18109_v29 = vpop.permute.xlu0 %12204  ;;  %v18112_v23 = vsel %vm2529_vm1, %v9160_v50, %v11847_v47  ;;  %v18115_v58 = vsel %vm2529_vm1, %v9159_v26, %v11846_v38  ;;  %v9164_v40 = vsel %vm2474_vm0, %v11857_v56, %v11862_v21  ;;  %v20288_v50 = vld [vmem:[#allocation24_spill] sm:$0xff]  ;;  %v20289_v26 = vld [vmem:[#allocation42_spill] sm:$0xff] }
 0x4ba   : > { %12489 = vrot.lane.b32.xlu1 %v20282_v10, %s12788_s27  ;;  %20284 = vst [vmem:[#allocation14_spill] sm:$0xff] %v18109_v29  ;;  %v20285_v10 = vunpack.i.l.bf16 %v20245_v2  ;;  %v18121_v17 = vpop.permute.xlu1 %12209  ;;  %v18124_v11 = vsel %vm2529_vm1, %v9162_v16, %v11852_v42  ;;  %v20287_v29 = vunpack.i.h.bf16 %v17458_v15  ;;  %v11882_v38 = vunpack.i.h.bf16 %v20288_v50 }
 0x4bb   : > { %v9174_v9 = vsel %vm2474_vm0, %v20283_v35, %v11872_v39  ;;  %20286 = vst [vmem:[#allocation78_spill] sm:$0xff] %v18121_v17  ;;  %v9163_v35 = vsel %vm2474_vm0, %v11856_v60, %v11861_v61  ;;  %v18134_v2 = vsel %vm2529_vm1, %v9161_v49, %v11851_v18  ;;  %v20291_v42 = vunpack.i.l.bf16 %v17458_v15  ;;  %v20294_v49 = vld [vmem:[#allocation22_spill] sm:$0xff] }
 0x4bc   : > { %v9173_v46 = vsel %vm2474_vm0, %v20285_v10, %v11871_v20  ;;  %v9172_v47 = vsel %vm2474_vm0, %v20287_v29, %v11867_v62  ;;  %v18137_v56 = vsel %vm2529_vm1, %v9174_v9, %v11872_v39  ;;  %v11881_v60 = vunpack.i.l.bf16 %v20288_v50 }
 0x4bd   : > { %12494 = vrot.lane.b32.xlu0 %v20289_v26, %s12788_s27  ;;  %20290 = vst [vmem:[#allocation50_spill] sm:$0xff] %v18137_v56  ;;  %v9171_v16 = vsel %vm2474_vm0, %v20291_v42, %v11866_v34  ;;  %v20292_v29 = vpack.i.bf16 %v17768_v24, %v17793_v4  ;;  %v18148_v10 = vsel %vm2529_vm1, %v9173_v46, %v11871_v20  ;;  %v11877_v39 = vunpack.i.h.bf16 %v20294_v49  ;;  %v18155_v15 = vpop.permute.xlu0 %12214  ;;  %v20298_v4 = vld [vmem:[#allocation27_spill] sm:$0xff]  ;;  %v20301_v42 = vld [vmem:[#allocation76_spill] sm:$0xff] }
 0x4be   : > { %20293 = vst [vmem:[#allocation71_spill] sm:$0xff] %v18148_v10  ;;  %v18151_v18 = vsel %vm2529_vm1, %v9164_v40, %v11862_v21  ;;  %v11876_v9 = vunpack.i.l.bf16 %v20294_v49  ;;  %20295 = vst [vmem:[#allocation62_spill] sm:$0xff] %v18155_v15  ;;  %v18158_v26 = vsel %vm2529_vm1, %v9163_v35, %v11861_v61  ;;  %v18161_v50 = vsel %vm2529_vm1, %v9172_v47, %v11867_v62  ;;  %v18165_v46 = vpop.permute.xlu1 %12219  ;;  %v20303_v35 = vld [vmem:[#allocation26_spill] sm:$0xff] }
 0x4bf   : > { %12499 = vrot.lane.b32.xlu1 %v20292_v29, %s12789_s6  ;;  %20296 = vst [vmem:[#allocation63_spill] sm:$0xff] %v18158_v26  ;;  %20297 = vst [vmem:[#allocation33_spill] sm:$0xff] %v18161_v50  ;;  %v11892_v24 = vunpack.i.h.bf16 %v20298_v4  ;;  %v11891_v20 = vunpack.i.l.bf16 %v20298_v4  ;;  %v18168_v21 = vsel %vm2529_vm1, %v9171_v16, %v11866_v34  ;;  %v9166_v40 = vsel %vm2474_vm0, %v11877_v39, %v11882_v38  ;;  %v20304_v4 = vld [vmem:[#allocation68_spill] sm:$0xff]  ;;  %v20305_v16 = vld [vmem:[#allocation95_spill] sm:$0xff] }
 0x4c0   : > { %20299 = vst [vmem:[#allocation84_spill] sm:$0xff] %v18165_v46  ;;  %20300 = vst [vmem:[#allocation25_spill] sm:$0xff] %v18168_v21  ;;  %v11917_v29 = vunpack.i.h.bf16 %v20301_v42  ;;  %v11916_v49 = vunpack.i.l.bf16 %v20301_v42  ;;  %v20302_v62 = vpack.i.bf16 %v17774_v48, %v17795_v13  ;;  %v9165_v61 = vsel %vm2474_vm0, %v11876_v9, %v11881_v60  ;;  %v20307_v46 = vld [vmem:[#allocation83_spill] sm:$0xff]  ;;  %v20308_v48 = vld [vmem:[#allocation29_spill] sm:$0xff] }
 0x4c1   : > { %v11902_v47 = vunpack.i.h.bf16 %v20303_v35  ;;  %v11887_v15 = vunpack.i.h.bf16 %v20304_v4  ;;  %v11886_v34 = vunpack.i.l.bf16 %v20304_v4  ;;  %v20306_v39 = vpack.i.bf16 %v17772_v63, %v20305_v16  ;;  %v18189_v9 = vpop.permute.xlu0 %12224  ;;  %v20315_v26 = vld [vmem:[#allocation48_spill] sm:$0xff] }
 0x4c2   : > { %12504 = vrot.lane.b32.xlu0 %v20302_v62, %s12789_s6  ;;  %v11901_v42 = vunpack.i.l.bf16 %v20303_v35  ;;  %v11912_v10 = vunpack.i.h.bf16 %v20307_v46  ;;  %v11911_v13 = vunpack.i.l.bf16 %v20307_v46  ;;  %v11897_v62 = vunpack.i.h.bf16 %v20308_v48  ;;  %v18197_v16 = vpop.permute.xlu1 %12229  ;;  %v20310_v46 = vld [vmem:[#allocation86_spill] sm:$0xff] }
 0x4c3   : > { %12509 = vrot.lane.b32.xlu1 %v20306_v39, %s12790_s10  ;;  %v18192_v21 = vsel %vm2529_vm1, %v9166_v40, %v11882_v38  ;;  %v9168_v4 = vsel %vm2474_vm0, %v11887_v15, %v11892_v24  ;;  %v9167_v56 = vsel %vm2474_vm0, %v11886_v34, %v11891_v20  ;;  %v11896_v63 = vunpack.i.l.bf16 %v20308_v48  ;;  %v20313_v34 = vld [vmem:[#allocation82_spill] sm:$0xff] }
 0x4c4   : > { %20309 = vst [vmem:[#allocation6_spill] sm:$0xff] %v18192_v21  ;;  %v9169_v35 = vsel %vm2474_vm0, %v11911_v13, %v11916_v49  ;;  %v9170_v39 = vsel %vm2474_vm0, %v11912_v10, %v11917_v29  ;;  %v11907_v50 = vunpack.i.h.bf16 %v20310_v46  ;;  %v11906_v17 = vunpack.i.l.bf16 %v20310_v46  ;;  %v20314_v10 = vld [vmem:[#allocation32_spill] sm:$0xff] }
 0x4c5   : > { %v20311_v38 = vpack.i.bf16 %v17784_v41, %v17782_v5  ;;  %v18208_v15 = vsel %vm2529_vm1, %v9165_v61, %v11881_v60  ;;  %v9210_v40 = vsel %vm2584_vm2, %v18002_v28, %v11902_v47  ;;  %v11922_v48 = vunpack.i.h.bf16 %v20313_v34  ;;  %v18228_v60 = vpop.permute.xlu0 %12234 }
 0x4c6   : > { %20312 = vst [vmem:[#allocation73_spill] sm:$0xff] %v18208_v15  ;;  %v11921_v13 = vunpack.i.l.bf16 %v20313_v34  ;;  %v20316_v21 = vpack.i.bf16 %v20314_v10, %v20315_v26  ;;  %v9209_v46 = vsel %vm2584_vm2, %v18005_v30, %v11901_v42  ;;  %v18221_v5 = vsel %vm2529_vm1, %v9168_v4, %v11892_v24  ;;  %v18239_v47 = vpop.permute.xlu1 %12239 }
 0x4c7   : > { %12514 = vrot.lane.b32.xlu0 %v20311_v38, %s12790_s10  ;;  %20317 = vst [vmem:[#allocation20_spill] sm:$0xff] %v18221_v5  ;;  %v18224_v41 = vsel %vm2529_vm1, %v9167_v56, %v11891_v20  ;;  %v9208_v28 = vsel %vm2584_vm2, %v17982_v43, %v11897_v62  ;;  %v18231_v61 = vsel %vm2529_vm1, %v9169_v35, %v11916_v49  ;;  %v20322_v20 = vld [vmem:[#allocation90_spill] sm:$0xff]  ;;  %vm9497_vm0 = vcmask 392192  }
 0x4c8   : > { %12519 = vrot.lane.b32.xlu1 %v20316_v21, %s12791_s11  ;;  %20318 = vst [vmem:[#allocation94_spill] sm:$0xff] %v18224_v41  ;;  %20319 = vst [vmem:[#allocation10_spill] sm:$0xff] %v18231_v61  ;;  %v18234_v26 = vsel %vm2529_vm1, %v9170_v39, %v11917_v29  ;;  %v9207_v30 = vsel %vm2584_vm2, %v17985_v53, %v11896_v63  ;;  %v20321_v21 = vld [vmem:[#allocation30_spill] sm:$0xff]  ;;  %v9212_v56 = vsel %vm2584_vm2, %v18029_v45, %v11907_v50  ;;  %v20324_v50 = vld [vmem:[#allocation92_spill] sm:$0xff]  ;;  %vm9530_vm1 = vcmask 424960  }
 0x4c9   : > { %20320 = vst [vmem:[#allocation65_spill] sm:$0xff] %v18234_v26  ;;  %v11927_v24 = vunpack.i.h.bf16 %v20321_v21  ;;  %v9211_v43 = vsel %vm2584_vm2, %v18036_v7, %v11906_v17  ;;  %v11932_v42 = vunpack.i.h.bf16 %v20322_v20  ;;  %v11926_v49 = vunpack.i.l.bf16 %v20321_v21  ;;  %v20325_v7 = vld [vmem:[#allocation75_spill] sm:$0xff]  ;;  %v20326_v17 = vld [vmem:[#allocation93_spill] sm:$0xff]  ;;  %v18263_v38 = vpop.permute.xlu0 %12244  ;;  %v20342_v61 = vld [vmem:[#allocation80_spill] sm:$0xff] }
 0x4ca   : > { %v20323_v29 = vpack.i.bf16 %v17797_v54, %v17786_v27  ;;  %v9214_v53 = vsel %vm2584_vm2, %v18023_v51, %v11922_v48  ;;  %v9213_v62 = vsel %vm2584_vm2, %v18026_v0, %v11921_v13  ;;  %v11931_v45 = vunpack.i.l.bf16 %v20322_v20  ;;  %v20327_v54 = vld [vmem:[#allocation64_spill] sm:$0xff]  ;;  %v20328_v51 = vld [vmem:[#allocation99_spill] sm:$0xff]  ;;  %v18270_v10 = vpop.permute.xlu1 %12249 }
 0x4cb   : > { %v11937_v4 = vunpack.i.h.bf16 %v20324_v50  ;;  %v11942_v63 = vunpack.i.h.bf16 %v20326_v17  ;;  %v11941_v35 = vunpack.i.l.bf16 %v20326_v17  ;;  %v11936_v27 = vunpack.i.l.bf16 %v20324_v50 }
 0x4cc   : > { %12524 = vrot.lane.b32.xlu0 %v20323_v29, %s12791_s11  ;;  %12529 = vrot.lane.b32.xlu1 %v20325_v7, %s12778_s30  ;;  %v11947_v39 = vunpack.i.h.bf16 %v20327_v54  ;;  %v9216_v0 = vsel %vm2584_vm2, %v18062_v55, %v11927_v24  ;;  %v11952_v34 = vunpack.i.h.bf16 %v20328_v51  ;;  %v11951_v48 = vunpack.i.l.bf16 %v20328_v51  ;;  %v20329_v29 = vld [vmem:[#allocation40_spill] sm:$0xff] }
 0x4cd   : > { %v11946_v13 = vunpack.i.l.bf16 %v20327_v54  ;;  %v9218_v21 = vsel %vm2584_vm2, %v18044_v8, %v11932_v42  ;;  %v9215_v20 = vsel %vm2584_vm2, %v18065_v59, %v11926_v49  ;;  %v11987_v50 = vunpack.i.h.bf16 %v20329_v29  ;;  %v20330_v55 = vld [vmem:[#allocation12_spill] sm:$0xff]  ;;  %v20331_v54 = vld [vmem:[#allocation101_spill] sm:$0xff]  ;;  %v20332_v42 = vld [vmem:[#allocation58_spill] sm:$0xff] }
 0x4ce   : > { %v11986_v7 = vunpack.i.l.bf16 %v20329_v29  ;;  %v9217_v24 = vsel %vm2584_vm2, %v18047_v14, %v11931_v45  ;;  %v9220_v17 = vsel %vm2584_vm2, %v18072_v12, %v11937_v4  ;;  %v11992_v51 = vunpack.i.h.bf16 %v20331_v54  ;;  %v18298_v12 = vpop.permute.xlu0 %12254 }
 0x4cf   : > { %v11991_v8 = vunpack.i.l.bf16 %v20331_v54  ;;  %v9222_v59 = vsel %vm2584_vm2, %v18094_v36, %v11942_v63  ;;  %v9221_v49 = vsel %vm2584_vm2, %v18102_v22, %v11941_v35  ;;  %v9219_v29 = vsel %vm2584_vm2, %v18080_v6, %v11936_v27  ;;  %v20333_v22 = vld [vmem:[#allocation97_spill] sm:$0xff]  ;;  %v18313_v63 = vpop.permute.xlu1 %12259  ;;  %v20334_v27 = vld [vmem:[#allocation39_spill] sm:$0xff] }
 0x4d0   : > { %12534 = vrot.lane.b32.xlu0 %v20330_v55, %s12780_s7  ;;  %12539 = vrot.lane.b32.xlu1 %v20332_v42, %s12780_s7  ;;  %v18296_v14 = vsel %vm2584_vm2, %v18112_v23, %v11947_v39  ;;  %v18302_v45 = vsel %vm2584_vm2, %v18124_v11, %v11952_v34  ;;  %v18306_v4 = vsel %vm2584_vm2, %v18134_v2, %v11951_v48  ;;  %v11997_v39 = vunpack.i.h.bf16 %v20334_v27  ;;  %v20335_v34 = vld [vmem:[#allocation9_spill] sm:$0xff]  ;;  %v20336_v48 = vld [vmem:[#allocation67_spill] sm:$0xff] }
 0x4d1   : > { %v18310_v36 = vsel %vm2584_vm2, %v18115_v58, %v11946_v13  ;;  %v9239_v23 = vsel %vm2639_vm3, %v9207_v30, %v11986_v7  ;;  %v9240_v35 = vsel %vm2639_vm3, %v9208_v28, %v11987_v50  ;;  %v11996_v11 = vunpack.i.l.bf16 %v20334_v27  ;;  %v20337_v54 = vld [vmem:[#allocation43_spill] sm:$0xff]  ;;  %v20339_v7 = vld [vmem:[#allocation102_spill] sm:$0xff] }
 0x4d2   : > { %v9242_v2 = vsel %vm2639_vm3, %v9210_v40, %v11992_v51  ;;  %v9241_v58 = vsel %vm2639_vm3, %v9209_v46, %v11991_v8  ;;  %v12002_v13 = vunpack.i.h.bf16 %v20336_v48  ;;  %v12001_v55 = vunpack.i.l.bf16 %v20336_v48  ;;  %v20338_v30 = vld [vmem:[#allocation3_spill] sm:$0xff]  ;;  %v20340_v40 = vld [vmem:[#allocation13_spill] sm:$0xff] }
 0x4d3   : > { %v12012_v28 = vunpack.i.h.bf16 %v20338_v30  ;;  %v12011_v50 = vunpack.i.l.bf16 %v20338_v30  ;;  %v12007_v42 = vunpack.i.h.bf16 %v20339_v7  ;;  %v12006_v27 = vunpack.i.l.bf16 %v20339_v7  ;;  %v20341_v8 = vld [vmem:[#allocation69_spill] sm:$0xff]  ;;  %v18337_v26 = vpop.permute.xlu1 %12269 }
 0x4d4   : > { %12544 = vrot.lane.b32.xlu0 %v20335_v34, %s12788_s27  ;;  %12549 = vrot.lane.b32.xlu1 %v20337_v54, %s12788_s27  ;;  %v18331_v34 = vpop.permute.xlu0 %12264  ;;  %v12022_v51 = vunpack.i.h.bf16 %v20340_v40  ;;  %v12021_v46 = vunpack.i.l.bf16 %v20340_v40  ;;  %v12017_v6 = vunpack.i.h.bf16 %v20341_v8  ;;  %v12016_v48 = vunpack.i.l.bf16 %v20341_v8 }
 0x4d5   : > { %v18340_v54 = vsel %vm2639_vm3, %v9211_v43, %v11996_v11  ;;  %v18343_v30 = vsel %vm2639_vm3, %v9212_v56, %v11997_v39  ;;  %v12067_v7 = vunpack.i.h.bf16 %v20342_v61  ;;  %v12066_v5 = vunpack.i.l.bf16 %v20342_v61  ;;  %v20344_v43 = vld [vmem:[#allocation85_spill] sm:$0xff] }
 0x4d6   : > { %v20343_v40 = vpack.i.bf16 %v17799_v1, %v17870_v44  ;;  %v18352_v41 = vsel %vm2639_vm3, %v9213_v62, %v12001_v55  ;;  %v18355_v8 = vsel %vm2639_vm3, %v9214_v53, %v12002_v13  ;;  %v12072_v11 = vunpack.i.h.bf16 %v20344_v43  ;;  %v20345_v39 = vld [vmem:[#allocation61_spill] sm:$0xff] }
 0x4d7   : > { %v12071_v56 = vunpack.i.l.bf16 %v20344_v43  ;;  %v20346_v15 = vpack.i.bf16 %v17815_v33, %v20345_v39  ;;  %v18364_v61 = vsel %vm2639_vm3, %v9217_v24, %v12011_v50  ;;  %v18367_v1 = vsel %vm2639_vm3, %v9218_v21, %v12012_v28  ;;  %v20347_v24 = vld [vmem:[#allocation8_spill] sm:$0xff]  ;;  %v20352_v39 = vld [vmem:[#allocation119_spill] sm:$0xff] }
 0x4d8   : > { %12554 = vrot.lane.b32.xlu0 %v20343_v40, %s12789_s6  ;;  %v18370_v44 = vsel %vm2639_vm3, %v9215_v20, %v12006_v27  ;;  %v18373_v53 = vsel %vm2639_vm3, %v9216_v0, %v12007_v42  ;;  %v18375_v62 = vpop.permute.xlu0 %12274  ;;  %v18378_v13 = vsel %vm2639_vm3, %v9221_v49, %v12021_v46  ;;  %v18381_v33 = vsel %vm2639_vm3, %v9222_v59, %v12022_v51  ;;  %v12280_v20 = vpop.permute.xlu1 %12279 }
 0x4d9   : > { %12559 = vrot.lane.b32.xlu1 %v20346_v15, %s12789_s6  ;;  %v18384_v15 = vsel %vm2639_vm3, %v9219_v29, %v12016_v48  ;;  %v18387_v21 = vsel %vm2639_vm3, %v9220_v17, %v12017_v6  ;;  %v12027_v55 = vunpack.i.h.bf16 %v20347_v24  ;;  %v12026_v0 = vunpack.i.l.bf16 %v20347_v24  ;;  %v20349_v6 = vld [vmem:[#allocation115_spill] sm:$0xff] }
 0x4da   : > { %v9272_v28 = vsel %vm2694_vm6, %v9240_v35, %v12067_v7  ;;  %v9271_v49 = vsel %vm2694_vm6, %v9239_v23, %v12066_v5  ;;  %v20348_v59 = vpack.i.bf16 %v17817_v32, %v17801_v57  ;;  %v9273_v29 = vsel %vm2694_vm6, %v9241_v58, %v12071_v56  ;;  %v20351_v23 = vld [vmem:[#allocation74_spill] sm:$0xff] }
 0x4db   : > { %v9274_v17 = vsel %vm2694_vm6, %v9242_v2, %v12072_v11  ;;  %v12147_v50 = vunpack.i.h.bf16 %v20349_v6  ;;  %v12146_v42 = vunpack.i.l.bf16 %v20349_v6  ;;  %v20350_v35 = vpack.i.bf16 %v17846_v19, %v17844_v31 }
 0x4dc   : > { %12564 = vrot.lane.b32.xlu0 %v20348_v59, %s12790_s10  ;;  %v12032_v27 = vunpack.i.h.bf16 %v20351_v23  ;;  %v12031_v51 = vunpack.i.l.bf16 %v20351_v23  ;;  %v12227_v57 = vunpack.i.h.bf16 %v18189_v9  ;;  %v12226_v32 = vunpack.i.l.bf16 %v18189_v9  ;;  %v18409_v58 = vpop.permute.xlu0 %12284  ;;  %v12290_v43 = vpop.permute.xlu1 %12289 }
 0x4dd   : > { %12569 = vrot.lane.b32.xlu1 %v20350_v35, %s12790_s10  ;;  %v9304_v2 = vsel %vm2749_vm7, %v9272_v28, %v12067_v7  ;;  %v9303_v46 = vsel %vm2749_vm7, %v9271_v49, %v12066_v5  ;;  %v12282_v48 = vunpack.i.h.bf16 %v12280_v20  ;;  %v12281_v40 = vunpack.i.l.bf16 %v12280_v20 }
 0x4de   : > { %v9305_v31 = vsel %vm2749_vm7, %v9273_v29, %v12071_v56  ;;  %v9306_v19 = vsel %vm2749_vm7, %v9274_v17, %v12072_v11  ;;  %v12152_v59 = vunpack.i.h.bf16 %v20352_v39  ;;  %v12151_v6 = vunpack.i.l.bf16 %v20352_v39  ;;  %v20354_v56 = vld [vmem:[#allocation57_spill] sm:$0xff] }
 0x4df   : > { %v20353_v9 = vpack.i.bf16 %v17848_v3, %v17819_v25  ;;  %v9335_v7 = vsel %vm2804_vm8, %v9303_v46, %v12146_v42  ;;  %v9336_v5 = vsel %vm2804_vm8, %v9304_v2, %v12147_v50  ;;  %v12232_v20 = vunpack.i.h.bf16 %v18197_v16  ;;  %v20355_v2 = vld [vmem:[#allocation77_spill] sm:$0xff] }
 0x4e0   : > { %v12231_v28 = vunpack.i.l.bf16 %v18197_v16  ;;  %v9367_v11 = vsel %vm2859_vm9, %v9335_v7, %v12226_v32  ;;  %v9368_v49 = vsel %vm2859_vm9, %v9336_v5, %v12227_v57  ;;  %v12287_v29 = vunpack.i.h.bf16 %v18409_v58  ;;  %v12295_v3 = vpop.permute.xlu0 %12294  ;;  %v12300_v16 = vpop.permute.xlu1 %12299 }
 0x4e1   : > { %12574 = vrot.lane.b32.xlu0 %v20353_v9, %s12791_s11  ;;  %12579 = vrot.lane.b32.xlu1 %v20354_v56, %s12778_s30  ;;  %v12286_v25 = vunpack.i.l.bf16 %v18409_v58  ;;  %v9400_v17 = vsel %vm5213_vm10, %v9368_v49, %v12282_v48  ;;  %v9399_v50 = vsel %vm5213_vm10, %v9367_v11, %v12281_v40  ;;  %v12292_v42 = vunpack.i.h.bf16 %v12290_v43  ;;  %v20357_v56 = vld [vmem:[#allocation54_spill] sm:$0xff] }
 0x4e2   : > { %v12291_v35 = vunpack.i.l.bf16 %v12290_v43  ;;  %v12077_v46 = vunpack.i.h.bf16 %v20355_v2  ;;  %v12076_v32 = vunpack.i.l.bf16 %v20355_v2  ;;  %v9337_v57 = vsel %vm2804_vm8, %v9305_v31, %v12151_v6 }
 0x4e3   : > { %v9338_v39 = vsel %vm2804_vm8, %v9306_v19, %v12152_v59  ;;  %v20356_v58 = vpack.i.bf16 %v17852_v37, %v17850_v52  ;;  %v9369_v9 = vsel %vm2859_vm9, %v9337_v57, %v12231_v28  ;;  %v12302_v43 = vunpack.i.h.bf16 %v12300_v16 }
 0x4e4   : > { %v9370_v7 = vsel %vm2859_vm9, %v9338_v39, %v12232_v20  ;;  %v12301_v5 = vunpack.i.l.bf16 %v12300_v16  ;;  %v9433_v11 = vsel %vm9431_vm14, %v9400_v17, %v12282_v48  ;;  %v9432_v31 = vsel %vm9431_vm14, %v9399_v50, %v12281_v40  ;;  %v12305_v6 = vpop.permute.xlu0 %12304  ;;  %v12310_v49 = vpop.permute.xlu1 %12309  ;;  %v20358_v48 = vld [vmem:[#allocation44_spill] sm:$0xff]  ;;  %v20359_v40 = vld [vmem:[#allocation11_spill] sm:$0xff] }
 0x4e5   : > { %12584 = vrot.lane.b32.xlu0 %v20356_v58, %s12791_s11  ;;  %12589 = vrot.lane.b32.xlu1 %v20357_v56, %s12778_s30  ;;  %v9401_v19 = vsel %vm5213_vm10, %v9369_v9, %v12286_v25  ;;  %v9402_v59 = vsel %vm5213_vm10, %v9370_v7, %v12287_v29  ;;  %v9465_v37 = vsel %vm9464_vm15, %v9432_v31, %v12291_v35  ;;  %v12297_v20 = vunpack.i.h.bf16 %v12295_v3 }
 0x4e6   : > { %v9466_v52 = vsel %vm9464_vm15, %v9433_v11, %v12292_v42  ;;  %v12296_v28 = vunpack.i.l.bf16 %v12295_v3  ;;  %v12312_v16 = vunpack.i.h.bf16 %v12310_v49  ;;  %v12311_v57 = vunpack.i.l.bf16 %v12310_v49  ;;  %v20360_v42 = vld [vmem:[#allocation72_spill] sm:$0xff] }
 0x4e7   : > { %v12307_v39 = vunpack.i.h.bf16 %v12305_v6  ;;  %v12306_v58 = vunpack.i.l.bf16 %v12305_v6  ;;  %v12082_v17 = vunpack.i.h.bf16 %v20359_v40  ;;  %v12081_v50 = vunpack.i.l.bf16 %v20359_v40 }
 0x4e8   : > { %v9498_v9 = vsel %vm9497_vm0, %v9465_v37, %v12301_v5  ;;  %v9499_v35 = vsel %vm9497_vm0, %v9466_v52, %v12302_v43  ;;  %v9434_v3 = vsel %vm9431_vm14, %v9401_v19, %v12286_v25  ;;  %v9435_v7 = vsel %vm9431_vm14, %v9402_v59, %v12287_v29  ;;  %v12315_v31 = vpop.permute.xlu0 %12314  ;;  %v20361_v29 = vld [vmem:[#allocation46_spill] sm:$0xff] }
 0x4e9   : > { %12594 = vrot.lane.b32.xlu0 %v20358_v48, %s12780_s7  ;;  %12599 = vrot.lane.b32.xlu1 %v20360_v42, %s12780_s7  ;;  %v9531_v56 = vsel %vm9530_vm1, %v9498_v9, %v12311_v57  ;;  %v9532_v11 = vsel %vm9530_vm1, %v9499_v35, %v12312_v16  ;;  %v9467_v6 = vsel %vm9464_vm15, %v9434_v3, %v12296_v28  ;;  %v12320_v48 = vpop.permute.xlu1 %12319  ;;  %v12317_v5 = vunpack.i.h.bf16 %v12315_v31  ;;  %v20362_v9 = vld [vmem:[#allocation45_spill] sm:$0xff] }
 0x4ea   : > { %v9468_v49 = vsel %vm9464_vm15, %v9435_v7, %v12297_v20  ;;  %v12316_v37 = vunpack.i.l.bf16 %v12315_v31  ;;  %v9500_v43 = vsel %vm9497_vm0, %v9467_v6, %v12306_v58  ;;  %v12322_v40 = vunpack.i.h.bf16 %v12320_v48 }
 0x4eb   : > { %v9501_v52 = vsel %vm9497_vm0, %v9468_v49, %v12307_v39  ;;  %v12321_v25 = vunpack.i.l.bf16 %v12320_v48  ;;  %v9564_v19 = vsel %vm9563_vm4, %v9531_v56, %v12311_v57  ;;  %v9565_v59 = vsel %vm9563_vm4, %v9532_v11, %v12312_v16  ;;  %v18493_v11 = vld [vmem:[#allocation2 + $0x1a0] sm:$0xff]  ;;  %v20364_v48 = vld [vmem:[#allocation104_spill] sm:$0xff] }
 0x4ec   : > { %v9533_v28 = vsel %vm9530_vm1, %v9500_v43, %v12316_v37  ;;  %v9534_v20 = vsel %vm9530_vm1, %v9501_v52, %v12317_v5  ;;  %v18479_v39 = vsel %vm2639_vm3, %v18310_v36, %v12026_v0  ;;  %v9276_v57 = vsel %vm2694_vm6, %v18343_v30, %v12077_v46  ;;  %v12325_v35 = vpop.permute.xlu0 %12324  ;;  %v18491_v0 = vld [vmem:[#allocation2 + $0x198] sm:$0xff]  ;;  %v20366_v52 = vld [vmem:[#allocation122_spill] sm:$0xff] }
 0x4ed   : > { %12604 = vrot.lane.b32.xlu0 %v20361_v29, %s12788_s27  ;;  %12609 = vrot.lane.b32.xlu1 %v20362_v9, %s12788_s27  ;;  %v9597_v16 = vsel %vm9596_vm5, %v9564_v19, %v12321_v25  ;;  %v9598_v58 = vsel %vm9596_vm5, %v9565_v59, %v12322_v40  ;;  %v9275_v42 = vsel %vm2694_vm6, %v18340_v54, %v12076_v32  ;;  %v12330_v7 = vpop.permute.xlu1 %12329  ;;  %v12327_v56 = vunpack.i.h.bf16 %v12325_v35  ;;  %v20363_v54 = vld [vmem:[#allocation105_spill] sm:$0xff]  ;;  %v20367_v19 = vld [vmem:[#allocation103_spill] sm:$0xff] }
 0x4ee   : > { %v9629_v3 = vpack.c.bf16 %v9598_v58, %v9597_v16  ;;  %v12326_v36 = vunpack.i.l.bf16 %v12325_v35  ;;  %v9277_v30 = vsel %vm2694_vm6, %v18352_v41, %v12081_v50  ;;  %v9278_v31 = vsel %vm2694_vm6, %v18355_v8, %v12082_v17  ;;  %v20368_v8 = vld [vmem:[#allocation4_spill] sm:$0xff] }
 0x4ef   : > { %v9566_v6 = vsel %vm9563_vm4, %v9533_v28, %v12316_v37  ;;  %v9567_v49 = vsel %vm9563_vm4, %v9534_v20, %v12317_v5  ;;  %v20365_v43 = vpack.i.bf16 %v20363_v54, %v20364_v48  ;;  %v12157_v40 = vunpack.i.h.bf16 %v20366_v52  ;;  %v20371_v48 = vld [vmem:[#allocation109_spill] sm:$0xff] }
 0x4f0   : > { %v12156_v25 = vunpack.i.l.bf16 %v20366_v52  ;;  %v9599_v29 = vsel %vm9596_vm5, %v9566_v6, %v12326_v36  ;;  %v9600_v41 = vsel %vm9596_vm5, %v9567_v49, %v12327_v56  ;;  %v20369_v59 = vpack.i.bf16 %v20367_v19, %v20368_v8  ;;  %10582 = vmatprep.mubr.msk.bf16.mxu1 %vm9684_vm11, %v9629_v3  ;;  %v12335_v20 = vpop.permute.xlu0 %12334  ;;  %v20370_v6 = vld [vmem:[#allocation123_spill] sm:$0xff] }
 0x4f1   : > { %12614 = vrot.lane.b32.xlu0 %v20365_v43, %s12789_s6  ;;  %v12237_v5 = vunpack.i.h.bf16 %v18228_v60  ;;  %v12236_v37 = vunpack.i.l.bf16 %v18228_v60  ;;  %v9630_v28 = vpack.c.bf16 %v9600_v41, %v9599_v29  ;;  %v12678_v9 = vpack.i.bf16 %v18493_v11, %v18491_v0  ;;  %v12340_v3 = vpop.permute.xlu1 %12339  ;;  %v20372_v43 = vld [vmem:[#allocation108_spill] sm:$0xff] }
 0x4f2   : > { %12619 = vrot.lane.b32.xlu1 %v20369_v59, %s12789_s6  ;;  %v9308_v16 = vsel %vm2749_vm7, %v9276_v57, %v12077_v46  ;;  %v9307_v58 = vsel %vm2749_vm7, %v9275_v42, %v12076_v32  ;;  %v12332_v35 = vunpack.i.h.bf16 %v12330_v7  ;;  %v12331_v56 = vunpack.i.l.bf16 %v12330_v7  ;;  %v20375_v57 = vld [vmem:[#allocation106_spill] sm:$0xff] }
 0x4f3   : > { %v9309_v36 = vsel %vm2749_vm7, %v9277_v30, %v12081_v50  ;;  %v9310_v60 = vsel %vm2749_vm7, %v9278_v31, %v12082_v17  ;;  %v12162_v49 = vunpack.i.h.bf16 %v20370_v6  ;;  %v12161_v54 = vunpack.i.l.bf16 %v20370_v6  ;;  %10583 = vmatmul.mubr.msk.bf16.vlgmr.msra.gmra.mrb[24].mxu1 %vm9684_vm11, %v9630_v28  ;;  %v20374_v17 = vld [vmem:[#allocation107_spill] sm:$0xff]  ;;  %v20379_v6 = vld [vmem:[#allocation110_spill] sm:$0xff] }
 0x4f4   : > { %v20373_v52 = vpack.i.bf16 %v20371_v48, %v20372_v43  ;;  %v9339_v2 = vsel %vm2804_vm8, %v9307_v58, %v12156_v25  ;;  %v9340_v46 = vsel %vm2804_vm8, %v9308_v16, %v12157_v40  ;;  %v12242_v32 = vunpack.i.h.bf16 %v18239_v47  ;;  %v12345_v41 = vpop.permute.xlu0 %12344 }
 0x4f5   : > { %v12241_v50 = vunpack.i.l.bf16 %v18239_v47  ;;  %v20376_v42 = vpack.i.bf16 %v20374_v17, %v20375_v57  ;;  %v9371_v7 = vsel %vm2859_vm9, %v9339_v2, %v12236_v37  ;;  %v9372_v30 = vsel %vm2859_vm9, %v9340_v46, %v12237_v5  ;;  %v12350_v59 = vpop.permute.xlu1 %12349  ;;  %v20377_v47 = vld [vmem:[#allocation21_spill] sm:$0xff]  ;;  %v20378_v5 = vld [vmem:[#allocation111_spill] sm:$0xff]  ;;  %v20381_v2 = vld [vmem:[#allocation70_spill] sm:$0xff] }
 0x4f6   : > { %12624 = vrot.lane.b32.xlu0 %v20373_v52, %s12790_s10  ;;  %v12337_v31 = vunpack.i.h.bf16 %v12335_v20  ;;  %v12336_v29 = vunpack.i.l.bf16 %v12335_v20  ;;  %v9404_v25 = vsel %vm5213_vm10, %v9372_v30, %v12332_v35  ;;  %v9403_v40 = vsel %vm5213_vm10, %v9371_v7, %v12331_v56 }
 0x4f7   : > { %12629 = vrot.lane.b32.xlu1 %v20376_v42, %s12790_s10  ;;  %v12342_v19 = vunpack.i.h.bf16 %v12340_v3  ;;  %v12341_v8 = vunpack.i.l.bf16 %v12340_v3  ;;  %v12087_v28 = vunpack.i.h.bf16 %v20377_v47  ;;  %v12086_v16 = vunpack.i.l.bf16 %v20377_v47 }
 0x4f8   : > { %v9341_v58 = vsel %vm2804_vm8, %v9309_v36, %v12161_v54  ;;  %v9342_v37 = vsel %vm2804_vm8, %v9310_v60, %v12162_v49  ;;  %v20380_v20 = vpack.i.bf16 %v20378_v5, %v20379_v6  ;;  %v12352_v52 = vunpack.i.h.bf16 %v12350_v59  ;;  %v12355_v54 = vpop.permute.xlu0 %12354 }
 0x4f9   : > { %v9373_v48 = vsel %vm2859_vm9, %v9341_v58, %v12241_v50  ;;  %v9374_v43 = vsel %vm2859_vm9, %v9342_v37, %v12242_v32  ;;  %v12351_v3 = vunpack.i.l.bf16 %v12350_v59  ;;  %v9437_v46 = vsel %vm9431_vm14, %v9404_v25, %v12332_v35  ;;  %v12360_v42 = vpop.permute.xlu1 %12359  ;;  %v20382_v35 = vld [vmem:[#allocation113_spill] sm:$0xff]  ;;  %v20383_v25 = vld [vmem:[#allocation112_spill] sm:$0xff] }
 0x4fa   : > { %12634 = vrot.lane.b32.xlu0 %v20380_v20, %s12791_s11  ;;  %v9436_v36 = vsel %vm9431_vm14, %v9403_v40, %v12331_v56  ;;  %v9405_v60 = vsel %vm5213_vm10, %v9373_v48, %v12336_v29  ;;  %v9406_v49 = vsel %vm5213_vm10, %v9374_v43, %v12337_v31  ;;  %v9470_v50 = vsel %vm9464_vm15, %v9437_v46, %v12342_v19  ;;  %v20385_v40 = vld [vmem:[#allocation96_spill] sm:$0xff] }
 0x4fb   : > { %12639 = vrot.lane.b32.xlu1 %v20381_v2, %s12778_s30  ;;  %v9469_v17 = vsel %vm9464_vm15, %v9436_v36, %v12341_v8  ;;  %v12347_v57 = vunpack.i.h.bf16 %v12345_v41  ;;  %v12346_v32 = vunpack.i.l.bf16 %v12345_v41  ;;  %v12362_v7 = vunpack.i.h.bf16 %v12360_v42  ;;  %v20386_v41 = vld [vmem:[#allocation47_spill] sm:$0xff] }
 0x4fc   : > { %v12361_v30 = vunpack.i.l.bf16 %v12360_v42  ;;  %v12357_v59 = vunpack.i.h.bf16 %v12355_v54  ;;  %v12356_v58 = vunpack.i.l.bf16 %v12355_v54  ;;  %v20384_v56 = vpack.i.bf16 %v20382_v35, %v20383_v25  ;;  %v12365_v2 = vpop.permute.xlu0 %12364  ;;  %v20387_v42 = vld [vmem:[#allocation41_spill] sm:$0xff] }
 0x4fd   : > { %v12092_v37 = vunpack.i.h.bf16 %v20385_v40  ;;  %v12091_v5 = vunpack.i.l.bf16 %v20385_v40  ;;  %v9502_v8 = vsel %vm9497_vm0, %v9469_v17, %v12351_v3  ;;  %v9503_v19 = vsel %vm9497_vm0, %v9470_v50, %v12352_v52  ;;  %v12370_v54 = vpop.permute.xlu1 %12369  ;;  %v18579_v52 = vld [vmem:[#allocation2 + $0x199] sm:$0xff]  ;;  %v18581_v50 = vld [vmem:[#allocation2 + $0x1a1] sm:$0xff] }
 0x4fe   : > { %12644 = vrot.lane.b32.xlu0 %v20384_v56, %s12791_s11  ;;  %v9438_v6 = vsel %vm9431_vm14, %v9405_v60, %v12336_v29  ;;  %v9439_v20 = vsel %vm9431_vm14, %v9406_v49, %v12337_v31  ;;  %v9535_v48 = vsel %vm9530_vm1, %v9502_v8, %v12361_v30  ;;  %v9536_v43 = vsel %vm9530_vm1, %v9503_v19, %v12362_v7  ;;  %v20388_v56 = vld [vmem:[#allocation49_spill] sm:$0xff] }
 0x4ff   : > { %12649 = vrot.lane.b32.xlu1 %v20386_v41, %s12778_s30  ;;  %v9471_v46 = vsel %vm9464_vm15, %v9438_v6, %v12346_v32  ;;  %v9472_v36 = vsel %vm9464_vm15, %v9439_v20, %v12347_v57  ;;  %v12367_v3 = vunpack.i.h.bf16 %v12365_v2  ;;  %v12366_v17 = vunpack.i.l.bf16 %v12365_v2  ;;  %s10439_s30 = sshll.u32 %s20450_s18, 8 }
 0x500   : > { %v9504_v29 = vsel %vm9497_vm0, %v9471_v46, %v12356_v58  ;;  %v9505_v31 = vsel %vm9497_vm0, %v9472_v36, %v12357_v59  ;;  %v12372_v60 = vunpack.i.h.bf16 %v12370_v54  ;;  %v12371_v49 = vunpack.i.l.bf16 %v12370_v54  ;;  %v12375_v8 = vpop.permute.xlu0 %12374  ;;  %v20389_v46 = vld [vmem:[#allocation52_spill] sm:$0xff]  ;;  %s19112_s15 = scalar_lea.vmem %s19224_s5, %s10439_s30 }
 0x501   : > { %v9568_v32 = vsel %vm9563_vm4, %v9535_v48, %v12361_v30  ;;  %v9569_v57 = vsel %vm9563_vm4, %v9536_v43, %v12362_v7  ;;  %v9537_v35 = vsel %vm9530_vm1, %v9504_v29, %v12366_v17  ;;  %v9538_v25 = vsel %vm9530_vm1, %v9505_v31, %v12367_v3  ;;  %v12380_v41 = vpop.permute.xlu1 %12379  ;;  %v20390_v36 = vld [vmem:[#allocation124_spill] sm:$0xff] }
 0x502   : > { %12654 = vrot.lane.b32.xlu0 %v20387_v42, %s12780_s7  ;;  %v9280_v59 = vsel %vm2694_vm6, %v18373_v53, %v12087_v28  ;;  %v9601_v58 = vsel %vm9596_vm5, %v9568_v32, %v12371_v49  ;;  %v9602_v40 = vsel %vm9596_vm5, %v9569_v57, %v12372_v60  ;;  %v12688_v7 = vpack.i.bf16 %v18581_v50, %v18579_v52 }
 0x503   : > { %12659 = vrot.lane.b32.xlu1 %v20388_v56, %s12780_s7  ;;  %v9279_v30 = vsel %vm2694_vm6, %v18370_v44, %v12086_v16  ;;  %v9631_v19 = vpack.c.bf16 %v9602_v40, %v9601_v58  ;;  %v12377_v6 = vunpack.i.h.bf16 %v12375_v8  ;;  %v12376_v20 = vunpack.i.l.bf16 %v12375_v8  ;;  %v20395_v40 = vld [vmem:[#allocation116_spill] sm:$0xff] }
 0x504   : > { %v9281_v53 = vsel %vm2694_vm6, %v18364_v61, %v12091_v5  ;;  %v9282_v48 = vsel %vm2694_vm6, %v18367_v1, %v12092_v37  ;;  %v9570_v43 = vsel %vm9563_vm4, %v9537_v35, %v12366_v17  ;;  %v9571_v2 = vsel %vm9563_vm4, %v9538_v25, %v12367_v3  ;;  %v20391_v61 = vld [vmem:[#allocation89_spill] sm:$0xff]  ;;  %v12385_v31 = vpop.permute.xlu0 %12384  ;;  %v20392_v25 = vld [vmem:[#allocation98_spill] sm:$0xff] }
 0x505   : > { %v12167_v54 = vunpack.i.h.bf16 %v20390_v36  ;;  %v12166_v44 = vunpack.i.l.bf16 %v20390_v36  ;;  %v9603_v52 = vsel %vm9596_vm5, %v9570_v43, %v12376_v20  ;;  %v9604_v50 = vsel %vm9596_vm5, %v9571_v2, %v12377_v6  ;;  %10586 = vmatprep.mubr.msk.bf16.mxu1 %vm9684_vm11, %v9631_v19  ;;  %v12390_v57 = vpop.permute.xlu1 %12389  ;;  %v7702_v19 = vld [vmem:[#allocation2 + $0x1a2] sm:$0xff] }
 0x506   : > { %12664 = vrot.lane.b32.xlu0 %v20389_v46, %s12788_s27  ;;  %v9312_v1 = vsel %vm2749_vm7, %v9280_v59, %v12087_v28  ;;  %v12247_v3 = vunpack.i.h.bf16 %v18263_v38  ;;  %v12246_v17 = vunpack.i.l.bf16 %v18263_v38  ;;  %v9632_v29 = vpack.c.bf16 %v9604_v50, %v9603_v52  ;;  %v20393_v28 = vld [vmem:[#allocation55_spill] sm:$0xff]  ;;  %v20394_v38 = vld [vmem:[#allocation114_spill] sm:$0xff] }
 0x507   : > { %12669 = vrot.lane.b32.xlu1 %v20391_v61, %s12788_s27  ;;  %v9313_v60 = vsel %vm2749_vm7, %v9281_v53, %v12091_v5  ;;  %v9311_v49 = vsel %vm2749_vm7, %v9279_v30, %v12086_v16  ;;  %v12382_v42 = vunpack.i.h.bf16 %v12380_v41  ;;  %v12381_v32 = vunpack.i.l.bf16 %v12380_v41  ;;  %v7701_v30 = vld [vmem:[#allocation2 + $0x19a] sm:$0xff] }
 0x508   : > { %v9314_v35 = vsel %vm2749_vm7, %v9282_v48, %v12092_v37  ;;  %v12097_v56 = vunpack.i.h.bf16 %v20392_v25  ;;  %v12172_v59 = vunpack.i.h.bf16 %v20393_v28  ;;  %v12171_v58 = vunpack.i.l.bf16 %v20393_v28  ;;  %10587 = vmatmul.mubr.msk.bf16.gmra.mrb[28].mxu1 %vm9684_vm11, %v9632_v29  ;;  %v12395_v48 = vpop.permute.xlu0 %12394 }
 0x509   : > { %v20396_v8 = vpack.i.bf16 %v20394_v38, %v20395_v40  ;;  %v9343_v47 = vsel %vm2804_vm8, %v9311_v49, %v12166_v44  ;;  %v9344_v16 = vsel %vm2804_vm8, %v9312_v1, %v12167_v54  ;;  %v12252_v5 = vunpack.i.h.bf16 %v18270_v10  ;;  %v12400_v36 = vpop.permute.xlu1 %12399  ;;  %v20398_v44 = vld [vmem:[#allocation117_spill] sm:$0xff] }
 0x50a   : > { %v12251_v37 = vunpack.i.l.bf16 %v18270_v10  ;;  %v9375_v41 = vsel %vm2859_vm9, %v9343_v47, %v12246_v17  ;;  %v9376_v6 = vsel %vm2859_vm9, %v9344_v16, %v12247_v3  ;;  %v12387_v20 = vunpack.i.h.bf16 %v12385_v31  ;;  %v20401_v16 = vld [vmem:[#allocation120_spill] sm:$0xff] }
 0x50b   : > { %12674 = vrot.lane.b32.xlu0 %v20396_v8, %s12789_s6  ;;  %12679 = vrot.lane.b32.xlu1 %v12678_v9, %s12789_s6  ;;  %v12386_v53 = vunpack.i.l.bf16 %v12385_v31  ;;  %v9408_v43 = vsel %vm5213_vm10, %v9376_v6, %v12382_v42  ;;  %v9407_v2 = vsel %vm5213_vm10, %v9375_v41, %v12381_v32  ;;  %v12392_v46 = vunpack.i.h.bf16 %v12390_v57  ;;  %v20397_v9 = vld [vmem:[#allocation118_spill] sm:$0xff] }
 0x50c   : > { %v12391_v10 = vunpack.i.l.bf16 %v12390_v57  ;;  %v12096_v54 = vunpack.i.l.bf16 %v20392_v25  ;;  %v9345_v0 = vsel %vm2804_vm8, %v9313_v60, %v12171_v58  ;;  %v9346_v11 = vsel %vm2804_vm8, %v9314_v35, %v12172_v59  ;;  %v12405_v57 = vpop.permute.xlu0 %12404 }
 0x50d   : > { %v20399_v52 = vpack.i.bf16 %v20397_v9, %v20398_v44  ;;  %v12698_v50 = vpack.i.bf16 %v7702_v19, %v7701_v30  ;;  %v9377_v61 = vsel %vm2859_vm9, %v9345_v0, %v12251_v37  ;;  %v9378_v1 = vsel %vm2859_vm9, %v9346_v11, %v12252_v5  ;;  %v12410_v38 = vpop.permute.xlu1 %12409  ;;  %v20403_v5 = vld [vmem:[#allocation91_spill] sm:$0xff] }
 0x50e   : > { %v12402_v3 = vunpack.i.h.bf16 %v12400_v36  ;;  %v12401_v17 = vunpack.i.l.bf16 %v12400_v36  ;;  %v9441_v29 = vsel %vm9431_vm14, %v9408_v43, %v12382_v42  ;;  %v9440_v31 = vsel %vm9431_vm14, %v9407_v2, %v12381_v32  ;;  %v20400_v42 = vld [vmem:[#allocation121_spill] sm:$0xff] }
 0x50f   : > { %12684 = vrot.lane.b32.xlu0 %v20399_v52, %s12790_s10  ;;  %12689 = vrot.lane.b32.xlu1 %v12688_v7, %s12790_s10  ;;  %v9409_v60 = vsel %vm5213_vm10, %v9377_v61, %v12386_v53  ;;  %v9410_v49 = vsel %vm5213_vm10, %v9378_v1, %v12387_v20  ;;  %v9473_v35 = vsel %vm9464_vm15, %v9440_v31, %v12391_v10  ;;  %v12397_v59 = vunpack.i.h.bf16 %v12395_v48 }
 0x510   : > { %v9474_v28 = vsel %vm9464_vm15, %v9441_v29, %v12392_v46  ;;  %v12396_v58 = vunpack.i.l.bf16 %v12395_v48  ;;  %v12412_v40 = vunpack.i.h.bf16 %v12410_v38  ;;  %v12411_v8 = vunpack.i.l.bf16 %v12410_v38  ;;  %v12415_v46 = vpop.permute.xlu0 %12414  ;;  %v20404_v38 = vld [vmem:[#allocation56_spill] sm:$0xff] }
 0x511   : > { %v12407_v47 = vunpack.i.h.bf16 %v12405_v57  ;;  %v12406_v7 = vunpack.i.l.bf16 %v12405_v57  ;;  %v20402_v32 = vpack.i.bf16 %v20400_v42, %v20401_v16  ;;  %v12102_v37 = vunpack.i.h.bf16 %v20403_v5  ;;  %v12420_v0 = vpop.permute.xlu1 %12419 }
 0x512   : > { %v12101_v30 = vunpack.i.l.bf16 %v20403_v5  ;;  %v9506_v19 = vsel %vm9497_vm0, %v9473_v35, %v12401_v17  ;;  %v9507_v41 = vsel %vm9497_vm0, %v9474_v28, %v12402_v3  ;;  %v9442_v6 = vsel %vm9431_vm14, %v9409_v60, %v12386_v53 }
 0x513   : > { %12694 = vrot.lane.b32.xlu0 %v20402_v32, %s12791_s11  ;;  %12699 = vrot.lane.b32.xlu1 %v12698_v50, %s12791_s11  ;;  %v9443_v48 = vsel %vm9431_vm14, %v9410_v49, %v12387_v20  ;;  %v9539_v43 = vsel %vm9530_vm1, %v9506_v19, %v12411_v8  ;;  %v9540_v2 = vsel %vm9530_vm1, %v9507_v41, %v12412_v40  ;;  %v12417_v11 = vunpack.i.h.bf16 %v12415_v46 }
 0x514   : > { %v9475_v10 = vsel %vm9464_vm15, %v9442_v6, %v12396_v58  ;;  %v9476_v36 = vsel %vm9464_vm15, %v9443_v48, %v12397_v59  ;;  %v12416_v9 = vunpack.i.l.bf16 %v12415_v46  ;;  %v12422_v50 = vunpack.i.h.bf16 %v12420_v0  ;;  %v12425_v49 = vpop.permute.xlu0 %12424  ;;  %v20405_v48 = vld [vmem:[#allocation53_spill] sm:$0xff] }
 0x515   : > { %v9508_v44 = vsel %vm9497_vm0, %v9475_v10, %v12406_v7  ;;  %v9509_v52 = vsel %vm9497_vm0, %v9476_v36, %v12407_v47  ;;  %v12421_v53 = vunpack.i.l.bf16 %v12420_v0  ;;  %v9572_v20 = vsel %vm9563_vm4, %v9539_v43, %v12411_v8  ;;  %v12430_v35 = vpop.permute.xlu1 %12429 }
 0x516   : > { %v9573_v61 = vsel %vm9563_vm4, %v9540_v2, %v12412_v40  ;;  %v9541_v1 = vsel %vm9530_vm1, %v9508_v44, %v12416_v9  ;;  %v9542_v3 = vsel %vm9530_vm1, %v9509_v52, %v12417_v11  ;;  %v18691_v17 = vsel %vm2639_vm3, %v18296_v14, %v12027_v55 }
 0x517   : > { %v9284_v29 = vsel %vm2694_vm6, %v18387_v21, %v12097_v56  ;;  %v9605_v31 = vsel %vm9596_vm5, %v9572_v20, %v12421_v53  ;;  %v9606_v60 = vsel %vm9596_vm5, %v9573_v61, %v12422_v50  ;;  %v9283_v57 = vsel %vm2694_vm6, %v18384_v15, %v12096_v54  ;;  %v20406_v50 = vld [vmem:[#allocation23_spill] sm:$0xff] }
 0x518   : > { %v9633_v24 = vpack.c.bf16 %v9606_v60, %v9605_v31  ;;  %v12427_v28 = vunpack.i.h.bf16 %v12425_v49  ;;  %v12426_v14 = vunpack.i.l.bf16 %v12425_v49  ;;  %v9285_v55 = vsel %vm2694_vm6, %v18378_v13, %v12101_v30  ;;  %v12435_v16 = vpop.permute.xlu0 %12434 }
 0x519   : > { %v9286_v21 = vsel %vm2694_vm6, %v18381_v33, %v12102_v37  ;;  %v9574_v59 = vsel %vm9563_vm4, %v9541_v1, %v12416_v9  ;;  %v9575_v58 = vsel %vm9563_vm4, %v9542_v3, %v12417_v11  ;;  %v12177_v40 = vunpack.i.h.bf16 %v20404_v38  ;;  %v12440_v6 = vpop.permute.xlu1 %12439 }
 0x51a   : > { %v12176_v8 = vunpack.i.l.bf16 %v20404_v38  ;;  %v9607_v15 = vsel %vm9596_vm5, %v9574_v59, %v12426_v14  ;;  %v9608_v47 = vsel %vm9596_vm5, %v9575_v58, %v12427_v28  ;;  %10590 = vmatprep.mubr.msk.bf16.mxu1 %vm9684_vm11, %v9633_v24  ;;  %v18718_v13 = vsel %vm2639_vm3, %v18306_v4, %v12031_v51 }
 0x51b   : > { %v12257_v33 = vunpack.i.h.bf16 %v18298_v12  ;;  %v12256_v7 = vunpack.i.l.bf16 %v18298_v12  ;;  %v9634_v42 = vpack.c.bf16 %v9608_v47, %v9607_v15  ;;  %v9316_v32 = vsel %vm2749_vm7, %v9284_v29, %v12097_v56  ;;  %v20407_v15 = vld [vmem:[#allocation19_spill] sm:$0xff] }
 0x51c   : > { %v9315_v5 = vsel %vm2749_vm7, %v9283_v57, %v12096_v54  ;;  %v12432_v19 = vunpack.i.h.bf16 %v12430_v35  ;;  %v12431_v41 = vunpack.i.l.bf16 %v12430_v35  ;;  %v9317_v4 = vsel %vm2749_vm7, %v9285_v55, %v12101_v30  ;;  %v12445_v36 = vpop.permute.xlu0 %12444 }
 0x51d   : > { %v9318_v51 = vsel %vm2749_vm7, %v9286_v21, %v12102_v37  ;;  %v12182_v43 = vunpack.i.h.bf16 %v20405_v48  ;;  %v12181_v12 = vunpack.i.l.bf16 %v20405_v48  ;;  %10591 = vmatmul.mubr.msk.bf16.gmra.mrb[32].mxu1 %vm9684_vm11, %v9634_v42  ;;  %v9347_v2 = vsel %vm2804_vm8, %v9315_v5, %v12176_v8  ;;  %v12450_v52 = vpop.permute.xlu1 %12449 }
 0x51e   : > { %v9348_v56 = vsel %vm2804_vm8, %v9316_v32, %v12177_v40  ;;  %v12262_v25 = vunpack.i.h.bf16 %v18313_v63  ;;  %v12261_v54 = vunpack.i.l.bf16 %v18313_v63  ;;  %v9379_v46 = vsel %vm2859_vm9, %v9347_v2, %v12256_v7 }
 0x51f   : > { %v9380_v30 = vsel %vm2859_vm9, %v9348_v56, %v12257_v33  ;;  %v12437_v10 = vunpack.i.h.bf16 %v12435_v16  ;;  %v12436_v37 = vunpack.i.l.bf16 %v12435_v16  ;;  %v9411_v11 = vsel %vm5213_vm10, %v9379_v46, %v12431_v41 }
 0x520   : > { %v9412_v0 = vsel %vm5213_vm10, %v9380_v30, %v12432_v19  ;;  %v12442_v9 = vunpack.i.h.bf16 %v12440_v6  ;;  %v12441_v44 = vunpack.i.l.bf16 %v12440_v6  ;;  %v12107_v53 = vunpack.i.h.bf16 %v20406_v50  ;;  %v12455_v35 = vpop.permute.xlu0 %12454 }
 0x521   : > { %v12106_v20 = vunpack.i.l.bf16 %v20406_v50  ;;  %v9349_v63 = vsel %vm2804_vm8, %v9317_v4, %v12181_v12  ;;  %v9350_v61 = vsel %vm2804_vm8, %v9318_v51, %v12182_v43  ;;  %v12452_v29 = vunpack.i.h.bf16 %v12450_v52  ;;  %v12460_v59 = vpop.permute.xlu1 %12459 }
 0x522   : > { %v9381_v1 = vsel %vm2859_vm9, %v9349_v63, %v12261_v54  ;;  %v9382_v3 = vsel %vm2859_vm9, %v9350_v61, %v12262_v25  ;;  %v12451_v31 = vunpack.i.l.bf16 %v12450_v52  ;;  %v9445_v60 = vsel %vm9431_vm14, %v9412_v0, %v12432_v19 }
 0x523   : > { %v9444_v49 = vsel %vm9431_vm14, %v9411_v11, %v12431_v41  ;;  %v9413_v57 = vsel %vm5213_vm10, %v9381_v1, %v12436_v37  ;;  %v9414_v24 = vsel %vm5213_vm10, %v9382_v3, %v12437_v10  ;;  %v9478_v14 = vsel %vm9464_vm15, %v9445_v60, %v12442_v9  ;;  %v20408_v3 = vld [vmem:[#allocation17_spill] sm:$0xff] }
 0x524   : > { %v9477_v28 = vsel %vm9464_vm15, %v9444_v49, %v12441_v44  ;;  %v12447_v55 = vunpack.i.h.bf16 %v12445_v36  ;;  %v12446_v21 = vunpack.i.l.bf16 %v12445_v36  ;;  %v12462_v58 = vunpack.i.h.bf16 %v12460_v59  ;;  %v12465_v41 = vpop.permute.xlu0 %12464 }
 0x525   : > { %v12461_v38 = vunpack.i.l.bf16 %v12460_v59  ;;  %v12457_v40 = vunpack.i.h.bf16 %v12455_v35  ;;  %v12456_v8 = vunpack.i.l.bf16 %v12455_v35  ;;  %v12112_v47 = vunpack.i.h.bf16 %v20407_v15  ;;  %v12470_v51 = vpop.permute.xlu1 %12469 }
 0x526   : > { %v12111_v33 = vunpack.i.l.bf16 %v20407_v15  ;;  %v9510_v7 = vsel %vm9497_vm0, %v9477_v28, %v12451_v31  ;;  %v9511_v42 = vsel %vm9497_vm0, %v9478_v14, %v12452_v29  ;;  %v9446_v16 = vsel %vm9431_vm14, %v9413_v57, %v12436_v37 }
 0x527   : > { %v9447_v32 = vsel %vm9431_vm14, %v9414_v24, %v12437_v10  ;;  %v9543_v5 = vsel %vm9530_vm1, %v9510_v7, %v12461_v38  ;;  %v9544_v19 = vsel %vm9530_vm1, %v9511_v42, %v12462_v58  ;;  %v9479_v6 = vsel %vm9464_vm15, %v9446_v16, %v12446_v21 }
 0x528   : > { %v9480_v4 = vsel %vm9464_vm15, %v9447_v32, %v12447_v55  ;;  %v12467_v48 = vunpack.i.h.bf16 %v12465_v41  ;;  %v12466_v43 = vunpack.i.l.bf16 %v12465_v41  ;;  %v9512_v12 = vsel %vm9497_vm0, %v9479_v6, %v12456_v8  ;;  %v12475_v9 = vpop.permute.xlu0 %12474 }
 0x529   : > { %v9513_v2 = vsel %vm9497_vm0, %v9480_v4, %v12457_v40  ;;  %v12472_v56 = vunpack.i.h.bf16 %v12470_v51  ;;  %v12471_v25 = vunpack.i.l.bf16 %v12470_v51  ;;  %v9576_v54 = vsel %vm9563_vm4, %v9543_v5, %v12461_v38  ;;  %v12480_v23 = vpop.permute.xlu1 %12479  ;;  %v20409_v40 = vld [vmem:[#allocation66_spill] sm:$0xff]  ;;  %v20410_v4 = vld [vmem:[#allocation35_spill] sm:$0xff] }
 0x52a   : > { %v9577_v46 = vsel %vm9563_vm4, %v9544_v19, %v12462_v58  ;;  %v9545_v30 = vsel %vm9530_vm1, %v9512_v12, %v12466_v43  ;;  %v9546_v10 = vsel %vm9530_vm1, %v9513_v2, %v12467_v48  ;;  %v9258_v37 = vsel %vm2639_vm3, %v18302_v45, %v12032_v27 }
 0x52b   : > { %v9288_v36 = vsel %vm2694_vm6, %v18691_v17, %v12107_v53  ;;  %v9609_v0 = vsel %vm9596_vm5, %v9576_v54, %v12471_v25  ;;  %v9610_v11 = vsel %vm9596_vm5, %v9577_v46, %v12472_v56  ;;  %v9287_v44 = vsel %vm2694_vm6, %v18479_v39, %v12106_v20 }
 0x52c   : > { %v9635_v52 = vpack.c.bf16 %v9610_v11, %v9609_v0  ;;  %v12477_v63 = vunpack.i.h.bf16 %v12475_v9  ;;  %v12476_v61 = vunpack.i.l.bf16 %v12475_v9  ;;  %v9289_v45 = vsel %vm2694_vm6, %v18718_v13, %v12111_v33  ;;  %v12485_v35 = vpop.permute.xlu0 %12484 }
 0x52d   : > { %v9290_v27 = vsel %vm2694_vm6, %v9258_v37, %v12112_v47  ;;  %v9578_v17 = vsel %vm9563_vm4, %v9545_v30, %v12466_v43  ;;  %v9579_v1 = vsel %vm9563_vm4, %v9546_v10, %v12467_v48  ;;  %v12187_v29 = vunpack.i.h.bf16 %v20408_v3  ;;  %v12490_v59 = vpop.permute.xlu1 %12489 }
 0x52e   : > { %v12186_v31 = vunpack.i.l.bf16 %v20408_v3  ;;  %v9611_v60 = vsel %vm9596_vm5, %v9578_v17, %v12476_v61  ;;  %v9612_v39 = vsel %vm9596_vm5, %v9579_v1, %v12477_v63  ;;  %10594 = vmatprep.mubr.msk.bf16.mxu1 %vm9684_vm11, %v9635_v52  ;;  %v11956_v49 = vunpack.i.l.bf16 %v20333_v22  ;;  %v20412_v17 = vld [vmem:[#allocation5_spill] sm:$0xff] }
 0x52f   : > { %v12267_v13 = vunpack.i.h.bf16 %v18331_v34  ;;  %v12266_v57 = vunpack.i.l.bf16 %v18331_v34  ;;  %v9636_v24 = vpack.c.bf16 %v9612_v39, %v9611_v60  ;;  %v9320_v28 = vsel %vm2749_vm7, %v9288_v36, %v12107_v53 }
 0x530   : > { %v9319_v14 = vsel %vm2749_vm7, %v9287_v44, %v12106_v20  ;;  %v12482_v55 = vunpack.i.h.bf16 %v12480_v23  ;;  %v12481_v21 = vunpack.i.l.bf16 %v12480_v23  ;;  %v9321_v58 = vsel %vm2749_vm7, %v9289_v45, %v12111_v33  ;;  %v12495_v16 = vpop.permute.xlu0 %12494 }
 0x531   : > { %v9322_v38 = vsel %vm2749_vm7, %v9290_v27, %v12112_v47  ;;  %v12192_v8 = vunpack.i.h.bf16 %v20409_v40  ;;  %v12191_v34 = vunpack.i.l.bf16 %v20409_v40  ;;  %10595 = vmatmul.mubr.msk.bf16.gmra.mrb[36].mxu1 %vm9684_vm11, %v9636_v24  ;;  %v9351_v15 = vsel %vm2804_vm8, %v9319_v14, %v12186_v31  ;;  %v12500_v6 = vpop.permute.xlu1 %12499 }
 0x532   : > { %v9352_v53 = vsel %vm2804_vm8, %v9320_v28, %v12187_v29  ;;  %v12272_v50 = vunpack.i.h.bf16 %v18337_v26  ;;  %v12271_v20 = vunpack.i.l.bf16 %v18337_v26  ;;  %v9383_v7 = vsel %vm2859_vm9, %v9351_v15, %v12266_v57  ;;  %v20413_v15 = vld [vmem:[#allocation7_spill] sm:$0xff] }
 0x533   : > { %v9384_v33 = vsel %vm2859_vm9, %v9352_v53, %v12267_v13  ;;  %v12487_v42 = vunpack.i.h.bf16 %v12485_v35  ;;  %v12486_v47 = vunpack.i.l.bf16 %v12485_v35  ;;  %v9415_v5 = vsel %vm5213_vm10, %v9383_v7, %v12481_v21 }
 0x534   : > { %v9416_v32 = vsel %vm5213_vm10, %v9384_v33, %v12482_v55  ;;  %v12492_v19 = vunpack.i.h.bf16 %v12490_v59  ;;  %v12491_v41 = vunpack.i.l.bf16 %v12490_v59  ;;  %v11962_v51 = vunpack.i.h.bf16 %v20410_v4  ;;  %v12505_v37 = vpop.permute.xlu0 %12504 }
 0x535   : > { %v11961_v48 = vunpack.i.l.bf16 %v20410_v4  ;;  %v9353_v26 = vsel %vm2804_vm8, %v9321_v58, %v12191_v34  ;;  %v9354_v43 = vsel %vm2804_vm8, %v9322_v38, %v12192_v8  ;;  %v12502_v56 = vunpack.i.h.bf16 %v12500_v6  ;;  %v12510_v44 = vpop.permute.xlu1 %12509 }
 0x536   : > { %v9385_v12 = vsel %vm2859_vm9, %v9353_v26, %v12271_v20  ;;  %v9386_v2 = vsel %vm2859_vm9, %v9354_v43, %v12272_v50  ;;  %v12501_v25 = vunpack.i.l.bf16 %v12500_v6  ;;  %v9449_v54 = vsel %vm9431_vm14, %v9416_v32, %v12482_v55 }
 0x537   : > { %v9448_v46 = vsel %vm9431_vm14, %v9415_v5, %v12481_v21  ;;  %v9417_v30 = vsel %vm5213_vm10, %v9385_v12, %v12486_v47  ;;  %v9418_v10 = vsel %vm5213_vm10, %v9386_v2, %v12487_v42  ;;  %v9482_v0 = vsel %vm9464_vm15, %v9449_v54, %v12492_v19  ;;  %v20414_v19 = vld [vmem:[#allocation16_spill] sm:$0xff] }
 0x538   : > { %v9481_v36 = vsel %vm9464_vm15, %v9448_v46, %v12491_v41  ;;  %v12497_v11 = vunpack.i.h.bf16 %v12495_v16  ;;  %v12496_v9 = vunpack.i.l.bf16 %v12495_v16  ;;  %v12512_v52 = vunpack.i.h.bf16 %v12510_v44  ;;  %v20415_v12 = vld [vmem:[#allocation88_spill] sm:$0xff]  ;;  %v20416_v46 = vld [vmem:[#allocation6_spill] sm:$0xff] }
 0x539   : > { %v12511_v23 = vunpack.i.l.bf16 %v12510_v44  ;;  %v12507_v63 = vunpack.i.h.bf16 %v12505_v37  ;;  %v12506_v61 = vunpack.i.l.bf16 %v12505_v37  ;;  %v20411_v45 = vunpack.i.h.bf16 %v20333_v22  ;;  %v12515_v57 = vpop.permute.xlu0 %12514  ;;  %v20419_v44 = vld [vmem:[#allocation36_spill] sm:$0xff] }
 0x53a   : > { %v12037_v1 = vunpack.i.h.bf16 %v20412_v17  ;;  %v9514_v3 = vsel %vm9497_vm0, %v9481_v36, %v12501_v25  ;;  %v9515_v29 = vsel %vm9497_vm0, %v9482_v0, %v12502_v56  ;;  %v9450_v31 = vsel %vm9431_vm14, %v9417_v30, %v12486_v47  ;;  %v20418_v36 = vld [vmem:[#allocation63_spill] sm:$0xff] }
 0x53b   : > { %v9228_v27 = vsel %vm2584_vm2, %v18151_v18, %v20411_v45  ;;  %v9451_v60 = vsel %vm9431_vm14, %v9418_v10, %v12487_v42  ;;  %v9547_v39 = vsel %vm9530_vm1, %v9514_v3, %v12511_v23  ;;  %v9548_v13 = vsel %vm9530_vm1, %v9515_v29, %v12512_v52  ;;  %v12520_v18 = vpop.permute.xlu1 %12519  ;;  %v20417_v10 = vld [vmem:[#allocation73_spill] sm:$0xff]  ;;  %v20420_v3 = vld [vmem:[#allocation59_spill] sm:$0xff] }
 0x53c   : > { %v9483_v24 = vsel %vm9464_vm15, %v9450_v31, %v12496_v9  ;;  %v9484_v35 = vsel %vm9464_vm15, %v9451_v60, %v12497_v11  ;;  %v12517_v28 = vunpack.i.h.bf16 %v12515_v57  ;;  %v12516_v14 = vunpack.i.l.bf16 %v12515_v57 }
 0x53d   : > { %v9516_v55 = vsel %vm9497_vm0, %v9483_v24, %v12506_v61  ;;  %v9517_v21 = vsel %vm9497_vm0, %v9484_v35, %v12507_v63  ;;  %v12522_v59 = vunpack.i.h.bf16 %v12520_v18  ;;  %v12521_v58 = vunpack.i.l.bf16 %v12520_v18 }
 0x53e   : > { %v9580_v38 = vsel %vm9563_vm4, %v9547_v39, %v12511_v23  ;;  %v9581_v40 = vsel %vm9563_vm4, %v9548_v13, %v12512_v52  ;;  %v9549_v8 = vsel %vm9530_vm1, %v9516_v55, %v12516_v14  ;;  %v9550_v34 = vsel %vm9530_vm1, %v9517_v21, %v12517_v28  ;;  %v12525_v33 = vpop.permute.xlu0 %12524 }
 0x53f   : > { %v12042_v53 = vunpack.i.h.bf16 %v20413_v15  ;;  %v12036_v50 = vunpack.i.l.bf16 %v20412_v17  ;;  %v9613_v20 = vsel %vm9596_vm5, %v9580_v38, %v12521_v58  ;;  %v9614_v7 = vsel %vm9596_vm5, %v9581_v40, %v12522_v59  ;;  %v12530_v16 = vpop.permute.xlu1 %12529 }
 0x540   : > { %v12041_v42 = vunpack.i.l.bf16 %v20413_v15  ;;  %v9637_v47 = vpack.c.bf16 %v9614_v7, %v9613_v20  ;;  %v12527_v32 = vunpack.i.h.bf16 %v12525_v33  ;;  %v12526_v5 = vunpack.i.l.bf16 %v12525_v33 }
 0x541   : > { %v12117_v41 = vunpack.i.h.bf16 %v20414_v19  ;;  %v12116_v6 = vunpack.i.l.bf16 %v20414_v19  ;;  %v9582_v26 = vsel %vm9563_vm4, %v9549_v8, %v12516_v14  ;;  %v9583_v43 = vsel %vm9563_vm4, %v9550_v34, %v12517_v28 }
 0x542   : > { %v12122_v2 = vunpack.i.h.bf16 %v20415_v12  ;;  %v12121_v56 = vunpack.i.l.bf16 %v20415_v12  ;;  %v9615_v25 = vsel %vm9596_vm5, %v9582_v26, %v12526_v5  ;;  %v9616_v54 = vsel %vm9596_vm5, %v9583_v43, %v12527_v32  ;;  %10598 = vmatprep.mubr.msk.bf16.mxu1 %vm9684_vm11, %v9637_v47  ;;  %v12535_v9 = vpop.permute.xlu0 %12534 }
 0x543   : > { %v9230_v30 = vsel %vm2584_vm2, %v20416_v46, %v11962_v51  ;;  %v9229_v37 = vsel %vm2584_vm2, %v20417_v10, %v11961_v48  ;;  %v9227_v0 = vsel %vm2584_vm2, %v20418_v36, %v11956_v49  ;;  %v9638_v11 = vpack.c.bf16 %v9616_v54, %v9615_v25  ;;  %v18876_v61 = vpop.permute.xlu1 %12539 }
 0x544   : > { %v11967_v52 = vunpack.i.h.bf16 %v20419_v44  ;;  %v11966_v23 = vunpack.i.l.bf16 %v20419_v44  ;;  %v9259_v63 = vsel %vm2639_vm3, %v9227_v0, %v12036_v50  ;;  %v9260_v51 = vsel %vm2639_vm3, %v9228_v27, %v12037_v1  ;;  %v20421_v1 = vld [vmem:[#allocation18_spill] sm:$0xff] }
 0x545   : > { %v9261_v4 = vsel %vm2639_vm3, %v9229_v37, %v12041_v42  ;;  %v9262_v48 = vsel %vm2639_vm3, %v9230_v30, %v12042_v53  ;;  %v9292_v22 = vsel %vm2694_vm6, %v9260_v51, %v12117_v41  ;;  %v9291_v49 = vsel %vm2694_vm6, %v9259_v63, %v12116_v6  ;;  %10599 = vmatmul.mubr.msk.bf16.gmra.mrb[40].mxu1 %vm9684_vm11, %v9638_v11 }
 0x546   : > { %v9293_v45 = vsel %vm2694_vm6, %v9261_v4, %v12121_v56  ;;  %v9294_v17 = vsel %vm2694_vm6, %v9262_v48, %v12122_v2  ;;  %v12197_v29 = vunpack.i.h.bf16 %v20420_v3  ;;  %v12196_v27 = vunpack.i.l.bf16 %v20420_v3  ;;  %v12545_v57 = vpop.permute.xlu0 %12544  ;;  %v20424_v3 = vld [vmem:[#allocation20_spill] sm:$0xff] }
 0x547   : > { %v12202_v31 = vunpack.i.h.bf16 %v20421_v1  ;;  %v12201_v60 = vunpack.i.l.bf16 %v20421_v1  ;;  %v12277_v39 = vunpack.i.h.bf16 %v18375_v62  ;;  %v12276_v13 = vunpack.i.l.bf16 %v18375_v62  ;;  %v12550_v14 = vpop.permute.xlu1 %12549 }
 0x548   : > { %v9324_v24 = vsel %vm2749_vm7, %v9292_v22, %v12117_v41  ;;  %v9323_v35 = vsel %vm2749_vm7, %v9291_v49, %v12116_v6  ;;  %v12537_v18 = vunpack.i.h.bf16 %v12535_v9  ;;  %v12536_v28 = vunpack.i.l.bf16 %v12535_v9  ;;  %v20422_v6 = vld [vmem:[#allocation100_spill] sm:$0xff] }
 0x549   : > { %v9325_v55 = vsel %vm2749_vm7, %v9293_v45, %v12121_v56  ;;  %v9326_v21 = vsel %vm2749_vm7, %v9294_v17, %v12122_v2  ;;  %v12532_v59 = vunpack.i.h.bf16 %v12530_v16  ;;  %v12531_v58 = vunpack.i.l.bf16 %v12530_v16  ;;  %v20423_v45 = vld [vmem:[#allocation94_spill] sm:$0xff] }
 0x54a   : > { %v9355_v38 = vsel %vm2804_vm8, %v9323_v35, %v12196_v27  ;;  %v9356_v40 = vsel %vm2804_vm8, %v9324_v24, %v12197_v29  ;;  %v12542_v62 = vunpack.i.h.bf16 %v18876_v61  ;;  %v12541_v8 = vunpack.i.l.bf16 %v18876_v61  ;;  %v12555_v20 = vpop.permute.xlu0 %12554 }
 0x54b   : > { %v9357_v34 = vsel %vm2804_vm8, %v9325_v55, %v12201_v60  ;;  %v9358_v15 = vsel %vm2804_vm8, %v9326_v21, %v12202_v31  ;;  %v9387_v53 = vsel %vm2859_vm9, %v9355_v38, %v12276_v13  ;;  %v9388_v50 = vsel %vm2859_vm9, %v9356_v40, %v12277_v39  ;;  %v12560_v16 = vpop.permute.xlu1 %12559  ;;  %v20425_v21 = vld [vmem:[#allocation10_spill] sm:$0xff] }
 0x54c   : > { %v9419_v7 = vsel %vm5213_vm10, %v9387_v53, %v12536_v28  ;;  %v9420_v33 = vsel %vm5213_vm10, %v9388_v50, %v12537_v18  ;;  %v12547_v42 = vunpack.i.h.bf16 %v12545_v57  ;;  %v12546_v47 = vunpack.i.l.bf16 %v12545_v57 }
 0x54d   : > { %v9389_v32 = vsel %vm2859_vm9, %v9357_v34, %v12531_v58  ;;  %v9390_v5 = vsel %vm2859_vm9, %v9358_v15, %v12532_v59  ;;  %v12557_v19 = vunpack.i.h.bf16 %v12555_v20  ;;  %v12556_v41 = vunpack.i.l.bf16 %v12555_v20  ;;  %v20426_v58 = vld [vmem:[#allocation87_spill] sm:$0xff] }
 0x54e   : > { %v11972_v26 = vunpack.i.h.bf16 %v20422_v6  ;;  %v11971_v43 = vunpack.i.l.bf16 %v20422_v6  ;;  %v9421_v12 = vsel %vm5213_vm10, %v9389_v32, %v12541_v8  ;;  %v9422_v2 = vsel %vm5213_vm10, %v9390_v5, %v12542_v62  ;;  %v12565_v30 = vpop.permute.xlu0 %12564  ;;  %v20427_v34 = vld [vmem:[#allocation79_spill] sm:$0xff]  ;;  %v20429_v5 = vld [vmem:[#allocation28_spill] sm:$0xff] }
 0x54f   : > { %v9452_v56 = vsel %vm9431_vm14, %v9419_v7, %v12536_v28  ;;  %v9453_v25 = vsel %vm9431_vm14, %v9420_v33, %v12537_v18  ;;  %v12552_v54 = vunpack.i.h.bf16 %v12550_v14  ;;  %v12551_v46 = vunpack.i.l.bf16 %v12550_v14  ;;  %v12570_v36 = vpop.permute.xlu1 %12569  ;;  %v20428_v33 = vld [vmem:[#allocation31_spill] sm:$0xff] }
 0x550   : > { %v9485_v10 = vsel %vm9464_vm15, %v9452_v56, %v12546_v47  ;;  %v9486_v37 = vsel %vm9464_vm15, %v9453_v25, %v12547_v42  ;;  %v12567_v0 = vunpack.i.h.bf16 %v12565_v30  ;;  %v12566_v11 = vunpack.i.l.bf16 %v12565_v30  ;;  %v20431_v56 = vld [vmem:[#allocation38_spill] sm:$0xff] }
 0x551   : > { %v12562_v9 = vunpack.i.h.bf16 %v12560_v16  ;;  %v12561_v63 = vunpack.i.l.bf16 %v12560_v16  ;;  %v9518_v51 = vsel %vm9497_vm0, %v9485_v10, %v12556_v41  ;;  %v9519_v61 = vsel %vm9497_vm0, %v9486_v37, %v12557_v19  ;;  %v20432_v10 = vld [vmem:[#allocation37_spill] sm:$0xff] }
 0x552   : > { %v12572_v4 = vunpack.i.h.bf16 %v12570_v36  ;;  %v12571_v48 = vunpack.i.l.bf16 %v12570_v36  ;;  %v9551_v22 = vsel %vm9530_vm1, %v9518_v51, %v12566_v11  ;;  %v9552_v49 = vsel %vm9530_vm1, %v9519_v61, %v12567_v0 }
 0x553   : > { %v9231_v17 = vsel %vm2584_vm2, %v20423_v45, %v11966_v23  ;;  %v9232_v29 = vsel %vm2584_vm2, %v20424_v3, %v11967_v52  ;;  %v9454_v27 = vsel %vm9431_vm14, %v9421_v12, %v12541_v8  ;;  %v9455_v1 = vsel %vm9431_vm14, %v9422_v2, %v12542_v62  ;;  %v12575_v31 = vpop.permute.xlu0 %12574  ;;  %v18931_v13 = vpop.permute.xlu1 %12579  ;;  %v20430_v12 = vld [vmem:[#allocation65_spill] sm:$0xff] }
 0x554   : > { %v9487_v60 = vsel %vm9464_vm15, %v9454_v27, %v12551_v46  ;;  %v9488_v39 = vsel %vm9464_vm15, %v9455_v1, %v12552_v54  ;;  %v12577_v57 = vunpack.i.h.bf16 %v12575_v31  ;;  %v12576_v24 = vunpack.i.l.bf16 %v12575_v31 }
 0x555   : > { %v9520_v23 = vsel %vm9497_vm0, %v9487_v60, %v12561_v63  ;;  %v9521_v44 = vsel %vm9497_vm0, %v9488_v39, %v12562_v9  ;;  %v9584_v35 = vsel %vm9563_vm4, %v9551_v22, %v12566_v11  ;;  %v9585_v52 = vsel %vm9563_vm4, %v9552_v49, %v12567_v0  ;;  %v20433_v22 = vld [vmem:[#allocation14_spill] sm:$0xff] }
 0x556   : > { %v9553_v18 = vsel %vm9530_vm1, %v9520_v23, %v12571_v48  ;;  %v9554_v28 = vsel %vm9530_vm1, %v9521_v44, %v12572_v4  ;;  %v9617_v14 = vsel %vm9596_vm5, %v9584_v35, %v12576_v24  ;;  %v9618_v55 = vsel %vm9596_vm5, %v9585_v52, %v12577_v57 }
 0x557   : > { %v9233_v59 = vsel %vm2584_vm2, %v20425_v21, %v11971_v43  ;;  %v12047_v38 = vunpack.i.h.bf16 %v20426_v58  ;;  %v12046_v40 = vunpack.i.l.bf16 %v20426_v58  ;;  %v9639_v62 = vpack.c.bf16 %v9618_v55, %v9617_v14  ;;  %v12585_v8 = vpop.permute.xlu0 %12584  ;;  %v12590_v50 = vpop.permute.xlu1 %12589 }
 0x558   : > { %v12052_v15 = vunpack.i.h.bf16 %v20427_v34  ;;  %v12051_v53 = vunpack.i.l.bf16 %v20427_v34  ;;  %v12587_v20 = vunpack.i.h.bf16 %v12585_v8  ;;  %v12586_v7 = vunpack.i.l.bf16 %v12585_v8 }
 0x559   : > { %v12127_v42 = vunpack.i.h.bf16 %v20428_v33  ;;  %v12126_v47 = vunpack.i.l.bf16 %v20428_v33  ;;  %v9586_v16 = vsel %vm9563_vm4, %v9553_v18, %v12571_v48  ;;  %v9587_v32 = vsel %vm9563_vm4, %v9554_v28, %v12572_v4  ;;  %10602 = vmatprep.mubr.msk.bf16.mxu1 %vm9684_vm11, %v9639_v62 }
 0x55a   : > { %v12132_v19 = vunpack.i.h.bf16 %v20429_v5  ;;  %v12131_v41 = vunpack.i.l.bf16 %v20429_v5  ;;  %v9619_v6 = vsel %vm9596_vm5, %v9586_v16, %v12586_v7  ;;  %v9620_v43 = vsel %vm9596_vm5, %v9587_v32, %v12587_v20  ;;  %v20436_v16 = vld [vmem:[#allocation15_spill] sm:$0xff] }
 0x55b   : > { %v9234_v2 = vsel %vm2584_vm2, %v20430_v12, %v11972_v26  ;;  %v11977_v25 = vunpack.i.h.bf16 %v20431_v56  ;;  %v11976_v54 = vunpack.i.l.bf16 %v20431_v56  ;;  %v9640_v46 = vpack.c.bf16 %v9620_v43, %v9619_v6  ;;  %v12595_v30 = vpop.permute.xlu0 %12594  ;;  %v18964_v9 = vpop.permute.xlu1 %12599 }
 0x55c   : > { %v11982_v37 = vunpack.i.h.bf16 %v20432_v10  ;;  %v11981_v36 = vunpack.i.l.bf16 %v20432_v10  ;;  %v9264_v0 = vsel %vm2639_vm3, %v9232_v29, %v12047_v38  ;;  %v9263_v11 = vsel %vm2639_vm3, %v9231_v17, %v12046_v40  ;;  %v20434_v17 = vld [vmem:[#allocation78_spill] sm:$0xff] }
 0x55d   : > { %v9265_v63 = vsel %vm2639_vm3, %v9233_v59, %v12051_v53  ;;  %v9266_v26 = vsel %vm2639_vm3, %v9234_v2, %v12052_v15  ;;  %v9295_v51 = vsel %vm2694_vm6, %v9263_v11, %v12126_v47  ;;  %v9296_v61 = vsel %vm2694_vm6, %v9264_v0, %v12127_v42  ;;  %10603 = vmatmul.mubr.msk.bf16.gmra.mrb[44].mxu1 %vm9684_vm11, %v9640_v46 }
 0x55e   : > { %v9297_v4 = vsel %vm2694_vm6, %v9265_v63, %v12131_v41  ;;  %v9298_v48 = vsel %vm2694_vm6, %v9266_v26, %v12132_v19  ;;  %v12207_v49 = vunpack.i.h.bf16 %v20433_v22  ;;  %v12206_v45 = vunpack.i.l.bf16 %v20433_v22 }
 0x55f   : > { %v12212_v3 = vunpack.i.h.bf16 %v20434_v17  ;;  %v12211_v29 = vunpack.i.l.bf16 %v20434_v17  ;;  %v12582_v27 = vunpack.i.h.bf16 %v18931_v13  ;;  %v12581_v1 = vunpack.i.l.bf16 %v18931_v13  ;;  %v12605_v31 = vpop.permute.xlu0 %12604  ;;  %v12610_v23 = vpop.permute.xlu1 %12609 }
 0x560   : > { %v9327_v60 = vsel %vm2749_vm7, %v9295_v51, %v12126_v47  ;;  %v9328_v39 = vsel %vm2749_vm7, %v9296_v61, %v12127_v42  ;;  %v12597_v57 = vunpack.i.h.bf16 %v12595_v30  ;;  %v12596_v24 = vunpack.i.l.bf16 %v12595_v30  ;;  %v20435_v42 = vld [vmem:[#allocation33_spill] sm:$0xff] }
 0x561   : > { %v9329_v44 = vsel %vm2749_vm7, %v9297_v4, %v12131_v41  ;;  %v9330_v35 = vsel %vm2749_vm7, %v9298_v48, %v12132_v19  ;;  %v12592_v52 = vunpack.i.h.bf16 %v12590_v50  ;;  %v12591_v18 = vunpack.i.l.bf16 %v12590_v50 }
 0x562   : > { %v9359_v28 = vsel %vm2804_vm8, %v9327_v60, %v12206_v45  ;;  %v9360_v14 = vsel %vm2804_vm8, %v9328_v39, %v12207_v49  ;;  %v12602_v13 = vunpack.i.h.bf16 %v18964_v9  ;;  %v12601_v55 = vunpack.i.l.bf16 %v18964_v9  ;;  %v20437_v49 = vld [vmem:[#allocation81_spill] sm:$0xff] }
 0x563   : > { %v9361_v21 = vsel %vm2804_vm8, %v9329_v44, %v12211_v29  ;;  %v9362_v59 = vsel %vm2804_vm8, %v9330_v35, %v12212_v3  ;;  %v9392_v58 = vsel %vm2859_vm9, %v9360_v14, %v12582_v27  ;;  %v9391_v38 = vsel %vm2859_vm9, %v9359_v28, %v12581_v1  ;;  %v12615_v40 = vpop.permute.xlu0 %12614 }
 0x564   : > { %v9423_v62 = vsel %vm5213_vm10, %v9391_v38, %v12596_v24  ;;  %v9424_v8 = vsel %vm5213_vm10, %v9392_v58, %v12597_v57  ;;  %v12607_v34 = vunpack.i.h.bf16 %v12605_v31  ;;  %v12606_v15 = vunpack.i.l.bf16 %v12605_v31  ;;  %v12620_v53 = vpop.permute.xlu1 %12619 }
 0x565   : > { %v9393_v50 = vsel %vm2859_vm9, %v9361_v21, %v12591_v18  ;;  %v9394_v20 = vsel %vm2859_vm9, %v9362_v59, %v12592_v52  ;;  %v12617_v7 = vunpack.i.h.bf16 %v12615_v40  ;;  %v12616_v33 = vunpack.i.l.bf16 %v12615_v40  ;;  %v20439_v40 = vld [vmem:[#allocation51_spill] sm:$0xff] }
 0x566   : > { %v9236_v47 = vsel %vm2584_vm2, %v20435_v42, %v11977_v25  ;;  %v12057_v32 = vunpack.i.h.bf16 %v20436_v16  ;;  %v9425_v5 = vsel %vm5213_vm10, %v9393_v50, %v12601_v55  ;;  %v9426_v19 = vsel %vm5213_vm10, %v9394_v20, %v12602_v13  ;;  %v20440_v50 = vld [vmem:[#allocation50_spill] sm:$0xff] }
 0x567   : > { %v9456_v41 = vsel %vm9431_vm14, %v9423_v62, %v12596_v24  ;;  %v9457_v6 = vsel %vm9431_vm14, %v9424_v8, %v12597_v57  ;;  %v12612_v43 = vunpack.i.h.bf16 %v12610_v23  ;;  %v12611_v12 = vunpack.i.l.bf16 %v12610_v23 }
 0x568   : > { %v12625_v2 = vpop.permute.xlu0 %12624  ;;  %v9489_v46 = vsel %vm9464_vm15, %v9456_v41, %v12606_v15  ;;  %v9490_v30 = vsel %vm9464_vm15, %v9457_v6, %v12607_v34  ;;  %v12622_v9 = vunpack.i.h.bf16 %v12620_v53  ;;  %v12621_v63 = vunpack.i.l.bf16 %v12620_v53 }
 0x569   : > { %v12630_v0 = vpop.permute.xlu1 %12629  ;;  %v12627_v11 = vunpack.i.h.bf16 %v12625_v2  ;;  %v12626_v25 = vunpack.i.l.bf16 %v12625_v2  ;;  %v9522_v26 = vsel %vm9497_vm0, %v9489_v46, %v12616_v33  ;;  %v9523_v51 = vsel %vm9497_vm0, %v9490_v30, %v12617_v7  ;;  %v20441_v7 = vld [vmem:[#allocation25_spill] sm:$0xff]  ;;  %v20443_v30 = vld [vmem:[#allocation84_spill] sm:$0xff] }
 0x56a   : > { %v12632_v61 = vunpack.i.h.bf16 %v12630_v0  ;;  %v12631_v4 = vunpack.i.l.bf16 %v12630_v0  ;;  %v12062_v45 = vunpack.i.h.bf16 %v20437_v49  ;;  %v12056_v17 = vunpack.i.l.bf16 %v20436_v16 }
 0x56b   : > { %v9555_v48 = vsel %vm9530_vm1, %v9522_v26, %v12626_v25  ;;  %v9556_v22 = vsel %vm9530_vm1, %v9523_v51, %v12627_v11  ;;  %v9458_v3 = vsel %vm9431_vm14, %v9425_v5, %v12601_v55  ;;  %v9459_v29 = vsel %vm9431_vm14, %v9426_v19, %v12602_v13  ;;  %v20438_v55 = vld [vmem:[#allocation34_spill] sm:$0xff]  ;;  %v20442_v5 = vld [vmem:[#allocation71_spill] sm:$0xff] }
 0x56c   : > { %v12635_v27 = vpop.permute.xlu0 %12634  ;;  %v9491_v1 = vsel %vm9464_vm15, %v9458_v3, %v12611_v12  ;;  %v9492_v31 = vsel %vm9464_vm15, %v9459_v29, %v12612_v43  ;;  %v9588_v44 = vsel %vm9563_vm4, %v9555_v48, %v12626_v25  ;;  %v9589_v35 = vsel %vm9563_vm4, %v9556_v22, %v12627_v11  ;;  %v20444_v25 = vld [vmem:[#allocation62_spill] sm:$0xff] }
 0x56d   : > { %v19014_v60 = vpop.permute.xlu1 %12639  ;;  %v12637_v39 = vunpack.i.h.bf16 %v12635_v27  ;;  %v12636_v57 = vunpack.i.l.bf16 %v12635_v27  ;;  %v9524_v24 = vsel %vm9497_vm0, %v9491_v1, %v12621_v63  ;;  %v9525_v23 = vsel %vm9497_vm0, %v9492_v31, %v12622_v9 }
 0x56e   : > { %v9557_v52 = vsel %vm9530_vm1, %v9524_v24, %v12631_v4  ;;  %v9558_v18 = vsel %vm9530_vm1, %v9525_v23, %v12632_v61  ;;  %v12061_v13 = vunpack.i.l.bf16 %v20437_v49  ;;  %v12137_v21 = vunpack.i.h.bf16 %v20438_v55 }
 0x56f   : > { %v9621_v28 = vsel %vm9596_vm5, %v9588_v44, %v12636_v57  ;;  %v9622_v14 = vsel %vm9596_vm5, %v9589_v35, %v12637_v39  ;;  %v12136_v59 = vunpack.i.l.bf16 %v20438_v55  ;;  %v12142_v62 = vunpack.i.h.bf16 %v20439_v40 }
 0x570   : > { %v9641_v58 = vpack.c.bf16 %v9622_v14, %v9621_v28  ;;  %v12645_v38 = vpop.permute.xlu0 %12644  ;;  %v12141_v8 = vunpack.i.l.bf16 %v20439_v40  ;;  %v9238_v20 = vsel %vm2584_vm2, %v20440_v50, %v11982_v37  ;;  %v9235_v33 = vsel %vm2584_vm2, %v20441_v7, %v11976_v54 }
 0x571   : > { %v12650_v34 = vpop.permute.xlu1 %12649  ;;  %v12647_v15 = vunpack.i.h.bf16 %v12645_v38  ;;  %v12646_v53 = vunpack.i.l.bf16 %v12645_v38  ;;  %v9590_v42 = vsel %vm9563_vm4, %v9557_v52, %v12631_v4  ;;  %v9591_v16 = vsel %vm9563_vm4, %v9558_v18, %v12632_v61 }
 0x572   : > { %10606 = vmatprep.mubr.msk.bf16.mxu1 %vm9684_vm11, %v9641_v58  ;;  %v9237_v19 = vsel %vm2584_vm2, %v20442_v5, %v11981_v36  ;;  %v9268_v41 = vsel %vm2639_vm3, %v9236_v47, %v12057_v32  ;;  %v9270_v54 = vsel %vm2639_vm3, %v9238_v20, %v12062_v45  ;;  %v9267_v43 = vsel %vm2639_vm3, %v9235_v33, %v12056_v17 }
 0x573   : > { %v9623_v37 = vsel %vm9596_vm5, %v9590_v42, %v12646_v53  ;;  %v9624_v56 = vsel %vm9596_vm5, %v9591_v16, %v12647_v15  ;;  %v9269_v6 = vsel %vm2639_vm3, %v9237_v19, %v12061_v13  ;;  %v9302_v10 = vsel %vm2694_vm6, %v9270_v54, %v12142_v62 }
 0x574   : > { %v9642_v12 = vpack.c.bf16 %v9624_v56, %v9623_v37  ;;  %v12655_v2 = vpop.permute.xlu0 %12654  ;;  %v9301_v46 = vsel %vm2694_vm6, %v9269_v6, %v12141_v8  ;;  %v9299_v36 = vsel %vm2694_vm6, %v9267_v43, %v12136_v59  ;;  %v9300_v47 = vsel %vm2694_vm6, %v9268_v41, %v12137_v21 }
 0x575   : > { %v12660_v32 = vpop.permute.xlu1 %12659  ;;  %v12222_v0 = vunpack.i.h.bf16 %v20443_v30  ;;  %v12221_v11 = vunpack.i.l.bf16 %v20443_v30  ;;  %v12217_v9 = vunpack.i.h.bf16 %v20444_v25  ;;  %v12216_v63 = vunpack.i.l.bf16 %v20444_v25 }
 0x576   : > { %10607 = vmatmul.mubr.msk.bf16.gmra.mrb[48].mxu1 %vm9684_vm11, %v9642_v12  ;;  %v12642_v26 = vunpack.i.h.bf16 %v19014_v60  ;;  %v12641_v51 = vunpack.i.l.bf16 %v19014_v60  ;;  %v12652_v61 = vunpack.i.h.bf16 %v12650_v34  ;;  %v12651_v4 = vunpack.i.l.bf16 %v12650_v34 }
 0x577   : > { %v9331_v48 = vsel %vm2749_vm7, %v9299_v36, %v12136_v59  ;;  %v9332_v22 = vsel %vm2749_vm7, %v9300_v47, %v12137_v21  ;;  %v12657_v49 = vunpack.i.h.bf16 %v12655_v2  ;;  %v12656_v45 = vunpack.i.l.bf16 %v12655_v2 }
 0x578   : > { %v12665_v17 = vpop.permute.xlu0 %12664  ;;  %v9333_v3 = vsel %vm2749_vm7, %v9301_v46, %v12141_v8  ;;  %v9334_v29 = vsel %vm2749_vm7, %v9302_v10, %v12142_v62  ;;  %v12662_v27 = vunpack.i.h.bf16 %v12660_v32  ;;  %v12661_v1 = vunpack.i.l.bf16 %v12660_v32 }
 0x579   : > { %v12670_v31 = vpop.permute.xlu1 %12669  ;;  %v9365_v39 = vsel %vm2804_vm8, %v9333_v3, %v12221_v11  ;;  %v9366_v60 = vsel %vm2804_vm8, %v9334_v29, %v12222_v0  ;;  %v9363_v57 = vsel %vm2804_vm8, %v9331_v48, %v12216_v63  ;;  %v9364_v24 = vsel %vm2804_vm8, %v9332_v22, %v12217_v9  ;;  %v19107_v29 = vld [vmem:[%s19223_s4] ss:$0 sm:$0xff] }
 0x57a   : > { %v9396_v23 = vsel %vm2859_vm9, %v9364_v24, %v12642_v26  ;;  %v9395_v44 = vsel %vm2859_vm9, %v9363_v57, %v12641_v51  ;;  %v9397_v35 = vsel %vm2859_vm9, %v9365_v39, %v12651_v4  ;;  %v9398_v52 = vsel %vm2859_vm9, %v9366_v60, %v12652_v61 }
 0x57b   : > { %v9427_v18 = vsel %vm5213_vm10, %v9395_v44, %v12656_v45  ;;  %v9428_v28 = vsel %vm5213_vm10, %v9396_v23, %v12657_v49  ;;  %v12667_v14 = vunpack.i.h.bf16 %v12665_v17  ;;  %v12666_v13 = vunpack.i.l.bf16 %v12665_v17 }
 0x57c   : > { %v9429_v21 = vsel %vm5213_vm10, %v9397_v35, %v12661_v1  ;;  %v9430_v59 = vsel %vm5213_vm10, %v9398_v52, %v12662_v27  ;;  %v12672_v58 = vunpack.i.h.bf16 %v12670_v31  ;;  %v12671_v38 = vunpack.i.l.bf16 %v12670_v31 }
 0x57d   : > { %v12675_v55 = vpop.permute.xlu0 %12674  ;;  %v12680_v40 = vpop.permute.xlu1 %12679  ;;  %v9460_v34 = vsel %vm9431_vm14, %v9427_v18, %v12656_v45  ;;  %v9461_v15 = vsel %vm9431_vm14, %v9428_v28, %v12657_v49  ;;  %v9462_v20 = vsel %vm9431_vm14, %v9429_v21, %v12661_v1  ;;  %v9463_v7 = vsel %vm9431_vm14, %v9430_v59, %v12662_v27 }
 0x57e   : > { %v12677_v62 = vunpack.i.h.bf16 %v12675_v55  ;;  %v12676_v8 = vunpack.i.l.bf16 %v12675_v55  ;;  %v12682_v53 = vunpack.i.h.bf16 %v12680_v40  ;;  %v12681_v50 = vunpack.i.l.bf16 %v12680_v40 }
 0x57f   : > { %v9493_v33 = vsel %vm9464_vm15, %v9460_v34, %v12666_v13  ;;  %v9494_v42 = vsel %vm9464_vm15, %v9461_v15, %v12667_v14  ;;  %v9495_v5 = vsel %vm9464_vm15, %v9462_v20, %v12671_v38  ;;  %v9496_v19 = vsel %vm9464_vm15, %v9463_v7, %v12672_v58 }
 0x580   : > { %v9526_v6 = vsel %vm9497_vm0, %v9493_v33, %v12676_v8  ;;  %v9527_v54 = vsel %vm9497_vm0, %v9494_v42, %v12677_v62  ;;  %v9528_v2 = vsel %vm9497_vm0, %v9495_v5, %v12681_v50  ;;  %v9529_v46 = vsel %vm9497_vm0, %v9496_v19, %v12682_v53 }
 0x581   : > { %v12685_v16 = vpop.permute.xlu0 %12684  ;;  %v12690_v41 = vpop.permute.xlu1 %12689 }
 0x582   : > { %v12687_v37 = vunpack.i.h.bf16 %v12685_v16  ;;  %v12686_v56 = vunpack.i.l.bf16 %v12685_v16  ;;  %v12692_v43 = vunpack.i.h.bf16 %v12690_v41  ;;  %v12691_v12 = vunpack.i.l.bf16 %v12690_v41 }
 0x584   : > { %v9559_v10 = vsel %vm9530_vm1, %v9526_v6, %v12686_v56  ;;  %v9560_v36 = vsel %vm9530_vm1, %v9527_v54, %v12687_v37  ;;  %v9561_v47 = vsel %vm9530_vm1, %v9528_v2, %v12691_v12  ;;  %v9562_v32 = vsel %vm9530_vm1, %v9529_v46, %v12692_v43 }
 0x585   : > { %v12695_v30 = vpop.permute.xlu0 %12694  ;;  %v12700_v0 = vpop.permute.xlu1 %12699  ;;  %v9592_v9 = vsel %vm9563_vm4, %v9559_v10, %v12686_v56  ;;  %v9593_v63 = vsel %vm9563_vm4, %v9560_v36, %v12687_v37  ;;  %v9594_v61 = vsel %vm9563_vm4, %v9561_v47, %v12691_v12  ;;  %v9595_v4 = vsel %vm9563_vm4, %v9562_v32, %v12692_v43 }
 0x586   : > { %v12697_v11 = vunpack.i.h.bf16 %v12695_v30  ;;  %v12696_v25 = vunpack.i.l.bf16 %v12695_v30  ;;  %v12702_v26 = vunpack.i.h.bf16 %v12700_v0  ;;  %v12701_v51 = vunpack.i.l.bf16 %v12700_v0 }
 0x588   : > { %v9625_v48 = vsel %vm9596_vm5, %v9592_v9, %v12696_v25  ;;  %v9626_v22 = vsel %vm9596_vm5, %v9593_v63, %v12697_v11  ;;  %v9627_v49 = vsel %vm9596_vm5, %v9594_v61, %v12701_v51  ;;  %v9628_v45 = vsel %vm9596_vm5, %v9595_v4, %v12702_v26 }
 0x589   : > { %v9643_v17 = vpack.c.bf16 %v9626_v22, %v9625_v48  ;;  %v9644_v3 = vpack.c.bf16 %v9628_v45, %v9627_v49 }
 0x58b   : > { %10610 = vmatprep.mubr.msk.bf16.mxu1 %vm9684_vm11, %v9643_v17 }
 0x58c   : > { %10611 = vmatmul.mubr.msk.bf16.gmra.mrb[52].mxu1 %vm9684_vm11, %v9644_v3 }
 0x5c6   : > { %v10584_v27 = vpop.f32.mrb[24].mxu1 }
 0x5c7   : > { %v9776_v1 = vadd.f32 %v10584_v27, %v19107_v29  ;;  %v9767_v31 = vpop.f32.mrb[25].mxu1 }
 0x5c8   : > { %v9768_v39 = vadd.f32 %v19107_v29, %v9767_v31  ;;  %v10585_v60 = vpop.f32.mrb[26].mxu1 }
 0x5c9   : > { %9896 = vst.msk [vmem:[%s19112_s15 + $0x10] sm:$0xff] %vm2639_vm3, %v9776_v1  ;;  %v9779_v57 = vadd.f32 %v10585_v60, %v19107_v29  ;;  %v9770_v24 = vpop.f32.mrb[27].mxu1 }
 0x5ca   : > { %9894 = vst.msk [vmem:[%s19112_s15] sm:$0xff] %vm2639_vm3, %v9768_v39  ;;  %v9771_v23 = vadd.f32 %v19107_v29, %v9770_v24 }
 0x5cb   : > { %9897 = vst.msk [vmem:[%s19112_s15 + $0x18] sm:$0xff] %vm2639_vm3, %v9779_v57 }
 0x5cc   : > { %9895 = vst.msk [vmem:[%s19112_s15 + $0x8] sm:$0xff] %vm2639_vm3, %v9771_v23 }
 0x5db   : > { %v10588_v44 = vpop.f32.mrb[28].mxu1 }
 0x5dc   : > { %v9792_v35 = vadd.f32 %v10588_v44, %v19107_v29  ;;  %v9783_v52 = vpop.f32.mrb[29].mxu1 }
 0x5dd   : > { %v9784_v18 = vadd.f32 %v19107_v29, %v9783_v52  ;;  %v10589_v28 = vpop.f32.mrb[30].mxu1 }
 0x5de   : > { %9900 = vst.msk [vmem:[%s19112_s15 + $0x30] sm:$0xff] %vm2639_vm3, %v9792_v35  ;;  %v9795_v14 = vadd.f32 %v10589_v28, %v19107_v29  ;;  %v9786_v13 = vpop.f32.mrb[31].mxu1 }
 0x5df   : > { %9898 = vst.msk [vmem:[%s19112_s15 + $0x20] sm:$0xff] %vm2639_vm3, %v9784_v18  ;;  %v9787_v55 = vadd.f32 %v19107_v29, %v9786_v13 }
 0x5e0   : > { %9901 = vst.msk [vmem:[%s19112_s15 + $0x38] sm:$0xff] %vm2639_vm3, %v9795_v14 }
 0x5e1   : > { %9899 = vst.msk [vmem:[%s19112_s15 + $0x28] sm:$0xff] %vm2639_vm3, %v9787_v55 }
 0x5f0   : > { %v10592_v21 = vpop.f32.mrb[32].mxu1 }
 0x5f1   : > { %v9808_v59 = vadd.f32 %v10592_v21, %v19107_v29  ;;  %v9799_v58 = vpop.f32.mrb[33].mxu1 }
 0x5f2   : > { %v9800_v38 = vadd.f32 %v19107_v29, %v9799_v58  ;;  %v10593_v40 = vpop.f32.mrb[34].mxu1 }
 0x5f3   : > { %9904 = vst.msk [vmem:[%s19112_s15 + $0x50] sm:$0xff] %vm2639_vm3, %v9808_v59  ;;  %v9811_v62 = vadd.f32 %v10593_v40, %v19107_v29  ;;  %v9802_v8 = vpop.f32.mrb[35].mxu1 }
 0x5f4   : > { %9902 = vst.msk [vmem:[%s19112_s15 + $0x40] sm:$0xff] %vm2639_vm3, %v9800_v38  ;;  %v9803_v34 = vadd.f32 %v19107_v29, %v9802_v8 }
 0x5f5   : > { %9905 = vst.msk [vmem:[%s19112_s15 + $0x58] sm:$0xff] %vm2639_vm3, %v9811_v62 }
 0x5f6   : > { %9903 = vst.msk [vmem:[%s19112_s15 + $0x48] sm:$0xff] %vm2639_vm3, %v9803_v34 }
 0x604   : > { %v10596_v15 = vpop.f32.mrb[36].mxu1 }
 0x605   : > { %v9824_v53 = vadd.f32 %v10596_v15, %v19107_v29  ;;  %v9815_v50 = vpop.f32.mrb[37].mxu1 }
 0x606   : > { %v9816_v20 = vadd.f32 %v19107_v29, %v9815_v50  ;;  %v10597_v7 = vpop.f32.mrb[38].mxu1 }
 0x607   : > { %9908 = vst.msk [vmem:[%s19112_s15 + $0x70] sm:$0xff] %vm2639_vm3, %v9824_v53  ;;  %v9827_v33 = vadd.f32 %v10597_v7, %v19107_v29  ;;  %v9818_v42 = vpop.f32.mrb[39].mxu1 }
 0x608   : > { %9906 = vst.msk [vmem:[%s19112_s15 + $0x60] sm:$0xff] %vm2639_vm3, %v9816_v20  ;;  %v9819_v16 = vadd.f32 %v19107_v29, %v9818_v42 }
 0x609   : > { %9909 = vst.msk [vmem:[%s19112_s15 + $0x78] sm:$0xff] %vm2639_vm3, %v9827_v33 }
 0x60a   : > { %9907 = vst.msk [vmem:[%s19112_s15 + $0x68] sm:$0xff] %vm2639_vm3, %v9819_v16 }
 0x618   : > { %v10600_v5 = vpop.f32.mrb[40].mxu1 }
 0x619   : > { %v9840_v19 = vadd.f32 %v10600_v5, %v19107_v29  ;;  %v9831_v41 = vpop.f32.mrb[41].mxu1 }
 0x61a   : > { %v9832_v37 = vadd.f32 %v19107_v29, %v9831_v41  ;;  %v10601_v56 = vpop.f32.mrb[42].mxu1 }
 0x61b   : > { %9912 = vst.msk [vmem:[%s19112_s15 + $0x90] sm:$0xff] %vm2639_vm3, %v9840_v19  ;;  %v9843_v6 = vadd.f32 %v10601_v56, %v19107_v29  ;;  %v9834_v54 = vpop.f32.mrb[43].mxu1 }
 0x61c   : > { %9910 = vst.msk [vmem:[%s19112_s15 + $0x80] sm:$0xff] %vm2639_vm3, %v9832_v37  ;;  %v9835_v43 = vadd.f32 %v19107_v29, %v9834_v54 }
 0x61d   : > { %9913 = vst.msk [vmem:[%s19112_s15 + $0x98] sm:$0xff] %vm2639_vm3, %v9843_v6 }
 0x61e   : > { %9911 = vst.msk [vmem:[%s19112_s15 + $0x88] sm:$0xff] %vm2639_vm3, %v9835_v43 }
 0x630   : > { %v10604_v12 = vpop.f32.mrb[44].mxu1 }
 0x631   : > { %v9856_v2 = vadd.f32 %v10604_v12, %v19107_v29  ;;  %v9847_v46 = vpop.f32.mrb[45].mxu1 }
 0x632   : > { %v9848_v10 = vadd.f32 %v19107_v29, %v9847_v46  ;;  %v10605_v36 = vpop.f32.mrb[46].mxu1 }
 0x633   : > { %9916 = vst.msk [vmem:[%s19112_s15 + $0xb0] sm:$0xff] %vm2639_vm3, %v9856_v2  ;;  %v9859_v47 = vadd.f32 %v10605_v36, %v19107_v29  ;;  %v9850_v32 = vpop.f32.mrb[47].mxu1 }
 0x634   : > { %9914 = vst.msk [vmem:[%s19112_s15 + $0xa0] sm:$0xff] %vm2639_vm3, %v9848_v10  ;;  %v9851_v30 = vadd.f32 %v19107_v29, %v9850_v32 }
 0x635   : > { %9917 = vst.msk [vmem:[%s19112_s15 + $0xb8] sm:$0xff] %vm2639_vm3, %v9859_v47 }
 0x636   : > { %9915 = vst.msk [vmem:[%s19112_s15 + $0xa8] sm:$0xff] %vm2639_vm3, %v9851_v30 }
 0x649   : > { %v10608_v0 = vpop.f32.mrb[48].mxu1 }
 0x64a   : > { %v9872_v11 = vadd.f32 %v10608_v0, %v19107_v29  ;;  %v9863_v25 = vpop.f32.mrb[49].mxu1 }
 0x64b   : > { %v9864_v9 = vadd.f32 %v19107_v29, %v9863_v25  ;;  %v10609_v63 = vpop.f32.mrb[50].mxu1 }
 0x64c   : > { %9920 = vst.msk [vmem:[%s19112_s15 + $0xd0] sm:$0xff] %vm2639_vm3, %v9872_v11  ;;  %v9875_v26 = vadd.f32 %v10609_v63, %v19107_v29  ;;  %v9866_v51 = vpop.f32.mrb[51].mxu1 }
 0x64d   : > { %9918 = vst.msk [vmem:[%s19112_s15 + $0xc0] sm:$0xff] %vm2639_vm3, %v9864_v9  ;;  %v9867_v61 = vadd.f32 %v19107_v29, %v9866_v51 }
 0x64e   : > { %9921 = vst.msk [vmem:[%s19112_s15 + $0xd8] sm:$0xff] %vm2639_vm3, %v9875_v26 }
 0x64f   : > { %9919 = vst.msk [vmem:[%s19112_s15 + $0xc8] sm:$0xff] %vm2639_vm3, %v9867_v61 }
 0x65f   : > { %v10612_v4 = vpop.f32.mrb[52].mxu1 }
 0x660   : > { %v9888_v48 = vadd.f32 %v10612_v4, %v19107_v29  ;;  %v9879_v22 = vpop.f32.mrb[53].mxu1 }
 0x661   : > { %v9880_v49 = vadd.f32 %v19107_v29, %v9879_v22  ;;  %v10613_v45 = vpop.f32.mrb[54].mxu1 }
 0x662   : > { %9924 = vst.msk [vmem:[%s19112_s15 + $0xf0] sm:$0xff] %vm2639_vm3, %v9888_v48  ;;  %v9891_v17 = vadd.f32 %v10613_v45, %v19107_v29  ;;  %v9882_v3 = vpop.f32.mrb[55].mxu1 }
 0x663   : > { %9922 = vst.msk [vmem:[%s19112_s15 + $0xe0] sm:$0xff] %vm2639_vm3, %v9880_v49  ;;  %v9883_v27 = vadd.f32 %v19107_v29, %v9882_v3 }
 0x664   : > { %9925 = vst.msk [vmem:[%s19112_s15 + $0xf8] sm:$0xff] %vm2639_vm3, %v9891_v17 }
 0x665   : > { %9923 = vst.msk [vmem:[%s19112_s15 + $0xe8] sm:$0xff] %vm2639_vm3, %v9883_v27 }
 0x666 PF: > { %s15_s20 = sadd.s32 1, %s12772_s20   ;;  %s20445_s18 = smov %s12768_s19 }
 0x667   : > { %p12_p5 = scmp.ge.s32.totalorder %s15_s20, 4   ;;  %s20446_s19 = smov %s20448_s21 }
 0x669   :  { %14 = sbr.rel (!%p12_p5) target bundleno = 2 (0x2), region = 75 }

</bundles_post_ra>
